<compile_context>
chip_gen: v5e
topology: v5e:2x2
jax: 0.10.0
libtpu: 0.0.40
codegen_flags: <defaults>
</compile_context>

<pallas_src>
import functools
import math

import numpy as np
import jax
import jax.numpy as jnp
from jax import lax
from jax.experimental import pallas as pl
from jax.experimental.pallas import tpu as pltpu

_LN_EPS = 1e-5
_INV_SQRT2 = 1.0 / math.sqrt(2.0)
_WDTYPE = jnp.bfloat16          # matmul-operand / activation dtype (MXU peak)


# ----------------------- generation-aware configuration ----------------------

@functools.lru_cache(maxsize=None)
def _tpu_config():
    """VMEM limit & row-tile targets per TPU generation (v5e/v6e: 128 MiB, v7x: 64 MiB)."""
    vmem_cap = 128 * 1024 * 1024
    try:
        info = pltpu.get_tpu_info()
        vmem_cap = int(getattr(info, "vmem_capacity_bytes", vmem_cap))
    except Exception:
        pass
    if vmem_cap >= (96 << 20):                                   # v5e / v6e
        return {"vmem_limit": 96 << 20, "tm": 512, "tm_mlp": 512}
    return {"vmem_limit": 40 << 20, "tm": 256, "tm_mlp": 128}    # v7x (64 MiB)


def _compiler_params():
    return pltpu.CompilerParams(dimension_semantics=("parallel",),
                                vmem_limit_bytes=_tpu_config()["vmem_limit"])


# ----------------------------- small helpers --------------------------------

def _pick_tm(m, target):
    if m >= target:
        return target
    return max(8, -(-m // 8) * 8)


def _pad_rows(x2d, tm):
    m = x2d.shape[0]
    mp = -(-m // tm) * tm
    if mp != m:
        x2d = jnp.pad(x2d, ((0, mp - m), (0, 0)))
    return x2d, mp


def _layernorm_f32(x, gamma, beta):
    xf = x.astype(jnp.float32)
    mu = jnp.mean(xf, axis=-1, keepdims=True)
    var = jnp.mean(jnp.square(xf - mu), axis=-1, keepdims=True)
    return (xf - mu) * jax.lax.rsqrt(var + _LN_EPS) * gamma + beta


def _gelu_exact(x):            # torch nn.GELU default (erf) -- Adapters
    return 0.5 * x * (1.0 + jax.lax.erf(x * _INV_SQRT2))


def _quick_gelu(x):            # CLIP QuickGELU -- MLP
    return x * jax.nn.sigmoid(1.702 * x)


def crack(integer):
    start = int(np.sqrt(integer))
    factor = integer / start
    while factor != int(factor):
        start += 1
        factor = integer / start
    return int(factor), start


# ------------------------- in-kernel fused building blocks -------------------

def _mha_into(o_slab_ref, q, ks, vs, heads, hd, cdt):
    """Multi-head attention; per-head output written into a (Tq, d) f32 VMEM slab.

    ks / vs are lists of (Tk_i, d) key / value slabs sharing ONE softmax over the
    concatenated key axis (order of keys is irrelevant for softmax + PV).
    """
    scale = 1.0 / math.sqrt(hd)
    for h in range(heads):
        sl = slice(h * hd, (h + 1) * hd)
        qh = (q[:, sl].astype(jnp.float32) * scale).astype(cdt)
        ss = [lax.dot_general(qh, k[:, sl], (((1,), (1,)), ((), ())),
                              preferred_element_type=jnp.float32) for k in ks]
        m = ss[0].max(axis=-1, keepdims=True)
        for s in ss[1:]:
            m = jnp.maximum(m, s.max(axis=-1, keepdims=True))
        ps = [jnp.exp(s - m) for s in ss]
        l = ps[0].sum(axis=-1, keepdims=True)
        for pm in ps[1:]:
            l = l + pm.sum(axis=-1, keepdims=True)
        o = jnp.dot(ps[0].astype(cdt), vs[0][:, sl], preferred_element_type=jnp.float32)
        for pm, v in zip(ps[1:], vs[1:]):
            o = o + jnp.dot(pm.astype(cdt), v[:, sl], preferred_element_type=jnp.float32)
        o_slab_ref[:, sl] = o * pl.reciprocal(l, approx=True)


def _out_proj_adapter(o, wo, bo, w1, b1, w2, b2, cdt):
    """out_proj(o) and Adapter(fc1 -> GELU -> fc2) on the projected output.

    Returns (y0, adapter_out) in f32; caller decides on skip / residual.
    """
    y0 = jnp.dot(o, wo, preferred_element_type=jnp.float32) + bo
    h = _gelu_exact(jnp.dot(y0.astype(cdt), w1, preferred_element_type=jnp.float32) + b1)
    a = jnp.dot(h.astype(cdt), w2, preferred_element_type=jnp.float32) + b2
    return y0, a


# ----------------------------- Pallas kernels --------------------------------

def _ln_linear_kernel(x_ref, g_ref, b_ref, w_ref, bias_ref, o_ref):
    """Fused LayerNorm(x) @ W + b (used for the fused QKV projection)."""
    x = x_ref[...]
    xn = _layernorm_f32(x, g_ref[...], b_ref[...]).astype(x.dtype)
    y = jnp.dot(xn, w_ref[...], preferred_element_type=jnp.float32) + bias_ref[...]
    o_ref[...] = y.astype(o_ref.dtype)


def ln_linear(x2d, gamma, beta, wt, bias):
    M, K = x2d.shape
    N = wt.shape[1]
    tm = _pick_tm(M, _tpu_config()["tm"])
    xp, Mp = _pad_rows(x2d, tm)
    out = pl.pallas_call(
        _ln_linear_kernel,
        out_shape=jax.ShapeDtypeStruct((Mp, N), x2d.dtype),
        grid=(Mp // tm,),
        in_specs=[pl.BlockSpec((tm, K), lambda i: (i, 0)),
                  pl.BlockSpec((1, K), lambda i: (0, 0)),
                  pl.BlockSpec((1, K), lambda i: (0, 0)),
                  pl.BlockSpec((K, N), lambda i: (0, 0)),
                  pl.BlockSpec((1, N), lambda i: (0, 0))],
        out_specs=pl.BlockSpec((tm, N), lambda i: (i, 0)),
        compiler_params=_compiler_params(),
    )(xp, gamma.reshape(1, K), beta.reshape(1, K), wt, bias.reshape(1, N))
    return out[:M] if Mp != M else out


def _make_temporal_kernel(heads, d):
    """Whole temporal branch fused: LN1 -> QKV -> MHA(T) -> out_proj -> T_Adapter
    (skip_connect=False) -> LN1 -> K/V projection of the resulting temporal token."""
    hd = d // heads

    def kernel(cls_ref, g_ref, b_ref, wqkv_ref, bqkv_ref, wo_ref, bo_ref,
               w1_ref, b1_ref, w2_ref, b2_ref, o_ref, o_slab):
        x = cls_ref[0]                                           # (T, d) bf16
        cdt = x.dtype
        wqkv = wqkv_ref[...]
        bqkv = bqkv_ref[...]
        xn = _layernorm_f32(x, g_ref[...], b_ref[...]).astype(cdt)
        qkv = (jnp.dot(xn, wqkv, preferred_element_type=jnp.float32) + bqkv).astype(cdt)
        q, k, v = qkv[:, :d], qkv[:, d:2 * d], qkv[:, 2 * d:]
        _mha_into(o_slab, q, [k], [v], heads, hd, cdt)           # (T, d) slab, f32
        o_all = o_slab[...].astype(cdt)
        _, xt = _out_proj_adapter(o_all, wo_ref[...], bo_ref[...],
                                  w1_ref[...], b1_ref[...], w2_ref[...], b2_ref[...], cdt)
        # K/V projection (same LN1 / in_proj) of the inserted temporal token; its own
        # query row is dropped by the reference right after the spatial attention.
        xtn = _layernorm_f32(xt, g_ref[...], b_ref[...]).astype(cdt)
        kv = jnp.dot(xtn, wqkv[:, d:], preferred_element_type=jnp.float32) + bqkv[:, d:]
        o_ref[0] = kv.astype(o_ref.dtype)

    return kernel


def temporal_kv(cls3d, p, heads):
    B, T, d = cls3d.shape
    dh = p["T_fc1_wt"].shape[1]
    return pl.pallas_call(
        _make_temporal_kernel(heads, d),
        out_shape=jax.ShapeDtypeStruct((B, T, 2 * d), cls3d.dtype),
        grid=(B,),
        in_specs=[pl.BlockSpec((1, T, d), lambda i: (i, 0, 0)),
                  pl.BlockSpec((1, d), lambda i: (0, 0)),
                  pl.BlockSpec((1, d), lambda i: (0, 0)),
                  pl.BlockSpec((d, 3 * d), lambda i: (0, 0)),
                  pl.BlockSpec((1, 3 * d), lambda i: (0, 0)),
                  pl.BlockSpec((d, d), lambda i: (0, 0)),
                  pl.BlockSpec((1, d), lambda i: (0, 0)),
                  pl.BlockSpec((d, dh), lambda i: (0, 0)),
                  pl.BlockSpec((1, dh), lambda i: (0, 0)),
                  pl.BlockSpec((dh, d), lambda i: (0, 0)),
                  pl.BlockSpec((1, d), lambda i: (0, 0))],
        out_specs=pl.BlockSpec((1, T, 2 * d), lambda i: (i, 0, 0)),
        scratch_shapes=[pltpu.VMEM((T, d), jnp.float32)],
        compiler_params=_compiler_params(),
    )(cls3d, p["ln1_g"].reshape(1, d), p["ln1_b"].reshape(1, d),
      p["wqkv"], p["bqkv"].reshape(1, 3 * d),
      p["out_proj_wt"], p["out_proj_b"].reshape(1, d),
      p["T_fc1_wt"], p["T_fc1_b"].reshape(1, dh),
      p["T_fc2_wt"], p["T_fc2_b"].reshape(1, d))


def _make_spatial_kernel(heads, d):
    """Spatial cross-attention (keys = own tokens + temporal token + shifted patches)
    fused with out_proj, S_Adapter (skip_connect=True) and the residual add."""
    hd = d // heads

    def kernel(x_ref, qkv_ref, ke_ref, ve_ref, wo_ref, bo_ref,
               w1_ref, b1_ref, w2_ref, b2_ref, o_ref, o_slab):
        x = x_ref[0]                                             # (n, d) bf16
        cdt = x.dtype
        qkv = qkv_ref[0]                                         # (n, 3d)
        q, k1, v1 = qkv[:, :d], qkv[:, d:2 * d], qkv[:, 2 * d:]
        ke, ve = ke_ref[0], ve_ref[0]                            # (L+1, d)
        _mha_into(o_slab, q, [k1, ke], [v1, ve], heads, hd, cdt)
        o_all = o_slab[...].astype(cdt)                          # (n, d)
        y0, a = _out_proj_adapter(o_all, wo_ref[...], bo_ref[...],
                                  w1_ref[...], b1_ref[...], w2_ref[...], b2_ref[...], cdt)
        # residual + S_Adapter skip:  x + (out_proj + adapter(out_proj))
        o_ref[0] = (x.astype(jnp.float32) + y0 + a).astype(o_ref.dtype)

    return kernel


def spatial_attn_block(x, qkv, k_extra, v_extra, p, heads):
    bt, n, d = x.shape
    lk = k_extra.shape[1]
    dh = p["S_fc1_wt"].shape[1]
    return pl.pallas_call(
        _make_spatial_kernel(heads, d),
        out_shape=jax.ShapeDtypeStruct((bt, n, d), x.dtype),
        grid=(bt,),
        in_specs=[pl.BlockSpec((1, n, d), lambda i: (i, 0, 0)),
                  pl.BlockSpec((1, n, 3 * d), lambda i: (i, 0, 0)),
                  pl.BlockSpec((1, lk, d), lambda i: (i, 0, 0)),
                  pl.BlockSpec((1, lk, d), lambda i: (i, 0, 0)),
                  pl.BlockSpec((d, d), lambda i: (0, 0)),
                  pl.BlockSpec((1, d), lambda i: (0, 0)),
                  pl.BlockSpec((d, dh), lambda i: (0, 0)),
                  pl.BlockSpec((1, dh), lambda i: (0, 0)),
                  pl.BlockSpec((dh, d), lambda i: (0, 0)),
                  pl.BlockSpec((1, d), lambda i: (0, 0))],
        out_specs=pl.BlockSpec((1, n, d), lambda i: (i, 0, 0)),
        scratch_shapes=[pltpu.VMEM((n, d), jnp.float32)],
        compiler_params=_compiler_params(),
    )(x, qkv, k_extra, v_extra,
      p["out_proj_wt"], p["out_proj_b"].reshape(1, d),
      p["S_fc1_wt"], p["S_fc1_b"].reshape(1, dh),
      p["S_fc2_wt"], p["S_fc2_b"].reshape(1, d))


def _make_mlp_kernel(adapter_scale):
    """x + mlp(ln_2(x)) + scale * MLP_Adapter(ln_2(x)); the 4d hidden never leaves VMEM."""

    def kernel(x_ref, g_ref, b_ref, wfc_ref, bfc_ref, wpr_ref, bpr_ref,
               wa1_ref, ba1_ref, wa2_ref, ba2_ref, o_ref):
        x = x_ref[...]
        xf = x.astype(jnp.float32)
        xn = _layernorm_f32(x, g_ref[...], b_ref[...]).astype(x.dtype)
        # CLIP MLP: c_fc -> QuickGELU -> c_proj
        h = jnp.dot(xn, wfc_ref[...], preferred_element_type=jnp.float32) + bfc_ref[...]
        h = _quick_gelu(h)
        m = jnp.dot(h.astype(x.dtype), wpr_ref[...],
                    preferred_element_type=jnp.float32) + bpr_ref[...]
        # MLP_Adapter (skip_connect=False): fc1 -> GELU(erf) -> fc2
        ha = _gelu_exact(jnp.dot(xn, wa1_ref[...],
                                 preferred_element_type=jnp.float32) + ba1_ref[...])
        a = jnp.dot(ha.astype(x.dtype), wa2_ref[...],
                    preferred_element_type=jnp.float32) + ba2_ref[...]
        o_ref[...] = (xf + m + adapter_scale * a).astype(o_ref.dtype)

    return kernel


def mlp_block(x2d, p, adapter_scale):
    M, d = x2d.shape
    d_ff = p["c_fc_wt"].shape[1]
    dh = p["M_fc1_wt"].shape[1]
    tm = _pick_tm(M, _tpu_config()["tm_mlp"])
    xp, Mp = _pad_rows(x2d, tm)
    out = pl.pallas_call(
        _make_mlp_kernel(adapter_scale),
        out_shape=jax.ShapeDtypeStruct((Mp, d), x2d.dtype),
        grid=(Mp // tm,),
        in_specs=[pl.BlockSpec((tm, d), lambda i: (i, 0)),
                  pl.BlockSpec((1, d), lambda i: (0, 0)),
                  pl.BlockSpec((1, d), lambda i: (0, 0)),
                  pl.BlockSpec((d, d_ff), lambda i: (0, 0)),
                  pl.BlockSpec((1, d_ff), lambda i: (0, 0)),
                  pl.BlockSpec((d_ff, d), lambda i: (0, 0)),
                  pl.BlockSpec((1, d), lambda i: (0, 0)),
                  pl.BlockSpec((d, dh), lambda i: (0, 0)),
                  pl.BlockSpec((1, dh), lambda i: (0, 0)),
                  pl.BlockSpec((dh, d), lambda i: (0, 0)),
                  pl.BlockSpec((1, d), lambda i: (0, 0))],
        out_specs=pl.BlockSpec((tm, d), lambda i: (i, 0)),
        compiler_params=_compiler_params(),
    )(xp, p["ln2_g"].reshape(1, d), p["ln2_b"].reshape(1, d),
      p["c_fc_wt"], p["c_fc_b"].reshape(1, d_ff),
      p["c_proj_wt"], p["c_proj_b"].reshape(1, d),
      p["M_fc1_wt"], p["M_fc1_b"].reshape(1, dh),
      p["M_fc2_wt"], p["M_fc2_b"].reshape(1, d))
    return out[:M] if Mp != M else out


# ----------------------------- JAX glue ---------------------------------------

@functools.lru_cache(maxsize=None)
def _shift_gather_index(T, H, W):
    # torch.roll(feat, shifts=s, dims=1): out[t] = feat[(t - s) % T]  (PatchShift, inv=False)
    table = {(0, 0): -4, (0, 1): 1, (0, 2): 2,
             (1, 0): -1, (1, 1): 0, (1, 2): 3,
             (2, 0): -2, (2, 1): -3, (2, 2): 4}
    idx = np.zeros((T, H, W), dtype=np.int32)
    for h in range(H):
        for w in range(W):
            s = table[(h % 3, w % 3)]
            for t in range(T):
                idx[t, h, w] = ((t - s) % T) * H * W + h * W + w
    return idx.reshape(T * H * W)


def patch_shift_tokens(z, B, T, H, W):
    """z: (B*T, H*W, c) -> per-(h, w) time-rolled gather (PatchShift, inv=False)."""
    c = z.shape[-1]
    flat_idx = jnp.asarray(_shift_gather_index(T, H, W))
    return jnp.take(z.reshape(B, T * H * W, c), flat_idx, axis=1).reshape(B * T, H * W, c)


def block_forward(x, p, T, heads, scale):
    """One ResidualAttentionBlock (shift=True, ToMe r=0, prop_attn=False, eval DropPath)."""
    bt, n, d = x.shape
    B = bt // T
    L = n - 1
    Hs, Ws = crack(L)

    # --- temporal branch on the class token, fused into ONE kernel.  Only the K/V
    # projection of LN1(inserted temporal token) is needed downstream: that token's
    # query row is dropped by the reference right after the spatial attention, so the
    # two token concats of the reference are eliminated (result is bit-identical).
    cls = x[:, 0, :].reshape(B, T, d)
    kv_t = temporal_kv(cls, p, heads).reshape(bt, 2 * d)                 # (bt, 2d)

    # --- fused LN1 + in_proj (QKV) over the original n tokens (one HBM read of x)
    qkv = ln_linear(x.reshape(bt * n, d), p["ln1_g"], p["ln1_b"],
                    p["wqkv"], p["bqkv"]).reshape(bt, n, 3 * d)

    # --- extra keys/values: temporal token + patch-shifted K/V.  The shift is a pure
    # time gather of the already-projected K/V (LN and in_proj are per-token), so the
    # shifted tokens are never re-normalized/re-projected and no (bt, 2n-1, d)
    # concatenated k_full/v_full is materialized.
    k_shift = patch_shift_tokens(qkv[:, 1:, d:2 * d], B, T, Hs, Ws)
    v_shift = patch_shift_tokens(qkv[:, 1:, 2 * d:], B, T, Hs, Ws)
    k_extra = jnp.concatenate([kv_t[:, None, :d], k_shift], axis=1)      # (bt, L+1, d)
    v_extra = jnp.concatenate([kv_t[:, None, d:], v_shift], axis=1)

    # --- fused spatial cross-attention + out_proj + S_Adapter + residual
    x = spatial_attn_block(x, qkv, k_extra, v_extra, p, heads)           # (bt, n, d)

    # TODO(synk): ToMe bipartite_soft_matching / merge_wavg skipped (_tome_info r=0 -> no-op).

    # --- fused LN2 + MLP (QuickGELU) + scale * MLP_Adapter + residual
    return mlp_block(x.reshape(bt * n, d), p, scale).reshape(bt, n, d)


def transformer_forward(x, params_list, T, heads, scale=1.0):
    x = x.astype(_WDTYPE)
    tome_r = [0] * len(params_list)            # _tome_info['r'] = [0, 0, ...]
    for i, p in enumerate(params_list):
        _ = tome_r[i]                          # popped per layer; 0 -> no merge
        x = block_forward(x, p, T, heads, scale)
    return x


# ----------------------------- parameter init --------------------------------

def init_block_params(key, d):
    ks = jax.random.split(key, 20)
    dh = d // 4

    def w(k, shape, s=0.02):                   # biases / LN params stay f32
        return jax.random.normal(k, shape, jnp.float32) * s

    def wt(k, shape, s=0.02):                  # weights: PyTorch layout -> (in, out), bf16
        return jnp.transpose(w(k, shape, s)).astype(_WDTYPE)

    return {
        "wqkv": wt(ks[0], (3 * d, d)), "bqkv": w(ks[1], (3 * d,)),
        "out_proj_wt": wt(ks[2], (d, d)), "out_proj_b": w(ks[3], (d,)),
        "ln1_g": jnp.ones((d,), jnp.float32), "ln1_b": jnp.zeros((d,), jnp.float32),
        "ln2_g": jnp.ones((d,), jnp.float32), "ln2_b": jnp.zeros((d,), jnp.float32),
        "c_fc_wt": wt(ks[4], (4 * d, d)), "c_fc_b": w(ks[5], (4 * d,)),
        "c_proj_wt": wt(ks[6], (d, 4 * d)), "c_proj_b": w(ks[7], (d,)),
        "T_fc1_wt": wt(ks[8], (dh, d)), "T_fc1_b": w(ks[9], (dh,)),
        "T_fc2_wt": wt(ks[10], (d, dh)), "T_fc2_b": w(ks[11], (d,)),
        "S_fc1_wt": wt(ks[12], (dh, d)), "S_fc1_b": w(ks[13], (dh,)),
        "S_fc2_wt": wt(ks[14], (d, dh)), "S_fc2_b": w(ks[15], (d,)),
        "M_fc1_wt": wt(ks[16], (dh, d)), "M_fc1_b": w(ks[17], (dh,)),
        "M_fc2_wt": wt(ks[18], (d, dh)), "M_fc2_b": w(ks[19], (d,)),
    }


# ----------------------------- main -------------------------------------------

if __name__ == "__main__":
    B, T, d, heads, layers = 2, 8, 32, 4, 2
    H = W = 4
    n = 1 + H * W                      # class token + 4x4 patch tokens
    key = jax.random.PRNGKey(0)
    kx, kp = jax.random.split(key)

    x = jax.random.normal(kx, (B * T, n, d), jnp.float32)   # (bt, n, d)
    params = [init_block_params(jax.random.fold_in(kp, i), d) for i in range(layers)]

    fwd = jax.jit(functools.partial(transformer_forward, T=T, heads=heads, scale=1.0))
    out = jax.block_until_ready(fwd(x, params))

    assert out.shape == (B * T, n, d), out.shape
    assert bool(jnp.all(jnp.isfinite(out.astype(jnp.float32))))
    print("KERNEL_OK")
</pallas_src>

<mosaic_0001>
module attributes {stable_mosaic.version = 11 : i64} {
  func.func @_ln_linear_kernel(%arg0: i32, %arg1: memref<272x32xbf16, #tpu.memory_space<vmem>>, %arg2: memref<1x32xf32, #tpu.memory_space<vmem>>, %arg3: memref<1x32xf32, #tpu.memory_space<vmem>>, %arg4: memref<32x96xbf16, #tpu.memory_space<vmem>>, %arg5: memref<1x96xf32, #tpu.memory_space<vmem>>, %arg6: memref<272x96xbf16, #tpu.memory_space<vmem>>) attributes {dimension_semantics = [#tpu.dimension_semantics<parallel>], iteration_bounds = array<i64: 1>, scalar_prefetch = 0 : i64, scratch_operands = 0 : i64, tpu.core_type = #tpu.core_type<tc>, window_params = [{transform_indices = @transform_0, window_bounds = array<i64: 272, 32>}, {pipeline_mode = #tpu.pipeline_mode<synchronous>, transform_indices = @transform_1, window_bounds = array<i64: 1, 32>}, {pipeline_mode = #tpu.pipeline_mode<synchronous>, transform_indices = @transform_2, window_bounds = array<i64: 1, 32>}, {pipeline_mode = #tpu.pipeline_mode<synchronous>, transform_indices = @transform_3, window_bounds = array<i64: 32, 96>}, {pipeline_mode = #tpu.pipeline_mode<synchronous>, transform_indices = @transform_4, window_bounds = array<i64: 1, 96>}, {transform_indices = @transform_5, window_bounds = array<i64: 272, 96>}]} {
    %c0 = arith.constant 0 : index
    %c0_0 = arith.constant 0 : index
    %0 = vector.load %arg1[%c0, %c0_0] : memref<272x32xbf16, #tpu.memory_space<vmem>>, vector<272x32xbf16>
    %c0_1 = arith.constant 0 : index
    %c0_2 = arith.constant 0 : index
    %1 = vector.load %arg2[%c0_1, %c0_2] : memref<1x32xf32, #tpu.memory_space<vmem>>, vector<1x32xf32>
    %c0_3 = arith.constant 0 : index
    %c0_4 = arith.constant 0 : index
    %2 = vector.load %arg3[%c0_3, %c0_4] : memref<1x32xf32, #tpu.memory_space<vmem>>, vector<1x32xf32>
    %3 = arith.extf %0 : vector<272x32xbf16> to vector<272x32xf32>
    %cst = arith.constant dense<0.000000e+00> : vector<272xf32>
    %4 = vector.multi_reduction <add>, %3, %cst [1] : vector<272x32xf32> to vector<272xf32>
    %5 = vector.shape_cast %4 : vector<272xf32> to vector<272x1xf32>
    %cst_5 = arith.constant 3.200000e+01 : f32
    %6 = vector.broadcast %cst_5 : f32 to vector<272x1xf32>
    %7 = arith.divf %5, %6 : vector<272x1xf32>
    %8 = vector.broadcast %7 : vector<272x1xf32> to vector<272x32xf32>
    %9 = arith.subf %3, %8 : vector<272x32xf32>
    %10 = arith.mulf %9, %9 : vector<272x32xf32>
    %cst_6 = arith.constant dense<0.000000e+00> : vector<272xf32>
    %11 = vector.multi_reduction <add>, %10, %cst_6 [1] : vector<272x32xf32> to vector<272xf32>
    %12 = vector.shape_cast %11 : vector<272xf32> to vector<272x1xf32>
    %cst_7 = arith.constant 3.200000e+01 : f32
    %13 = vector.broadcast %cst_7 : f32 to vector<272x1xf32>
    %14 = arith.divf %12, %13 : vector<272x1xf32>
    %15 = vector.broadcast %7 : vector<272x1xf32> to vector<272x32xf32>
    %16 = arith.subf %3, %15 : vector<272x32xf32>
    %cst_8 = arith.constant 9.99999974E-6 : f32
    %17 = vector.broadcast %cst_8 : f32 to vector<272x1xf32>
    %18 = arith.addf %14, %17 : vector<272x1xf32>
    %19 = math.rsqrt %18 : vector<272x1xf32>
    %20 = vector.broadcast %19 : vector<272x1xf32> to vector<272x32xf32>
    %21 = arith.mulf %16, %20 : vector<272x32xf32>
    %22 = vector.broadcast %1 : vector<1x32xf32> to vector<272x32xf32>
    %23 = arith.mulf %21, %22 : vector<272x32xf32>
    %24 = vector.broadcast %2 : vector<1x32xf32> to vector<272x32xf32>
    %25 = arith.addf %23, %24 : vector<272x32xf32>
    %26 = arith.truncf %25 : vector<272x32xf32> to vector<272x32xbf16>
    %c0_9 = arith.constant 0 : index
    %c0_10 = arith.constant 0 : index
    %27 = vector.load %arg4[%c0_9, %c0_10] : memref<32x96xbf16, #tpu.memory_space<vmem>>, vector<32x96xbf16>
    %cst_11 = arith.constant dense<0.000000e+00> : vector<272x96xf32>
    %28 = tpu.matmul %26, %27, %cst_11 {dimension_numbers = #tpu.dot_dimension_numbers<[1], [0], [0], [1], [0, 0, 1, 1], [], []>} : vector<272x32xbf16>, vector<32x96xbf16>, vector<272x96xf32> -> vector<272x96xf32>
    %c0_12 = arith.constant 0 : index
    %c0_13 = arith.constant 0 : index
    %29 = vector.load %arg5[%c0_12, %c0_13] : memref<1x96xf32, #tpu.memory_space<vmem>>, vector<1x96xf32>
    %30 = vector.broadcast %29 : vector<1x96xf32> to vector<272x96xf32>
    %31 = arith.addf %28, %30 : vector<272x96xf32>
    %32 = arith.truncf %31 : vector<272x96xf32> to vector<272x96xbf16>
    %c0_14 = arith.constant 0 : index
    %c0_15 = arith.constant 0 : index
    %33 = vector.load %arg6[%c0_14, %c0_15] : memref<272x96xbf16, #tpu.memory_space<vmem>>, vector<272x96xbf16>
    tpu.vector_store %arg6[%c0_14, %c0_15], %32 {strides = array<i32>} : memref<272x96xbf16, #tpu.memory_space<vmem>>, vector<272x96xbf16>,
    return
  }
  func.func @transform_0(%arg0: i32) -> (i32, i32) {
    %c0_i32 = arith.constant 0 : i32
    %c0_i32_0 = arith.constant 0 : i32
    return %arg0, %c0_i32 : i32, i32
  }
  func.func @transform_1(%arg0: i32) -> (i32, i32) {
    %c0_i32 = arith.constant 0 : i32
    %c0_i32_0 = arith.constant 0 : i32
    %c0_i32_1 = arith.constant 0 : i32
    return %c0_i32, %c0_i32_0 : i32, i32
  }
  func.func @transform_2(%arg0: i32) -> (i32, i32) {
    %c0_i32 = arith.constant 0 : i32
    %c0_i32_0 = arith.constant 0 : i32
    %c0_i32_1 = arith.constant 0 : i32
    return %c0_i32, %c0_i32_0 : i32, i32
  }
  func.func @transform_3(%arg0: i32) -> (i32, i32) {
    %c0_i32 = arith.constant 0 : i32
    %c0_i32_0 = arith.constant 0 : i32
    %c0_i32_1 = arith.constant 0 : i32
    return %c0_i32, %c0_i32_0 : i32, i32
  }
  func.func @transform_4(%arg0: i32) -> (i32, i32) {
    %c0_i32 = arith.constant 0 : i32
    %c0_i32_0 = arith.constant 0 : i32
    %c0_i32_1 = arith.constant 0 : i32
    return %c0_i32, %c0_i32_0 : i32, i32
  }
  func.func @transform_5(%arg0: i32) -> (i32, i32) {
    %c0_i32 = arith.constant 0 : i32
    %c0_i32_0 = arith.constant 0 : i32
    return %arg0, %c0_i32 : i32, i32
  }
}

module attributes {stable_mosaic.version = 11 : i64} {
  func.func @kernel(%arg0: i32, %arg1: memref<1x8x32xbf16, #tpu.memory_space<vmem>>, %arg2: memref<1x32xf32, #tpu.memory_space<vmem>>, %arg3: memref<1x32xf32, #tpu.memory_space<vmem>>, %arg4: memref<32x96xbf16, #tpu.memory_space<vmem>>, %arg5: memref<1x96xf32, #tpu.memory_space<vmem>>, %arg6: memref<32x32xbf16, #tpu.memory_space<vmem>>, %arg7: memref<1x32xf32, #tpu.memory_space<vmem>>, %arg8: memref<32x8xbf16, #tpu.memory_space<vmem>>, %arg9: memref<1x8xf32, #tpu.memory_space<vmem>>, %arg10: memref<8x32xbf16, #tpu.memory_space<vmem>>, %arg11: memref<1x32xf32, #tpu.memory_space<vmem>>, %arg12: memref<1x8x64xbf16, #tpu.memory_space<vmem>>, %arg13: memref<8x32xf32, #tpu.memory_space<vmem>>) attributes {dimension_semantics = [#tpu.dimension_semantics<parallel>], iteration_bounds = array<i64: 2>, scalar_prefetch = 0 : i64, scratch_operands = 1 : i64, tpu.core_type = #tpu.core_type<tc>, window_params = [{transform_indices = @transform_0, window_bounds = array<i64: 1, 8, 32>}, {pipeline_mode = #tpu.pipeline_mode<synchronous>, transform_indices = @transform_1, window_bounds = array<i64: 1, 32>}, {pipeline_mode = #tpu.pipeline_mode<synchronous>, transform_indices = @transform_2, window_bounds = array<i64: 1, 32>}, {pipeline_mode = #tpu.pipeline_mode<synchronous>, transform_indices = @transform_3, window_bounds = array<i64: 32, 96>}, {pipeline_mode = #tpu.pipeline_mode<synchronous>, transform_indices = @transform_4, window_bounds = array<i64: 1, 96>}, {pipeline_mode = #tpu.pipeline_mode<synchronous>, transform_indices = @transform_5, window_bounds = array<i64: 32, 32>}, {pipeline_mode = #tpu.pipeline_mode<synchronous>, transform_indices = @transform_6, window_bounds = array<i64: 1, 32>}, {pipeline_mode = #tpu.pipeline_mode<synchronous>, transform_indices = @transform_7, window_bounds = array<i64: 32, 8>}, {pipeline_mode = #tpu.pipeline_mode<synchronous>, transform_indices = @transform_8, window_bounds = array<i64: 1, 8>}, {pipeline_mode = #tpu.pipeline_mode<synchronous>, transform_indices = @transform_9, window_bounds = array<i64: 8, 32>}, {pipeline_mode = #tpu.pipeline_mode<synchronous>, transform_indices = @transform_10, window_bounds = array<i64: 1, 32>}, {transform_indices = @transform_11, window_bounds = array<i64: 1, 8, 64>}]} {
    %c0 = arith.constant 0 : index
    %c0_0 = arith.constant 0 : index
    %c0_1 = arith.constant 0 : index
    %0 = vector.load %arg1[%c0, %c0_0, %c0_1] : memref<1x8x32xbf16, #tpu.memory_space<vmem>>, vector<1x8x32xbf16>
    %1 = vector.shape_cast %0 : vector<1x8x32xbf16> to vector<8x32xbf16>
    %c0_2 = arith.constant 0 : index
    %c0_3 = arith.constant 0 : index
    %2 = vector.load %arg4[%c0_2, %c0_3] : memref<32x96xbf16, #tpu.memory_space<vmem>>, vector<32x96xbf16>
    %c0_4 = arith.constant 0 : index
    %c0_5 = arith.constant 0 : index
    %3 = vector.load %arg5[%c0_4, %c0_5] : memref<1x96xf32, #tpu.memory_space<vmem>>, vector<1x96xf32>
    %c0_6 = arith.constant 0 : index
    %c0_7 = arith.constant 0 : index
    %4 = vector.load %arg2[%c0_6, %c0_7] : memref<1x32xf32, #tpu.memory_space<vmem>>, vector<1x32xf32>
    %c0_8 = arith.constant 0 : index
    %c0_9 = arith.constant 0 : index
    %5 = vector.load %arg3[%c0_8, %c0_9] : memref<1x32xf32, #tpu.memory_space<vmem>>, vector<1x32xf32>
    %6 = arith.extf %1 : vector<8x32xbf16> to vector<8x32xf32>
    %cst = arith.constant dense<0.000000e+00> : vector<8xf32>
    %7 = vector.multi_reduction <add>, %6, %cst [1] : vector<8x32xf32> to vector<8xf32>
    %8 = vector.shape_cast %7 : vector<8xf32> to vector<8x1xf32>
    %cst_10 = arith.constant 3.200000e+01 : f32
    %9 = vector.broadcast %cst_10 : f32 to vector<8x1xf32>
    %10 = arith.divf %8, %9 : vector<8x1xf32>
    %11 = vector.broadcast %10 : vector<8x1xf32> to vector<8x32xf32>
    %12 = arith.subf %6, %11 : vector<8x32xf32>
    %13 = arith.mulf %12, %12 : vector<8x32xf32>
    %cst_11 = arith.constant dense<0.000000e+00> : vector<8xf32>
    %14 = vector.multi_reduction <add>, %13, %cst_11 [1] : vector<8x32xf32> to vector<8xf32>
    %15 = vector.shape_cast %14 : vector<8xf32> to vector<8x1xf32>
    %cst_12 = arith.constant 3.200000e+01 : f32
    %16 = vector.broadcast %cst_12 : f32 to vector<8x1xf32>
    %17 = arith.divf %15, %16 : vector<8x1xf32>
    %18 = vector.broadcast %10 : vector<8x1xf32> to vector<8x32xf32>
    %19 = arith.subf %6, %18 : vector<8x32xf32>
    %cst_13 = arith.constant 9.99999974E-6 : f32
    %20 = vector.broadcast %cst_13 : f32 to vector<8x1xf32>
    %21 = arith.addf %17, %20 : vector<8x1xf32>
    %22 = math.rsqrt %21 : vector<8x1xf32>
    %23 = vector.broadcast %22 : vector<8x1xf32> to vector<8x32xf32>
    %24 = arith.mulf %19, %23 : vector<8x32xf32>
    %25 = vector.broadcast %4 : vector<1x32xf32> to vector<8x32xf32>
    %26 = arith.mulf %24, %25 : vector<8x32xf32>
    %27 = vector.broadcast %5 : vector<1x32xf32> to vector<8x32xf32>
    %28 = arith.addf %26, %27 : vector<8x32xf32>
    %29 = arith.truncf %28 : vector<8x32xf32> to vector<8x32xbf16>
    %cst_14 = arith.constant dense<0.000000e+00> : vector<8x96xf32>
    %30 = tpu.matmul %29, %2, %cst_14 {dimension_numbers = #tpu.dot_dimension_numbers<[1], [0], [0], [1], [0, 0, 1, 1], [], []>} : vector<8x32xbf16>, vector<32x96xbf16>, vector<8x96xf32> -> vector<8x96xf32>
    %31 = vector.broadcast %3 : vector<1x96xf32> to vector<8x96xf32>
    %32 = arith.addf %30, %31 : vector<8x96xf32>
    %33 = arith.truncf %32 : vector<8x96xf32> to vector<8x96xbf16>
    %34 = vector.extract_strided_slice %33 {offsets = [0, 0], sizes = [8, 32], strides = [1, 1]} : vector<8x96xbf16> to vector<8x32xbf16>
    %35 = vector.extract_strided_slice %33 {offsets = [0, 32], sizes = [8, 32], strides = [1, 1]} : vector<8x96xbf16> to vector<8x32xbf16>
    %36 = vector.extract_strided_slice %33 {offsets = [0, 64], sizes = [8, 32], strides = [1, 1]} : vector<8x96xbf16> to vector<8x32xbf16>
    %37 = vector.extract_strided_slice %34 {offsets = [0, 0], sizes = [8, 8], strides = [1, 1]} : vector<8x32xbf16> to vector<8x8xbf16>
    %38 = arith.extf %37 : vector<8x8xbf16> to vector<8x8xf32>
    %cst_15 = arith.constant 0.353553385 : f32
    %39 = vector.broadcast %cst_15 : f32 to vector<8x8xf32>
    %40 = arith.mulf %38, %39 : vector<8x8xf32>
    %41 = arith.truncf %40 : vector<8x8xf32> to vector<8x8xbf16>
    %42 = vector.extract_strided_slice %35 {offsets = [0, 0], sizes = [8, 8], strides = [1, 1]} : vector<8x32xbf16> to vector<8x8xbf16>
    %cst_16 = arith.constant dense<0.000000e+00> : vector<8x8xf32>
    %43 = tpu.matmul %41, %42, %cst_16 {dimension_numbers = #tpu.dot_dimension_numbers<[1], [1], [0], [0], [0, 0, 1, 0], [], []>} : vector<8x8xbf16>, vector<8x8xbf16>, vector<8x8xf32> -> vector<8x8xf32>
    %cst_17 = arith.constant dense<0xFF800000> : vector<8xf32>
    %44 = vector.multi_reduction <maximumf>, %43, %cst_17 [1] : vector<8x8xf32> to vector<8xf32>
    %45 = vector.shape_cast %44 : vector<8xf32> to vector<8x1xf32>
    %46 = vector.broadcast %45 : vector<8x1xf32> to vector<8x8xf32>
    %47 = arith.subf %43, %46 : vector<8x8xf32>
    %48 = math.exp %47 : vector<8x8xf32>
    %cst_18 = arith.constant dense<0.000000e+00> : vector<8xf32>
    %49 = vector.multi_reduction <add>, %48, %cst_18 [1] : vector<8x8xf32> to vector<8xf32>
    %50 = vector.shape_cast %49 : vector<8xf32> to vector<8x1xf32>
    %51 = arith.truncf %48 : vector<8x8xf32> to vector<8x8xbf16>
    %52 = vector.extract_strided_slice %36 {offsets = [0, 0], sizes = [8, 8], strides = [1, 1]} : vector<8x32xbf16> to vector<8x8xbf16>
    %cst_19 = arith.constant dense<0.000000e+00> : vector<8x8xf32>
    %53 = tpu.matmul %51, %52, %cst_19 {dimension_numbers = #tpu.dot_dimension_numbers<[1], [0], [0], [1], [0, 0, 1, 1], [], []>} : vector<8x8xbf16>, vector<8x8xbf16>, vector<8x8xf32> -> vector<8x8xf32>
    %54 = tpu.reciprocal %50 {approx = true} : vector<8x1xf32> -> vector<8x1xf32>
    %55 = vector.broadcast %54 : vector<8x1xf32> to vector<8x8xf32>
    %56 = arith.mulf %53, %55 : vector<8x8xf32>
    %c0_20 = arith.constant 0 : index
    %c0_21 = arith.constant 0 : index
    %57 = vector.load %arg13[%c0_20, %c0_21] : memref<8x32xf32, #tpu.memory_space<vmem>>, vector<8x8xf32>
    tpu.vector_store %arg13[%c0_20, %c0_21], %56 {strides = array<i32>} : memref<8x32xf32, #tpu.memory_space<vmem>>, vector<8x8xf32>,
    %58 = vector.extract_strided_slice %34 {offsets = [0, 8], sizes = [8, 8], strides = [1, 1]} : vector<8x32xbf16> to vector<8x8xbf16>
    %59 = arith.extf %58 : vector<8x8xbf16> to vector<8x8xf32>
    %cst_22 = arith.constant 0.353553385 : f32
    %60 = vector.broadcast %cst_22 : f32 to vector<8x8xf32>
    %61 = arith.mulf %59, %60 : vector<8x8xf32>
    %62 = arith.truncf %61 : vector<8x8xf32> to vector<8x8xbf16>
    %63 = vector.extract_strided_slice %35 {offsets = [0, 8], sizes = [8, 8], strides = [1, 1]} : vector<8x32xbf16> to vector<8x8xbf16>
    %cst_23 = arith.constant dense<0.000000e+00> : vector<8x8xf32>
    %64 = tpu.matmul %62, %63, %cst_23 {dimension_numbers = #tpu.dot_dimension_numbers<[1], [1], [0], [0], [0, 0, 1, 0], [], []>} : vector<8x8xbf16>, vector<8x8xbf16>, vector<8x8xf32> -> vector<8x8xf32>
    %cst_24 = arith.constant dense<0xFF800000> : vector<8xf32>
    %65 = vector.multi_reduction <maximumf>, %64, %cst_24 [1] : vector<8x8xf32> to vector<8xf32>
    %66 = vector.shape_cast %65 : vector<8xf32> to vector<8x1xf32>
    %67 = vector.broadcast %66 : vector<8x1xf32> to vector<8x8xf32>
    %68 = arith.subf %64, %67 : vector<8x8xf32>
    %69 = math.exp %68 : vector<8x8xf32>
    %cst_25 = arith.constant dense<0.000000e+00> : vector<8xf32>
    %70 = vector.multi_reduction <add>, %69, %cst_25 [1] : vector<8x8xf32> to vector<8xf32>
    %71 = vector.shape_cast %70 : vector<8xf32> to vector<8x1xf32>
    %72 = arith.truncf %69 : vector<8x8xf32> to vector<8x8xbf16>
    %73 = vector.extract_strided_slice %36 {offsets = [0, 8], sizes = [8, 8], strides = [1, 1]} : vector<8x32xbf16> to vector<8x8xbf16>
    %cst_26 = arith.constant dense<0.000000e+00> : vector<8x8xf32>
    %74 = tpu.matmul %72, %73, %cst_26 {dimension_numbers = #tpu.dot_dimension_numbers<[1], [0], [0], [1], [0, 0, 1, 1], [], []>} : vector<8x8xbf16>, vector<8x8xbf16>, vector<8x8xf32> -> vector<8x8xf32>
    %75 = tpu.reciprocal %71 {approx = true} : vector<8x1xf32> -> vector<8x1xf32>
    %76 = vector.broadcast %75 : vector<8x1xf32> to vector<8x8xf32>
    %77 = arith.mulf %74, %76 : vector<8x8xf32>
    %c0_27 = arith.constant 0 : index
    %c8 = arith.constant 8 : index
    %78 = vector.load %arg13[%c0_27, %c8] : memref<8x32xf32, #tpu.memory_space<vmem>>, vector<8x8xf32>
    tpu.vector_store %arg13[%c0_27, %c8], %77 {strides = array<i32>} : memref<8x32xf32, #tpu.memory_space<vmem>>, vector<8x8xf32>,
    %79 = vector.extract_strided_slice %34 {offsets = [0, 16], sizes = [8, 8], strides = [1, 1]} : vector<8x32xbf16> to vector<8x8xbf16>
    %80 = arith.extf %79 : vector<8x8xbf16> to vector<8x8xf32>
    %cst_28 = arith.constant 0.353553385 : f32
    %81 = vector.broadcast %cst_28 : f32 to vector<8x8xf32>
    %82 = arith.mulf %80, %81 : vector<8x8xf32>
    %83 = arith.truncf %82 : vector<8x8xf32> to vector<8x8xbf16>
    %84 = vector.extract_strided_slice %35 {offsets = [0, 16], sizes = [8, 8], strides = [1, 1]} : vector<8x32xbf16> to vector<8x8xbf16>
    %cst_29 = arith.constant dense<0.000000e+00> : vector<8x8xf32>
    %85 = tpu.matmul %83, %84, %cst_29 {dimension_numbers = #tpu.dot_dimension_numbers<[1], [1], [0], [0], [0, 0, 1, 0], [], []>} : vector<8x8xbf16>, vector<8x8xbf16>, vector<8x8xf32> -> vector<8x8xf32>
    %cst_30 = arith.constant dense<0xFF800000> : vector<8xf32>
    %86 = vector.multi_reduction <maximumf>, %85, %cst_30 [1] : vector<8x8xf32> to vector<8xf32>
    %87 = vector.shape_cast %86 : vector<8xf32> to vector<8x1xf32>
    %88 = vector.broadcast %87 : vector<8x1xf32> to vector<8x8xf32>
    %89 = arith.subf %85, %88 : vector<8x8xf32>
    %90 = math.exp %89 : vector<8x8xf32>
    %cst_31 = arith.constant dense<0.000000e+00> : vector<8xf32>
    %91 = vector.multi_reduction <add>, %90, %cst_31 [1] : vector<8x8xf32> to vector<8xf32>
    %92 = vector.shape_cast %91 : vector<8xf32> to vector<8x1xf32>
    %93 = arith.truncf %90 : vector<8x8xf32> to vector<8x8xbf16>
    %94 = vector.extract_strided_slice %36 {offsets = [0, 16], sizes = [8, 8], strides = [1, 1]} : vector<8x32xbf16> to vector<8x8xbf16>
    %cst_32 = arith.constant dense<0.000000e+00> : vector<8x8xf32>
    %95 = tpu.matmul %93, %94, %cst_32 {dimension_numbers = #tpu.dot_dimension_numbers<[1], [0], [0], [1], [0, 0, 1, 1], [], []>} : vector<8x8xbf16>, vector<8x8xbf16>, vector<8x8xf32> -> vector<8x8xf32>
    %96 = tpu.reciprocal %92 {approx = true} : vector<8x1xf32> -> vector<8x1xf32>
    %97 = vector.broadcast %96 : vector<8x1xf32> to vector<8x8xf32>
    %98 = arith.mulf %95, %97 : vector<8x8xf32>
    %c0_33 = arith.constant 0 : index
    %c16 = arith.constant 16 : index
    %99 = vector.load %arg13[%c0_33, %c16] : memref<8x32xf32, #tpu.memory_space<vmem>>, vector<8x8xf32>
    tpu.vector_store %arg13[%c0_33, %c16], %98 {strides = array<i32>} : memref<8x32xf32, #tpu.memory_space<vmem>>, vector<8x8xf32>,
    %100 = vector.extract_strided_slice %34 {offsets = [0, 24], sizes = [8, 8], strides = [1, 1]} : vector<8x32xbf16> to vector<8x8xbf16>
    %101 = arith.extf %100 : vector<8x8xbf16> to vector<8x8xf32>
    %cst_34 = arith.constant 0.353553385 : f32
    %102 = vector.broadcast %cst_34 : f32 to vector<8x8xf32>
    %103 = arith.mulf %101, %102 : vector<8x8xf32>
    %104 = arith.truncf %103 : vector<8x8xf32> to vector<8x8xbf16>
    %105 = vector.extract_strided_slice %35 {offsets = [0, 24], sizes = [8, 8], strides = [1, 1]} : vector<8x32xbf16> to vector<8x8xbf16>
    %cst_35 = arith.constant dense<0.000000e+00> : vector<8x8xf32>
    %106 = tpu.matmul %104, %105, %cst_35 {dimension_numbers = #tpu.dot_dimension_numbers<[1], [1], [0], [0], [0, 0, 1, 0], [], []>} : vector<8x8xbf16>, vector<8x8xbf16>, vector<8x8xf32> -> vector<8x8xf32>
    %cst_36 = arith.constant dense<0xFF800000> : vector<8xf32>
    %107 = vector.multi_reduction <maximumf>, %106, %cst_36 [1] : vector<8x8xf32> to vector<8xf32>
    %108 = vector.shape_cast %107 : vector<8xf32> to vector<8x1xf32>
    %109 = vector.broadcast %108 : vector<8x1xf32> to vector<8x8xf32>
    %110 = arith.subf %106, %109 : vector<8x8xf32>
    %111 = math.exp %110 : vector<8x8xf32>
    %cst_37 = arith.constant dense<0.000000e+00> : vector<8xf32>
    %112 = vector.multi_reduction <add>, %111, %cst_37 [1] : vector<8x8xf32> to vector<8xf32>
    %113 = vector.shape_cast %112 : vector<8xf32> to vector<8x1xf32>
    %114 = arith.truncf %111 : vector<8x8xf32> to vector<8x8xbf16>
    %115 = vector.extract_strided_slice %36 {offsets = [0, 24], sizes = [8, 8], strides = [1, 1]} : vector<8x32xbf16> to vector<8x8xbf16>
    %cst_38 = arith.constant dense<0.000000e+00> : vector<8x8xf32>
    %116 = tpu.matmul %114, %115, %cst_38 {dimension_numbers = #tpu.dot_dimension_numbers<[1], [0], [0], [1], [0, 0, 1, 1], [], []>} : vector<8x8xbf16>, vector<8x8xbf16>, vector<8x8xf32> -> vector<8x8xf32>
    %117 = tpu.reciprocal %113 {approx = true} : vector<8x1xf32> -> vector<8x1xf32>
    %118 = vector.broadcast %117 : vector<8x1xf32> to vector<8x8xf32>
    %119 = arith.mulf %116, %118 : vector<8x8xf32>
    %c0_39 = arith.constant 0 : index
    %c24 = arith.constant 24 : index
    %120 = vector.load %arg13[%c0_39, %c24] : memref<8x32xf32, #tpu.memory_space<vmem>>, vector<8x8xf32>
    tpu.vector_store %arg13[%c0_39, %c24], %119 {strides = array<i32>} : memref<8x32xf32, #tpu.memory_space<vmem>>, vector<8x8xf32>,
    %c0_40 = arith.constant 0 : index
    %c0_41 = arith.constant 0 : index
    %121 = vector.load %arg13[%c0_40, %c0_41] : memref<8x32xf32, #tpu.memory_space<vmem>>, vector<8x32xf32>
    %122 = arith.truncf %121 : vector<8x32xf32> to vector<8x32xbf16>
    %c0_42 = arith.constant 0 : index
    %c0_43 = arith.constant 0 : index
    %123 = vector.load %arg6[%c0_42, %c0_43] : memref<32x32xbf16, #tpu.memory_space<vmem>>, vector<32x32xbf16>
    %c0_44 = arith.constant 0 : index
    %c0_45 = arith.constant 0 : index
    %124 = vector.load %arg7[%c0_44, %c0_45] : memref<1x32xf32, #tpu.memory_space<vmem>>, vector<1x32xf32>
    %c0_46 = arith.constant 0 : index
    %c0_47 = arith.constant 0 : index
    %125 = vector.load %arg8[%c0_46, %c0_47] : memref<32x8xbf16, #tpu.memory_space<vmem>>, vector<32x8xbf16>
    %c0_48 = arith.constant 0 : index
    %c0_49 = arith.constant 0 : index
    %126 = vector.load %arg9[%c0_48, %c0_49] : memref<1x8xf32, #tpu.memory_space<vmem>>, vector<1x8xf32>
    %c0_50 = arith.constant 0 : index
    %c0_51 = arith.constant 0 : index
    %127 = vector.load %arg10[%c0_50, %c0_51] : memref<8x32xbf16, #tpu.memory_space<vmem>>, vector<8x32xbf16>
    %c0_52 = arith.constant 0 : index
    %c0_53 = arith.constant 0 : index
    %128 = vector.load %arg11[%c0_52, %c0_53] : memref<1x32xf32, #tpu.memory_space<vmem>>, vector<1x32xf32>
    %cst_54 = arith.constant dense<0.000000e+00> : vector<8x32xf32>
    %129 = tpu.matmul %122, %123, %cst_54 {dimension_numbers = #tpu.dot_dimension_numbers<[1], [0], [0], [1], [0, 0, 1, 1], [], []>} : vector<8x32xbf16>, vector<32x32xbf16>, vector<8x32xf32> -> vector<8x32xf32>
    %130 = vector.broadcast %124 : vector<1x32xf32> to vector<8x32xf32>
    %131 = arith.addf %129, %130 : vector<8x32xf32>
    %132 = arith.truncf %131 : vector<8x32xf32> to vector<8x32xbf16>
    %cst_55 = arith.constant dense<0.000000e+00> : vector<8x8xf32>
    %133 = tpu.matmul %132, %125, %cst_55 {dimension_numbers = #tpu.dot_dimension_numbers<[1], [0], [0], [1], [0, 0, 1, 1], [], []>} : vector<8x32xbf16>, vector<32x8xbf16>, vector<8x8xf32> -> vector<8x8xf32>
    %134 = vector.broadcast %126 : vector<1x8xf32> to vector<8x8xf32>
    %135 = arith.addf %133, %134 : vector<8x8xf32>
    %cst_56 = arith.constant 5.000000e-01 : f32
    %136 = vector.broadcast %cst_56 : f32 to vector<8x8xf32>
    %137 = arith.mulf %136, %135 : vector<8x8xf32>
    %cst_57 = arith.constant 0.707106769 : f32
    %138 = vector.broadcast %cst_57 : f32 to vector<8x8xf32>
    %139 = arith.mulf %135, %138 : vector<8x8xf32>
    %140 = math.erf %139 : vector<8x8xf32>
    %cst_58 = arith.constant 1.000000e+00 : f32
    %141 = vector.broadcast %cst_58 : f32 to vector<8x8xf32>
    %142 = arith.addf %141, %140 : vector<8x8xf32>
    %143 = arith.mulf %137, %142 : vector<8x8xf32>
    %144 = arith.truncf %143 : vector<8x8xf32> to vector<8x8xbf16>
    %cst_59 = arith.constant dense<0.000000e+00> : vector<8x32xf32>
    %145 = tpu.matmul %144, %127, %cst_59 {dimension_numbers = #tpu.dot_dimension_numbers<[1], [0], [0], [1], [0, 0, 1, 1], [], []>} : vector<8x8xbf16>, vector<8x32xbf16>, vector<8x32xf32> -> vector<8x32xf32>
    %146 = vector.broadcast %128 : vector<1x32xf32> to vector<8x32xf32>
    %147 = arith.addf %145, %146 : vector<8x32xf32>
    %c0_60 = arith.constant 0 : index
    %c0_61 = arith.constant 0 : index
    %148 = vector.load %arg2[%c0_60, %c0_61] : memref<1x32xf32, #tpu.memory_space<vmem>>, vector<1x32xf32>
    %c0_62 = arith.constant 0 : index
    %c0_63 = arith.constant 0 : index
    %149 = vector.load %arg3[%c0_62, %c0_63] : memref<1x32xf32, #tpu.memory_space<vmem>>, vector<1x32xf32>
    %cst_64 = arith.constant dense<0.000000e+00> : vector<8xf32>
    %150 = vector.multi_reduction <add>, %147, %cst_64 [1] : vector<8x32xf32> to vector<8xf32>
    %151 = vector.shape_cast %150 : vector<8xf32> to vector<8x1xf32>
    %cst_65 = arith.constant 3.200000e+01 : f32
    %152 = vector.broadcast %cst_65 : f32 to vector<8x1xf32>
    %153 = arith.divf %151, %152 : vector<8x1xf32>
    %154 = vector.broadcast %153 : vector<8x1xf32> to vector<8x32xf32>
    %155 = arith.subf %147, %154 : vector<8x32xf32>
    %156 = arith.mulf %155, %155 : vector<8x32xf32>
    %cst_66 = arith.constant dense<0.000000e+00> : vector<8xf32>
    %157 = vector.multi_reduction <add>, %156, %cst_66 [1] : vector<8x32xf32> to vector<8xf32>
    %158 = vector.shape_cast %157 : vector<8xf32> to vector<8x1xf32>
    %cst_67 = arith.constant 3.200000e+01 : f32
    %159 = vector.broadcast %cst_67 : f32 to vector<8x1xf32>
    %160 = arith.divf %158, %159 : vector<8x1xf32>
    %161 = vector.broadcast %153 : vector<8x1xf32> to vector<8x32xf32>
    %162 = arith.subf %147, %161 : vector<8x32xf32>
    %cst_68 = arith.constant 9.99999974E-6 : f32
    %163 = vector.broadcast %cst_68 : f32 to vector<8x1xf32>
    %164 = arith.addf %160, %163 : vector<8x1xf32>
    %165 = math.rsqrt %164 : vector<8x1xf32>
    %166 = vector.broadcast %165 : vector<8x1xf32> to vector<8x32xf32>
    %167 = arith.mulf %162, %166 : vector<8x32xf32>
    %168 = vector.broadcast %148 : vector<1x32xf32> to vector<8x32xf32>
    %169 = arith.mulf %167, %168 : vector<8x32xf32>
    %170 = vector.broadcast %149 : vector<1x32xf32> to vector<8x32xf32>
    %171 = arith.addf %169, %170 : vector<8x32xf32>
    %172 = arith.truncf %171 : vector<8x32xf32> to vector<8x32xbf16>
    %173 = vector.extract_strided_slice %2 {offsets = [0, 32], sizes = [32, 64], strides = [1, 1]} : vector<32x96xbf16> to vector<32x64xbf16>
    %cst_69 = arith.constant dense<0.000000e+00> : vector<8x64xf32>
    %174 = tpu.matmul %172, %173, %cst_69 {dimension_numbers = #tpu.dot_dimension_numbers<[1], [0], [0], [1], [0, 0, 1, 1], [], []>} : vector<8x32xbf16>, vector<32x64xbf16>, vector<8x64xf32> -> vector<8x64xf32>
    %175 = vector.extract_strided_slice %3 {offsets = [0, 32], sizes = [1, 64], strides = [1, 1]} : vector<1x96xf32> to vector<1x64xf32>
    %176 = vector.broadcast %175 : vector<1x64xf32> to vector<8x64xf32>
    %177 = arith.addf %174, %176 : vector<8x64xf32>
    %178 = arith.truncf %177 : vector<8x64xf32> to vector<8x64xbf16>
    %c0_70 = arith.constant 0 : index
    %c0_71 = arith.constant 0 : index
    %c0_72 = arith.constant 0 : index
    %179 = vector.load %arg12[%c0_70, %c0_71, %c0_72] : memref<1x8x64xbf16, #tpu.memory_space<vmem>>, vector<1x8x64xbf16>
    %180 = vector.shape_cast %179 : vector<1x8x64xbf16> to vector<8x64xbf16>
    %181 = vector.shape_cast %178 : vector<8x64xbf16> to vector<1x8x64xbf16>
    tpu.vector_store %arg12[%c0_70, %c0_71, %c0_72], %181 {strides = array<i32>} : memref<1x8x64xbf16, #tpu.memory_space<vmem>>, vector<1x8x64xbf16>,
    return
  }
  func.func @transform_0(%arg0: i32) -> (i32, i32, i32) {
    %c0_i32 = arith.constant 0 : i32
    %c0_i32_0 = arith.constant 0 : i32
    %c0_i32_1 = arith.constant 0 : i32
    return %arg0, %c0_i32, %c0_i32_0 : i32, i32, i32
  }
  func.func @transform_1(%arg0: i32) -> (i32, i32) {
    %c0_i32 = arith.constant 0 : i32
    %c0_i32_0 = arith.constant 0 : i32
    %c0_i32_1 = arith.constant 0 : i32
    return %c0_i32, %c0_i32_0 : i32, i32
  }
  func.func @transform_2(%arg0: i32) -> (i32, i32) {
    %c0_i32 = arith.constant 0 : i32
    %c0_i32_0 = arith.constant 0 : i32
    %c0_i32_1 = arith.constant 0 : i32
    return %c0_i32, %c0_i32_0 : i32, i32
  }
  func.func @transform_3(%arg0: i32) -> (i32, i32) {
    %c0_i32 = arith.constant 0 : i32
    %c0_i32_0 = arith.constant 0 : i32
    %c0_i32_1 = arith.constant 0 : i32
    return %c0_i32, %c0_i32_0 : i32, i32
  }
  func.func @transform_4(%arg0: i32) -> (i32, i32) {
    %c0_i32 = arith.constant 0 : i32
    %c0_i32_0 = arith.constant 0 : i32
    %c0_i32_1 = arith.constant 0 : i32
    return %c0_i32, %c0_i32_0 : i32, i32
  }
  func.func @transform_5(%arg0: i32) -> (i32, i32) {
    %c0_i32 = arith.constant 0 : i32
    %c0_i32_0 = arith.constant 0 : i32
    %c0_i32_1 = arith.constant 0 : i32
    return %c0_i32, %c0_i32_0 : i32, i32
  }
  func.func @transform_6(%arg0: i32) -> (i32, i32) {
    %c0_i32 = arith.constant 0 : i32
    %c0_i32_0 = arith.constant 0 : i32
    %c0_i32_1 = arith.constant 0 : i32
    return %c0_i32, %c0_i32_0 : i32, i32
  }
  func.func @transform_7(%arg0: i32) -> (i32, i32) {
    %c0_i32 = arith.constant 0 : i32
    %c0_i32_0 = arith.constant 0 : i32
    %c0_i32_1 = arith.constant 0 : i32
    return %c0_i32, %c0_i32_0 : i32, i32
  }
  func.func @transform_8(%arg0: i32) -> (i32, i32) {
    %c0_i32 = arith.constant 0 : i32
    %c0_i32_0 = arith.constant 0 : i32
    %c0_i32_1 = arith.constant 0 : i32
    return %c0_i32, %c0_i32_0 : i32, i32
  }
  func.func @transform_9(%arg0: i32) -> (i32, i32) {
    %c0_i32 = arith.constant 0 : i32
    %c0_i32_0 = arith.constant 0 : i32
    %c0_i32_1 = arith.constant 0 : i32
    return %c0_i32, %c0_i32_0 : i32, i32
  }
  func.func @transform_10(%arg0: i32) -> (i32, i32) {
    %c0_i32 = arith.constant 0 : i32
    %c0_i32_0 = arith.constant 0 : i32
    %c0_i32_1 = arith.constant 0 : i32
    return %c0_i32, %c0_i32_0 : i32, i32
  }
  func.func @transform_11(%arg0: i32) -> (i32, i32, i32) {
    %c0_i32 = arith.constant 0 : i32
    %c0_i32_0 = arith.constant 0 : i32
    %c0_i32_1 = arith.constant 0 : i32
    return %arg0, %c0_i32, %c0_i32_0 : i32, i32, i32
  }
}

module attributes {stable_mosaic.version = 11 : i64} {
  func.func @kernel(%arg0: i32, %arg1: memref<1x17x32xbf16, #tpu.memory_space<vmem>>, %arg2: memref<1x17x96xbf16, #tpu.memory_space<vmem>>, %arg3: memref<1x17x32xbf16, #tpu.memory_space<vmem>>, %arg4: memref<1x17x32xbf16, #tpu.memory_space<vmem>>, %arg5: memref<32x32xbf16, #tpu.memory_space<vmem>>, %arg6: memref<1x32xf32, #tpu.memory_space<vmem>>, %arg7: memref<32x8xbf16, #tpu.memory_space<vmem>>, %arg8: memref<1x8xf32, #tpu.memory_space<vmem>>, %arg9: memref<8x32xbf16, #tpu.memory_space<vmem>>, %arg10: memref<1x32xf32, #tpu.memory_space<vmem>>, %arg11: memref<1x17x32xbf16, #tpu.memory_space<vmem>>, %arg12: memref<17x32xf32, #tpu.memory_space<vmem>>) attributes {dimension_semantics = [#tpu.dimension_semantics<parallel>], iteration_bounds = array<i64: 16>, scalar_prefetch = 0 : i64, scratch_operands = 1 : i64, tpu.core_type = #tpu.core_type<tc>, window_params = [{transform_indices = @transform_0, window_bounds = array<i64: 1, 17, 32>}, {transform_indices = @transform_1, window_bounds = array<i64: 1, 17, 96>}, {transform_indices = @transform_2, window_bounds = array<i64: 1, 17, 32>}, {transform_indices = @transform_3, window_bounds = array<i64: 1, 17, 32>}, {pipeline_mode = #tpu.pipeline_mode<synchronous>, transform_indices = @transform_4, window_bounds = array<i64: 32, 32>}, {pipeline_mode = #tpu.pipeline_mode<synchronous>, transform_indices = @transform_5, window_bounds = array<i64: 1, 32>}, {pipeline_mode = #tpu.pipeline_mode<synchronous>, transform_indices = @transform_6, window_bounds = array<i64: 32, 8>}, {pipeline_mode = #tpu.pipeline_mode<synchronous>, transform_indices = @transform_7, window_bounds = array<i64: 1, 8>}, {pipeline_mode = #tpu.pipeline_mode<synchronous>, transform_indices = @transform_8, window_bounds = array<i64: 8, 32>}, {pipeline_mode = #tpu.pipeline_mode<synchronous>, transform_indices = @transform_9, window_bounds = array<i64: 1, 32>}, {transform_indices = @transform_10, window_bounds = array<i64: 1, 17, 32>}]} {
    %c0 = arith.constant 0 : index
    %c0_0 = arith.constant 0 : index
    %c0_1 = arith.constant 0 : index
    %0 = vector.load %arg1[%c0, %c0_0, %c0_1] : memref<1x17x32xbf16, #tpu.memory_space<vmem>>, vector<1x17x32xbf16>
    %1 = vector.shape_cast %0 : vector<1x17x32xbf16> to vector<17x32xbf16>
    %c0_2 = arith.constant 0 : index
    %c0_3 = arith.constant 0 : index
    %c0_4 = arith.constant 0 : index
    %2 = vector.load %arg2[%c0_2, %c0_3, %c0_4] : memref<1x17x96xbf16, #tpu.memory_space<vmem>>, vector<1x17x96xbf16>
    %3 = vector.shape_cast %2 : vector<1x17x96xbf16> to vector<17x96xbf16>
    %4 = vector.extract_strided_slice %3 {offsets = [0, 0], sizes = [17, 32], strides = [1, 1]} : vector<17x96xbf16> to vector<17x32xbf16>
    %5 = vector.extract_strided_slice %3 {offsets = [0, 32], sizes = [17, 32], strides = [1, 1]} : vector<17x96xbf16> to vector<17x32xbf16>
    %6 = vector.extract_strided_slice %3 {offsets = [0, 64], sizes = [17, 32], strides = [1, 1]} : vector<17x96xbf16> to vector<17x32xbf16>
    %c0_5 = arith.constant 0 : index
    %c0_6 = arith.constant 0 : index
    %c0_7 = arith.constant 0 : index
    %7 = vector.load %arg3[%c0_5, %c0_6, %c0_7] : memref<1x17x32xbf16, #tpu.memory_space<vmem>>, vector<1x17x32xbf16>
    %8 = vector.shape_cast %7 : vector<1x17x32xbf16> to vector<17x32xbf16>
    %c0_8 = arith.constant 0 : index
    %c0_9 = arith.constant 0 : index
    %c0_10 = arith.constant 0 : index
    %9 = vector.load %arg4[%c0_8, %c0_9, %c0_10] : memref<1x17x32xbf16, #tpu.memory_space<vmem>>, vector<1x17x32xbf16>
    %10 = vector.shape_cast %9 : vector<1x17x32xbf16> to vector<17x32xbf16>
    %11 = vector.extract_strided_slice %4 {offsets = [0, 0], sizes = [17, 8], strides = [1, 1]} : vector<17x32xbf16> to vector<17x8xbf16>
    %12 = arith.extf %11 : vector<17x8xbf16> to vector<17x8xf32>
    %cst = arith.constant 0.353553385 : f32
    %13 = vector.broadcast %cst : f32 to vector<17x8xf32>
    %14 = arith.mulf %12, %13 : vector<17x8xf32>
    %15 = arith.truncf %14 : vector<17x8xf32> to vector<17x8xbf16>
    %16 = vector.extract_strided_slice %5 {offsets = [0, 0], sizes = [17, 8], strides = [1, 1]} : vector<17x32xbf16> to vector<17x8xbf16>
    %cst_11 = arith.constant dense<0.000000e+00> : vector<17x17xf32>
    %17 = tpu.matmul %15, %16, %cst_11 {dimension_numbers = #tpu.dot_dimension_numbers<[1], [1], [0], [0], [0, 0, 1, 0], [], []>} : vector<17x8xbf16>, vector<17x8xbf16>, vector<17x17xf32> -> vector<17x17xf32>
    %18 = vector.extract_strided_slice %8 {offsets = [0, 0], sizes = [17, 8], strides = [1, 1]} : vector<17x32xbf16> to vector<17x8xbf16>
    %cst_12 = arith.constant dense<0.000000e+00> : vector<17x17xf32>
    %19 = tpu.matmul %15, %18, %cst_12 {dimension_numbers = #tpu.dot_dimension_numbers<[1], [1], [0], [0], [0, 0, 1, 0], [], []>} : vector<17x8xbf16>, vector<17x8xbf16>, vector<17x17xf32> -> vector<17x17xf32>
    %cst_13 = arith.constant dense<0xFF800000> : vector<17xf32>
    %20 = vector.multi_reduction <maximumf>, %17, %cst_13 [1] : vector<17x17xf32> to vector<17xf32>
    %21 = vector.shape_cast %20 : vector<17xf32> to vector<17x1xf32>
    %cst_14 = arith.constant dense<0xFF800000> : vector<17xf32>
    %22 = vector.multi_reduction <maximumf>, %19, %cst_14 [1] : vector<17x17xf32> to vector<17xf32>
    %23 = vector.shape_cast %22 : vector<17xf32> to vector<17x1xf32>
    %24 = arith.maximumf %21, %23 : vector<17x1xf32>
    %25 = vector.broadcast %24 : vector<17x1xf32> to vector<17x17xf32>
    %26 = arith.subf %17, %25 : vector<17x17xf32>
    %27 = math.exp %26 : vector<17x17xf32>
    %28 = vector.broadcast %24 : vector<17x1xf32> to vector<17x17xf32>
    %29 = arith.subf %19, %28 : vector<17x17xf32>
    %30 = math.exp %29 : vector<17x17xf32>
    %cst_15 = arith.constant dense<0.000000e+00> : vector<17xf32>
    %31 = vector.multi_reduction <add>, %27, %cst_15 [1] : vector<17x17xf32> to vector<17xf32>
    %32 = vector.shape_cast %31 : vector<17xf32> to vector<17x1xf32>
    %cst_16 = arith.constant dense<0.000000e+00> : vector<17xf32>
    %33 = vector.multi_reduction <add>, %30, %cst_16 [1] : vector<17x17xf32> to vector<17xf32>
    %34 = vector.shape_cast %33 : vector<17xf32> to vector<17x1xf32>
    %35 = arith.addf %32, %34 : vector<17x1xf32>
    %36 = arith.truncf %27 : vector<17x17xf32> to vector<17x17xbf16>
    %37 = vector.extract_strided_slice %6 {offsets = [0, 0], sizes = [17, 8], strides = [1, 1]} : vector<17x32xbf16> to vector<17x8xbf16>
    %cst_17 = arith.constant dense<0.000000e+00> : vector<17x8xf32>
    %38 = tpu.matmul %36, %37, %cst_17 {dimension_numbers = #tpu.dot_dimension_numbers<[1], [0], [0], [1], [0, 0, 1, 1], [], []>} : vector<17x17xbf16>, vector<17x8xbf16>, vector<17x8xf32> -> vector<17x8xf32>
    %39 = arith.truncf %30 : vector<17x17xf32> to vector<17x17xbf16>
    %40 = vector.extract_strided_slice %10 {offsets = [0, 0], sizes = [17, 8], strides = [1, 1]} : vector<17x32xbf16> to vector<17x8xbf16>
    %cst_18 = arith.constant dense<0.000000e+00> : vector<17x8xf32>
    %41 = tpu.matmul %39, %40, %cst_18 {dimension_numbers = #tpu.dot_dimension_numbers<[1], [0], [0], [1], [0, 0, 1, 1], [], []>} : vector<17x17xbf16>, vector<17x8xbf16>, vector<17x8xf32> -> vector<17x8xf32>
    %42 = arith.addf %38, %41 : vector<17x8xf32>
    %43 = tpu.reciprocal %35 {approx = true} : vector<17x1xf32> -> vector<17x1xf32>
    %44 = vector.broadcast %43 : vector<17x1xf32> to vector<17x8xf32>
    %45 = arith.mulf %42, %44 : vector<17x8xf32>
    %c0_19 = arith.constant 0 : index
    %c0_20 = arith.constant 0 : index
    %46 = vector.load %arg12[%c0_19, %c0_20] : memref<17x32xf32, #tpu.memory_space<vmem>>, vector<17x8xf32>
    tpu.vector_store %arg12[%c0_19, %c0_20], %45 {strides = array<i32>} : memref<17x32xf32, #tpu.memory_space<vmem>>, vector<17x8xf32>,
    %47 = vector.extract_strided_slice %4 {offsets = [0, 8], sizes = [17, 8], strides = [1, 1]} : vector<17x32xbf16> to vector<17x8xbf16>
    %48 = arith.extf %47 : vector<17x8xbf16> to vector<17x8xf32>
    %cst_21 = arith.constant 0.353553385 : f32
    %49 = vector.broadcast %cst_21 : f32 to vector<17x8xf32>
    %50 = arith.mulf %48, %49 : vector<17x8xf32>
    %51 = arith.truncf %50 : vector<17x8xf32> to vector<17x8xbf16>
    %52 = vector.extract_strided_slice %5 {offsets = [0, 8], sizes = [17, 8], strides = [1, 1]} : vector<17x32xbf16> to vector<17x8xbf16>
    %cst_22 = arith.constant dense<0.000000e+00> : vector<17x17xf32>
    %53 = tpu.matmul %51, %52, %cst_22 {dimension_numbers = #tpu.dot_dimension_numbers<[1], [1], [0], [0], [0, 0, 1, 0], [], []>} : vector<17x8xbf16>, vector<17x8xbf16>, vector<17x17xf32> -> vector<17x17xf32>
    %54 = vector.extract_strided_slice %8 {offsets = [0, 8], sizes = [17, 8], strides = [1, 1]} : vector<17x32xbf16> to vector<17x8xbf16>
    %cst_23 = arith.constant dense<0.000000e+00> : vector<17x17xf32>
    %55 = tpu.matmul %51, %54, %cst_23 {dimension_numbers = #tpu.dot_dimension_numbers<[1], [1], [0], [0], [0, 0, 1, 0], [], []>} : vector<17x8xbf16>, vector<17x8xbf16>, vector<17x17xf32> -> vector<17x17xf32>
    %cst_24 = arith.constant dense<0xFF800000> : vector<17xf32>
    %56 = vector.multi_reduction <maximumf>, %53, %cst_24 [1] : vector<17x17xf32> to vector<17xf32>
    %57 = vector.shape_cast %56 : vector<17xf32> to vector<17x1xf32>
    %cst_25 = arith.constant dense<0xFF800000> : vector<17xf32>
    %58 = vector.multi_reduction <maximumf>, %55, %cst_25 [1] : vector<17x17xf32> to vector<17xf32>
    %59 = vector.shape_cast %58 : vector<17xf32> to vector<17x1xf32>
    %60 = arith.maximumf %57, %59 : vector<17x1xf32>
    %61 = vector.broadcast %60 : vector<17x1xf32> to vector<17x17xf32>
    %62 = arith.subf %53, %61 : vector<17x17xf32>
    %63 = math.exp %62 : vector<17x17xf32>
    %64 = vector.broadcast %60 : vector<17x1xf32> to vector<17x17xf32>
    %65 = arith.subf %55, %64 : vector<17x17xf32>
    %66 = math.exp %65 : vector<17x17xf32>
    %cst_26 = arith.constant dense<0.000000e+00> : vector<17xf32>
    %67 = vector.multi_reduction <add>, %63, %cst_26 [1] : vector<17x17xf32> to vector<17xf32>
    %68 = vector.shape_cast %67 : vector<17xf32> to vector<17x1xf32>
    %cst_27 = arith.constant dense<0.000000e+00> : vector<17xf32>
    %69 = vector.multi_reduction <add>, %66, %cst_27 [1] : vector<17x17xf32> to vector<17xf32>
    %70 = vector.shape_cast %69 : vector<17xf32> to vector<17x1xf32>
    %71 = arith.addf %68, %70 : vector<17x1xf32>
    %72 = arith.truncf %63 : vector<17x17xf32> to vector<17x17xbf16>
    %73 = vector.extract_strided_slice %6 {offsets = [0, 8], sizes = [17, 8], strides = [1, 1]} : vector<17x32xbf16> to vector<17x8xbf16>
    %cst_28 = arith.constant dense<0.000000e+00> : vector<17x8xf32>
    %74 = tpu.matmul %72, %73, %cst_28 {dimension_numbers = #tpu.dot_dimension_numbers<[1], [0], [0], [1], [0, 0, 1, 1], [], []>} : vector<17x17xbf16>, vector<17x8xbf16>, vector<17x8xf32> -> vector<17x8xf32>
    %75 = arith.truncf %66 : vector<17x17xf32> to vector<17x17xbf16>
    %76 = vector.extract_strided_slice %10 {offsets = [0, 8], sizes = [17, 8], strides = [1, 1]} : vector<17x32xbf16> to vector<17x8xbf16>
    %cst_29 = arith.constant dense<0.000000e+00> : vector<17x8xf32>
    %77 = tpu.matmul %75, %76, %cst_29 {dimension_numbers = #tpu.dot_dimension_numbers<[1], [0], [0], [1], [0, 0, 1, 1], [], []>} : vector<17x17xbf16>, vector<17x8xbf16>, vector<17x8xf32> -> vector<17x8xf32>
    %78 = arith.addf %74, %77 : vector<17x8xf32>
    %79 = tpu.reciprocal %71 {approx = true} : vector<17x1xf32> -> vector<17x1xf32>
    %80 = vector.broadcast %79 : vector<17x1xf32> to vector<17x8xf32>
    %81 = arith.mulf %78, %80 : vector<17x8xf32>
    %c0_30 = arith.constant 0 : index
    %c8 = arith.constant 8 : index
    %82 = vector.load %arg12[%c0_30, %c8] : memref<17x32xf32, #tpu.memory_space<vmem>>, vector<17x8xf32>
    tpu.vector_store %arg12[%c0_30, %c8], %81 {strides = array<i32>} : memref<17x32xf32, #tpu.memory_space<vmem>>, vector<17x8xf32>,
    %83 = vector.extract_strided_slice %4 {offsets = [0, 16], sizes = [17, 8], strides = [1, 1]} : vector<17x32xbf16> to vector<17x8xbf16>
    %84 = arith.extf %83 : vector<17x8xbf16> to vector<17x8xf32>
    %cst_31 = arith.constant 0.353553385 : f32
    %85 = vector.broadcast %cst_31 : f32 to vector<17x8xf32>
    %86 = arith.mulf %84, %85 : vector<17x8xf32>
    %87 = arith.truncf %86 : vector<17x8xf32> to vector<17x8xbf16>
    %88 = vector.extract_strided_slice %5 {offsets = [0, 16], sizes = [17, 8], strides = [1, 1]} : vector<17x32xbf16> to vector<17x8xbf16>
    %cst_32 = arith.constant dense<0.000000e+00> : vector<17x17xf32>
    %89 = tpu.matmul %87, %88, %cst_32 {dimension_numbers = #tpu.dot_dimension_numbers<[1], [1], [0], [0], [0, 0, 1, 0], [], []>} : vector<17x8xbf16>, vector<17x8xbf16>, vector<17x17xf32> -> vector<17x17xf32>
    %90 = vector.extract_strided_slice %8 {offsets = [0, 16], sizes = [17, 8], strides = [1, 1]} : vector<17x32xbf16> to vector<17x8xbf16>
    %cst_33 = arith.constant dense<0.000000e+00> : vector<17x17xf32>
    %91 = tpu.matmul %87, %90, %cst_33 {dimension_numbers = #tpu.dot_dimension_numbers<[1], [1], [0], [0], [0, 0, 1, 0], [], []>} : vector<17x8xbf16>, vector<17x8xbf16>, vector<17x17xf32> -> vector<17x17xf32>
    %cst_34 = arith.constant dense<0xFF800000> : vector<17xf32>
    %92 = vector.multi_reduction <maximumf>, %89, %cst_34 [1] : vector<17x17xf32> to vector<17xf32>
    %93 = vector.shape_cast %92 : vector<17xf32> to vector<17x1xf32>
    %cst_35 = arith.constant dense<0xFF800000> : vector<17xf32>
    %94 = vector.multi_reduction <maximumf>, %91, %cst_35 [1] : vector<17x17xf32> to vector<17xf32>
    %95 = vector.shape_cast %94 : vector<17xf32> to vector<17x1xf32>
    %96 = arith.maximumf %93, %95 : vector<17x1xf32>
    %97 = vector.broadcast %96 : vector<17x1xf32> to vector<17x17xf32>
    %98 = arith.subf %89, %97 : vector<17x17xf32>
    %99 = math.exp %98 : vector<17x17xf32>
    %100 = vector.broadcast %96 : vector<17x1xf32> to vector<17x17xf32>
    %101 = arith.subf %91, %100 : vector<17x17xf32>
    %102 = math.exp %101 : vector<17x17xf32>
    %cst_36 = arith.constant dense<0.000000e+00> : vector<17xf32>
    %103 = vector.multi_reduction <add>, %99, %cst_36 [1] : vector<17x17xf32> to vector<17xf32>
    %104 = vector.shape_cast %103 : vector<17xf32> to vector<17x1xf32>
    %cst_37 = arith.constant dense<0.000000e+00> : vector<17xf32>
    %105 = vector.multi_reduction <add>, %102, %cst_37 [1] : vector<17x17xf32> to vector<17xf32>
    %106 = vector.shape_cast %105 : vector<17xf32> to vector<17x1xf32>
    %107 = arith.addf %104, %106 : vector<17x1xf32>
    %108 = arith.truncf %99 : vector<17x17xf32> to vector<17x17xbf16>
    %109 = vector.extract_strided_slice %6 {offsets = [0, 16], sizes = [17, 8], strides = [1, 1]} : vector<17x32xbf16> to vector<17x8xbf16>
    %cst_38 = arith.constant dense<0.000000e+00> : vector<17x8xf32>
    %110 = tpu.matmul %108, %109, %cst_38 {dimension_numbers = #tpu.dot_dimension_numbers<[1], [0], [0], [1], [0, 0, 1, 1], [], []>} : vector<17x17xbf16>, vector<17x8xbf16>, vector<17x8xf32> -> vector<17x8xf32>
    %111 = arith.truncf %102 : vector<17x17xf32> to vector<17x17xbf16>
    %112 = vector.extract_strided_slice %10 {offsets = [0, 16], sizes = [17, 8], strides = [1, 1]} : vector<17x32xbf16> to vector<17x8xbf16>
    %cst_39 = arith.constant dense<0.000000e+00> : vector<17x8xf32>
    %113 = tpu.matmul %111, %112, %cst_39 {dimension_numbers = #tpu.dot_dimension_numbers<[1], [0], [0], [1], [0, 0, 1, 1], [], []>} : vector<17x17xbf16>, vector<17x8xbf16>, vector<17x8xf32> -> vector<17x8xf32>
    %114 = arith.addf %110, %113 : vector<17x8xf32>
    %115 = tpu.reciprocal %107 {approx = true} : vector<17x1xf32> -> vector<17x1xf32>
    %116 = vector.broadcast %115 : vector<17x1xf32> to vector<17x8xf32>
    %117 = arith.mulf %114, %116 : vector<17x8xf32>
    %c0_40 = arith.constant 0 : index
    %c16 = arith.constant 16 : index
    %118 = vector.load %arg12[%c0_40, %c16] : memref<17x32xf32, #tpu.memory_space<vmem>>, vector<17x8xf32>
    tpu.vector_store %arg12[%c0_40, %c16], %117 {strides = array<i32>} : memref<17x32xf32, #tpu.memory_space<vmem>>, vector<17x8xf32>,
    %119 = vector.extract_strided_slice %4 {offsets = [0, 24], sizes = [17, 8], strides = [1, 1]} : vector<17x32xbf16> to vector<17x8xbf16>
    %120 = arith.extf %119 : vector<17x8xbf16> to vector<17x8xf32>
    %cst_41 = arith.constant 0.353553385 : f32
    %121 = vector.broadcast %cst_41 : f32 to vector<17x8xf32>
    %122 = arith.mulf %120, %121 : vector<17x8xf32>
    %123 = arith.truncf %122 : vector<17x8xf32> to vector<17x8xbf16>
    %124 = vector.extract_strided_slice %5 {offsets = [0, 24], sizes = [17, 8], strides = [1, 1]} : vector<17x32xbf16> to vector<17x8xbf16>
    %cst_42 = arith.constant dense<0.000000e+00> : vector<17x17xf32>
    %125 = tpu.matmul %123, %124, %cst_42 {dimension_numbers = #tpu.dot_dimension_numbers<[1], [1], [0], [0], [0, 0, 1, 0], [], []>} : vector<17x8xbf16>, vector<17x8xbf16>, vector<17x17xf32> -> vector<17x17xf32>
    %126 = vector.extract_strided_slice %8 {offsets = [0, 24], sizes = [17, 8], strides = [1, 1]} : vector<17x32xbf16> to vector<17x8xbf16>
    %cst_43 = arith.constant dense<0.000000e+00> : vector<17x17xf32>
    %127 = tpu.matmul %123, %126, %cst_43 {dimension_numbers = #tpu.dot_dimension_numbers<[1], [1], [0], [0], [0, 0, 1, 0], [], []>} : vector<17x8xbf16>, vector<17x8xbf16>, vector<17x17xf32> -> vector<17x17xf32>
    %cst_44 = arith.constant dense<0xFF800000> : vector<17xf32>
    %128 = vector.multi_reduction <maximumf>, %125, %cst_44 [1] : vector<17x17xf32> to vector<17xf32>
    %129 = vector.shape_cast %128 : vector<17xf32> to vector<17x1xf32>
    %cst_45 = arith.constant dense<0xFF800000> : vector<17xf32>
    %130 = vector.multi_reduction <maximumf>, %127, %cst_45 [1] : vector<17x17xf32> to vector<17xf32>
    %131 = vector.shape_cast %130 : vector<17xf32> to vector<17x1xf32>
    %132 = arith.maximumf %129, %131 : vector<17x1xf32>
    %133 = vector.broadcast %132 : vector<17x1xf32> to vector<17x17xf32>
    %134 = arith.subf %125, %133 : vector<17x17xf32>
    %135 = math.exp %134 : vector<17x17xf32>
    %136 = vector.broadcast %132 : vector<17x1xf32> to vector<17x17xf32>
    %137 = arith.subf %127, %136 : vector<17x17xf32>
    %138 = math.exp %137 : vector<17x17xf32>
    %cst_46 = arith.constant dense<0.000000e+00> : vector<17xf32>
    %139 = vector.multi_reduction <add>, %135, %cst_46 [1] : vector<17x17xf32> to vector<17xf32>
    %140 = vector.shape_cast %139 : vector<17xf32> to vector<17x1xf32>
    %cst_47 = arith.constant dense<0.000000e+00> : vector<17xf32>
    %141 = vector.multi_reduction <add>, %138, %cst_47 [1] : vector<17x17xf32> to vector<17xf32>
    %142 = vector.shape_cast %141 : vector<17xf32> to vector<17x1xf32>
    %143 = arith.addf %140, %142 : vector<17x1xf32>
    %144 = arith.truncf %135 : vector<17x17xf32> to vector<17x17xbf16>
    %145 = vector.extract_strided_slice %6 {offsets = [0, 24], sizes = [17, 8], strides = [1, 1]} : vector<17x32xbf16> to vector<17x8xbf16>
    %cst_48 = arith.constant dense<0.000000e+00> : vector<17x8xf32>
    %146 = tpu.matmul %144, %145, %cst_48 {dimension_numbers = #tpu.dot_dimension_numbers<[1], [0], [0], [1], [0, 0, 1, 1], [], []>} : vector<17x17xbf16>, vector<17x8xbf16>, vector<17x8xf32> -> vector<17x8xf32>
    %147 = arith.truncf %138 : vector<17x17xf32> to vector<17x17xbf16>
    %148 = vector.extract_strided_slice %10 {offsets = [0, 24], sizes = [17, 8], strides = [1, 1]} : vector<17x32xbf16> to vector<17x8xbf16>
    %cst_49 = arith.constant dense<0.000000e+00> : vector<17x8xf32>
    %149 = tpu.matmul %147, %148, %cst_49 {dimension_numbers = #tpu.dot_dimension_numbers<[1], [0], [0], [1], [0, 0, 1, 1], [], []>} : vector<17x17xbf16>, vector<17x8xbf16>, vector<17x8xf32> -> vector<17x8xf32>
    %150 = arith.addf %146, %149 : vector<17x8xf32>
    %151 = tpu.reciprocal %143 {approx = true} : vector<17x1xf32> -> vector<17x1xf32>
    %152 = vector.broadcast %151 : vector<17x1xf32> to vector<17x8xf32>
    %153 = arith.mulf %150, %152 : vector<17x8xf32>
    %c0_50 = arith.constant 0 : index
    %c24 = arith.constant 24 : index
    %154 = vector.load %arg12[%c0_50, %c24] : memref<17x32xf32, #tpu.memory_space<vmem>>, vector<17x8xf32>
    tpu.vector_store %arg12[%c0_50, %c24], %153 {strides = array<i32>} : memref<17x32xf32, #tpu.memory_space<vmem>>, vector<17x8xf32>,
    %c0_51 = arith.constant 0 : index
    %c0_52 = arith.constant 0 : index
    %155 = vector.load %arg12[%c0_51, %c0_52] : memref<17x32xf32, #tpu.memory_space<vmem>>, vector<17x32xf32>
    %156 = arith.truncf %155 : vector<17x32xf32> to vector<17x32xbf16>
    %c0_53 = arith.constant 0 : index
    %c0_54 = arith.constant 0 : index
    %157 = vector.load %arg5[%c0_53, %c0_54] : memref<32x32xbf16, #tpu.memory_space<vmem>>, vector<32x32xbf16>
    %c0_55 = arith.constant 0 : index
    %c0_56 = arith.constant 0 : index
    %158 = vector.load %arg6[%c0_55, %c0_56] : memref<1x32xf32, #tpu.memory_space<vmem>>, vector<1x32xf32>
    %c0_57 = arith.constant 0 : index
    %c0_58 = arith.constant 0 : index
    %159 = vector.load %arg7[%c0_57, %c0_58] : memref<32x8xbf16, #tpu.memory_space<vmem>>, vector<32x8xbf16>
    %c0_59 = arith.constant 0 : index
    %c0_60 = arith.constant 0 : index
    %160 = vector.load %arg8[%c0_59, %c0_60] : memref<1x8xf32, #tpu.memory_space<vmem>>, vector<1x8xf32>
    %c0_61 = arith.constant 0 : index
    %c0_62 = arith.constant 0 : index
    %161 = vector.load %arg9[%c0_61, %c0_62] : memref<8x32xbf16, #tpu.memory_space<vmem>>, vector<8x32xbf16>
    %c0_63 = arith.constant 0 : index
    %c0_64 = arith.constant 0 : index
    %162 = vector.load %arg10[%c0_63, %c0_64] : memref<1x32xf32, #tpu.memory_space<vmem>>, vector<1x32xf32>
    %cst_65 = arith.constant dense<0.000000e+00> : vector<17x32xf32>
    %163 = tpu.matmul %156, %157, %cst_65 {dimension_numbers = #tpu.dot_dimension_numbers<[1], [0], [0], [1], [0, 0, 1, 1], [], []>} : vector<17x32xbf16>, vector<32x32xbf16>, vector<17x32xf32> -> vector<17x32xf32>
    %164 = vector.broadcast %158 : vector<1x32xf32> to vector<17x32xf32>
    %165 = arith.addf %163, %164 : vector<17x32xf32>
    %166 = arith.truncf %165 : vector<17x32xf32> to vector<17x32xbf16>
    %cst_66 = arith.constant dense<0.000000e+00> : vector<17x8xf32>
    %167 = tpu.matmul %166, %159, %cst_66 {dimension_numbers = #tpu.dot_dimension_numbers<[1], [0], [0], [1], [0, 0, 1, 1], [], []>} : vector<17x32xbf16>, vector<32x8xbf16>, vector<17x8xf32> -> vector<17x8xf32>
    %168 = vector.broadcast %160 : vector<1x8xf32> to vector<17x8xf32>
    %169 = arith.addf %167, %168 : vector<17x8xf32>
    %cst_67 = arith.constant 5.000000e-01 : f32
    %170 = vector.broadcast %cst_67 : f32 to vector<17x8xf32>
    %171 = arith.mulf %170, %169 : vector<17x8xf32>
    %cst_68 = arith.constant 0.707106769 : f32
    %172 = vector.broadcast %cst_68 : f32 to vector<17x8xf32>
    %173 = arith.mulf %169, %172 : vector<17x8xf32>
    %174 = math.erf %173 : vector<17x8xf32>
    %cst_69 = arith.constant 1.000000e+00 : f32
    %175 = vector.broadcast %cst_69 : f32 to vector<17x8xf32>
    %176 = arith.addf %175, %174 : vector<17x8xf32>
    %177 = arith.mulf %171, %176 : vector<17x8xf32>
    %178 = arith.truncf %177 : vector<17x8xf32> to vector<17x8xbf16>
    %cst_70 = arith.constant dense<0.000000e+00> : vector<17x32xf32>
    %179 = tpu.matmul %178, %161, %cst_70 {dimension_numbers = #tpu.dot_dimension_numbers<[1], [0], [0], [1], [0, 0, 1, 1], [], []>} : vector<17x8xbf16>, vector<8x32xbf16>, vector<17x32xf32> -> vector<17x32xf32>
    %180 = vector.broadcast %162 : vector<1x32xf32> to vector<17x32xf32>
    %181 = arith.addf %179, %180 : vector<17x32xf32>
    %182 = arith.extf %1 : vector<17x32xbf16> to vector<17x32xf32>
    %183 = arith.addf %182, %165 : vector<17x32xf32>
    %184 = arith.addf %183, %181 : vector<17x32xf32>
    %185 = arith.truncf %184 : vector<17x32xf32> to vector<17x32xbf16>
    %c0_71 = arith.constant 0 : index
    %c0_72 = arith.constant 0 : index
    %c0_73 = arith.constant 0 : index
    %186 = vector.load %arg11[%c0_71, %c0_72, %c0_73] : memref<1x17x32xbf16, #tpu.memory_space<vmem>>, vector<1x17x32xbf16>
    %187 = vector.shape_cast %186 : vector<1x17x32xbf16> to vector<17x32xbf16>
    %188 = vector.shape_cast %185 : vector<17x32xbf16> to vector<1x17x32xbf16>
    tpu.vector_store %arg11[%c0_71, %c0_72, %c0_73], %188 {strides = array<i32>} : memref<1x17x32xbf16, #tpu.memory_space<vmem>>, vector<1x17x32xbf16>,
    return
  }
  func.func @transform_0(%arg0: i32) -> (i32, i32, i32) {
    %c0_i32 = arith.constant 0 : i32
    %c0_i32_0 = arith.constant 0 : i32
    %c0_i32_1 = arith.constant 0 : i32
    return %arg0, %c0_i32, %c0_i32_0 : i32, i32, i32
  }
  func.func @transform_1(%arg0: i32) -> (i32, i32, i32) {
    %c0_i32 = arith.constant 0 : i32
    %c0_i32_0 = arith.constant 0 : i32
    %c0_i32_1 = arith.constant 0 : i32
    return %arg0, %c0_i32, %c0_i32_0 : i32, i32, i32
  }
  func.func @transform_2(%arg0: i32) -> (i32, i32, i32) {
    %c0_i32 = arith.constant 0 : i32
    %c0_i32_0 = arith.constant 0 : i32
    %c0_i32_1 = arith.constant 0 : i32
    return %arg0, %c0_i32, %c0_i32_0 : i32, i32, i32
  }
  func.func @transform_3(%arg0: i32) -> (i32, i32, i32) {
    %c0_i32 = arith.constant 0 : i32
    %c0_i32_0 = arith.constant 0 : i32
    %c0_i32_1 = arith.constant 0 : i32
    return %arg0, %c0_i32, %c0_i32_0 : i32, i32, i32
  }
  func.func @transform_4(%arg0: i32) -> (i32, i32) {
    %c0_i32 = arith.constant 0 : i32
    %c0_i32_0 = arith.constant 0 : i32
    %c0_i32_1 = arith.constant 0 : i32
    return %c0_i32, %c0_i32_0 : i32, i32
  }
  func.func @transform_5(%arg0: i32) -> (i32, i32) {
    %c0_i32 = arith.constant 0 : i32
    %c0_i32_0 = arith.constant 0 : i32
    %c0_i32_1 = arith.constant 0 : i32
    return %c0_i32, %c0_i32_0 : i32, i32
  }
  func.func @transform_6(%arg0: i32) -> (i32, i32) {
    %c0_i32 = arith.constant 0 : i32
    %c0_i32_0 = arith.constant 0 : i32
    %c0_i32_1 = arith.constant 0 : i32
    return %c0_i32, %c0_i32_0 : i32, i32
  }
  func.func @transform_7(%arg0: i32) -> (i32, i32) {
    %c0_i32 = arith.constant 0 : i32
    %c0_i32_0 = arith.constant 0 : i32
    %c0_i32_1 = arith.constant 0 : i32
    return %c0_i32, %c0_i32_0 : i32, i32
  }
  func.func @transform_8(%arg0: i32) -> (i32, i32) {
    %c0_i32 = arith.constant 0 : i32
    %c0_i32_0 = arith.constant 0 : i32
    %c0_i32_1 = arith.constant 0 : i32
    return %c0_i32, %c0_i32_0 : i32, i32
  }
  func.func @transform_9(%arg0: i32) -> (i32, i32) {
    %c0_i32 = arith.constant 0 : i32
    %c0_i32_0 = arith.constant 0 : i32
    %c0_i32_1 = arith.constant 0 : i32
    return %c0_i32, %c0_i32_0 : i32, i32
  }
  func.func @transform_10(%arg0: i32) -> (i32, i32, i32) {
    %c0_i32 = arith.constant 0 : i32
    %c0_i32_0 = arith.constant 0 : i32
    %c0_i32_1 = arith.constant 0 : i32
    return %arg0, %c0_i32, %c0_i32_0 : i32, i32, i32
  }
}

module attributes {stable_mosaic.version = 11 : i64} {
  func.func @kernel(%arg0: i32, %arg1: memref<272x32xbf16, #tpu.memory_space<vmem>>, %arg2: memref<1x32xf32, #tpu.memory_space<vmem>>, %arg3: memref<1x32xf32, #tpu.memory_space<vmem>>, %arg4: memref<32x128xbf16, #tpu.memory_space<vmem>>, %arg5: memref<1x128xf32, #tpu.memory_space<vmem>>, %arg6: memref<128x32xbf16, #tpu.memory_space<vmem>>, %arg7: memref<1x32xf32, #tpu.memory_space<vmem>>, %arg8: memref<32x8xbf16, #tpu.memory_space<vmem>>, %arg9: memref<1x8xf32, #tpu.memory_space<vmem>>, %arg10: memref<8x32xbf16, #tpu.memory_space<vmem>>, %arg11: memref<1x32xf32, #tpu.memory_space<vmem>>, %arg12: memref<272x32xbf16, #tpu.memory_space<vmem>>) attributes {dimension_semantics = [#tpu.dimension_semantics<parallel>], iteration_bounds = array<i64: 1>, scalar_prefetch = 0 : i64, scratch_operands = 0 : i64, tpu.core_type = #tpu.core_type<tc>, window_params = [{transform_indices = @transform_0, window_bounds = array<i64: 272, 32>}, {pipeline_mode = #tpu.pipeline_mode<synchronous>, transform_indices = @transform_1, window_bounds = array<i64: 1, 32>}, {pipeline_mode = #tpu.pipeline_mode<synchronous>, transform_indices = @transform_2, window_bounds = array<i64: 1, 32>}, {pipeline_mode = #tpu.pipeline_mode<synchronous>, transform_indices = @transform_3, window_bounds = array<i64: 32, 128>}, {pipeline_mode = #tpu.pipeline_mode<synchronous>, transform_indices = @transform_4, window_bounds = array<i64: 1, 128>}, {pipeline_mode = #tpu.pipeline_mode<synchronous>, transform_indices = @transform_5, window_bounds = array<i64: 128, 32>}, {pipeline_mode = #tpu.pipeline_mode<synchronous>, transform_indices = @transform_6, window_bounds = array<i64: 1, 32>}, {pipeline_mode = #tpu.pipeline_mode<synchronous>, transform_indices = @transform_7, window_bounds = array<i64: 32, 8>}, {pipeline_mode = #tpu.pipeline_mode<synchronous>, transform_indices = @transform_8, window_bounds = array<i64: 1, 8>}, {pipeline_mode = #tpu.pipeline_mode<synchronous>, transform_indices = @transform_9, window_bounds = array<i64: 8, 32>}, {pipeline_mode = #tpu.pipeline_mode<synchronous>, transform_indices = @transform_10, window_bounds = array<i64: 1, 32>}, {transform_indices = @transform_11, window_bounds = array<i64: 272, 32>}]} {
    %c0 = arith.constant 0 : index
    %c0_0 = arith.constant 0 : index
    %0 = vector.load %arg1[%c0, %c0_0] : memref<272x32xbf16, #tpu.memory_space<vmem>>, vector<272x32xbf16>
    %1 = arith.extf %0 : vector<272x32xbf16> to vector<272x32xf32>
    %c0_1 = arith.constant 0 : index
    %c0_2 = arith.constant 0 : index
    %2 = vector.load %arg2[%c0_1, %c0_2] : memref<1x32xf32, #tpu.memory_space<vmem>>, vector<1x32xf32>
    %c0_3 = arith.constant 0 : index
    %c0_4 = arith.constant 0 : index
    %3 = vector.load %arg3[%c0_3, %c0_4] : memref<1x32xf32, #tpu.memory_space<vmem>>, vector<1x32xf32>
    %4 = arith.extf %0 : vector<272x32xbf16> to vector<272x32xf32>
    %cst = arith.constant dense<0.000000e+00> : vector<272xf32>
    %5 = vector.multi_reduction <add>, %4, %cst [1] : vector<272x32xf32> to vector<272xf32>
    %6 = vector.shape_cast %5 : vector<272xf32> to vector<272x1xf32>
    %cst_5 = arith.constant 3.200000e+01 : f32
    %7 = vector.broadcast %cst_5 : f32 to vector<272x1xf32>
    %8 = arith.divf %6, %7 : vector<272x1xf32>
    %9 = vector.broadcast %8 : vector<272x1xf32> to vector<272x32xf32>
    %10 = arith.subf %4, %9 : vector<272x32xf32>
    %11 = arith.mulf %10, %10 : vector<272x32xf32>
    %cst_6 = arith.constant dense<0.000000e+00> : vector<272xf32>
    %12 = vector.multi_reduction <add>, %11, %cst_6 [1] : vector<272x32xf32> to vector<272xf32>
    %13 = vector.shape_cast %12 : vector<272xf32> to vector<272x1xf32>
    %cst_7 = arith.constant 3.200000e+01 : f32
    %14 = vector.broadcast %cst_7 : f32 to vector<272x1xf32>
    %15 = arith.divf %13, %14 : vector<272x1xf32>
    %16 = vector.broadcast %8 : vector<272x1xf32> to vector<272x32xf32>
    %17 = arith.subf %4, %16 : vector<272x32xf32>
    %cst_8 = arith.constant 9.99999974E-6 : f32
    %18 = vector.broadcast %cst_8 : f32 to vector<272x1xf32>
    %19 = arith.addf %15, %18 : vector<272x1xf32>
    %20 = math.rsqrt %19 : vector<272x1xf32>
    %21 = vector.broadcast %20 : vector<272x1xf32> to vector<272x32xf32>
    %22 = arith.mulf %17, %21 : vector<272x32xf32>
    %23 = vector.broadcast %2 : vector<1x32xf32> to vector<272x32xf32>
    %24 = arith.mulf %22, %23 : vector<272x32xf32>
    %25 = vector.broadcast %3 : vector<1x32xf32> to vector<272x32xf32>
    %26 = arith.addf %24, %25 : vector<272x32xf32>
    %27 = arith.truncf %26 : vector<272x32xf32> to vector<272x32xbf16>
    %c0_9 = arith.constant 0 : index
    %c0_10 = arith.constant 0 : index
    %28 = vector.load %arg4[%c0_9, %c0_10] : memref<32x128xbf16, #tpu.memory_space<vmem>>, vector<32x128xbf16>
    %cst_11 = arith.constant dense<0.000000e+00> : vector<272x128xf32>
    %29 = tpu.matmul %27, %28, %cst_11 {dimension_numbers = #tpu.dot_dimension_numbers<[1], [0], [0], [1], [0, 0, 1, 1], [], []>} : vector<272x32xbf16>, vector<32x128xbf16>, vector<272x128xf32> -> vector<272x128xf32>
    %c0_12 = arith.constant 0 : index
    %c0_13 = arith.constant 0 : index
    %30 = vector.load %arg5[%c0_12, %c0_13] : memref<1x128xf32, #tpu.memory_space<vmem>>, vector<1x128xf32>
    %31 = vector.broadcast %30 : vector<1x128xf32> to vector<272x128xf32>
    %32 = arith.addf %29, %31 : vector<272x128xf32>
    %cst_14 = arith.constant 1.702000e+00 : f32
    %33 = vector.broadcast %cst_14 : f32 to vector<272x128xf32>
    %34 = arith.mulf %33, %32 : vector<272x128xf32>
    %35 = arith.negf %34 : vector<272x128xf32>
    %36 = math.exp %35 : vector<272x128xf32>
    %cst_15 = arith.constant 1.000000e+00 : f32
    %37 = vector.broadcast %cst_15 : f32 to vector<272x128xf32>
    %38 = arith.addf %37, %36 : vector<272x128xf32>
    %39 = arith.divf %37, %38 : vector<272x128xf32>
    %40 = arith.mulf %32, %39 : vector<272x128xf32>
    %41 = arith.truncf %40 : vector<272x128xf32> to vector<272x128xbf16>
    %c0_16 = arith.constant 0 : index
    %c0_17 = arith.constant 0 : index
    %42 = vector.load %arg6[%c0_16, %c0_17] : memref<128x32xbf16, #tpu.memory_space<vmem>>, vector<128x32xbf16>
    %cst_18 = arith.constant dense<0.000000e+00> : vector<272x32xf32>
    %43 = tpu.matmul %41, %42, %cst_18 {dimension_numbers = #tpu.dot_dimension_numbers<[1], [0], [0], [1], [0, 0, 1, 1], [], []>} : vector<272x128xbf16>, vector<128x32xbf16>, vector<272x32xf32> -> vector<272x32xf32>
    %c0_19 = arith.constant 0 : index
    %c0_20 = arith.constant 0 : index
    %44 = vector.load %arg7[%c0_19, %c0_20] : memref<1x32xf32, #tpu.memory_space<vmem>>, vector<1x32xf32>
    %45 = vector.broadcast %44 : vector<1x32xf32> to vector<272x32xf32>
    %46 = arith.addf %43, %45 : vector<272x32xf32>
    %c0_21 = arith.constant 0 : index
    %c0_22 = arith.constant 0 : index
    %47 = vector.load %arg8[%c0_21, %c0_22] : memref<32x8xbf16, #tpu.memory_space<vmem>>, vector<32x8xbf16>
    %cst_23 = arith.constant dense<0.000000e+00> : vector<272x8xf32>
    %48 = tpu.matmul %27, %47, %cst_23 {dimension_numbers = #tpu.dot_dimension_numbers<[1], [0], [0], [1], [0, 0, 1, 1], [], []>} : vector<272x32xbf16>, vector<32x8xbf16>, vector<272x8xf32> -> vector<272x8xf32>
    %c0_24 = arith.constant 0 : index
    %c0_25 = arith.constant 0 : index
    %49 = vector.load %arg9[%c0_24, %c0_25] : memref<1x8xf32, #tpu.memory_space<vmem>>, vector<1x8xf32>
    %50 = vector.broadcast %49 : vector<1x8xf32> to vector<272x8xf32>
    %51 = arith.addf %48, %50 : vector<272x8xf32>
    %cst_26 = arith.constant 5.000000e-01 : f32
    %52 = vector.broadcast %cst_26 : f32 to vector<272x8xf32>
    %53 = arith.mulf %52, %51 : vector<272x8xf32>
    %cst_27 = arith.constant 0.707106769 : f32
    %54 = vector.broadcast %cst_27 : f32 to vector<272x8xf32>
    %55 = arith.mulf %51, %54 : vector<272x8xf32>
    %56 = math.erf %55 : vector<272x8xf32>
    %cst_28 = arith.constant 1.000000e+00 : f32
    %57 = vector.broadcast %cst_28 : f32 to vector<272x8xf32>
    %58 = arith.addf %57, %56 : vector<272x8xf32>
    %59 = arith.mulf %53, %58 : vector<272x8xf32>
    %60 = arith.truncf %59 : vector<272x8xf32> to vector<272x8xbf16>
    %c0_29 = arith.constant 0 : index
    %c0_30 = arith.constant 0 : index
    %61 = vector.load %arg10[%c0_29, %c0_30] : memref<8x32xbf16, #tpu.memory_space<vmem>>, vector<8x32xbf16>
    %cst_31 = arith.constant dense<0.000000e+00> : vector<272x32xf32>
    %62 = tpu.matmul %60, %61, %cst_31 {dimension_numbers = #tpu.dot_dimension_numbers<[1], [0], [0], [1], [0, 0, 1, 1], [], []>} : vector<272x8xbf16>, vector<8x32xbf16>, vector<272x32xf32> -> vector<272x32xf32>
    %c0_32 = arith.constant 0 : index
    %c0_33 = arith.constant 0 : index
    %63 = vector.load %arg11[%c0_32, %c0_33] : memref<1x32xf32, #tpu.memory_space<vmem>>, vector<1x32xf32>
    %64 = vector.broadcast %63 : vector<1x32xf32> to vector<272x32xf32>
    %65 = arith.addf %62, %64 : vector<272x32xf32>
    %66 = arith.addf %1, %46 : vector<272x32xf32>
    %cst_34 = arith.constant 1.000000e+00 : f32
    %67 = vector.broadcast %cst_34 : f32 to vector<272x32xf32>
    %68 = arith.mulf %67, %65 : vector<272x32xf32>
    %69 = arith.addf %66, %68 : vector<272x32xf32>
    %70 = arith.truncf %69 : vector<272x32xf32> to vector<272x32xbf16>
    %c0_35 = arith.constant 0 : index
    %c0_36 = arith.constant 0 : index
    %71 = vector.load %arg12[%c0_35, %c0_36] : memref<272x32xbf16, #tpu.memory_space<vmem>>, vector<272x32xbf16>
    tpu.vector_store %arg12[%c0_35, %c0_36], %70 {strides = array<i32>} : memref<272x32xbf16, #tpu.memory_space<vmem>>, vector<272x32xbf16>,
    return
  }
  func.func @transform_0(%arg0: i32) -> (i32, i32) {
    %c0_i32 = arith.constant 0 : i32
    %c0_i32_0 = arith.constant 0 : i32
    return %arg0, %c0_i32 : i32, i32
  }
  func.func @transform_1(%arg0: i32) -> (i32, i32) {
    %c0_i32 = arith.constant 0 : i32
    %c0_i32_0 = arith.constant 0 : i32
    %c0_i32_1 = arith.constant 0 : i32
    return %c0_i32, %c0_i32_0 : i32, i32
  }
  func.func @transform_2(%arg0: i32) -> (i32, i32) {
    %c0_i32 = arith.constant 0 : i32
    %c0_i32_0 = arith.constant 0 : i32
    %c0_i32_1 = arith.constant 0 : i32
    return %c0_i32, %c0_i32_0 : i32, i32
  }
  func.func @transform_3(%arg0: i32) -> (i32, i32) {
    %c0_i32 = arith.constant 0 : i32
    %c0_i32_0 = arith.constant 0 : i32
    %c0_i32_1 = arith.constant 0 : i32
    return %c0_i32, %c0_i32_0 : i32, i32
  }
  func.func @transform_4(%arg0: i32) -> (i32, i32) {
    %c0_i32 = arith.constant 0 : i32
    %c0_i32_0 = arith.constant 0 : i32
    %c0_i32_1 = arith.constant 0 : i32
    return %c0_i32, %c0_i32_0 : i32, i32
  }
  func.func @transform_5(%arg0: i32) -> (i32, i32) {
    %c0_i32 = arith.constant 0 : i32
    %c0_i32_0 = arith.constant 0 : i32
    %c0_i32_1 = arith.constant 0 : i32
    return %c0_i32, %c0_i32_0 : i32, i32
  }
  func.func @transform_6(%arg0: i32) -> (i32, i32) {
    %c0_i32 = arith.constant 0 : i32
    %c0_i32_0 = arith.constant 0 : i32
    %c0_i32_1 = arith.constant 0 : i32
    return %c0_i32, %c0_i32_0 : i32, i32
  }
  func.func @transform_7(%arg0: i32) -> (i32, i32) {
    %c0_i32 = arith.constant 0 : i32
    %c0_i32_0 = arith.constant 0 : i32
    %c0_i32_1 = arith.constant 0 : i32
    return %c0_i32, %c0_i32_0 : i32, i32
  }
  func.func @transform_8(%arg0: i32) -> (i32, i32) {
    %c0_i32 = arith.constant 0 : i32
    %c0_i32_0 = arith.constant 0 : i32
    %c0_i32_1 = arith.constant 0 : i32
    return %c0_i32, %c0_i32_0 : i32, i32
  }
  func.func @transform_9(%arg0: i32) -> (i32, i32) {
    %c0_i32 = arith.constant 0 : i32
    %c0_i32_0 = arith.constant 0 : i32
    %c0_i32_1 = arith.constant 0 : i32
    return %c0_i32, %c0_i32_0 : i32, i32
  }
  func.func @transform_10(%arg0: i32) -> (i32, i32) {
    %c0_i32 = arith.constant 0 : i32
    %c0_i32_0 = arith.constant 0 : i32
    %c0_i32_1 = arith.constant 0 : i32
    return %c0_i32, %c0_i32_0 : i32, i32
  }
  func.func @transform_11(%arg0: i32) -> (i32, i32) {
    %c0_i32 = arith.constant 0 : i32
    %c0_i32_0 = arith.constant 0 : i32
    return %arg0, %c0_i32 : i32, i32
  }
}

</mosaic_0001>

<bundles_post_ra>
// kernel: transformer_forward.9
= control target key start
LH: loop header
LB: loop body
LE: loop exit
PB: predicated region body
PF: predicated region fallthrough
CT: control target
= control target key end

     0   :  { %vm91_vm0 = vcmask 261120   ;;  %s2896_s0 = inlined_call_operand.vmem [shape: bf16[272,32], index: 0, kind: input, shape index: {}]   ;;  %s2897_s1 = inlined_call_operand.vmem [shape: f32[1,32], index: 1, kind: input, shape index: {}]   ;;  %s2898_s2 = inlined_call_operand.vmem [shape: f32[1,32], index: 2, kind: input, shape index: {}]   ;;  %s2899_s3 = inlined_call_operand.vmem [shape: bf16[32,96], index: 3, kind: input, shape index: {}]   ;;  %s2900_s4 = inlined_call_operand.vmem [shape: f32[1,96], index: 4, kind: input, shape index: {}]   ;;  %s2901_s5 = inlined_call_operand.vmem [shape: bf16[272,96], index: 5, kind: output, shape index: {}]  }
   0x1   :  { %v1403_v0 = vld [vmem:[%s2896_s0 + $0x50] sm:$0xff]   ;;  %v1408_v1 = vld [vmem:[%s2896_s0 + $0x48] sm:$0xff]   ;;  %v1413_v2 = vld [vmem:[%s2896_s0 + $0x20] sm:$0xff]  }
   0x2   :  { %v1245_v3 = vunpack.c.l.bf16 %v1403_v0  ;;  %v1241_v4 = vunpack.c.l.bf16 %v1408_v1  ;;  %v1221_v5 = vunpack.c.l.bf16 %v1413_v2  ;;  %v1246_v9 = vunpack.c.h.bf16 %v1403_v0  ;;  %v1442_v15 = vld [vmem:[%s2896_s0 + $0x28] sm:$0xff]   ;;  %v1447_v16 = vld [vmem:[%s2896_s0] sm:$0xff]   ;;  %v1464_v23 = vld [vmem:[%s2896_s0 + $0x58] sm:$0xff]  }
   0x3   :  { %v1242_v10 = vunpack.c.h.bf16 %v1408_v1  ;;  %v1222_v11 = vunpack.c.h.bf16 %v1413_v2  ;;  %v1225_v17 = vunpack.c.l.bf16 %v1442_v15  ;;  %v1205_v18 = vunpack.c.l.bf16 %v1447_v16  ;;  %v1481_v30 = vld [vmem:[%s2896_s0 + $0x8] sm:$0xff]   ;;  %v1486_v31 = vld [vmem:[%s2896_s0 + $0x70] sm:$0xff]   ;;  %v1520_v45 = vld [vmem:[%s2896_s0 + $0x60] sm:$0xff]  }
   0x4   :  { %v152_v6 = vsel %vm91_vm0, %v1245_v3, 0.0  ;;  %v146_v7 = vsel %vm91_vm0, %v1241_v4, 0.0  ;;  %v116_v8 = vsel %vm91_vm0, %v1221_v5, 0.0  ;;  %v155_v12 = vsel %vm91_vm0, %v1246_v9, 0.0  ;;  %v1503_v38 = vld [vmem:[%s2896_s0 + $0x30] sm:$0xff]   ;;  %v1527_v48 = vld [vmem:[%s2896_s0 + $0x78] sm:$0xff]  }
   0x5   :  { %153 = vadd.xlane.f32.xlu2 %v152_v6  ;;  %147 = vadd.xlane.f32.xlu0 %v146_v7  ;;  %v149_v13 = vsel %vm91_vm0, %v1242_v10, 0.0  ;;  %v119_v14 = vsel %vm91_vm0, %v1222_v11, 0.0  ;;  %v1206_v19 = vunpack.c.h.bf16 %v1447_v16  ;;  %v122_v20 = vsel %vm91_vm0, %v1225_v17, 0.0  ;;  %v1542_v53 = vld [vmem:[%s2896_s0 + $0x38] sm:$0xff]   ;;  %v1547_v54 = vld [vmem:[%s2896_s0 + $0x10] sm:$0xff]   ;;  %v1564_v61 = vld [vmem:[%s2896_s0 + $0x68] sm:$0xff]  }
   0x6   :  { %117 = vadd.xlane.f32.xlu1 %v116_v8  ;;  %v92_v21 = vsel %vm91_vm0, %v1205_v18, 0.0  ;;  %v1250_v24 = vunpack.c.h.bf16 %v1464_v23  ;;  %v1226_v25 = vunpack.c.h.bf16 %v1442_v15  ;;  %v1249_v26 = vunpack.c.l.bf16 %v1464_v23  ;;  %v1569_v62 = vld [vmem:[%s2896_s0 + $0x80] sm:$0xff]  }
   0x7   :  { %v95_v22 = vsel %vm91_vm0, %v1206_v19, 0.0  ;;  %v1209_v32 = vunpack.c.l.bf16 %v1481_v30  ;;  %v1261_v33 = vunpack.c.l.bf16 %v1486_v31  ;;  %v1262_v34 = vunpack.c.h.bf16 %v1486_v31 }
   0x8   :  { %v161_v27 = vsel %vm91_vm0, %v1250_v24, 0.0  ;;  %v125_v28 = vsel %vm91_vm0, %v1226_v25, 0.0  ;;  %v158_v29 = vsel %vm91_vm0, %v1249_v26, 0.0  ;;  %v1230_v39 = vunpack.c.h.bf16 %v1503_v38 }
   0x9   :  { %v98_v35 = vsel %vm91_vm0, %v1209_v32, 0.0  ;;  %v176_v36 = vsel %vm91_vm0, %v1261_v33, 0.0  ;;  %v179_v37 = vsel %vm91_vm0, %v1262_v34, 0.0  ;;  %v1210_v40 = vunpack.c.h.bf16 %v1481_v30 }
   0xa   :  { %v1229_v41 = vunpack.c.l.bf16 %v1503_v38  ;;  %v131_v42 = vsel %vm91_vm0, %v1230_v39, 0.0  ;;  %v1253_v46 = vunpack.c.l.bf16 %v1520_v45  ;;  %v1254_v47 = vunpack.c.h.bf16 %v1520_v45 }
   0xb   :  { %v101_v43 = vsel %vm91_vm0, %v1210_v40, 0.0  ;;  %v1265_v49 = vunpack.c.l.bf16 %v1527_v48  ;;  %v1266_v55 = vunpack.c.h.bf16 %v1527_v48  ;;  %v1214_v56 = vunpack.c.h.bf16 %v1547_v54 }
   0xc   :  { %v128_v44 = vsel %vm91_vm0, %v1229_v41, 0.0  ;;  %v164_v50 = vsel %vm91_vm0, %v1253_v46, 0.0  ;;  %v167_v51 = vsel %vm91_vm0, %v1254_v47, 0.0  ;;  %v1233_v57 = vunpack.c.l.bf16 %v1542_v53 }
   0xd   :  { %156 = vadd.xlane.f32.xlu2 %v155_v12  ;;  %150 = vadd.xlane.f32.xlu0 %v149_v13  ;;  %v182_v52 = vsel %vm91_vm0, %v1265_v49, 0.0  ;;  %v185_v58 = vsel %vm91_vm0, %v1266_v55, 0.0  ;;  %v107_v59 = vsel %vm91_vm0, %v1214_v56, 0.0  ;;  %v1213_v63 = vunpack.c.l.bf16 %v1547_v54 }
   0xe   :  { %120 = vadd.xlane.f32.xlu1 %v119_v14  ;;  %v134_v60 = vsel %vm91_vm0, %v1233_v57, 0.0  ;;  %v1258_v6 = vunpack.c.h.bf16 %v1564_v61  ;;  %v1269_v7 = vunpack.c.l.bf16 %v1569_v62  ;;  %v1586_v14 = vld [vmem:[%s2896_s0 + $0x40] sm:$0xff]  }
   0xf   :  { %v104_v8 = vsel %vm91_vm0, %v1213_v63, 0.0 }
  0x10   :  { %v173_v12 = vsel %vm91_vm0, %v1258_v6, 0.0  ;;  %v188_v13 = vsel %vm91_vm0, %v1269_v7, 0.0 }
  0x15   :  { %123 = vadd.xlane.f32.xlu2 %v122_v20  ;;  %93 = vadd.xlane.f32.xlu0 %v92_v21  ;;  %v1591_v20 = vld [vmem:[%s2896_s0 + $0x18] sm:$0xff]   ;;  %v1234_v21 = vunpack.c.h.bf16 %v1542_v53 }
  0x16   :  { %96 = vadd.xlane.f32.xlu1 %v95_v22  ;;  %v1237_v22 = vunpack.c.l.bf16 %v1586_v14 }
  0x1d   :  { %162 = vadd.xlane.f32.xlu2 %v161_v27  ;;  %126 = vadd.xlane.f32.xlu0 %v125_v28  ;;  %v1217_v27 = vunpack.c.l.bf16 %v1591_v20  ;;  %v137_v28 = vsel %vm91_vm0, %v1234_v21, 0.0 }
  0x1e   :  { %159 = vadd.xlane.f32.xlu1 %v158_v29  ;;  %v140_v29 = vsel %vm91_vm0, %v1237_v22, 0.0 }
  0x25   :  { %99 = vadd.xlane.f32.xlu2 %v98_v35  ;;  %177 = vadd.xlane.f32.xlu0 %v176_v36  ;;  %v110_v35 = vsel %vm91_vm0, %v1217_v27, 0.0  ;;  %v1257_v36 = vunpack.c.l.bf16 %v1564_v61 }
  0x26   :  { %180 = vadd.xlane.f32.xlu1 %v179_v37  ;;  %v1238_v37 = vunpack.c.h.bf16 %v1586_v14 }
  0x2d   :  { %132 = vadd.xlane.f32.xlu2 %v131_v42  ;;  %102 = vadd.xlane.f32.xlu0 %v101_v43  ;;  %v170_v42 = vsel %vm91_vm0, %v1257_v36, 0.0  ;;  %v143_v43 = vsel %vm91_vm0, %v1238_v37, 0.0 }
  0x2e   :  { %129 = vadd.xlane.f32.xlu1 %v128_v44  ;;  %v1270_v44 = vunpack.c.h.bf16 %v1569_v62 }
  0x35   :  { %165 = vadd.xlane.f32.xlu2 %v164_v50  ;;  %168 = vadd.xlane.f32.xlu0 %v167_v51  ;;  %v191_v50 = vsel %vm91_vm0, %v1270_v44, 0.0  ;;  %v1369_v51 = vmov 32.0  }
  0x36   :  { %183 = vadd.xlane.f32.xlu1 %v182_v52  ;;  %1297 = vrcp.f32 %v1369_v51  ;;  %v2902_v52 = vunpack.c.h.bf16 %v1591_v20 }
  0x3d   :  { %186 = vadd.xlane.f32.xlu2 %v185_v58  ;;  %108 = vadd.xlane.f32.xlu0 %v107_v59  ;;  %v113_v58 = vsel %vm91_vm0, %v2902_v52, 0.0  ;;  %v1298_v59 = vpop.eup %1297 }
  0x3e   :  { %135 = vadd.xlane.f32.xlu1 %v134_v60  ;;  %v195_v60 = vmul.f32 32.0, %v1298_v59  ;;  %vm199_vm1 = vweird.f32 %v1298_v59 }
  0x45   :  { %105 = vadd.xlane.f32.xlu2 %v104_v8  ;;  %174 = vadd.xlane.f32.xlu0 %v173_v12  ;;  %v196_v8 = vsub.f32 1.0, %v195_v60 }
  0x46   :  { %189 = vadd.xlane.f32.xlu1 %v188_v13 }
  0x47   :  { %v197_v12 = vmul.f32 %v1298_v59, %v196_v8 }
  0x49   :  { %v198_v13 = vadd.f32 %v1298_v59, %v197_v12 }
  0x4d   :  { %138 = vadd.xlane.f32.xlu2 %v137_v28  ;;  %141 = vadd.xlane.f32.xlu0 %v140_v29  ;;  %v1621_v28 = vsel %vm199_vm1, %v1298_v59, %v198_v13 }
  0x4e   :  { %111 = vadd.xlane.f32.xlu1 %v110_v35 }
  0x55   :  { %171 = vadd.xlane.f32.xlu2 %v170_v42 }
  0x56   :  { %144 = vadd.xlane.f32.xlu1 %v143_v43 }
  0x5d   :  { %192 = vadd.xlane.f32.xlu2 %v191_v50 }
  0x65   :  { %114 = vadd.xlane.f32.xlu2 %v113_v58 }
  0x78   :  { %v154_v29 = vpop.xlane.xlu2 %153  ;;  %v148_v35 = vpop.xlane.xlu0 %147 }
  0x79   :  { %v219_v42 = vmul.f32 %v1621_v28, %v148_v35  ;;  %v118_v43 = vpop.xlane.xlu1 %117 }
  0x7a   :  { %v209_v50 = vmul.f32 %v1621_v28, %v118_v43 }
  0x7b   :  { %v1627_v51 = vsub.f32 %v1241_v4, %v219_v42  ;;  %v221_v42 = vmul.f32 %v1621_v28, %v154_v29 }
  0x7c   :  { %v1631_v58 = vsub.f32 %v1221_v5, %v209_v50 }
  0x7d   :  { %v287_v60 = vmul.f32 %v1627_v51, %v1627_v51 }
  0x7e   :  { %v277_v43 = vmul.f32 %v1631_v58, %v1631_v58 }
  0x7f   :  { %v357_v59 = vsel %vm91_vm0, %v287_v60, 0.0 }
  0x80   :  { %v157_v8 = vpop.xlane.xlu2 %156  ;;  %v151_v12 = vpop.xlane.xlu0 %150  ;;  %358 = vadd.xlane.f32.xlu0 %v357_v59  ;;  %v327_v59 = vsel %vm91_vm0, %v277_v43, 0.0 }
  0x81   :  { %v220_v13 = vmul.f32 %v1621_v28, %v151_v12  ;;  %v121_v35 = vpop.xlane.xlu1 %120  ;;  %v222_v43 = vmul.f32 %v1621_v28, %v157_v8 }
  0x82   :  { %v210_v4 = vmul.f32 %v1621_v28, %v121_v35  ;;  %v1655_v35 = vsub.f32 %v1245_v3, %v221_v42 }
  0x83   :  { %v1642_v5 = vsub.f32 %v1242_v10, %v220_v13 }
  0x84   :  { %v1647_v50 = vsub.f32 %v1222_v11, %v210_v4  ;;  %v289_v3 = vmul.f32 %v1655_v35, %v1655_v35 }
  0x85   :  { %v288_v60 = vmul.f32 %v1642_v5, %v1642_v5 }
  0x86   :  { %v278_v11 = vmul.f32 %v1647_v50, %v1647_v50 }
  0x87   :  { %v360_v12 = vsel %vm91_vm0, %v288_v60, 0.0 }
  0x88   :  { %v124_v1 = vpop.xlane.xlu2 %123  ;;  %361 = vadd.xlane.f32.xlu1 %v360_v12  ;;  %328 = vadd.xlane.f32.xlu0 %v327_v59  ;;  %v94_v10 = vpop.xlane.xlu0 %93  ;;  %v330_v60 = vsel %vm91_vm0, %v278_v11, 0.0  ;;  %v1677_v12 = vsub.f32 %v1246_v9, %v222_v43 }
  0x89   :  { %v211_v29 = vmul.f32 %v1621_v28, %v124_v1  ;;  %v97_v2 = vpop.xlane.xlu1 %96  ;;  %v201_v13 = vmul.f32 %v1621_v28, %v94_v10  ;;  %v363_v1 = vsel %vm91_vm0, %v289_v3, 0.0 }
  0x8a   :  { %v290_v9 = vmul.f32 %v1677_v12, %v1677_v12 }
  0x8b   :  { %v1664_v4 = vsub.f32 %v1225_v17, %v211_v29  ;;  %v1673_v59 = vsub.f32 %v1205_v18, %v201_v13  ;;  %v202_v29 = vmul.f32 %v1621_v28, %v97_v2 }
  0x8d   :  { %v279_v42 = vmul.f32 %v1664_v4, %v1664_v4  ;;  %v269_v0 = vmul.f32 %v1673_v59, %v1673_v59  ;;  %v1694_v43 = vsub.f32 %v1206_v19, %v202_v29 }
  0x8f   :  { %v333_v8 = vsel %vm91_vm0, %v279_v42, 0.0  ;;  %v303_v3 = vsel %vm91_vm0, %v269_v0, 0.0  ;;  %v366_v42 = vsel %vm91_vm0, %v290_v9, 0.0  ;;  %v270_v15 = vmul.f32 %v1694_v43, %v1694_v43 }
  0x90   :  { %v163_v17 = vpop.xlane.xlu2 %162  ;;  %334 = vadd.xlane.f32.xlu2 %v333_v8  ;;  %331 = vadd.xlane.f32.xlu1 %v330_v60  ;;  %v127_v10 = vpop.xlane.xlu0 %126 }
  0x91   :  { %v160_v52 = vpop.xlane.xlu1 %159  ;;  %364 = vadd.xlane.f32.xlu0 %v363_v1  ;;  %v212_v18 = vmul.f32 %v1621_v28, %v127_v10  ;;  %v224_v10 = vmul.f32 %v1621_v28, %v163_v17 }
  0x92   :  { %v223_v11 = vmul.f32 %v1621_v28, %v160_v52 }
  0x93   :  { %v1698_v2 = vsub.f32 %v1226_v25, %v212_v18  ;;  %v306_v18 = vsel %vm91_vm0, %v270_v15, 0.0 }
  0x94   :  { %v1690_v13 = vsub.f32 %v1249_v26, %v223_v11 }
  0x95   :  { %v280_v1 = vmul.f32 %v1698_v2, %v1698_v2 }
  0x96   :  { %v291_v52 = vmul.f32 %v1690_v13, %v1690_v13 }
  0x97   :  { %v336_v9 = vsel %vm91_vm0, %v280_v1, 0.0 }
  0x98   :  { %v100_v60 = vpop.xlane.xlu2 %99  ;;  %367 = vadd.xlane.f32.xlu1 %v366_v42  ;;  %v369_v26 = vsel %vm91_vm0, %v291_v52, 0.0  ;;  %v178_v8 = vpop.xlane.xlu0 %177  ;;  %v1726_v52 = vsub.f32 %v1250_v24, %v224_v10 }
  0x99   :  { %370 = vadd.xlane.f32.xlu2 %v369_v26  ;;  %v181_v16 = vpop.xlane.xlu1 %180  ;;  %304 = vadd.xlane.f32.xlu0 %v303_v3  ;;  %v229_v19 = vmul.f32 %v1621_v28, %v178_v8  ;;  %v203_v8 = vmul.f32 %v1621_v28, %v100_v60 }
  0x9a   :  { %v230_v25 = vmul.f32 %v1621_v28, %v181_v16  ;;  %v292_v24 = vmul.f32 %v1726_v52, %v1726_v52 }
  0x9b   :  { %v1718_v11 = vsub.f32 %v1261_v33, %v229_v19 }
  0x9c   :  { %v1714_v29 = vsub.f32 %v1262_v34, %v230_v25  ;;  %v1749_v25 = vsub.f32 %v1209_v32, %v203_v8  ;;  %v372_v1 = vsel %vm91_vm0, %v292_v24, 0.0 }
  0x9d   :  { %v297_v42 = vmul.f32 %v1718_v11, %v1718_v11 }
  0x9e   :  { %v298_v0 = vmul.f32 %v1714_v29, %v1714_v29 }
  0x9f   :  { %v387_v19 = vsel %vm91_vm0, %v297_v42, 0.0 }
  0xa0   :  { %v133_v17 = vpop.xlane.xlu2 %132  ;;  %307 = vadd.xlane.f32.xlu1 %v306_v18  ;;  %v390_v34 = vsel %vm91_vm0, %v298_v0, 0.0  ;;  %v103_v3 = vpop.xlane.xlu0 %102 }
  0xa1   :  { %391 = vadd.xlane.f32.xlu2 %v390_v34  ;;  %v130_v31 = vpop.xlane.xlu1 %129  ;;  %337 = vadd.xlane.f32.xlu0 %v336_v9  ;;  %v204_v33 = vmul.f32 %v1621_v28, %v103_v3  ;;  %v214_v32 = vmul.f32 %v1621_v28, %v133_v17  ;;  %v271_v34 = vmul.f32 %v1749_v25, %v1749_v25 }
  0xa2   :  { %v213_v26 = vmul.f32 %v1621_v28, %v130_v31 }
  0xa3   :  { %v1742_v16 = vsub.f32 %v1210_v40, %v204_v33  ;;  %v309_v17 = vsel %vm91_vm0, %v271_v34, 0.0 }
  0xa4   :  { %v1736_v23 = vsub.f32 %v1229_v41, %v213_v26 }
  0xa5   :  { %v272_v18 = vmul.f32 %v1742_v16, %v1742_v16 }
  0xa6   :  { %v281_v15 = vmul.f32 %v1736_v23, %v1736_v23 }
  0xa7   :  { %v312_v3 = vsel %vm91_vm0, %v272_v18, 0.0 }
  0xa8   :  { %v166_v60 = vpop.xlane.xlu2 %165  ;;  %v339_v41 = vsel %vm91_vm0, %v281_v15, 0.0  ;;  %388 = vadd.xlane.f32.xlu1 %v387_v19  ;;  %v169_v10 = vpop.xlane.xlu0 %168 }
  0xa9   :  { %340 = vadd.xlane.f32.xlu2 %v339_v41  ;;  %373 = vadd.xlane.f32.xlu0 %v372_v1  ;;  %v226_v40 = vmul.f32 %v1621_v28, %v169_v10  ;;  %v184_v0 = vpop.xlane.xlu1 %183  ;;  %v225_v9 = vmul.f32 %v1621_v28, %v166_v60 }
  0xaa   :  { %v231_v24 = vmul.f32 %v1621_v28, %v184_v0 }
  0xab   :  { %v1759_v30 = vsub.f32 %v1254_v47, %v226_v40  ;;  %v1769_v33 = vsub.f32 %v1253_v46, %v225_v9  ;;  %v1774_v47 = vsub.f32 %v1230_v39, %v214_v32 }
  0xac   :  { %v1785_v39 = vsub.f32 %v1265_v49, %v231_v24 }
  0xad   :  { %v294_v31 = vmul.f32 %v1759_v30, %v1759_v30  ;;  %v293_v45 = vmul.f32 %v1769_v33, %v1769_v33  ;;  %v282_v46 = vmul.f32 %v1774_v47, %v1774_v47 }
  0xae   :  { %v299_v18 = vmul.f32 %v1785_v39, %v1785_v39 }
  0xaf   :  { %v378_v42 = vsel %vm91_vm0, %v294_v31, 0.0  ;;  %v375_v60 = vsel %vm91_vm0, %v293_v45, 0.0  ;;  %v342_v1 = vsel %vm91_vm0, %v282_v46, 0.0 }
  0xb0   :  { %v187_v26 = vpop.xlane.xlu2 %186  ;;  %313 = vadd.xlane.f32.xlu1 %v312_v3  ;;  %v109_v38 = vpop.xlane.xlu0 %108  ;;  %v393_v34 = vsel %vm91_vm0, %v299_v18, 0.0 }
  0xb1   :  { %310 = vadd.xlane.f32.xlu0 %v309_v17  ;;  %379 = vadd.xlane.f32.xlu2 %v378_v42  ;;  %v136_v8 = vpop.xlane.xlu1 %135  ;;  %v232_v19 = vmul.f32 %v1621_v28, %v187_v26  ;;  %v206_v49 = vmul.f32 %v1621_v28, %v109_v38 }
  0xb2   :  { %v215_v40 = vmul.f32 %v1621_v28, %v136_v8 }
  0xb3   :  { %v1789_v15 = vsub.f32 %v1266_v55, %v232_v19  ;;  %v1813_v3 = vsub.f32 %v1214_v56, %v206_v49 }
  0xb4   :  { %v1806_v9 = vsub.f32 %v1233_v57, %v215_v40 }
  0xb5   :  { %v300_v55 = vmul.f32 %v1789_v15, %v1789_v15  ;;  %v274_v56 = vmul.f32 %v1813_v3, %v1813_v3 }
  0xb6   :  { %v283_v8 = vmul.f32 %v1806_v9, %v1806_v9 }
  0xb8   :  { %v106_v41 = vpop.xlane.xlu2 %105  ;;  %376 = vadd.xlane.f32.xlu1 %v375_v60  ;;  %v175_v31 = vpop.xlane.xlu0 %174  ;;  %v345_v46 = vsel %vm91_vm0, %v283_v8, 0.0 }
  0xb9   :  { %v205_v10 = vmul.f32 %v1621_v28, %v106_v41  ;;  %343 = vadd.xlane.f32.xlu0 %v342_v1  ;;  %v190_v0 = vpop.xlane.xlu1 %189  ;;  %v228_v54 = vmul.f32 %v1621_v28, %v175_v31  ;;  %v318_v41 = vsel %vm91_vm0, %v274_v56, 0.0 }
  0xba   :  { %v233_v17 = vmul.f32 %v1621_v28, %v190_v0 }
  0xbb   :  { %v1800_v48 = vsub.f32 %v1213_v63, %v205_v10  ;;  %v396_v63 = vsel %vm91_vm0, %v300_v55, 0.0  ;;  %v1837_v60 = vsub.f32 %v1258_v6, %v228_v54 }
  0xbc   :  { %v1830_v45 = vsub.f32 %v1269_v7, %v233_v17 }
  0xbd   :  { %v273_v32 = vmul.f32 %v1800_v48, %v1800_v48  ;;  %v296_v40 = vmul.f32 %v1837_v60, %v1837_v60 }
  0xbe   :  { %2909 = vst [vmem:[#allocation2_spill] sm:$0xff] %v1830_v45  ;;  %v301_v10 = vmul.f32 %v1830_v45, %v1830_v45 }
  0xbf   :  { %v315_v42 = vsel %vm91_vm0, %v273_v32, 0.0  ;;  %v384_v55 = vsel %vm91_vm0, %v296_v40, 0.0 }
  0xc0   :  { %v139_v26 = vpop.xlane.xlu2 %138  ;;  %397 = vadd.xlane.f32.xlu1 %v396_v63  ;;  %316 = vadd.xlane.f32.xlu2 %v315_v42  ;;  %v399_v49 = vsel %vm91_vm0, %v301_v10, 0.0  ;;  %v142_v31 = vpop.xlane.xlu0 %141 }
  0xc1   :  { %v216_v57 = vmul.f32 %v1621_v28, %v139_v26  ;;  %394 = vadd.xlane.f32.xlu0 %v393_v34  ;;  %v112_v19 = vpop.xlane.xlu1 %111  ;;  %v217_v42 = vmul.f32 %v1621_v28, %v142_v31 }
  0xc2   :  { %v207_v7 = vmul.f32 %v1621_v28, %v112_v19 }
  0xc3   :  { %v1826_v24 = vsub.f32 %v1234_v21, %v216_v57  ;;  %v1878_v54 = vsub.f32 %v1237_v22, %v217_v42 }
  0xc4   :  { %v1853_v18 = vsub.f32 %v1217_v27, %v207_v7 }
  0xc5   :  { %v284_v38 = vmul.f32 %v1826_v24, %v1826_v24  ;;  %2913 = vst [vmem:[#allocation6_spill] sm:$0xff] %v1878_v54 }
  0xc6   :  { %2910 = vst [vmem:[#allocation3_spill] sm:$0xff] %v1853_v18 }
  0xc7   :  { %v348_v53 = vsel %vm91_vm0, %v284_v38, 0.0 }
  0xc8   :  { %v172_v21 = vpop.xlane.xlu2 %171  ;;  %346 = vadd.xlane.f32.xlu1 %v345_v46  ;;  %349 = vadd.xlane.f32.xlu2 %v348_v53  ;;  %v2914_v46 = vunpack.c.h.bf16 %v1591_v20  ;;  %v1202_v20 = vld [vmem:[%s2899_s3 + $0x8] sm:$0xff] }
  0xc9   :  { %v227_v1 = vmul.f32 %v1621_v28, %v172_v21  ;;  %319 = vadd.xlane.f32.xlu0 %v318_v41  ;;  %v145_v32 = vpop.xlane.xlu1 %144  ;;  %1288 = vmatpush.bf16.msra.mxu2 %v1202_v20 }
  0xca   :  { %v218_v27 = vmul.f32 %v1621_v28, %v145_v32  ;;  %1287 = vmatpush.bf16.msra.mxu1 %v1202_v20  ;;  %1015 = vmatpush.bf16.msra.mxu0 %v1202_v20 }
  0xcb   :  { %v1849_v6 = vsub.f32 %v1257_v36, %v227_v1  ;;  %v275_v36 = vmul.f32 %v1853_v18, %v1853_v18  ;;  %1289 = vmatpush.bf16.msra.mxu3 %v1202_v20 }
  0xcc   :  { %v1871_v57 = vsub.f32 %v1238_v37, %v218_v27 }
  0xcd   :  { %v295_v0 = vmul.f32 %v1849_v6, %v1849_v6  ;;  %v321_v8 = vsel %vm91_vm0, %v275_v36, 0.0 }
  0xce   :  { %2912 = vst [vmem:[#allocation5_spill] sm:$0xff] %v1871_v57  ;;  %v286_v37 = vmul.f32 %v1871_v57, %v1871_v57 }
  0xcf   :  { %v381_v34 = vsel %vm91_vm0, %v295_v0, 0.0 }
  0xd0   :  { %v193_v63 = vpop.xlane.xlu2 %192  ;;  %400 = vadd.xlane.f32.xlu2 %v399_v49  ;;  %385 = vadd.xlane.f32.xlu1 %v384_v55  ;;  %v354_v22 = vsel %vm91_vm0, %v286_v37, 0.0  ;;  %v1201_v49 = vld [vmem:[%s2899_s3] sm:$0xff] }
  0xd1   :  { %v234_v61 = vmul.f32 %v1621_v28, %v193_v63  ;;  %382 = vadd.xlane.f32.xlu0 %v381_v34  ;;  %1291 = vmatpush.bf16.msra.mxu2 %v1201_v49 }
  0xd2   :  { %1290 = vmatpush.bf16.msra.mxu1 %v1201_v49  ;;  %1016 = vmatpush.bf16.msra.mxu0 %v1201_v49 }
  0xd3   :  { %v1867_v26 = vsub.f32 %v1270_v44, %v234_v61  ;;  %v285_v44 = vmul.f32 %v1878_v54, %v1878_v54  ;;  %1292 = vmatpush.bf16.msra.mxu3 %v1201_v49 }
  0xd5   :  { %2911 = vst [vmem:[#allocation4_spill] sm:$0xff] %v1867_v26  ;;  %v302_v17 = vmul.f32 %v1867_v26, %v1867_v26  ;;  %v351_v41 = vsel %vm91_vm0, %v285_v44, 0.0 }
  0xd7   :  { %v402_v56 = vsel %vm91_vm0, %v302_v17, 0.0 }
  0xd8   :  { %v115_v19 = vpop.xlane.xlu2 %114  ;;  %322 = vadd.xlane.f32.xlu1 %v321_v8 }
  0xd9   :  { %v208_v62 = vmul.f32 %v1621_v28, %v115_v19  ;;  %403 = vadd.xlane.f32.xlu0 %v402_v56 }
  0xdb   :  { %v1888_v38 = vsub.f32 %v2914_v46, %v208_v62 }
  0xdd   :  { %2915 = vst [vmem:[#allocation7_spill] sm:$0xff] %v1888_v38  ;;  %v276_v14 = vmul.f32 %v1888_v38, %v1888_v38 }
  0xdf   :  { %v324_v53 = vsel %vm91_vm0, %v276_v14, 0.0 }
  0xe0   :  { %325 = vadd.xlane.f32.xlu2 %v324_v53  ;;  %355 = vadd.xlane.f32.xlu1 %v354_v22 }
  0xe1   :  { %352 = vadd.xlane.f32.xlu0 %v351_v41 }
  0xf3   :  { %v359_v21 = vpop.xlane.xlu0 %358 }
  0xf4   :  { %v423_v1 = vmul.f32 %v359_v21, %v1621_v28 }
  0xf6   :  { %v457_v7 = vadd.f32 1e-05, %v423_v1 }
  0xf8   :  { %1299 = vrsqrt.f32 %v457_v7  ;;  %vm659_vm3 = vweird.f32 %v457_v7 }
  0xfb   :  { %v362_v10 = vpop.xlane.xlu1 %361  ;;  %v329_v40 = vpop.xlane.xlu0 %328 }
  0xfc   :  { %v424_v0 = vmul.f32 %v362_v10, %v1621_v28  ;;  %v413_v55 = vmul.f32 %v329_v40, %v1621_v28 }
  0xfe   :  { %v1300_v32 = vpop.eup %1299  ;;  %v1904_v34 = vadd.f32 1e-05, %v424_v0  ;;  %v1906_v31 = vadd.f32 1e-05, %v413_v55 }
  0xff   :  { %v654_v63 = vmul.f32 %v1300_v32, %v457_v7  ;;  %vm660_vm2 = vweird.f32 %v1300_v32 }
 0x100   :  { %1301 = vrsqrt.f32 %v1904_v34  ;;  %vm661_vm4 = vmor %vm659_vm3, %vm660_vm2  ;;  %vm669_vm6 = vweird.f32 %v1904_v34  ;;  %vm559_vm9 = vweird.f32 %v1906_v31 }
 0x101   :  { %v655_v61 = vmul.f32 %v1300_v32, %v654_v63  ;;  %1303 = vrsqrt.f32 %v1906_v31 }
 0x103   :  { %v656_v27 = vmul.f32 0.5, %v655_v61  ;;  %v335_v36 = vpop.xlane.xlu2 %334  ;;  %v332_v42 = vpop.xlane.xlu1 %331 }
 0x104   :  { %v415_v17 = vmul.f32 %v335_v36, %v1621_v28  ;;  %v414_v8 = vmul.f32 %v332_v42, %v1621_v28  ;;  %v365_v56 = vpop.xlane.xlu0 %364 }
 0x105   :  { %v657_v19 = vsub.f32 1.5, %v656_v27  ;;  %v425_v62 = vmul.f32 %v365_v56, %v1621_v28 }
 0x106   :  { %v1913_v37 = vpop.eup %1301  ;;  %v1915_v44 = vadd.f32 1e-05, %v415_v17  ;;  %v1917_v46 = vadd.f32 1e-05, %v414_v8 }
 0x107   :  { %v1919_v14 = vpop.eup %1303  ;;  %v664_v22 = vmul.f32 %v1913_v37, %v1904_v34  ;;  %v1923_v41 = vadd.f32 1e-05, %v425_v62  ;;  %v658_v21 = vmul.f32 %v1300_v32, %v657_v19  ;;  %vm670_vm5 = vweird.f32 %v1913_v37 }
 0x108   :  { %v554_v53 = vmul.f32 %v1919_v14, %v1906_v31  ;;  %1305 = vrsqrt.f32 %v1915_v44  ;;  %vm1967_vm7 = vmor %vm669_vm6, %vm670_vm5  ;;  %vm560_vm8 = vweird.f32 %v1919_v14  ;;  %vm579_vm10 = vweird.f32 %v1915_v44 }
 0x109   :  { %v665_v1 = vmul.f32 %v1913_v37, %v664_v22  ;;  %1307 = vrsqrt.f32 %v1917_v46  ;;  %v662_v63 = vsel %vm661_vm4, %v1300_v32, %v658_v21  ;;  %vm2000_vm11 = vmor %vm559_vm9, %vm560_vm8  ;;  %vm569_vm12 = vweird.f32 %v1917_v46 }
 0x10a   :  { %v555_v20 = vmul.f32 %v1919_v14, %v554_v53  ;;  %1309 = vrsqrt.f32 %v1923_v41  ;;  %v831_v32 = vmul.f32 %v662_v63, %v1627_v51  ;;  %v1955_v53 = vld [vmem:[%s2897_s1] ss:$0 sm:$0xff]  ;;  %vm679_vm13 = vweird.f32 %v1923_v41 }
 0x10b   :  { %v666_v10 = vmul.f32 0.5, %v665_v1  ;;  %v368_v40 = vpop.xlane.xlu1 %367 }
 0x10c   :  { %v371_v49 = vpop.xlane.xlu2 %370  ;;  %v426_v0 = vmul.f32 %v368_v40, %v1621_v28  ;;  %v305_v55 = vpop.xlane.xlu0 %304  ;;  %v556_v27 = vmul.f32 0.5, %v555_v20 }
 0x10d   :  { %v667_v61 = vsub.f32 1.5, %v666_v10  ;;  %v427_v36 = vmul.f32 %v371_v49, %v1621_v28  ;;  %v405_v22 = vmul.f32 %v305_v55, %v1621_v28 }
 0x10e   :  { %v1934_v42 = vpop.eup %1305  ;;  %v1936_v17 = vadd.f32 1e-05, %v426_v0  ;;  %v557_v1 = vsub.f32 1.5, %v556_v27 }
 0x10f   :  { %v1938_v8 = vpop.eup %1307  ;;  %v574_v7 = vmul.f32 %v1934_v42, %v1915_v44  ;;  %v1943_v56 = vadd.f32 1e-05, %v427_v36  ;;  %v668_v21 = vmul.f32 %v1913_v37, %v667_v61  ;;  %v1972_v55 = vadd.f32 1e-05, %v405_v22  ;;  %v1984_v22 = vld [vmem:[%s2898_s2] ss:$0 sm:$0xff] }
 0x110   :  { %v1945_v19 = vpop.eup %1309  ;;  %v564_v62 = vmul.f32 %v1938_v8, %v1917_v46  ;;  %1311 = vrsqrt.f32 %v1936_v17  ;;  %v868_v36 = vmul.f32 %v1955_v53, %v831_v32  ;;  %vm580_vm14 = vweird.f32 %v1934_v42 }
 0x111   :  { %v575_v20 = vmul.f32 %v1934_v42, %v574_v7  ;;  %v674_v51 = vmul.f32 %v1945_v19, %v1923_v41  ;;  %1313 = vrsqrt.f32 %v1943_v56  ;;  %v672_v34 = vsel %vm1967_vm7, %v1913_v37, %v668_v21  ;;  %vm2051_vm4 = vmor %vm579_vm10, %vm580_vm14 }
 0x112   :  { %v565_v10 = vmul.f32 %v1938_v8, %v564_v62  ;;  %v558_v7 = vmul.f32 %v1919_v14, %v557_v1  ;;  %1315 = vrsqrt.f32 %v1972_v55  ;;  %vm570_vm15 = vweird.f32 %v1938_v8 }
 0x113   :  { %v675_v40 = vmul.f32 %v1945_v19, %v674_v51  ;;  %v308_v49 = vpop.xlane.xlu1 %307  ;;  %v576_v62 = vmul.f32 0.5, %v575_v20  ;;  %v832_v20 = vmul.f32 %v672_v34, %v1642_v5  ;;  %vm680_vm1 = vweird.f32 %v1945_v19  ;;  %vm2065_vm5 = vmor %vm569_vm12, %vm570_vm15 }
 0x114   :  { %v392_v63 = vpop.xlane.xlu2 %391  ;;  %v406_v61 = vmul.f32 %v308_v49, %v1621_v28  ;;  %v338_v27 = vpop.xlane.xlu0 %337  ;;  %v566_v49 = vmul.f32 0.5, %v565_v10  ;;  %vm699_vm2 = vweird.f32 %v1943_v56  ;;  %vm689_vm3 = vweird.f32 %v1936_v17  ;;  %vm2080_vm8 = vmor %vm679_vm13, %vm680_vm1 }
 0x115   :  { %v434_v51 = vmul.f32 %v392_v63, %v1621_v28  ;;  %v676_v37 = vmul.f32 0.5, %v675_v40  ;;  %v416_v31 = vmul.f32 %v338_v27, %v1621_v28  ;;  %v562_v40 = vsel %vm2000_vm11, %v1919_v14, %v558_v7 }
 0x116   :  { %v1986_v54 = vpop.eup %1311  ;;  %v1989_v32 = vadd.f32 1e-05, %v406_v61  ;;  %v577_v63 = vsub.f32 1.5, %v576_v62  ;;  %v905_v61 = vadd.f32 %v1984_v22, %v868_v36  ;;  %v567_v34 = vsub.f32 1.5, %v566_v49 }
 0x117   :  { %v684_v21 = vmul.f32 %v1986_v54, %v1936_v17  ;;  %v1995_v1 = vpop.eup %1313  ;;  %v2005_v0 = vadd.f32 1e-05, %v434_v51  ;;  %v677_v27 = vsub.f32 1.5, %v676_v37  ;;  %v2025_v10 = vmul.f32 %v562_v40, %v1631_v58 }
 0x118   :  { %1317 = vrsqrt.f32 %v1989_v32  ;;  %v694_v5 = vmul.f32 %v1995_v1, %v1943_v56  ;;  %v2022_v62 = vpop.eup %1315  ;;  %v2027_v57 = vadd.f32 1e-05, %v416_v31  ;;  %v869_v49 = vmul.f32 %v1955_v53, %v832_v20 }
 0x119   :  { %v685_v51 = vmul.f32 %v1986_v54, %v684_v21  ;;  %1319 = vrsqrt.f32 %v2005_v0  ;;  %v578_v38 = vmul.f32 %v1934_v42, %v577_v63  ;;  %v474_v37 = vmul.f32 %v2022_v62, %v1972_v55 }
 0x11a   :  { %v695_v14 = vmul.f32 %v1995_v1, %v694_v5  ;;  %v568_v58 = vmul.f32 %v1938_v8, %v567_v34  ;;  %1321 = vrsqrt.f32 %v2027_v57  ;;  %v906_v20 = vadd.f32 %v1984_v22, %v869_v49 }
 0x11b   :  { %v389_v7 = vpop.xlane.xlu1 %388  ;;  %v686_v36 = vmul.f32 0.5, %v685_v51  ;;  %v678_v31 = vmul.f32 %v1945_v19, %v677_v27  ;;  %v475_v63 = vmul.f32 %v2022_v62, %v474_v37  ;;  %v582_v37 = vsel %vm2051_vm4, %v1934_v42, %v578_v38 }
 0x11c   :  { %v341_v21 = vpop.xlane.xlu2 %340  ;;  %v374_v18 = vpop.xlane.xlu0 %373  ;;  %v696_v40 = vmul.f32 0.5, %v695_v14  ;;  %v930_v49 = vpack.c.bf16 %v906_v20, %v905_v61  ;;  %v433_v45 = vmul.f32 %v389_v7, %v1621_v28  ;;  %vm690_vm6 = vweird.f32 %v1986_v54 }
 0x11d   :  { %v417_v5 = vmul.f32 %v341_v21, %v1621_v28  ;;  %v687_v14 = vsub.f32 1.5, %v686_v36  ;;  %v476_v36 = vmul.f32 0.5, %v475_v63  ;;  %vm479_vm7 = vweird.f32 %v1972_v55  ;;  %vm2113_vm11 = vmor %vm689_vm3, %vm690_vm6 }
 0x11e   :  { %v2035_v26 = vpop.eup %1317  ;;  %v572_v38 = vsel %vm2065_vm5, %v1938_v8, %v568_v58  ;;  %v697_v42 = vsub.f32 1.5, %v696_v40  ;;  %1193 = vmatmul.msk.bf16.vlgmr.msra.gmra.mxu2 %vm91_vm0, %v930_v49  ;;  %vm700_vm9 = vweird.f32 %v1995_v1  ;;  %v2095_v20 = vmul.f32 %v582_v37, %v1664_v4 }
 0x11f   :  { %v484_v51 = vmul.f32 %v2035_v26, %v1989_v32  ;;  %v2045_v21 = vpop.eup %1319  ;;  %v2055_v27 = vadd.f32 1e-05, %v417_v5  ;;  %v682_v5 = vsel %vm2080_vm8, %v1945_v19, %v678_v31  ;;  %v477_v8 = vsub.f32 1.5, %v476_v36  ;;  %vm2125_vm13 = vmor %vm699_vm2, %vm700_vm9 }
 0x120   :  { %v764_v61 = vmul.f32 %v2045_v21, %v2005_v0  ;;  %v2092_v58 = vpop.eup %1321  ;;  %v688_v40 = vmul.f32 %v1986_v54, %v687_v14  ;;  %v2098_v63 = vadd.f32 1e-05, %v433_v45  ;;  %v822_v34 = vmul.f32 %v572_v38, %v1647_v50 }
 0x121   :  { %v485_v7 = vmul.f32 %v2035_v26, %v484_v51  ;;  %1323 = vrsqrt.f32 %v2055_v27  ;;  %v428_v51 = vmul.f32 %v374_v18, %v1621_v28  ;;  %vm769_vm10 = vweird.f32 %v2005_v0 }
 0x122   :  { %v765_v41 = vmul.f32 %v2045_v21, %v764_v61  ;;  %v584_v31 = vmul.f32 %v2092_v58, %v2027_v57  ;;  %v2106_v44 = vmul.f32 %v682_v5, %v1655_v35  ;;  %v698_v4 = vmul.f32 %v1995_v1, %v697_v42 }
 0x123   :  { %v486_v19 = vmul.f32 0.5, %v485_v7  ;;  %v314_v49 = vpop.xlane.xlu1 %313  ;;  %vm489_vm12 = vweird.f32 %v1989_v32  ;;  %1325 = vrsqrt.f32 %v2098_v63  ;;  %v2119_v50 = vadd.f32 1e-05, %v428_v51 }
 0x124   :  { %v478_v18 = vmul.f32 %v2022_v62, %v477_v8  ;;  %vm480_vm14 = vweird.f32 %v2022_v62  ;;  %v766_v17 = vmul.f32 0.5, %v765_v41  ;;  %v585_v14 = vmul.f32 %v2092_v58, %v584_v31  ;;  %v311_v37 = vpop.xlane.xlu0 %310  ;;  %v380_v7 = vpop.xlane.xlu2 %379 }
 0x125   :  { %v692_v61 = vsel %vm2113_vm11, %v1986_v54, %v688_v40  ;;  %vm490_vm15 = vweird.f32 %v2035_v26  ;;  %1327 = vrsqrt.f32 %v2119_v50  ;;  %v858_v56 = vmul.f32 %v1955_v53, %v2025_v10  ;;  %vm2151_vm2 = vmor %vm479_vm7, %vm480_vm14 }
 0x126   :  { %vm770_vm1 = vweird.f32 %v2045_v21  ;;  %v487_v38 = vsub.f32 1.5, %v486_v19  ;;  %v586_v46 = vmul.f32 0.5, %v585_v14  ;;  %v702_v5 = vsel %vm2125_vm13, %v1995_v1, %v698_v4  ;;  %vm2187_vm5 = vmor %vm489_vm12, %vm490_vm15 }
 0x127   :  { %v2132_v36 = vpop.eup %1323  ;;  %vm599_vm3 = vweird.f32 %v2055_v27  ;;  %v859_v10 = vmul.f32 %v1955_v53, %v822_v34  ;;  %v408_v8 = vmul.f32 %v314_v49, %v1621_v28  ;;  %v834_v41 = vmul.f32 %v692_v61, %v1677_v12  ;;  %vm2199_vm6 = vmor %vm769_vm10, %vm770_vm1 }
 0x128   :  { %v594_v42 = vmul.f32 %v2132_v36, %v2055_v27  ;;  %v482_v1 = vsel %vm2151_vm2, %v2022_v62, %v478_v18  ;;  %v767_v40 = vsub.f32 1.5, %v766_v17  ;;  %vm589_vm4 = vweird.f32 %v2027_v57 }
 0x129   :  { %v2164_v51 = vpop.eup %1325  ;;  %v895_v19 = vadd.f32 %v1984_v22, %v858_v56  ;;  %v896_v31 = vadd.f32 %v1984_v22, %v859_v10  ;;  %v2168_v34 = vadd.f32 1e-05, %v408_v8  ;;  %v430_v49 = vmul.f32 %v380_v7, %v1621_v28 }
 0x12a   :  { %v595_v55 = vmul.f32 %v2132_v36, %v594_v42  ;;  %v488_v12 = vmul.f32 %v2035_v26, %v487_v38  ;;  %v587_v4 = vsub.f32 1.5, %v586_v46  ;;  %v754_v62 = vmul.f32 %v2164_v51, %v2098_v63 }
 0x12b   :  { %v2174_v35 = vpop.eup %1327  ;;  %v2177_v18 = vmul.f32 %v702_v5, %v1690_v13  ;;  %v925_v17 = vpack.c.bf16 %v896_v31, %v895_v19  ;;  %1329 = vrsqrt.f32 %v2168_v34  ;;  %v2180_v14 = vadd.f32 1e-05, %v430_v49  ;;  %v377_v42 = vpop.xlane.xlu1 %376 }
 0x12c   :  { %v596_v45 = vmul.f32 0.5, %v595_v55  ;;  %v768_v61 = vmul.f32 %v2045_v21, %v767_v40  ;;  %v755_v46 = vmul.f32 %v2164_v51, %v754_v62  ;;  %v704_v13 = vmul.f32 %v2174_v35, %v2119_v50  ;;  %v344_v10 = vpop.xlane.xlu0 %343 }
 0x12d   :  { %v813_v7 = vmul.f32 %v482_v1, %v1673_v59  ;;  %vm590_vm7 = vweird.f32 %v2092_v58  ;;  %vm600_vm8 = vweird.f32 %v2132_v36  ;;  %1188 = vmatmul.msk.bf16.vlgmr.msra.gmra.mxu1 %vm91_vm0, %v925_v17  ;;  %1331 = vrsqrt.f32 %v2180_v14 }
 0x12e   :  { %v597_v38 = vsub.f32 1.5, %v596_v45  ;;  %v492_v59 = vsel %vm2187_vm5, %v2035_v26, %v488_v12  ;;  %v588_v32 = vmul.f32 %v2092_v58, %v587_v4  ;;  %v705_v0 = vmul.f32 %v2174_v35, %v704_v13  ;;  %vm2224_vm10 = vmor %vm599_vm3, %vm600_vm8 }
 0x12f   :  { %vm709_vm9 = vweird.f32 %v2119_v50  ;;  %v407_v54 = vmul.f32 %v311_v37, %v1621_v28  ;;  %v870_v1 = vmul.f32 %v1955_v53, %v2106_v44  ;;  %v871_v40 = vmul.f32 %v1955_v53, %v834_v41  ;;  %vm2236_vm11 = vmor %vm589_vm4, %vm590_vm7 }
 0x130   :  { %v598_v8 = vmul.f32 %v2132_v36, %v597_v38  ;;  %v429_v55 = vmul.f32 %v377_v42, %v1621_v28  ;;  %v772_v26 = vsel %vm2199_vm6, %v2045_v21, %v768_v61  ;;  %v756_v37 = vmul.f32 0.5, %v755_v46 }
 0x131   :  { %v706_v31 = vmul.f32 0.5, %v705_v0  ;;  %v2228_v49 = vadd.f32 1e-05, %v407_v54  ;;  %v2230_v12 = vpop.eup %1329  ;;  %v907_v21 = vadd.f32 %v1984_v22, %v870_v1  ;;  %v908_v27 = vadd.f32 %v1984_v22, %v871_v40 }
 0x132   :  { %v2242_v41 = vadd.f32 1e-05, %v429_v55  ;;  %v418_v4 = vmul.f32 %v344_v10, %v1621_v28  ;;  %v814_v45 = vmul.f32 %v492_v59, %v1694_v43  ;;  %v592_v62 = vsel %vm2236_vm11, %v2092_v58, %v588_v32 }
 0x133   :  { %vm759_vm12 = vweird.f32 %v2098_v63  ;;  %v707_v57 = vsub.f32 1.5, %v706_v31  ;;  %v504_v17 = vmul.f32 %v2230_v12, %v2168_v34  ;;  %v2252_v61 = vpop.eup %1331  ;;  %v602_v56 = vsel %vm2224_vm10, %v2132_v36, %v598_v8  ;;  %v398_v54 = vpop.xlane.xlu1 %397 }
 0x134   :  { %vm710_vm13 = vweird.f32 %v2174_v35  ;;  %1333 = vrsqrt.f32 %v2228_v49  ;;  %v931_v43 = vpack.c.bf16 %v908_v27, %v907_v21  ;;  %v757_v38 = vsub.f32 1.5, %v756_v37  ;;  %v317_v8 = vpop.xlane.xlu2 %316  ;;  %v395_v31 = vpop.xlane.xlu0 %394 }
 0x135   :  { %v708_v58 = vmul.f32 %v2174_v35, %v707_v57  ;;  %v505_v46 = vmul.f32 %v2230_v12, %v504_v17  ;;  %v724_v13 = vmul.f32 %v2252_v61, %v2180_v14  ;;  %v2264_v42 = vmul.f32 %v772_v26, %v1714_v29  ;;  %vm2281_vm15 = vmor %vm709_vm9, %vm710_vm13 }
 0x136   :  { %v824_v5 = vmul.f32 %v592_v62, %v1698_v2  ;;  %1194 = vmatmul.msk.bf16.gmra.mxu2 %vm91_vm0, %v931_v43  ;;  %1335 = vrsqrt.f32 %v2242_v41  ;;  %v2269_v36 = vadd.f32 1e-05, %v418_v4  ;;  %vm760_vm14 = vweird.f32 %v2164_v51 }
 0x137   :  { %v506_v59 = vmul.f32 0.5, %v505_v46  ;;  %v725_v32 = vmul.f32 %v2252_v61, %v724_v13  ;;  %v850_v0 = vmul.f32 %v1955_v53, %v813_v7  ;;  %v2275_v10 = vmul.f32 %v602_v56, %v1736_v23  ;;  %vm2310_vm3 = vmor %vm759_vm12, %vm760_vm14 }
 0x138   :  { %vm729_vm1 = vweird.f32 %v2180_v14  ;;  %1337 = vrsqrt.f32 %v2269_v36  ;;  %v851_v29 = vmul.f32 %v1955_v53, %v814_v45  ;;  %v758_v7 = vmul.f32 %v2164_v51, %v757_v38 }
 0x139   :  { %v712_v23 = vsel %vm2281_vm15, %v2174_v35, %v708_v58  ;;  %vm509_vm2 = vweird.f32 %v2168_v34  ;;  %v726_v50 = vmul.f32 0.5, %v725_v32  ;;  %v860_v1 = vmul.f32 %v1955_v53, %v2095_v20 }
 0x13a   :  { %v2295_v40 = vpop.eup %1333  ;;  %v887_v55 = vadd.f32 %v1984_v22, %v850_v0  ;;  %v888_v26 = vadd.f32 %v1984_v22, %v851_v29  ;;  %v861_v19 = vmul.f32 %v1955_v53, %v824_v5  ;;  %v436_v37 = vmul.f32 %v398_v54, %v1621_v28 }
 0x13b   :  { %v507_v44 = vsub.f32 1.5, %v506_v59  ;;  %v727_v21 = vsub.f32 1.5, %v726_v50  ;;  %v494_v35 = vmul.f32 %v2295_v40, %v2228_v49  ;;  %v409_v27 = vmul.f32 %v317_v8, %v1621_v28 }
 0x13c   :  { %v2304_v4 = vpop.eup %1335  ;;  %v921_v45 = vpack.c.bf16 %v888_v26, %v887_v55  ;;  %v897_v62 = vadd.f32 %v1984_v22, %v860_v1  ;;  %v898_v57 = vadd.f32 %v1984_v22, %v861_v19  ;;  %v2316_v17 = vadd.f32 1e-05, %v436_v37  ;;  %v350_v26 = vpop.xlane.xlu2 %349 }
 0x13d   :  { %v762_v56 = vsel %vm2310_vm3, %v2164_v51, %v758_v7  ;;  %vm510_vm4 = vweird.f32 %v2230_v12  ;;  %v495_v43 = vmul.f32 %v2295_v40, %v494_v35  ;;  %v714_v63 = vmul.f32 %v2304_v4, %v2242_v41 }
 0x13e   :  { %v2325_v38 = vpop.eup %1337  ;;  %v836_v58 = vmul.f32 %v712_v23, %v1726_v52  ;;  %vm730_vm5 = vweird.f32 %v2252_v61  ;;  %1184 = vmatmul.msk.bf16.vlgmr.msra.gmra.mxu0 %vm91_vm0, %v921_v45  ;;  %v926_v46 = vpack.c.bf16 %v898_v57, %v897_v62  ;;  %1339 = vrsqrt.f32 %v2316_v17  ;;  %vm2354_vm9 = vmor %vm509_vm2, %vm510_vm4 }
 0x13f   :  { %v508_v51 = vmul.f32 %v2230_v12, %v507_v44  ;;  %v496_v13 = vmul.f32 0.5, %v495_v43  ;;  %v715_v5 = vmul.f32 %v2304_v4, %v714_v63  ;;  %v604_v59 = vmul.f32 %v2325_v38, %v2269_v36  ;;  %vm2343_vm7 = vmor %vm729_vm1, %vm730_vm5  ;;  %v347_v44 = vpop.xlane.xlu1 %346 }
 0x140   :  { %v841_v32 = vmul.f32 %v762_v56, %v1718_v11  ;;  %v728_v0 = vmul.f32 %v2252_v61, %v727_v21  ;;  %vm499_vm6 = vweird.f32 %v2228_v49  ;;  %1189 = vmatmul.msk.bf16.gmra.mxu1 %vm91_vm0, %v926_v46  ;;  %v2339_v52 = vadd.f32 1e-05, %v409_v27  ;;  %v320_v21 = vpop.xlane.xlu0 %319 }
 0x141   :  { %v497_v2 = vsub.f32 1.5, %v496_v13  ;;  %vm500_vm8 = vweird.f32 %v2295_v40  ;;  %v605_v29 = vmul.f32 %v2325_v38, %v604_v59  ;;  %v435_v11 = vmul.f32 %v395_v31, %v1621_v28 }
 0x142   :  { %v716_v14 = vmul.f32 0.5, %v715_v5  ;;  %1341 = vrsqrt.f32 %v2339_v52  ;;  %v872_v7 = vmul.f32 %v1955_v53, %v2177_v18  ;;  %v873_v23 = vmul.f32 %v1955_v53, %v836_v58  ;;  %vm501_vm10 = vmor %vm499_vm6, %vm500_vm8 }
 0x143   :  { %v512_v50 = vsel %vm2354_vm9, %v2230_v12, %v508_v51  ;;  %v498_v1 = vmul.f32 %v2295_v40, %v497_v2  ;;  %v606_v55 = vmul.f32 0.5, %v605_v29  ;;  %v2366_v34 = vadd.f32 1e-05, %v435_v11 }
 0x144   :  { %v2368_v19 = vpop.eup %1339  ;;  %v732_v37 = vsel %vm2343_vm7, %v2252_v61, %v728_v0  ;;  %vm719_vm11 = vweird.f32 %v2242_v41  ;;  %v910_v18 = vadd.f32 %v1984_v22, %v873_v23  ;;  %v878_v12 = vmul.f32 %v1955_v53, %v841_v32 }
 0x145   :  { %v879_v31 = vmul.f32 %v1955_v53, %v2264_v42  ;;  %v502_v35 = vsel %vm501_vm10, %v2295_v40, %v498_v1  ;;  %v607_v27 = vsub.f32 1.5, %v606_v55  ;;  %v784_v61 = vmul.f32 %v2368_v19, %v2316_v17 }
 0x146   :  { %v909_v49 = vadd.f32 %v1984_v22, %v872_v7  ;;  %v816_v20 = vmul.f32 %v512_v50, %v1742_v16  ;;  %v717_v45 = vsub.f32 1.5, %v716_v14  ;;  %vm609_vm12 = vweird.f32 %v2269_v36  ;;  %v401_v50 = vpop.xlane.xlu2 %400 }
 0x147   :  { %1343 = vrsqrt.f32 %v2366_v34  ;;  %v815_v62 = vmul.f32 %v502_v35, %v1749_v25  ;;  %vm720_vm13 = vweird.f32 %v2304_v4  ;;  %v785_v42 = vmul.f32 %v2368_v19, %v784_v61 }
 0x148   :  { %v932_v40 = vpack.c.bf16 %v910_v18, %v909_v49  ;;  %v2392_v57 = vpop.eup %1341  ;;  %v2395_v56 = vmul.f32 %v732_v37, %v1759_v30  ;;  %v915_v43 = vadd.f32 %v1984_v22, %v878_v12  ;;  %v916_v16 = vadd.f32 %v1984_v22, %v879_v31  ;;  %vm2430_vm2 = vmor %vm719_vm11, %vm720_vm13  ;;  %v383_v37 = vpop.xlane.xlu0 %382 }
 0x149   :  { %v419_v63 = vmul.f32 %v347_v44, %v1621_v28  ;;  %v608_v58 = vmul.f32 %v2325_v38, %v607_v27  ;;  %vm610_vm14 = vweird.f32 %v2325_v38  ;;  %v786_v25 = vmul.f32 0.5, %v785_v42 }
 0x14a   :  { %v514_v46 = vmul.f32 %v2392_v57, %v2339_v52  ;;  %1195 = vmatmul.msk.bf16.gmra.mxu2 %vm91_vm0, %v932_v40  ;;  %v718_v51 = vmul.f32 %v2304_v4, %v717_v45  ;;  %v935_v30 = vpack.c.bf16 %v916_v16, %v915_v43  ;;  %v420_v5 = vmul.f32 %v350_v26, %v1621_v28  ;;  %vm2416_vm15 = vmor %vm609_vm12, %vm610_vm14  ;;  %v386_v26 = vpop.xlane.xlu1 %385 }
 0x14b   :  { %v2406_v13 = vadd.f32 1e-05, %v419_v63  ;;  %v787_v59 = vsub.f32 1.5, %v786_v25  ;;  %v410_v0 = vmul.f32 %v320_v21, %v1621_v28  ;;  %v852_v54 = vmul.f32 %v1955_v53, %v815_v62 }
 0x14c   :  { %v515_v32 = vmul.f32 %v2392_v57, %v514_v46  ;;  %vm789_vm1 = vweird.f32 %v2316_v17  ;;  %1198 = vmatmul.msk.bf16.vlgmr.msra.gmra.mxu3 %vm91_vm0, %v935_v30  ;;  %v2423_v11 = vadd.f32 1e-05, %v420_v5  ;;  %v853_v8 = vmul.f32 %v1955_v53, %v816_v20 }
 0x14d   :  { %v2412_v2 = vpop.eup %1343  ;;  %1345 = vrsqrt.f32 %v2406_v13  ;;  %v612_v14 = vsel %vm2416_vm15, %v2325_v38, %v608_v58  ;;  %vm790_vm3 = vweird.f32 %v2368_v19  ;;  %v722_v1 = vsel %vm2430_vm2, %v2304_v4, %v718_v51 }
 0x14e   :  { %v516_v7 = vmul.f32 0.5, %v515_v32  ;;  %v774_v23 = vmul.f32 %v2412_v2, %v2366_v34  ;;  %1347 = vrsqrt.f32 %v2423_v11  ;;  %v2444_v41 = vadd.f32 1e-05, %v410_v0  ;;  %vm2462_vm5 = vmor %vm789_vm1, %vm790_vm3 }
 0x14f   :  { %v889_v55 = vadd.f32 %v1984_v22, %v852_v54  ;;  %v788_v38 = vmul.f32 %v2368_v19, %v787_v59  ;;  %v890_v31 = vadd.f32 %v1984_v22, %v853_v8  ;;  %v826_v44 = vmul.f32 %v612_v14, %v1774_v47 }
 0x150   :  { %v517_v18 = vsub.f32 1.5, %v516_v7  ;;  %v775_v12 = vmul.f32 %v2412_v2, %v774_v23  ;;  %vm520_vm4 = vweird.f32 %v2392_v57  ;;  %1349 = vrsqrt.f32 %v2444_v41  ;;  %v404_v54 = vpop.xlane.xlu0 %403 }
 0x151   :  { %v437_v4 = vmul.f32 %v401_v50, %v1621_v28  ;;  %v922_v27 = vpack.c.bf16 %v890_v31, %v889_v55  ;;  %v432_v61 = vmul.f32 %v386_v26, %v1621_v28  ;;  %vm519_vm6 = vweird.f32 %v2339_v52 }
 0x152   :  { %v518_v21 = vmul.f32 %v2392_v57, %v517_v18  ;;  %v776_v35 = vmul.f32 0.5, %v775_v12  ;;  %vm779_vm7 = vweird.f32 %v2366_v34  ;;  %v431_v45 = vmul.f32 %v383_v37, %v1621_v28  ;;  %vm2482_vm8 = vmor %vm519_vm6, %vm520_vm4 }
 0x153   :  { %v2456_v49 = vpop.eup %1345  ;;  %v2468_v20 = vadd.f32 1e-05, %v437_v4  ;;  %v837_v62 = vmul.f32 %v722_v1, %v1769_v33  ;;  %v792_v42 = vsel %vm2462_vm5, %v2368_v19, %v788_v38  ;;  %1185 = vmatmul.msk.bf16.gmra.mxu0 %vm91_vm0, %v922_v27  ;;  %vm780_vm9 = vweird.f32 %v2412_v2 }
 0x154   :  { %v777_v40 = vsub.f32 1.5, %v776_v35  ;;  %v614_v17 = vmul.f32 %v2456_v49, %v2406_v13  ;;  %v2478_v43 = vpop.eup %1347  ;;  %vm619_vm10 = vweird.f32 %v2406_v13  ;;  %v2489_v33 = vadd.f32 1e-05, %v432_v61  ;;  %vm2526_vm13 = vmor %vm779_vm7, %vm780_vm9 }
 0x155   :  { %1351 = vrsqrt.f32 %v2468_v20  ;;  %v522_v19 = vsel %vm2482_vm8, %v2392_v57, %v518_v21  ;;  %v624_v63 = vmul.f32 %v2478_v43, %v2423_v11  ;;  %v863_v58 = vmul.f32 %v1955_v53, %v826_v44 }
 0x156   :  { %v615_v16 = vmul.f32 %v2456_v49, %v614_v17  ;;  %v2498_v25 = vpop.eup %1349  ;;  %v2501_v46 = vmul.f32 %v792_v42, %v1789_v15  ;;  %1353 = vrsqrt.f32 %v2489_v33  ;;  %v2504_v51 = vadd.f32 1e-05, %v431_v45  ;;  %v323_v15 = vpop.xlane.xlu1 %322 }
 0x157   :  { %v862_v30 = vmul.f32 %v1955_v53, %v2275_v10  ;;  %v778_v57 = vmul.f32 %v2412_v2, %v777_v40  ;;  %v625_v59 = vmul.f32 %v2478_v43, %v624_v63  ;;  %v524_v32 = vmul.f32 %v2498_v25, %v2444_v41  ;;  %v326_v63 = vpop.xlane.xlu2 %325 }
 0x158   :  { %v616_v5 = vmul.f32 0.5, %v615_v16  ;;  %v2513_v0 = vmul.f32 %v522_v19, %v1800_v48  ;;  %vm620_vm11 = vweird.f32 %v2456_v49  ;;  %vm529_vm12 = vweird.f32 %v2444_v41 }
 0x159   :  { %1355 = vrsqrt.f32 %v2504_v51  ;;  %v626_v29 = vmul.f32 0.5, %v625_v59  ;;  %v525_v8 = vmul.f32 %v2498_v25, %v524_v32  ;;  %v900_v36 = vadd.f32 %v1984_v22, %v863_v58  ;;  %vm2551_vm1 = vmor %vm619_vm10, %vm620_vm11 }
 0x15a   :  { %v617_v10 = vsub.f32 1.5, %v616_v5  ;;  %vm630_vm14 = vweird.f32 %v2478_v43  ;;  %v899_v7 = vadd.f32 %v1984_v22, %v862_v30  ;;  %v874_v23 = vmul.f32 %v1955_v53, %v837_v62  ;;  %v353_v30 = vpop.xlane.xlu0 %352 }
 0x15b   :  { %v2520_v14 = vpop.eup %1351  ;;  %v875_v50 = vmul.f32 %v1955_v53, %v2395_v56  ;;  %v782_v1 = vsel %vm2526_vm13, %v2412_v2, %v778_v57  ;;  %v526_v34 = vmul.f32 0.5, %v525_v8  ;;  %vm629_vm15 = vweird.f32 %v2423_v11 }
 0x15c   :  { %v618_v55 = vmul.f32 %v2456_v49, %v617_v10  ;;  %v794_v26 = vmul.f32 %v2520_v14, %v2468_v20  ;;  %v2541_v37 = vpop.eup %1353  ;;  %v927_v38 = vpack.c.bf16 %v900_v36, %v899_v7  ;;  %v911_v18 = vadd.f32 %v1984_v22, %v874_v23  ;;  %vm2606_vm10 = vmor %vm629_vm15, %vm630_vm14 }
 0x15d   :  { %v912_v12 = vadd.f32 %v1984_v22, %v875_v50  ;;  %v411_v56 = vmul.f32 %v323_v15, %v1621_v28  ;;  %v627_v31 = vsub.f32 1.5, %v626_v29  ;;  %v527_v44 = vsub.f32 1.5, %v526_v34 }
 0x15e   :  { %v795_v4 = vmul.f32 %v2520_v14, %v794_v26  ;;  %v438_v21 = vmul.f32 %v404_v54, %v1621_v28  ;;  %v622_v27 = vsel %vm2551_vm1, %v2456_v49, %v618_v55  ;;  %vm530_vm2 = vweird.f32 %v2498_v25  ;;  %1190 = vmatmul.msk.bf16.gmra.mxu1 %vm91_vm0, %v927_v38  ;;  %v356_v41 = vpop.xlane.xlu1 %355 }
 0x15f   :  { %v2557_v35 = vpop.eup %1355  ;;  %v744_v13 = vmul.f32 %v2541_v37, %v2489_v33  ;;  %vm749_vm3 = vweird.f32 %v2489_v33  ;;  %v933_v61 = vpack.c.bf16 %v912_v12, %v911_v18  ;;  %v843_v47 = vmul.f32 %v782_v1, %v1785_v39  ;;  %vm2583_vm6 = vmor %vm529_vm12, %vm530_vm2 }
 0x160   :  { %v528_v45 = vmul.f32 %v2498_v25, %v527_v44  ;;  %v796_v62 = vmul.f32 0.5, %v795_v4  ;;  %v734_v42 = vmul.f32 %v2557_v35, %v2504_v51  ;;  %vm800_vm4 = vweird.f32 %v2520_v14 }
 0x161   :  { %v745_v49 = vmul.f32 %v2541_v37, %v744_v13  ;;  %vm739_vm5 = vweird.f32 %v2504_v51  ;;  %1196 = vmatmul.msk.bf16.gmra.mxu2 %vm91_vm0, %v933_v61  ;;  %v2575_v40 = vadd.f32 1e-05, %v411_v56  ;;  %v827_v17 = vmul.f32 %v622_v27, %v1806_v9  ;;  %v2968_v27 = vld [vmem:[#allocation2_spill] sm:$0xff]  ;;  %v2973_v51 = vld [vmem:[#allocation7_spill] sm:$0xff] }
 0x162   :  { %v628_v39 = vmul.f32 %v2478_v43, %v627_v31  ;;  %vm799_vm7 = vweird.f32 %v2468_v20  ;;  %v735_v19 = vmul.f32 %v2557_v35, %v734_v42  ;;  %v2589_v16 = vadd.f32 1e-05, %v438_v21 }
 0x163   :  { %v532_v9 = vsel %vm2583_vm6, %v2498_v25, %v528_v45  ;;  %v746_v58 = vmul.f32 0.5, %v745_v49  ;;  %vm750_vm8 = vweird.f32 %v2541_v37  ;;  %1357 = vrsqrt.f32 %v2575_v40  ;;  %vm2655_vm13 = vmor %vm799_vm7, %vm800_vm4 }
 0x164   :  { %v797_v57 = vsub.f32 1.5, %v796_v62  ;;  %v736_v5 = vmul.f32 0.5, %v735_v19  ;;  %vm740_vm9 = vweird.f32 %v2557_v35  ;;  %1359 = vrsqrt.f32 %v2589_v16  ;;  %vm2624_vm11 = vmor %vm749_vm3, %vm750_vm8 }
 0x165   :  { %v747_v59 = vsub.f32 1.5, %v746_v58  ;;  %v880_v32 = vmul.f32 %v1955_v53, %v843_v47  ;;  %v881_v15 = vmul.f32 %v1955_v53, %v2501_v46  ;;  %v412_v25 = vmul.f32 %v326_v63, %v1621_v28  ;;  %vm741_vm12 = vmor %vm739_vm5, %vm740_vm9 }
 0x166   :  { %v818_v10 = vmul.f32 %v532_v9, %v1813_v3  ;;  %v737_v29 = vsub.f32 1.5, %v736_v5  ;;  %v422_v8 = vmul.f32 %v356_v41, %v1621_v28  ;;  %v421_v36 = vmul.f32 %v353_v30, %v1621_v28 }
 0x167   :  { %v632_v46 = vsel %vm2606_vm10, %v2478_v43, %v628_v39  ;;  %v748_v48 = vmul.f32 %v2541_v37, %v747_v59  ;;  %v917_v7 = vadd.f32 %v1984_v22, %v880_v32  ;;  %v918_v11 = vadd.f32 %v1984_v22, %v881_v15 }
 0x168   :  { %v798_v23 = vmul.f32 %v2520_v14, %v797_v57  ;;  %v738_v28 = vmul.f32 %v2557_v35, %v737_v29  ;;  %v2629_v50 = vadd.f32 1e-05, %v412_v25  ;;  %v2631_v43 = vadd.f32 1e-05, %v422_v8  ;;  %v2971_v29 = vld [vmem:[#allocation4_spill] sm:$0xff] }
 0x169   :  { %v2633_v1 = vpop.eup %1357  ;;  %v752_v55 = vsel %vm2624_vm11, %v2541_v37, %v748_v48  ;;  %v936_v33 = vpack.c.bf16 %v918_v11, %v917_v7  ;;  %v2642_v34 = vadd.f32 1e-05, %v421_v36  ;;  %v854_v26 = vmul.f32 %v1955_v53, %v2513_v0 }
 0x16a   :  { %v1360_v38 = vpop.eup %1359  ;;  %v828_v18 = vmul.f32 %v632_v46, %v1826_v24  ;;  %v742_v12 = vsel %vm741_vm12, %v2557_v35, %v738_v28  ;;  %v534_v56 = vmul.f32 %v2633_v1, %v2575_v40  ;;  %v855_v37 = vmul.f32 %v1955_v53, %v818_v10 }
 0x16b   :  { %v840_v0 = vmul.f32 %v752_v55, %v1837_v60  ;;  %v839_v2 = vmul.f32 %v742_v12, %v1849_v6  ;;  %v804_v24 = vmul.f32 %v1360_v38, %v2589_v16  ;;  %1199 = vmatmul.msk.bf16.gmra.mxu3 %vm91_vm0, %v936_v33  ;;  %1361 = vrsqrt.f32 %v2629_v50 }
 0x16c   :  { %v802_v31 = vsel %vm2655_vm13, %v2520_v14, %v798_v23  ;;  %v535_v20 = vmul.f32 %v2633_v1, %v534_v56  ;;  %1363 = vrsqrt.f32 %v2631_v43  ;;  %v891_v60 = vadd.f32 %v1984_v22, %v854_v26  ;;  %v1367_v23 = vld [vmem:[%s2897_s1] ss:$0 sm:$0xff] }
 0x16d   :  { %v805_v44 = vmul.f32 %v1360_v38, %v804_v24  ;;  %1365 = vrsqrt.f32 %v2642_v34  ;;  %v892_v4 = vadd.f32 %v1984_v22, %v855_v37  ;;  %v864_v21 = vmul.f32 %v1955_v53, %v827_v17 }
 0x16e   :  { %v536_v6 = vmul.f32 0.5, %v535_v20  ;;  %v865_v35 = vmul.f32 %v1955_v53, %v828_v18  ;;  %v845_v13 = vmul.f32 %v802_v31, %v2968_v27  ;;  %v876_v14 = vmul.f32 %v1955_v53, %v839_v2  ;;  %v2974_v31 = vld [vmem:[#allocation5_spill] sm:$0xff] }
 0x16f   :  { %v806_v61 = vmul.f32 0.5, %v805_v44  ;;  %v877_v47 = vmul.f32 %v1955_v53, %v840_v0  ;;  %v923_v62 = vpack.c.bf16 %v892_v4, %v891_v60  ;;  %v901_v42 = vadd.f32 %v1984_v22, %v864_v21 }
 0x170   :  { %v537_v45 = vsub.f32 1.5, %v536_v6  ;;  %v902_v49 = vadd.f32 %v1984_v22, %v865_v35  ;;  %vm810_vm14 = vweird.f32 %v1360_v38  ;;  %v913_v17 = vadd.f32 %v1984_v22, %v876_v14  ;;  %v1368_v6 = vld [vmem:[%s2898_s2] ss:$0 sm:$0xff] }
 0x171   :  { %v1362_v39 = vpop.eup %1361  ;;  %v807_v52 = vsub.f32 1.5, %v806_v61  ;;  %v914_v19 = vadd.f32 %v1984_v22, %v877_v47  ;;  %vm540_vm15 = vweird.f32 %v2633_v1  ;;  %1186 = vmatmul.msk.bf16.gmra.mxu0 %vm91_vm0, %v923_v62  ;;  %vm809_vm1 = vweird.f32 %v2589_v16  ;;  %v2724_v14 = vld [vmem:[%s2900_s4] ss:$0 sm:$0xff] }
 0x172   :  { %v1364_v63 = vpop.eup %1363  ;;  %v538_v9 = vmul.f32 %v2633_v1, %v537_v45  ;;  %v544_v58 = vmul.f32 %v1362_v39, %v2629_v50  ;;  %v928_v41 = vpack.c.bf16 %v902_v49, %v901_v42  ;;  %vm539_vm2 = vweird.f32 %v2575_v40  ;;  %vm811_vm3 = vmor %vm809_vm1, %vm810_vm14 }
 0x173   :  { %v1366_v30 = vpop.eup %1365  ;;  %v808_v57 = vmul.f32 %v1360_v38, %v807_v52  ;;  %v644_v5 = vmul.f32 %v1364_v63, %v2631_v43  ;;  %v934_v59 = vpack.c.bf16 %v914_v19, %v913_v17  ;;  %vm2691_vm4 = vmor %vm539_vm2, %vm540_vm15  ;;  %v882_v16 = vmul.f32 %v1955_v53, %v845_v13  ;;  %v2972_v53 = vld [vmem:[#allocation3_spill] sm:$0xff] }
 0x174   :  { %v545_v32 = vmul.f32 %v1362_v39, %v544_v58  ;;  %v634_v15 = vmul.f32 %v1366_v30, %v2642_v34  ;;  %1191 = vmatmul.msk.bf16.gmra.mxu1 %vm91_vm0, %v928_v41  ;;  %v542_v40 = vsel %vm2691_vm4, %v2633_v1, %v538_v9  ;;  %vm549_vm5 = vweird.f32 %v2629_v50  ;;  %v2975_v50 = vld [vmem:[#allocation6_spill] sm:$0xff] }
 0x175   :  { %v812_v54 = vsel %vm811_vm3, %v1360_v38, %v808_v57  ;;  %v645_v10 = vmul.f32 %v1364_v63, %v644_v5  ;;  %1197 = vmatmul.msk.bf16.gmra.mxu2 %vm91_vm0, %v934_v59  ;;  %vm550_vm6 = vweird.f32 %v1362_v39  ;;  %v819_v28 = vmul.f32 %v542_v40, %v2972_v53 }
 0x176   :  { %v846_v8 = vmul.f32 %v812_v54, %v2971_v29  ;;  %v546_v36 = vmul.f32 0.5, %v545_v32  ;;  %v635_v46 = vmul.f32 %v1366_v30, %v634_v15  ;;  %vm650_vm7 = vweird.f32 %v1364_v63  ;;  %vm551_vm9 = vmor %vm549_vm5, %vm550_vm6 }
 0x177   :  { %v646_v48 = vmul.f32 0.5, %v645_v10  ;;  %v919_v1 = vadd.f32 %v1984_v22, %v882_v16  ;;  %vm640_vm8 = vweird.f32 %v1366_v30  ;;  %vm649_vm10 = vweird.f32 %v2631_v43 }
 0x178   :  { %v547_v7 = vsub.f32 1.5, %v546_v36  ;;  %v636_v11 = vmul.f32 0.5, %v635_v46  ;;  %v883_v3 = vmul.f32 %v1367_v23, %v846_v8  ;;  %vm651_vm11 = vmor %vm649_vm10, %vm650_vm7  ;;  %vm639_vm12 = vweird.f32 %v2642_v34 }
 0x179   :  { %v647_v55 = vsub.f32 1.5, %v646_v48  ;;  %vm641_vm13 = vmor %vm639_vm12, %vm640_vm8  ;;  %v856_v24 = vmul.f32 %v1367_v23, %v819_v28  ;;  %vm1137_vm14 = vcmask 781312  }
 0x17a   :  { %v548_v33 = vmul.f32 %v1362_v39, %v547_v7  ;;  %v637_v26 = vsub.f32 1.5, %v636_v11  ;;  %v920_v38 = vadd.f32 %v1984_v22, %v883_v3 }
 0x17b   :  { %v648_v18 = vmul.f32 %v1364_v63, %v647_v55  ;;  %v893_v34 = vadd.f32 %v1368_v6, %v856_v24 }
 0x17c   :  { %v552_v12 = vsel %vm551_vm9, %v1362_v39, %v548_v33  ;;  %v638_v56 = vmul.f32 %v1366_v30, %v637_v26  ;;  %v937_v37 = vpack.c.bf16 %v920_v38, %v919_v1 }
 0x17d   :  { %v820_v0 = vmul.f32 %v552_v12, %v2973_v51  ;;  %v652_v2 = vsel %vm651_vm11, %v1364_v63, %v648_v18 }
 0x17e   :  { %v830_v20 = vmul.f32 %v652_v2, %v2974_v31  ;;  %v642_v22 = vsel %vm641_vm13, %v1366_v30, %v638_v56  ;;  %1200 = vmatmul.msk.bf16.gmra.mxu3 %vm91_vm0, %v937_v37 }
 0x17f   :  { %v829_v44 = vmul.f32 %v642_v22, %v2975_v50  ;;  %v857_v60 = vmul.f32 %v1367_v23, %v820_v0 }
 0x180   :  { %v867_v43 = vmul.f32 %v1367_v23, %v830_v20 }
 0x181   :  { %v894_v4 = vadd.f32 %v1368_v6, %v857_v60  ;;  %v866_v21 = vmul.f32 %v1367_v23, %v829_v44 }
 0x182   :  { %v904_v35 = vadd.f32 %v1368_v6, %v867_v43 }
 0x183   :  { %v924_v27 = vpack.c.bf16 %v894_v4, %v893_v34  ;;  %v903_v13 = vadd.f32 %v1368_v6, %v866_v21 }
 0x185   :  { %1187 = vmatmul.msk.bf16.gmra.mxu0 %vm91_vm0, %v924_v27  ;;  %v929_v61 = vpack.c.bf16 %v904_v35, %v903_v13 }
 0x187   :  { %1192 = vmatmul.msk.bf16.gmra.mxu1 %vm91_vm0, %v929_v61 }
 0x1a1   :  { %v1063_v47 = vpop.f32.mrf.mxu2 }
 0x1a2   :  { %v1064_v45 = vadd.f32 %v2724_v14, %v1063_v47 }
 0x1a4   :  { %v1121_v62 = vpack.c.bf16 %v1064_v45, %v1064_v45 }
 0x1a6   :  { %1156 = vst.msk [vmem:[%s2901_s5 + $0x48] sm:$0xf] %vm1137_vm14, %v1121_v62 }
 0x1a9   :  { %v1065_v49 = vpop.f32.mrf.mxu2 }
 0x1aa   :  { %v1038_v42 = vpop.f32.mrf.mxu1  ;;  %v1066_v52 = vadd.f32 %v2724_v14, %v1065_v49 }
 0x1ab   :  { %v1039_v39 = vadd.f32 %v2724_v14, %v1038_v42 }
 0x1ac   :  { %v1122_v19 = vpack.c.bf16 %v1066_v52, %v1066_v52 }
 0x1ad   :  { %v1111_v17 = vpack.c.bf16 %v1039_v39, %v1039_v39 }
 0x1ae   :  { %1157 = vst.msk [vmem:[%s2901_s5 + $0x4c] sm:$0xf] %vm1137_vm14, %v1122_v19 }
 0x1af   :  { %1146 = vst.msk [vmem:[%s2901_s5 + $0x20] sm:$0xf] %vm1137_vm14, %v1111_v17 }
 0x1b2   :  { %v1040_v63 = vpop.f32.mrf.mxu1 }
 0x1b3   :  { %v1041_v9 = vadd.f32 %v2724_v14, %v1040_v63 }
 0x1b5   :  { %v1112_v58 = vpack.c.bf16 %v1041_v9, %v1041_v9 }
 0x1b7   :  { %1147 = vst.msk [vmem:[%s2901_s5 + $0x24] sm:$0xf] %vm1137_vm14, %v1112_v58 }
 0x1b9   :  { %v1068_v41 = vpop.f32.mrf.mxu2 }
 0x1ba   :  { %v1069_v30 = vadd.f32 %v2724_v14, %v1068_v41 }
 0x1bb   :  { %v1018_v57 = vpop.f32.mrf.mxu0 }
 0x1bc   :  { %v1123_v5 = vpack.c.bf16 %v1069_v30, %v1069_v30  ;;  %v1019_v59 = vadd.f32 %v2724_v14, %v1018_v57 }
 0x1bd   :  { %v1043_v32 = vpop.f32.mrf.mxu1 }
 0x1be   :  { %1158 = vst.msk [vmem:[%s2901_s5 + $0x50] sm:$0xf] %vm1137_vm14, %v1123_v5  ;;  %v1103_v15 = vpack.c.bf16 %v1019_v59, %v1019_v59  ;;  %v1044_v25 = vadd.f32 %v2724_v14, %v1043_v32 }
 0x1c0   :  { %1138 = vst.msk [vmem:[%s2901_s5] sm:$0xf] %vm1137_vm14, %v1103_v15  ;;  %v1113_v54 = vpack.c.bf16 %v1044_v25, %v1044_v25 }
 0x1c1   :  { %v1070_v10 = vpop.f32.mrf.mxu2 }
 0x1c2   :  { %1148 = vst.msk [vmem:[%s2901_s5 + $0x28] sm:$0xf] %vm1137_vm14, %v1113_v54  ;;  %v1071_v16 = vadd.f32 %v2724_v14, %v1070_v10 }
 0x1c3   :  { %v1020_v40 = vpop.f32.mrf.mxu0 }
 0x1c4   :  { %v1124_v29 = vpack.c.bf16 %v1071_v16, %v1071_v16  ;;  %v1021_v8 = vadd.f32 %v2724_v14, %v1020_v40 }
 0x1c5   :  { %v1045_v36 = vpop.f32.mrf.mxu1 }
 0x1c6   :  { %1159 = vst.msk [vmem:[%s2901_s5 + $0x54] sm:$0xf] %vm1137_vm14, %v1124_v29  ;;  %v1104_v46 = vpack.c.bf16 %v1021_v8, %v1021_v8  ;;  %v1046_v48 = vadd.f32 %v2724_v14, %v1045_v36 }
 0x1c8   :  { %1139 = vst.msk [vmem:[%s2901_s5 + $0x4] sm:$0xf] %vm1137_vm14, %v1104_v46  ;;  %v1114_v7 = vpack.c.bf16 %v1046_v48, %v1046_v48 }
 0x1ca   :  { %1149 = vst.msk [vmem:[%s2901_s5 + $0x2c] sm:$0xf] %vm1137_vm14, %v1114_v7 }
 0x1cd   :  { %v1073_v11 = vpop.f32.mrf.mxu2 }
 0x1ce   :  { %v1074_v23 = vadd.f32 %v2724_v14, %v1073_v11 }
 0x1cf   :  { %v1088_v53 = vpop.f32.mrf.mxu3 }
 0x1d0   :  { %v1125_v3 = vpack.c.bf16 %v1074_v23, %v1074_v23  ;;  %v1089_v28 = vadd.f32 %v2724_v14, %v1088_v53  ;;  %v1023_v55 = vpop.f32.mrf.mxu0 }
 0x1d1   :  { %v1024_v1 = vadd.f32 %v2724_v14, %v1023_v55 }
 0x1d2   :  { %1160 = vst.msk [vmem:[%s2901_s5 + $0x58] sm:$0xf] %vm1137_vm14, %v1125_v3  ;;  %v1131_v33 = vpack.c.bf16 %v1089_v28, %v1089_v28 }
 0x1d3   :  { %v1105_v26 = vpack.c.bf16 %v1024_v1, %v1024_v1 }
 0x1d4   :  { %1166 = vst.msk [vmem:[%s2901_s5 + $0x70] sm:$0xf] %vm1137_vm14, %v1131_v33 }
 0x1d5   :  { %v1075_v38 = vpop.f32.mrf.mxu2  ;;  %1140 = vst.msk [vmem:[%s2901_s5 + $0x8] sm:$0xf] %vm1137_vm14, %v1105_v26 }
 0x1d6   :  { %v1076_v18 = vadd.f32 %v2724_v14, %v1075_v38 }
 0x1d7   :  { %v1090_v56 = vpop.f32.mrf.mxu3 }
 0x1d8   :  { %v1126_v12 = vpack.c.bf16 %v1076_v18, %v1076_v18  ;;  %v1091_v37 = vadd.f32 %v2724_v14, %v1090_v56  ;;  %v1025_v51 = vpop.f32.mrf.mxu0 }
 0x1d9   :  { %v1026_v0 = vadd.f32 %v2724_v14, %v1025_v51 }
 0x1da   :  { %1161 = vst.msk [vmem:[%s2901_s5 + $0x5c] sm:$0xf] %vm1137_vm14, %v1126_v12  ;;  %v1132_v2 = vpack.c.bf16 %v1091_v37, %v1091_v37 }
 0x1db   :  { %v1106_v24 = vpack.c.bf16 %v1026_v0, %v1026_v0  ;;  %v1048_v31 = vpop.f32.mrf.mxu1 }
 0x1dc   :  { %1167 = vst.msk [vmem:[%s2901_s5 + $0x74] sm:$0xf] %vm1137_vm14, %v1132_v2  ;;  %v1049_v20 = vadd.f32 %v2724_v14, %v1048_v31 }
 0x1dd   :  { %1141 = vst.msk [vmem:[%s2901_s5 + $0xc] sm:$0xf] %vm1137_vm14, %v1106_v24 }
 0x1de   :  { %v1115_v22 = vpack.c.bf16 %v1049_v20, %v1049_v20 }
 0x1e0   :  { %1150 = vst.msk [vmem:[%s2901_s5 + $0x30] sm:$0xf] %vm1137_vm14, %v1115_v22 }
 0x1e3   :  { %v1050_v44 = vpop.f32.mrf.mxu1 }
 0x1e4   :  { %v1078_v50 = vpop.f32.mrf.mxu2  ;;  %v1051_v43 = vadd.f32 %v2724_v14, %v1050_v44 }
 0x1e5   :  { %v1079_v60 = vadd.f32 %v2724_v14, %v1078_v50 }
 0x1e6   :  { %v1116_v34 = vpack.c.bf16 %v1051_v43, %v1051_v43 }
 0x1e7   :  { %v1127_v6 = vpack.c.bf16 %v1079_v60, %v1079_v60 }
 0x1e8   :  { %1151 = vst.msk [vmem:[%s2901_s5 + $0x34] sm:$0xf] %vm1137_vm14, %v1116_v34 }
 0x1e9   :  { %1162 = vst.msk [vmem:[%s2901_s5 + $0x60] sm:$0xf] %vm1137_vm14, %v1127_v6 }
 0x1ec   :  { %v1080_v4 = vpop.f32.mrf.mxu2 }
 0x1ed   :  { %v1081_v21 = vadd.f32 %v2724_v14, %v1080_v4 }
 0x1ee   :  { %v1093_v35 = vpop.f32.mrf.mxu3  ;;  %v1028_v61 = vpop.f32.mrf.mxu0 }
 0x1ef   :  { %v1128_v27 = vpack.c.bf16 %v1081_v21, %v1081_v21  ;;  %v1094_v13 = vadd.f32 %v2724_v14, %v1093_v35  ;;  %v1029_v47 = vadd.f32 %v2724_v14, %v1028_v61 }
 0x1f1   :  { %1163 = vst.msk [vmem:[%s2901_s5 + $0x64] sm:$0xf] %vm1137_vm14, %v1128_v27  ;;  %v1133_v45 = vpack.c.bf16 %v1094_v13, %v1094_v13  ;;  %v1053_v62 = vpop.f32.mrf.mxu1  ;;  %v1107_v42 = vpack.c.bf16 %v1029_v47, %v1029_v47 }
 0x1f2   :  { %v1054_v49 = vadd.f32 %v2724_v14, %v1053_v62 }
 0x1f3   :  { %1168 = vst.msk [vmem:[%s2901_s5 + $0x78] sm:$0xf] %vm1137_vm14, %v1133_v45 }
 0x1f4   :  { %1142 = vst.msk [vmem:[%s2901_s5 + $0x10] sm:$0xf] %vm1137_vm14, %v1107_v42  ;;  %v1117_v39 = vpack.c.bf16 %v1054_v49, %v1054_v49 }
 0x1f6   :  { %1152 = vst.msk [vmem:[%s2901_s5 + $0x38] sm:$0xf] %vm1137_vm14, %v1117_v39  ;;  %v1095_v52 = vpop.f32.mrf.mxu3  ;;  %v1030_v19 = vpop.f32.mrf.mxu0 }
 0x1f7   :  { %v1096_v17 = vadd.f32 %v2724_v14, %v1095_v52  ;;  %v1031_v63 = vadd.f32 %v2724_v14, %v1030_v19 }
 0x1f8   :  { %v1083_v9 = vpop.f32.mrf.mxu2 }
 0x1f9   :  { %v1134_v58 = vpack.c.bf16 %v1096_v17, %v1096_v17  ;;  %v1055_v41 = vpop.f32.mrf.mxu1  ;;  %v1084_v30 = vadd.f32 %v2724_v14, %v1083_v9  ;;  %v1108_v57 = vpack.c.bf16 %v1031_v63, %v1031_v63 }
 0x1fa   :  { %v1056_v5 = vadd.f32 %v2724_v14, %v1055_v41 }
 0x1fb   :  { %1169 = vst.msk [vmem:[%s2901_s5 + $0x7c] sm:$0xf] %vm1137_vm14, %v1134_v58  ;;  %v1129_v59 = vpack.c.bf16 %v1084_v30, %v1084_v30 }
 0x1fc   :  { %1143 = vst.msk [vmem:[%s2901_s5 + $0x14] sm:$0xf] %vm1137_vm14, %v1108_v57  ;;  %v1118_v32 = vpack.c.bf16 %v1056_v5, %v1056_v5 }
 0x1fd   :  { %1164 = vst.msk [vmem:[%s2901_s5 + $0x68] sm:$0xf] %vm1137_vm14, %v1129_v59 }
 0x1fe   :  { %1153 = vst.msk [vmem:[%s2901_s5 + $0x3c] sm:$0xf] %vm1137_vm14, %v1118_v32 }
 0x200   :  { %v1085_v15 = vpop.f32.mrf.mxu2 }
 0x201   :  { %v1086_v25 = vadd.f32 %v2724_v14, %v1085_v15  ;;  %v1098_v54 = vpop.f32.mrf.mxu3 }
 0x202   :  { %v1099_v10 = vadd.f32 %v2724_v14, %v1098_v54  ;;  %v1033_v16 = vpop.f32.mrf.mxu0 }
 0x203   :  { %v1130_v40 = vpack.c.bf16 %v1086_v25, %v1086_v25  ;;  %v1034_v29 = vadd.f32 %v2724_v14, %v1033_v16 }
 0x204   :  { %v1135_v8 = vpack.c.bf16 %v1099_v10, %v1099_v10  ;;  %v1058_v36 = vpop.f32.mrf.mxu1 }
 0x205   :  { %1165 = vst.msk [vmem:[%s2901_s5 + $0x6c] sm:$0xf] %vm1137_vm14, %v1130_v40  ;;  %v1109_v46 = vpack.c.bf16 %v1034_v29, %v1034_v29  ;;  %v1059_v48 = vadd.f32 %v2724_v14, %v1058_v36 }
 0x206   :  { %1170 = vst.msk [vmem:[%s2901_s5 + $0x80] sm:$0xf] %vm1137_vm14, %v1135_v8 }
 0x207   :  { %1144 = vst.msk [vmem:[%s2901_s5 + $0x18] sm:$0xf] %vm1137_vm14, %v1109_v46  ;;  %v1119_v7 = vpack.c.bf16 %v1059_v48, %v1059_v48 }
 0x209   :  { %1154 = vst.msk [vmem:[%s2901_s5 + $0x40] sm:$0xf] %vm1137_vm14, %v1119_v7  ;;  %v1100_v11 = vpop.f32.mrf.mxu3 }
 0x20a   :  { %v1101_v23 = vadd.f32 %v2724_v14, %v1100_v11  ;;  %v1035_v3 = vpop.f32.mrf.mxu0 }
 0x20b   :  { %v1036_v53 = vadd.f32 %v2724_v14, %v1035_v3 }
 0x20c   :  { %v1136_v28 = vpack.c.bf16 %v1101_v23, %v1101_v23  ;;  %v1060_v55 = vpop.f32.mrf.mxu1 }
 0x20d   :  { %v1110_v1 = vpack.c.bf16 %v1036_v53, %v1036_v53  ;;  %v1061_v33 = vadd.f32 %v2724_v14, %v1060_v55 }
 0x20e   :  { %1171 = vst.msk [vmem:[%s2901_s5 + $0x84] sm:$0xf] %vm1137_vm14, %v1136_v28 }
 0x20f   :  { %1145 = vst.msk [vmem:[%s2901_s5 + $0x1c] sm:$0xf] %vm1137_vm14, %v1110_v1  ;;  %v1120_v26 = vpack.c.bf16 %v1061_v33, %v1061_v33 }
 0x211   :  { %1155 = vst.msk [vmem:[%s2901_s5 + $0x44] sm:$0xf] %vm1137_vm14, %v1120_v26 }

// kernel: transformer_forward.8
= control target key start
LH: loop header
LB: loop body
LE: loop exit
PB: predicated region body
PF: predicated region fallthrough
CT: control target
= control target key end

     0   :  { %s1162_s17 = smov 0   ;;  %s1298_s0 = inlined_call_operand.vmem [shape: bf16[2,8,32], index: 0, kind: input, shape index: {}]   ;;  %s1299_s1 = inlined_call_operand.vmem [shape: f32[1,32], index: 1, kind: input, shape index: {}]   ;;  %s1300_s2 = inlined_call_operand.vmem [shape: f32[1,32], index: 2, kind: input, shape index: {}]   ;;  %s1301_s3 = inlined_call_operand.vmem [shape: bf16[32,96], index: 3, kind: input, shape index: {}]   ;;  %s1302_s4 = inlined_call_operand.vmem [shape: f32[1,96], index: 4, kind: input, shape index: {}]   ;;  %s1303_s5 = inlined_call_operand.vmem [shape: bf16[32,32], index: 5, kind: input, shape index: {}]   ;;  %s1304_s6 = inlined_call_operand.vmem [shape: f32[1,32], index: 6, kind: input, shape index: {}]   ;;  %s1305_s7 = inlined_call_operand.vmem [shape: bf16[32,8], index: 7, kind: input, shape index: {}]   ;;  %s1306_s8 = inlined_call_operand.vmem [shape: f32[1,8], index: 8, kind: input, shape index: {}]   ;;  %s1307_s9 = inlined_call_operand.vmem [shape: bf16[8,32], index: 9, kind: input, shape index: {}]   ;;  %s1308_s10 = inlined_call_operand.vmem [shape: f32[1,32], index: 10, kind: input, shape index: {}]   ;;  %s1309_s11 = inlined_call_operand.vmem [shape: bf16[2,8,64], index: 11, kind: output, shape index: {}]  }
   0x1 LB: > { %s971_s18 = sadd.s32 4294967295, %s1085_s17   ;;  %p975_p0 = scmp.ge.s32.totalorder %s1085_s17, 1  ;;  %s1085_s17 = sphi %s1162_s17, %s21_s17  }
   0x2   : > { %p336_p1 = scmp.lt.s32.totalorder %s1085_s17, 3 }
   0x4   : > { %p337_p2 = pnand %p975_p0, %p336_p1 }
   0x5   : > { %p374_p3 = scmp.lt.s32.totalorder (!%p337_p2), %s971_s18, 1  ;;  %s1088_s14 = smov (!%p337_p2), 96  }
   0x6   : > { %340 = sbr.rel (%p337_p2) target bundleno = 1955 (0x7a3), region = 64  ;;  %s1089_s15 = smov (!%p337_p2), 104  }
   0x7   : > { %s1090_s16 = smov (!%p337_p2), 120   ;;  %s1091_s20 = smov (!%p337_p2), 88  }
   0x8   : > { %s1092_s21 = smov (!%p337_p2), 56   ;;  %s1094_s23 = smov (!%p337_p2), 80  }
   0x9   : > { %s1095_s24 = smov (!%p337_p2), 112   ;;  %s1096_s25 = smov (!%p337_p2), 64  }
   0xa   : > { %s1097_s26 = smov (!%p337_p2), 40   ;;  %s1098_s27 = smov (!%p337_p2), 48  }
   0xb   : > { %s1311_s18 = smov (!%p374_p3, %s971_s18), 1  ;;  %vm392_vm0 = vcmask 261120   ;;  %v1087_v3 = vmov 32.0   ;;  %v1186_v15 = vld [vmem:[%s1301_s3 + $0x8] sm:$0xff]  ;;  %v1192_v16 = vld [vmem:[%s1301_s3] sm:$0xff]  ;;  %vm471_vm5 = vcmask 64512  }
   0xc   : > { %s976_s19 = sshll.u32 %s1311_s18, 2  ;;  %1055 = vrcp.f32 %v1087_v3  ;;  %455 = vmatpush.bf16.msra.mxu0 %v1186_v15  ;;  %v1047_v26 = vld [vmem:[%s1299_s1] ss:$0 sm:$0xff]  ;;  %vm506_vm6 = vcmask 1043456   ;;  %s1099_s28 = smov 16   ;;  %vm587_vm7 = vcmask 130112  }
   0xd   : > { %s377_s22 = scalar_lea.vmem %s1298_s0, %s976_s19  ;;  %v1048_v29 = vld [vmem:[%s1300_s2] ss:$0 sm:$0xff]  ;;  %s1100_s29 = smov 8   ;;  %vm649_vm8 = vcmask 195712   ;;  %vm711_vm9 = vcmask 261312  }
   0xe   : > { %v383_v0 = vld [vmem:[%s377_s22] sm:$0xf]  ;;  %s1093_s22 = smov 72   ;;  %s1101_s30 = smov 24  }
   0xf   : > { %v391_v1 = vunpack.c.l.bf16 %v383_v0  ;;  %v1206_v33 = vld [vmem:[%s1302_s4] ss:$0 sm:$0xff] }
  0x10   : > { %456 = vmatpush.bf16.msra.mxu0 %v1192_v16 }
  0x11   : > { %v393_v2 = vsel %vm392_vm0, %v391_v1, 0.0 }
  0x12   : > { %394 = vadd.xlane.f32.xlu0 %v393_v2  ;;  %v1056_v4 = vpop.eup %1055 }
  0x13   : > { %v397_v5 = vmul.f32 32.0, %v1056_v4  ;;  %vm401_vm1 = vweird.f32 %v1056_v4 }
  0x15   : > { %v398_v6 = vsub.f32 1.0, %v397_v5 }
  0x17   : > { %v399_v7 = vmul.f32 %v1056_v4, %v398_v6 }
  0x19   : > { %v400_v8 = vadd.f32 %v1056_v4, %v399_v7 }
  0x1b   : > { %v1179_v9 = vsel %vm401_vm1, %v1056_v4, %v400_v8 }
  0x85   : > { %v395_v10 = vpop.xlane.xlu0 %394 }
  0x86   : > { %v403_v11 = vmul.f32 %v1179_v9, %v395_v10 }
  0x88   : > { %v404_v12 = vsub.f32 %v391_v1, %v403_v11 }
  0x8a   : > { %v405_v13 = vmul.f32 %v404_v12, %v404_v12 }
  0x8c   : > { %v406_v14 = vsel %vm392_vm0, %v405_v13, 0.0 }
  0x8d   : > { %407 = vadd.xlane.f32.xlu0 %v406_v14 }
 0x100   : > { %v408_v17 = vpop.xlane.xlu0 %407 }
 0x101   : > { %v409_v18 = vmul.f32 %v408_v17, %v1179_v9 }
 0x103   : > { %v410_v19 = vadd.f32 1e-05, %v409_v18 }
 0x105   : > { %1057 = vrsqrt.f32 %v410_v19  ;;  %vm417_vm3 = vweird.f32 %v410_v19 }
 0x10b   : > { %v1058_v20 = vpop.eup %1057 }
 0x10c   : > { %v412_v21 = vmul.f32 %v1058_v20, %v410_v19  ;;  %vm418_vm2 = vweird.f32 %v1058_v20 }
 0x10d   : > { %vm419_vm4 = vmor %vm417_vm3, %vm418_vm2  ;;  %vm916_vm2 = vcmask 519168  }
 0x10e   : > { %v413_v22 = vmul.f32 %v1058_v20, %v412_v21 }
 0x110   : > { %v414_v23 = vmul.f32 0.5, %v413_v22 }
 0x112   : > { %v415_v24 = vsub.f32 1.5, %v414_v23 }
 0x114   : > { %v416_v25 = vmul.f32 %v1058_v20, %v415_v24 }
 0x116   : > { %v420_v27 = vsel %vm419_vm4, %v1058_v20, %v416_v25 }
 0x117   : > { %v421_v28 = vmul.f32 %v420_v27, %v404_v12 }
 0x119   : > { %v425_v30 = vmul.f32 %v1047_v26, %v421_v28 }
 0x11b   : > { %v429_v31 = vadd.f32 %v1048_v29, %v425_v30 }
 0x11d   : > { %v430_v32 = vpack.c.bf16 %v429_v31, %v429_v31 }
 0x11f   : > { %986 = vmatmul.msk.bf16.vlgmr.msra.gmra.mxu0 %vm392_vm0, %v430_v32 }
 0x19c   : > { %v458_v34 = vpop.f32.mrf.mxu0 }
 0x19d   : > { %v459_v35 = vadd.f32 %v1206_v33, %v458_v34 }
 0x19f   : > { %v462_v36 = vpack.c.bf16 %v459_v35, %v459_v35 }
 0x1a1   : > { %v463_v37 = vunpack.c.l.bf16 %v462_v36  ;;  %v467_v38 = vunpack.c.l.b16 %v462_v36 }
 0x1a3   : > { %v464_v39 = vmul.f32 0.35355338, %v463_v37  ;;  %v1209_v40 = vpack.c.b16 %v467_v38, %v467_v38 }
 0x1a4   : > { %v460_v41 = vpop.f32.mrf.mxu0 }
 0x1a5   : > { %v465_v42 = vpack.c.bf16 %v464_v39, %v464_v39  ;;  %469 = vrot.lane.b32.xlu1 %v1209_v40, %s1088_s14 }
 0x1a7   : > { %651 = vrot.lane.b32.xlu0 %v465_v42, %s1089_s15  ;;  %527 = vrot.lane.b32.xlu2 %v465_v42, %s1090_s16 }
 0x1ad   : > { %529 = vrot.lane.b32.xlu1 %v1209_v40, %s1091_s20 }
 0x1af   : > { %560 = vrot.lane.b32.xlu0 %v1209_v40, %s1092_s21  ;;  %653 = vrot.lane.b32.xlu2 %v1209_v40, %s1093_s22  ;;  %s381_s22 = scalar_lea.vmem %s1309_s11, %s976_s19 }
 0x1b5   : > { %591 = vrot.lane.b32.xlu1 %v1209_v40, %s1094_s23 }
 0x1b7   : > { %589 = vrot.lane.b32.xlu2 %v465_v42, %s1095_s24 }
 0x1bf   : > { %501 = vrot.lane.b32.xlu2 %v1209_v40, %s1096_s25 }
 0x201   : > { %v528_v43 = vpop.permute.xlu2 %527 }
 0x209   : > { %v654_v44 = vpop.permute.xlu2 %653 }
 0x20a   : > { %v659_v54 = vsel %vm471_vm5, %v654_v44, 0 }
 0x211   : > { %v590_v45 = vpop.permute.xlu2 %589 }
 0x217   : > { %v470_v46 = vpop.permute.xlu1 %469 }
 0x218   : > { %v476_v47 = vsel %vm471_vm5, %v470_v46, 0 }
 0x219   : > { %485 = vmatpush.bf16.xpose.msra.mxu1 %v476_v47  ;;  %v652_v48 = vpop.permute.xlu0 %651  ;;  %v502_v49 = vpop.permute.xlu2 %501 }
 0x21a   : > { %v508_v50 = vsel %vm506_vm6, %v502_v49, 0 }
 0x21b   : > { %517 = vmatpush.bf16.msra.mxu2 %v508_v50 }
 0x21f   : > { %v530_v51 = vpop.permute.xlu1 %529 }
 0x220   : > { %987 = vmatmul.msk.bf16.vlgmr.msra.gmra.mxu1 %vm471_vm5, %v465_v42  ;;  %v535_v52 = vsel %vm471_vm5, %v530_v51, 0 }
 0x221   : > { %544 = vmatpush.bf16.xpose.msra.mxu3 %v535_v52  ;;  %v561_v53 = vpop.permute.xlu0 %560 }
 0x222   : > { %v566_v55 = vsel %vm506_vm6, %v561_v53, 0 }
 0x223   : > { %575 = vmatpush.bf16.msrb.mxu2 %v566_v55 }
 0x227   : > { %v592_v56 = vpop.permute.xlu1 %591 }
 0x228   : > { %989 = vmatmul.msk.bf16.vlgmr.msra.gmra.mxu3 %vm471_vm5, %v528_v43  ;;  %v597_v57 = vsel %vm471_vm5, %v592_v56, 0  ;;  %v1021_v56 = vld [vmem:[%s1303_s5 + $0x8] sm:$0xff] }
 0x229   : > { %668 = vmatpush.bf16.xpose.msrb.mxu3 %v659_v54  ;;  %606 = vmatpush.bf16.xpose.msrb.mxu0 %v597_v57  ;;  %v1020_v57 = vld [vmem:[%s1303_s5] sm:$0xff] }
 0x230   : > { %991 = vmatmul.msk.bf16.vlgmr.msrb.gmra.mxu0 %vm471_vm5, %v590_v45 }
 0x231   : > { %751 = vmatpush.bf16.msra.mxu0 %v1021_v56 }
 0x235   : > { %752 = vmatpush.bf16.msra.mxu0 %v1020_v57 }
 0x238   : > { %993 = vmatmul.msk.bf16.vlgmr.msrb.gmra.mxu3 %vm471_vm5, %v652_v48 }
 0x29d   : > { %v487_v58 = vpop.f32.mrf.mxu1 }
 0x29e   : > { %v491_v59 = vsel %vm471_vm5, %v487_v58, -inf }
 0x29f   : > { %492 = vmax.xlane.f32.xlu1 %v491_v59 }
 0x2a5   : > { %v489_v60 = vpop.f32.mrf.mxu1 }
 0x2ab   : > { %v546_v61 = vpop.f32.mrf.mxu3 }
 0x2ac   : > { %v550_v62 = vsel %vm471_vm5, %v546_v61, -inf }
 0x2ad   : > { %551 = vmax.xlane.f32.xlu2 %v550_v62  ;;  %v608_v63 = vpop.f32.mrf.mxu0 }
 0x2ae   : > { %v612_v0 = vsel %vm471_vm5, %v608_v63, -inf }
 0x2af   : > { %613 = vmax.xlane.f32.xlu1 %v612_v0  ;;  %v1022_v0 = vld [vmem:[%s1305_s7] sm:$0xff] }
 0x2b3   : > { %v548_v1 = vpop.f32.mrf.mxu3 }
 0x2b4   : > { %v1050_v1 = vld [vmem:[%s1304_s6] ss:$0 sm:$0xff] }
 0x2b5   : > { %v610_v2 = vpop.f32.mrf.mxu0 }
 0x2bb   : > { %v670_v3 = vpop.f32.mrf.mxu3 }
 0x2bc   : > { %v674_v4 = vsel %vm471_vm5, %v670_v3, -inf }
 0x2bd   : > { %675 = vmax.xlane.f32.xlu0 %v674_v4 }
 0x2c3   : > { %v672_v5 = vpop.f32.mrf.mxu3 }
 0x2c5   : > { %684 = vrot.lane.b32.xlu2 %v1209_v40, %s1097_s26 }
 0x2c8   : > { %622 = vrot.lane.b32.xlu1 %v1209_v40, %s1098_s27 }
 0x312   : > { %v493_v6 = vpop.xlane.xlu1 %492 }
 0x313   : > { %v494_v7 = vsub.f32 %v487_v58, %v493_v6  ;;  %v1023_v58 = vld [vmem:[%s1305_s7 + $0x8] sm:$0xff]  ;;  %v1051_v6 = vld [vmem:[%s1306_s8] ss:$0 sm:$0xff] }
 0x315   : > { %v495_v8 = vmul.f32 1.442695, %v494_v7 }
 0x317   : > { %1059 = vpow2.f32 %v495_v8 }
 0x31d   : > { %v1060_v10 = vpop.eup %1059 }
 0x31e   : > { %v497_v11 = vsel %vm471_vm5, %v1060_v10, 0.0  ;;  %v500_v12 = vpack.c.bf16 %v1060_v10, %v1060_v10 }
 0x31f   : > { %498 = vadd.xlane.f32.xlu1 %v497_v11 }
 0x320   : > { %v552_v13 = vpop.xlane.xlu2 %551  ;;  %988 = vmatmul.msk.bf16.vlgmr.msra.gmra.mxu2 %vm471_vm5, %v500_v12 }
 0x321   : > { %v553_v14 = vsub.f32 %v546_v61, %v552_v13 }
 0x322   : > { %v614_v17 = vpop.xlane.xlu1 %613 }
 0x323   : > { %v554_v18 = vmul.f32 1.442695, %v553_v14  ;;  %v615_v19 = vsub.f32 %v608_v63, %v614_v17 }
 0x325   : > { %1061 = vpow2.f32 %v554_v18  ;;  %v616_v20 = vmul.f32 1.442695, %v615_v19 }
 0x327   : > { %1063 = vpow2.f32 %v616_v20 }
 0x328   : > { %v685_v21 = vpop.permute.xlu2 %684 }
 0x329   : > { %v690_v22 = vsel %vm506_vm6, %v685_v21, 0 }
 0x32a   : > { %699 = vmatpush.bf16.msra.mxu2 %v690_v22 }
 0x32b   : > { %v1062_v23 = vpop.eup %1061 }
 0x32c   : > { %v559_v26 = vpack.c.bf16 %v1062_v23, %v1062_v23  ;;  %v556_v30 = vsel %vm471_vm5, %v1062_v23, 0.0 }
 0x32d   : > { %v1064_v24 = vpop.eup %1063 }
 0x32e   : > { %v618_v25 = vsel %vm471_vm5, %v1064_v24, 0.0  ;;  %v621_v36 = vpack.c.bf16 %v1064_v24, %v1064_v24 }
 0x32f   : > { %619 = vadd.xlane.f32.xlu0 %v618_v25 }
 0x330   : > { %v676_v27 = vpop.xlane.xlu0 %675  ;;  %990 = vmatmul.msk.bf16.vlgmr.msrb.gmra.mxu2 %vm471_vm5, %v559_v26 }
 0x331   : > { %v677_v28 = vsub.f32 %v670_v3, %v676_v27  ;;  %v725_v27 = vld [vmem:[%s1307_s9] sm:$0xf] }
 0x333   : > { %v678_v29 = vmul.f32 1.442695, %v677_v28 }
 0x335   : > { %1065 = vpow2.f32 %v678_v29  ;;  %v842_v29 = vsel %vm506_vm6, %v725_v27, 0 }
 0x336   : > { %851 = vmatpush.bf16.msra.mxu3 %v842_v29 }
 0x337   : > { %557 = vadd.xlane.f32.xlu0 %v556_v30 }
 0x338   : > { %892 = vrot.lane.b32.xlu1 %v1186_v15, %s1088_s14 }
 0x33a   : > { %v623_v31 = vpop.permute.xlu1 %622 }
 0x33b   : > { %v1066_v32 = vpop.eup %1065  ;;  %v628_v34 = vsel %vm506_vm6, %v623_v31, 0 }
 0x33c   : > { %637 = vmatpush.bf16.msrb.mxu1 %v628_v34  ;;  %v680_v35 = vsel %vm471_vm5, %v1066_v32, 0.0  ;;  %v683_v37 = vpack.c.bf16 %v1066_v32, %v1066_v32 }
 0x33d   : > { %681 = vadd.xlane.f32.xlu2 %v680_v35 }
 0x33f   : > { %992 = vmatmul.msk.bf16.vlgmr.msrb.gmra.mxu1 %vm471_vm5, %v621_v36 }
 0x340   : > { %994 = vmatmul.msk.bf16.vlgmr.msra.gmra.mxu2 %vm471_vm5, %v683_v37  ;;  %896 = vrot.lane.b32.xlu1 %v1206_v33, %s1088_s14 }
 0x341   : > { %783 = vmatpush.bf16.msra.mxu1 %v1023_v58 }
 0x345   : > { %784 = vmatpush.bf16.msra.mxu1 %v1022_v0 }
 0x392   : > { %v499_v38 = vpop.xlane.xlu1 %498 }
 0x393   : > { %1067 = vrcp.f32 %v499_v38 }
 0x399   : > { %v1068_v15 = vpop.eup %1067 }
 0x3a2   : > { %v620_v42 = vpop.xlane.xlu0 %619 }
 0x3a3   : > { %v519_v39 = vpop.f32.mrf.mxu2  ;;  %1069 = vrcp.f32 %v620_v42 }
 0x3a4   : > { %v524_v40 = vmul.f32 %v1068_v15, %v519_v39 }
 0x3a6   : > { %525 = vst.msk [vmem:[#allocation2] sm:$0xff] %vm471_vm5, %v524_v40 }
 0x3a9   : > { %v1070_v46 = vpop.eup %1069 }
 0x3aa   : > { %v558_v44 = vpop.xlane.xlu0 %557  ;;  %v893_v0 = vpop.permute.xlu1 %892 }
 0x3ab   : > { %v521_v41 = vpop.f32.mrf.mxu2  ;;  %1071 = vrcp.f32 %v558_v44  ;;  %908 = vmatpush.bf16.msrb.mxu2 %v893_v0 }
 0x3b0   : > { %v682_v33 = vpop.xlane.xlu2 %681 }
 0x3b1   : > { %v1072_v50 = vpop.eup %1071  ;;  %1073 = vrcp.f32 %v682_v33 }
 0x3b3   : > { %v577_v43 = vpop.f32.mrf.mxu2 }
 0x3b4   : > { %v582_v52 = vmul.f32 %v1072_v50, %v577_v43 }
 0x3b7   : > { %v1074_v54 = vpop.eup %1073 }
 0x3bb   : > { %v579_v45 = vpop.f32.mrf.mxu2 }
 0x3bc   : > { %v639_v47 = vpop.f32.mrf.mxu1 }
 0x3bd   : > { %v644_v48 = vmul.f32 %v1070_v46, %v639_v47 }
 0x3bf   : > { %646 = vrot.lane.b32.xlu0 %v644_v48, %s1099_s28 }
 0x3c3   : > { %v701_v49 = vpop.f32.mrf.mxu2 }
 0x3c4   : > { %v641_v51 = vpop.f32.mrf.mxu1  ;;  %v706_v55 = vmul.f32 %v1074_v54, %v701_v49  ;;  %v1052_v54 = vld [vmem:[%s1308_s10] ss:$0 sm:$0xff] }
 0x3c7   : > { %584 = vrot.lane.b32.xlu0 %v582_v52, %s1100_s29 }
 0x3cb   : > { %v703_v53 = vpop.f32.mrf.mxu2 }
 0x3cf   : > { %708 = vrot.lane.b32.xlu0 %v706_v55, %s1101_s30 }
 0x431   : > { %v647_v59 = vpop.permute.xlu0 %646 }
 0x439   : > { %v585_v60 = vpop.permute.xlu0 %584 }
 0x43a   : > { %588 = vst.msk [vmem:[#allocation2] sm:$0xff] %vm587_vm7, %v585_v60 }
 0x43b   : > { %650 = vst.msk [vmem:[#allocation2] sm:$0xff] %vm649_vm8, %v647_v59 }
 0x441   : > { %v709_v61 = vpop.permute.xlu0 %708 }
 0x442   : > { %712 = vst.msk [vmem:[#allocation2] sm:$0xff] %vm711_vm9, %v709_v61 }
 0x449   : > { %v713_v62 = vld [vmem:[#allocation2] sm:$0xff] }
 0x44a   : > { %v714_v63 = vpack.c.bf16 %v713_v62, %v713_v62 }
 0x44c   : > { %1003 = vmatmul.msk.bf16.vlgmr.msra.gmra.mxu0 %vm392_vm0, %v714_v63 }
 0x4c9   : > { %v754_v2 = vpop.f32.mrf.mxu0 }
 0x4ca   : > { %v755_v3 = vadd.f32 %v1050_v1, %v754_v2 }
 0x4cc   : > { %v758_v4 = vpack.c.bf16 %v755_v3, %v755_v3 }
 0x4ce   : > { %1012 = vmatmul.msk.bf16.vlgmr.msra.gmra.mxu1 %vm392_vm0, %v758_v4 }
 0x4d1   : > { %v756_v5 = vpop.f32.mrf.mxu0 }
 0x54b   : > { %v786_v7 = vpop.f32.mrf.mxu1 }
 0x54c   : > { %v787_v8 = vadd.f32 %v1051_v6, %v786_v7 }
 0x54e   : > { %v791_v10 = vmul.f32 0.70710677, %v787_v8  ;;  %v790_v50 = vmul.f32 0.5, %v787_v8 }
 0x550   : > { %v792_v11 = vmul.f32 %v791_v10, %v791_v10 }
 0x552   : > { %v793_v12 = vmin.f32 %v792_v11, 16.0 }
 0x553   : > { %v788_v13 = vpop.f32.mrf.mxu1 }
 0x554   : > { %v794_v14 = vmul.f32 2.1237322e-06, %v793_v12  ;;  %v805_v17 = vmul.f32 3.8918573e-05, %v793_v12  ;;  %v1054_v13 = vld [vmem:[%s1300_s2] ss:$0 sm:$0xff] }
 0x556   : > { %v795_v18 = vadd.f32 0.00028619796, %v794_v14  ;;  %v806_v19 = vadd.f32 0.001143296, %v805_v17 }
 0x558   : > { %v796_v20 = vmul.f32 %v795_v18, %v793_v12  ;;  %v807_v21 = vmul.f32 %v806_v19, %v793_v12  ;;  %v897_v19 = vpop.permute.xlu1 %896 }
 0x55a   : > { %v808_v22 = vadd.f32 0.014752088, %v807_v21  ;;  %v797_v23 = vadd.f32 0.0036580483, %v796_v20 }
 0x55c   : > { %v809_v24 = vmul.f32 %v808_v22, %v793_v12  ;;  %v798_v26 = vmul.f32 %v797_v23, %v793_v12 }
 0x55e   : > { %v810_v25 = vadd.f32 0.112945676, %v809_v24  ;;  %v799_v31 = vadd.f32 0.05243302, %v798_v26 }
 0x560   : > { %v811_v28 = vmul.f32 %v810_v25, %v793_v12  ;;  %v800_v35 = vmul.f32 %v799_v31, %v793_v12 }
 0x562   : > { %v812_v30 = vadd.f32 0.4994258, %v811_v28  ;;  %v801_v36 = vadd.f32 0.18741608, %v800_v35 }
 0x564   : > { %v813_v32 = vmul.f32 %v812_v30, %v793_v12  ;;  %v802_v38 = vmul.f32 %v801_v36, %v793_v12 }
 0x566   : > { %v814_v34 = vadd.f32 1.0, %v813_v32  ;;  %v803_v41 = vadd.f32 1.1283791, %v802_v38 }
 0x568   : > { %1075 = vrcp.f32 %v814_v34  ;;  %v826_v40 = vand.u32 2147483648, %v814_v34  ;;  %v824_v43 = vand.u32 2147483647, %v814_v34  ;;  %vm820_vm11 = vweird.f32 %v814_v34 }
 0x569   : > { %v804_v46 = vmul.f32 %v803_v41, %v791_v10 }
 0x56a   : > { %v827_v45 = vor.u32 1.1754944e-38, %v826_v40  ;;  %vm825_vm13 = vcmp.eq.f32.partialorder %v824_v43, 8.507059e+37 }
 0x56e   : > { %v1076_v37 = vpop.eup %1075 }
 0x56f   : > { %v816_v15 = vmul.f32 %v1076_v37, %v814_v34  ;;  %vm821_vm10 = vweird.f32 %v1076_v37 }
 0x570   : > { %vm822_vm12 = vmor %vm820_vm11, %vm821_vm10 }
 0x571   : > { %v817_v39 = vsub.f32 1.0, %v816_v15 }
 0x573   : > { %v818_v42 = vmul.f32 %v1076_v37, %v817_v39 }
 0x575   : > { %v819_v44 = vadd.f32 %v1076_v37, %v818_v42 }
 0x577   : > { %v823_v47 = vsel %vm822_vm12, %v1076_v37, %v819_v44 }
 0x578   : > { %v828_v48 = vsel %vm825_vm13, %v827_v45, %v823_v47 }
 0x579   : > { %v829_v33 = vmul.f32 %v828_v48, %v804_v46 }
 0x57b   : > { %v1013_v49 = vclamps-f32 %v829_v33, 1.0 }
 0x57d   : > { %v832_v51 = vadd.f32 1.0, %v1013_v49 }
 0x57f   : > { %v833_v52 = vmul.f32 %v832_v51, %v790_v50 }
 0x581   : > { %v834_v53 = vpack.c.bf16 %v833_v52, %v833_v52 }
 0x583   : > { %1014 = vmatmul.msk.bf16.vlgmr.msra.gmra.mxu3 %vm471_vm5, %v834_v53 }
 0x606   : > { %v853_v55 = vpop.f32.mrf.mxu3 }
 0x607   : > { %v854_v56 = vadd.f32 %v1052_v54, %v853_v55 }
 0x609   : > { %v859_v57 = vsel %vm392_vm0, %v854_v56, 0.0 }
 0x60a   : > { %860 = vadd.xlane.f32.xlu0 %v859_v57 }
 0x60e   : > { %v855_v58 = vpop.f32.mrf.mxu3 }
 0x67d   : > { %v861_v59 = vpop.xlane.xlu0 %860 }
 0x67e   : > { %v862_v60 = vmul.f32 %v861_v59, %v1179_v9 }
 0x680   : > { %v863_v61 = vsub.f32 %v854_v56, %v862_v60 }
 0x682   : > { %v864_v62 = vmul.f32 %v863_v61, %v863_v61 }
 0x684   : > { %v865_v63 = vsel %vm392_vm0, %v864_v62, 0.0 }
 0x685   : > { %866 = vadd.xlane.f32.xlu2 %v865_v63 }
 0x69d   : > { %890 = vrot.lane.b32.xlu2 %v1192_v16, %s1088_s14  ;;  %v1053_v16 = vld [vmem:[%s1299_s1] ss:$0 sm:$0xff] }
 0x6f8   : > { %v867_v1 = vpop.xlane.xlu2 %866 }
 0x6f9   : > { %v868_v2 = vmul.f32 %v867_v1, %v1179_v9 }
 0x6fb   : > { %v869_v3 = vadd.f32 1e-05, %v868_v2 }
 0x6fd   : > { %1077 = vrsqrt.f32 %v869_v3  ;;  %vm876_vm15 = vweird.f32 %v869_v3 }
 0x700   : > { %v891_v4 = vpop.permute.xlu2 %890 }
 0x701   : > { %909 = vmatpush.bf16.msrb.mxu2 %v891_v4 }
 0x703   : > { %v1078_v5 = vpop.eup %1077 }
 0x704   : > { %v871_v6 = vmul.f32 %v1078_v5, %v869_v3  ;;  %vm877_vm14 = vweird.f32 %v1078_v5 }
 0x705   : > { %vm878_vm1 = vmor %vm876_vm15, %vm877_vm14 }
 0x706   : > { %v872_v7 = vmul.f32 %v1078_v5, %v871_v6 }
 0x708   : > { %v873_v8 = vmul.f32 0.5, %v872_v7 }
 0x70a   : > { %v874_v10 = vsub.f32 1.5, %v873_v8 }
 0x70c   : > { %v875_v11 = vmul.f32 %v1078_v5, %v874_v10 }
 0x70e   : > { %v879_v12 = vsel %vm878_vm1, %v1078_v5, %v875_v11 }
 0x70f   : > { %v880_v9 = vmul.f32 %v879_v12, %v863_v61 }
 0x711   : > { %v884_v14 = vmul.f32 %v1053_v16, %v880_v9 }
 0x713   : > { %v888_v17 = vadd.f32 %v1054_v13, %v884_v14 }
 0x715   : > { %v889_v18 = vpack.c.bf16 %v888_v17, %v888_v17 }
 0x717   : > { %1015 = vmatmul.msk.bf16.vlgmr.msrb.gmra.mxu2 %vm392_vm0, %v889_v18 }
 0x79a   : > { %v911_v20 = vpop.f32.mrf.mxu2 }
 0x79b   : > { %v912_v21 = vadd.f32 %v911_v20, %v897_v19 }
 0x79d   : > { %v915_v22 = vpack.c.bf16 %v912_v21, %v912_v21 }
 0x79f   : > { %917 = vst.msk [vmem:[%s381_s22] sm:$0xf] %vm916_vm2, %v915_v22 }
 0x7a2   : > { %v913_v23 = vpop.f32.mrf.mxu2 }
 0x7a3 PF: > { %s21_s17 = sadd.s32 1, %s1085_s17  }
 0x7a4   : > { %p18_p4 = scmp.ge.s32.totalorder %s21_s17, 4  }
 0x7a6   :  { %20 = sbr.rel (!%p18_p4) target bundleno = 1 (0x1), region = 94 }

// kernel: transformer_forward.10
= control target key start
LH: loop header
LB: loop body
LE: loop exit
PB: predicated region body
PF: predicated region fallthrough
CT: control target
= control target key end

     0   :  { %s1968_s13 = smov 0   ;;  %s2374_s0 = inlined_call_operand.vmem [shape: bf16[16,17,32], index: 0, kind: input, shape index: {}]   ;;  %s2375_s1 = inlined_call_operand.vmem [shape: bf16[16,17,96], index: 1, kind: input, shape index: {}]   ;;  %s2376_s2 = inlined_call_operand.vmem [shape: bf16[16,17,32], index: 2, kind: input, shape index: {}]   ;;  %s2377_s3 = inlined_call_operand.vmem [shape: bf16[16,17,32], index: 3, kind: input, shape index: {}]   ;;  %s2378_s4 = inlined_call_operand.vmem [shape: bf16[32,32], index: 4, kind: input, shape index: {}]   ;;  %s2379_s5 = inlined_call_operand.vmem [shape: f32[1,32], index: 5, kind: input, shape index: {}]   ;;  %s2380_s6 = inlined_call_operand.vmem [shape: bf16[32,8], index: 6, kind: input, shape index: {}]   ;;  %s2381_s7 = inlined_call_operand.vmem [shape: f32[1,8], index: 7, kind: input, shape index: {}]   ;;  %s2382_s8 = inlined_call_operand.vmem [shape: bf16[8,32], index: 8, kind: input, shape index: {}]   ;;  %s2383_s9 = inlined_call_operand.vmem [shape: f32[1,32], index: 9, kind: input, shape index: {}]   ;;  %s2384_s10 = inlined_call_operand.vmem [shape: bf16[16,17,32], index: 10, kind: output, shape index: {}]  }
   0x1 LB: > { %s1691_s14 = sadd.s32 4294967295, %s1896_s13   ;;  %p1695_p0 = scmp.ge.s32.totalorder %s1896_s13, 1  ;;  %s1896_s13 = sphi %s1968_s13, %s20_s13  }
   0x2   : > { %p342_p1 = scmp.lt.s32.totalorder %s1896_s13, 17 }
   0x4   : > { %p343_p2 = pnand %p1695_p0, %p342_p1 }
   0x5   : > { %p395_p3 = scmp.lt.s32.totalorder (!%p343_p2), %s1691_s14, 15  ;;  %s1898_s19 = smov (!%p343_p2), 96  }
   0x6   : > { %346 = sbr.rel (%p343_p2) target bundleno = 1609 (0x649), region = 60  ;;  %s1899_s20 = smov (!%p343_p2), 64  }
   0x7   : > { %s1901_s24 = smov (!%p343_p2), 120   ;;  %s1902_s25 = smov (!%p343_p2), 88  }
   0x8   : > { %s1903_s26 = smov (!%p343_p2), 80   ;;  %s1904_s27 = smov (!%p343_p2), 112  }
   0x9   : > { %s1905_s28 = smov (!%p343_p2), 104   ;;  %s1906_s29 = smov (!%p343_p2), 72  }
   0xa   : > { %s1908_s16 = smov (!%p343_p2), 48   ;;  %s1909_s17 = smov (!%p343_p2), 40  }
   0xb   : > { %s2386_s14 = smov (!%p395_p3, %s1691_s14), 15  ;;  %vm453_vm0 = vcmask 64512   ;;  %vm523_vm1 = vcmask 131072   ;;  %vm516_vm2 = vcmask 138240   ;;  %vm597_vm3 = vcmask 1040384  }
   0xc   : > { %s1976_s15 = smul.u32 12, %s2386_s14  ;;  %v1900_v33 = vmov 0   ;;  %s1907_s14 = smov 56   ;;  %vm877_vm4 = vcmask 130112   ;;  %vm1094_vm5 = vcmask 195712   ;;  %vm1311_vm6 = vcmask 261312  }
   0xd   : > { %v2018_v34 = vsel %vm597_vm3, 65535, %v1900_v33  ;;  %vm1348_vm7 = vcmask 261120   ;;  %vm661_vm8 = vcmask 57344   ;;  %vm880_vm9 = vcmask 122944  }
   0xe   : > { %s404_s18 = scalar_lea.vmem %s2375_s1, %s1976_s15  ;;  %s409_s23 = scalar_lea.vmem %s2376_s2, %s1976_s15  ;;  %vm1097_vm10 = vcmask 188544   ;;  %vm1314_vm11 = vcmask 254144   ;;  %vm1557_vm12 = vcmask 1043456  }
   0xf   : > { %v426_v0 = vld [vmem:[%s404_s18 + $0x8] sm:$0x1]  ;;  %v1985_v3 = vld [vmem:[%s404_s18] sm:$0xff]  ;;  %s414_s12 = scalar_lea.vmem %s2377_s3, %s1976_s15 }
  0x10   : > { %v446_v1 = vunpack.c.l.b16 %v426_v0  ;;  %621 = vrot.lane.b32.xlu1 %v1985_v3, %s1899_s20  ;;  %v429_v4 = vld [vmem:[%s409_s23 + $0x8] sm:$0x1]  ;;  %v424_v8 = vld [vmem:[%s404_s18] sm:$0xff]   ;;  %v435_v12 = vunpack.c.l.bf16 %v426_v0  ;;  %s1910_s18 = smov 8  }
  0x11   : > { %v489_v6 = vunpack.c.l.b16 %v429_v4  ;;  %v433_v9 = vunpack.c.l.bf16 %v424_v8  ;;  %v434_v11 = vunpack.c.h.bf16 %v424_v8  ;;  %v1773_v19 = vld [vmem:[%s409_s23] sm:$0xff]  ;;  %v432_v42 = vld [vmem:[%s414_s12 + $0x8] sm:$0x1] }
  0x12   : > { %v1982_v2 = vpack.c.b16 %v446_v1, %v446_v1  ;;  %v438_v18 = vmul.f32 0.35355338, %v435_v12  ;;  %v493_v22 = vsel %vm453_vm0, %v1773_v19, 0  ;;  %v587_v43 = vunpack.c.l.b16 %v432_v42  ;;  %v2057_v46 = vld [vmem:[%s414_s12] sm:$0xff] }
  0x13   : > { %v491_v10 = vpack.c.b16 %v489_v6, %v489_v6  ;;  %v436_v14 = vmul.f32 0.35355338, %v433_v9  ;;  %v437_v17 = vmul.f32 0.35355338, %v434_v11 }
  0x14   : > { %451 = vrot.lane.b32.xlu0 %v1982_v2, %s1898_s19  ;;  %v440_v21 = vpack.c.bf16 %v438_v18, %v438_v18  ;;  %v2051_v44 = vpack.c.b16 %v587_v43, %v587_v43 }
  0x15   : > { %v496_v15 = vsel %vm453_vm0, %v491_v10, 0  ;;  %v439_v20 = vpack.c.bf16 %v437_v17, %v436_v14 }
  0x16   : > { %v601_v45 = vand.u32 %v2018_v34, %v2051_v44 }
  0x18   : > { %609 = vmatpush.bf16.msra.mxu2 %v601_v45 }
  0x1c   : > { %449 = vrot.lane.b32.xlu0 %v1985_v3, %s1898_s19  ;;  %610 = vmatpush.bf16.msra.mxu2 %v2057_v46  ;;  %s1911_s19 = smov 16  }
  0x24   : > { %623 = vrot.lane.b32.xlu0 %v1982_v2, %s1899_s20  ;;  %s1912_s20 = smov 24  }
  0x82   : > { %v622_v36 = vpop.permute.xlu1 %621 }
  0x86   : > { %v452_v5 = vpop.permute.xlu0 %451 }
  0x87   : > { %v464_v7 = vsel %vm453_vm0, %v452_v5, 0 }
  0x88   : > { %472 = vmatpush.bf16.xpose.msra.mxu0 %v464_v7  ;;  %1783 = vmatpush.bf16.xpose.msra.mxu1 %v464_v7 }
  0x8e   : > { %v450_v13 = vpop.permute.xlu0 %449 }
  0x8f   : > { %v461_v16 = vsel %vm453_vm0, %v450_v13, 0 }
  0x90   : > { %473 = vmatpush.bf16.xpose.msra.mxu0 %v461_v16  ;;  %1784 = vmatpush.bf16.xpose.msra.mxu1 %v461_v16 }
  0x96   : > { %v624_v32 = vpop.permute.xlu0 %623 }
  0x97   : > { %1705 = vmatmul.msk.bf16.vlgmr.msra.gmra.mxu0 %vm453_vm0, %v439_v20  ;;  %1706 = vmatmul.msk.bf16.vlgmr.msra.gmra.mxu1 %vm453_vm0, %v440_v21  ;;  %v633_v35 = vand.u32 %v624_v32, %v2018_v34 }
  0x98   : > { %504 = vmatpush.bf16.xpose.msrb.mxu1 %v496_v15 }
  0x99   : > { %641 = vmatpush.bf16.msra.mxu3 %v633_v35 }
  0x9d   : > { %642 = vmatpush.bf16.msra.mxu3 %v622_v36 }
  0xa0   : > { %505 = vmatpush.bf16.xpose.msrb.mxu1 %v493_v22 }
  0xa7   : > { %1711 = vmatmul.msk.bf16.vlgmr.msrb.gmra.mxu1 %vm453_vm0, %v439_v20 }
  0xb7   : > { %1712 = vmatmul.msk.bf16.gmra.mxu1 %vm453_vm0, %v440_v21 }
 0x114   : > { %v2002_v23 = vpop.f32.mrf.mxu0  ;;  %v2004_v24 = vpop.f32.mrf.mxu1 }
 0x115   : > { %v524_v25 = vsel %vm523_vm1, %v2004_v24, -inf  ;;  %v517_v26 = vsel %vm516_vm2, %v2002_v23, -inf }
 0x116   : > { %525 = vmax.xlane.f32.xlu2 %v524_v25  ;;  %518 = vmax.xlane.f32.xlu1 %v517_v26 }
 0x11c   : > { %v2010_v27 = vpop.f32.mrf.mxu0  ;;  %v482_v28 = vpop.f32.mrf.mxu1 }
 0x11d   : > { %v520_v29 = vsel %vm516_vm2, %v2010_v27, -inf }
 0x11e   : > { %521 = vmax.xlane.f32.xlu1 %v520_v29 }
 0x124   : > { %v2014_v30 = vpop.f32.mrf.mxu1 }
 0x125   : > { %v527_v31 = vsel %vm516_vm2, %v2014_v30, -inf }
 0x126   : > { %528 = vmax.xlane.f32.xlu2 %v527_v31 }
 0x12c   : > { %v2021_v37 = vpop.f32.mrf.mxu1 }
 0x12d   : > { %v530_v38 = vsel %vm516_vm2, %v2021_v37, -inf }
 0x12e   : > { %531 = vmax.xlane.f32.xlu2 %v530_v38 }
 0x134   : > { %v2025_v39 = vpop.f32.mrf.mxu1 }
 0x135   : > { %v533_v40 = vsel %vm523_vm1, %v2025_v39, -inf }
 0x136   : > { %534 = vmax.xlane.f32.xlu0 %v533_v40 }
 0x137   : > { %705 = vrot.lane.b32.xlu1 %v491_v10, %s1901_s24 }
 0x13c   : > { %v514_v41 = vpop.f32.mrf.mxu1 }
 0x13f   : > { %703 = vrot.lane.b32.xlu1 %v1773_v19, %s1901_s24 }
 0x146   : > { %671 = vrot.lane.b32.xlu2 %v1982_v2, %s1902_s25 }
 0x147   : > { %667 = vrot.lane.b32.xlu1 %v440_v21, %s1901_s24 }
 0x14a   : > { %886 = vrot.lane.b32.xlu0 %v1985_v3, %s1903_s26 }
 0x14e   : > { %669 = vrot.lane.b32.xlu2 %v1985_v3, %s1902_s25 }
 0x14f   : > { %922 = vrot.lane.b32.xlu1 %v491_v10, %s1904_s27 }
 0x152   : > { %1139 = vrot.lane.b32.xlu0 %v491_v10, %s1905_s28 }
 0x156   : > { %665 = vrot.lane.b32.xlu2 %v439_v20, %s1901_s24 }
 0x157   : > { %882 = vrot.lane.b32.xlu1 %v439_v20, %s1904_s27 }
 0x15a   : > { %1099 = vrot.lane.b32.xlu0 %v439_v20, %s1905_s28 }
 0x15e   : > { %888 = vrot.lane.b32.xlu2 %v1982_v2, %s1903_s26 }
 0x15f   : > { %1105 = vrot.lane.b32.xlu1 %v1982_v2, %s1906_s29 }
 0x162   : > { %797 = vrot.lane.b32.xlu0 %v2051_v44, %s1901_s24 }
 0x166   : > { %920 = vrot.lane.b32.xlu2 %v1773_v19, %s1904_s27 }
 0x167   : > { %1137 = vrot.lane.b32.xlu1 %v1773_v19, %s1905_s28 }
 0x16a   : > { %827 = vrot.lane.b32.xlu0 %v1985_v3, %s1907_s14 }
 0x16e   : > { %884 = vrot.lane.b32.xlu2 %v440_v21, %s1904_s27 }
 0x16f   : > { %795 = vrot.lane.b32.xlu1 %v2057_v46, %s1901_s24  ;;  %s419_s24 = scalar_lea.vmem %s2384_s10, %s1976_s15 }
 0x172   : > { %1046 = vrot.lane.b32.xlu0 %v1982_v2, %s1908_s16 }
 0x176   : > { %1103 = vrot.lane.b32.xlu2 %v1985_v3, %s1906_s29 }
 0x177   : > { %1012 = vrot.lane.b32.xlu1 %v2057_v46, %s1904_s27 }
 0x17a   : > { %1044 = vrot.lane.b32.xlu0 %v1985_v3, %s1908_s16 }
 0x17e   : > { %1101 = vrot.lane.b32.xlu2 %v440_v21, %s1905_s28 }
 0x186   : > { %829 = vrot.lane.b32.xlu2 %v1982_v2, %s1907_s14 }
 0x189   : > { %v526_v47 = vpop.xlane.xlu2 %525  ;;  %v519_v48 = vpop.xlane.xlu1 %518 }
 0x18e   : > { %1014 = vrot.lane.b32.xlu2 %v2051_v44, %s1904_s27 }
 0x191   : > { %v522_v53 = vpop.xlane.xlu1 %521 }
 0x199   : > { %v529_v49 = vpop.xlane.xlu2 %528 }
 0x19a   : > { %v536_v50 = vmax.f32 %v519_v48, %v529_v49 }
 0x19c   : > { %v539_v51 = vsub.f32 %v2002_v23, %v536_v50  ;;  %v548_v52 = vsub.f32 %v2014_v30, %v536_v50 }
 0x19e   : > { %v542_v55 = vmul.f32 1.442695, %v539_v51  ;;  %v551_v57 = vmul.f32 1.442695, %v548_v52 }
 0x1a0   : > { %1812 = vpow2.f32 %v542_v55 }
 0x1a1   : > { %v532_v54 = vpop.xlane.xlu2 %531  ;;  %1814 = vpow2.f32 %v551_v57 }
 0x1a2   : > { %v537_v56 = vmax.f32 %v522_v53, %v532_v54 }
 0x1a4   : > { %v540_v58 = vsub.f32 %v2010_v27, %v537_v56  ;;  %v549_v59 = vsub.f32 %v2021_v37, %v537_v56 }
 0x1a6   : > { %v544_v60 = vmul.f32 1.442695, %v540_v58  ;;  %v553_v61 = vmul.f32 1.442695, %v549_v59  ;;  %v2076_v6 = vpop.eup %1812 }
 0x1a7   : > { %v2078_v7 = vpop.eup %1814 }
 0x1a8   : > { %1816 = vpow2.f32 %v544_v60 }
 0x1a9   : > { %1818 = vpow2.f32 %v553_v61  ;;  %v535_v62 = vpop.xlane.xlu0 %534  ;;  %v672_v63 = vpop.permute.xlu2 %671 }
 0x1aa   : > { %v538_v0 = vmax.f32 %v526_v47, %v535_v62  ;;  %v706_v1 = vpop.permute.xlu1 %705  ;;  %v683_v4 = vsel %vm453_vm0, %v672_v63, 0 }
 0x1ab   : > { %691 = vmatpush.bf16.xpose.msrb.mxu2 %v683_v4  ;;  %v711_v5 = vsel %vm453_vm0, %v706_v1, 0 }
 0x1ac   : > { %719 = vmatpush.bf16.xpose.msrb.mxu3 %v711_v5  ;;  %v541_v9 = vsub.f32 %v2004_v24, %v538_v0  ;;  %v550_v11 = vsub.f32 %v2025_v39, %v538_v0 }
 0x1ae   : > { %v2080_v8 = vpop.eup %1816  ;;  %v546_v15 = vmul.f32 1.442695, %v541_v9  ;;  %v555_v18 = vmul.f32 1.442695, %v550_v11 }
 0x1af   : > { %v2083_v10 = vpop.eup %1818  ;;  %v578_v12 = vpack.c.bf16 %v2080_v8, %v2076_v6 }
 0x1b0   : > { %v580_v13 = vpack.c.bf16 %v2083_v10, %v2078_v7  ;;  %1820 = vpow2.f32 %v546_v15 }
 0x1b1   : > { %1719 = vmatmul.msk.bf16.vlgmr.msra.gmra.mxu3 %vm516_vm2, %v578_v12  ;;  %v670_v14 = vpop.permute.xlu2 %669  ;;  %1822 = vpow2.f32 %v555_v18 }
 0x1b2   : > { %1717 = vmatmul.msk.bf16.vlgmr.msra.gmra.mxu2 %vm516_vm2, %v580_v13  ;;  %v704_v16 = vpop.permute.xlu1 %703  ;;  %v680_v17 = vsel %vm453_vm0, %v670_v14, 0 }
 0x1b3   : > { %692 = vmatpush.bf16.xpose.msrb.mxu2 %v680_v17  ;;  %v708_v19 = vsel %vm453_vm0, %v704_v16, 0 }
 0x1b4   : > { %720 = vmatpush.bf16.xpose.msrb.mxu3 %v708_v19 }
 0x1b6   : > { %v2094_v22 = vpop.eup %1820 }
 0x1b7   : > { %v2096_v23 = vpop.eup %1822  ;;  %v579_v24 = vpack.c.bf16 %v2094_v22, %v2094_v22 }
 0x1b8   : > { %v581_v25 = vpack.c.bf16 %v2096_v23, %v2096_v23 }
 0x1b9   : > { %v666_v20 = vpop.permute.xlu2 %665 }
 0x1ba   : > { %v668_v21 = vpop.permute.xlu1 %667 }
 0x1bc   : > { %v887_v30 = vpop.permute.xlu0 %886 }
 0x1bd   : > { %v897_v31 = vsel %vm453_vm0, %v887_v30, 0 }
 0x1c1   : > { %1720 = vmatmul.msk.bf16.gmra.mxu3 %vm516_vm2, %v579_v24  ;;  %v889_v26 = vpop.permute.xlu2 %888 }
 0x1c2   : > { %1718 = vmatmul.msk.bf16.gmra.mxu2 %vm516_vm2, %v581_v25  ;;  %v900_v27 = vsel %vm453_vm0, %v889_v26, 0  ;;  %v923_v28 = vpop.permute.xlu1 %922 }
 0x1c3   : > { %v928_v29 = vsel %vm453_vm0, %v923_v28, 0  ;;  %908 = vmatpush.bf16.xpose.msra.mxu2 %v900_v27 }
 0x1c4   : > { %936 = vmatpush.bf16.xpose.msra.mxu3 %v928_v29  ;;  %v1140_v36 = vpop.permute.xlu0 %1139 }
 0x1c5   : > { %v1145_v37 = vsel %vm453_vm0, %v1140_v36, 0 }
 0x1c9   : > { %v921_v32 = vpop.permute.xlu2 %920 }
 0x1ca   : > { %v925_v33 = vsel %vm453_vm0, %v921_v32, 0  ;;  %v883_v35 = vpop.permute.xlu1 %882 }
 0x1cb   : > { %909 = vmatpush.bf16.xpose.msra.mxu2 %v897_v31 }
 0x1cc   : > { %937 = vmatpush.bf16.xpose.msra.mxu3 %v925_v33  ;;  %v1100_v47 = vpop.permute.xlu0 %1099 }
 0x1d1   : > { %1723 = vmatmul.msk.bf16.vlgmr.msrb.gmra.mxu3 %vm453_vm0, %v666_v20  ;;  %v885_v40 = vpop.permute.xlu2 %884 }
 0x1d2   : > { %1721 = vmatmul.msk.bf16.vlgmr.msrb.gmra.mxu2 %vm453_vm0, %v666_v20  ;;  %v1106_v38 = vpop.permute.xlu1 %1105 }
 0x1d3   : > { %v1117_v39 = vsel %vm453_vm0, %v1106_v38, 0 }
 0x1d4   : > { %1153 = vmatpush.bf16.xpose.msrb.mxu3 %v1145_v37  ;;  %1125 = vmatpush.bf16.xpose.msrb.mxu2 %v1117_v39  ;;  %v798_v16 = vpop.permute.xlu0 %797 }
 0x1d5   : > { %v807_v17 = vand.u32 %v798_v16, %v2018_v34 }
 0x1d7   : > { %815 = vmatpush.bf16.msrb.mxu0 %v807_v17 }
 0x1d9   : > { %v1104_v41 = vpop.permute.xlu2 %1103 }
 0x1da   : > { %v1138_v42 = vpop.permute.xlu1 %1137  ;;  %v1114_v43 = vsel %vm453_vm0, %v1104_v41, 0 }
 0x1db   : > { %v1142_v45 = vsel %vm453_vm0, %v1138_v42, 0 }
 0x1dc   : > { %1126 = vmatpush.bf16.xpose.msrb.mxu2 %v1114_v43  ;;  %1154 = vmatpush.bf16.xpose.msrb.mxu3 %v1142_v45  ;;  %v828_v24 = vpop.permute.xlu0 %827 }
 0x1e1   : > { %1724 = vmatmul.msk.bf16.gmra.mxu3 %vm453_vm0, %v668_v21  ;;  %v1102_v48 = vpop.permute.xlu2 %1101 }
 0x1e2   : > { %1722 = vmatmul.msk.bf16.gmra.mxu2 %vm453_vm0, %v668_v21  ;;  %v796_v39 = vpop.permute.xlu1 %795 }
 0x1e3   : > { %816 = vmatpush.bf16.msrb.mxu0 %v796_v39  ;;  %v557_v39 = vsel %vm516_vm2, %v2076_v6, 0.0 }
 0x1e4   : > { %v1047_v29 = vpop.permute.xlu0 %1046 }
 0x1e5   : > { %v1056_v31 = vand.u32 %v1047_v29, %v2018_v34 }
 0x1e9   : > { %v830_v18 = vpop.permute.xlu2 %829 }
 0x1ea   : > { %v839_v19 = vand.u32 %v830_v18, %v2018_v34 }
 0x1ec   : > { %847 = vmatpush.bf16.msra.mxu1 %v839_v19 }
 0x1f0   : > { %848 = vmatpush.bf16.msra.mxu1 %v828_v24 }
 0x1f1   : > { %1731 = vmatmul.msk.bf16.vlgmr.msra.gmra.mxu3 %vm453_vm0, %v883_v35 }
 0x1f2   : > { %1729 = vmatmul.msk.bf16.vlgmr.msra.gmra.mxu2 %vm453_vm0, %v883_v35  ;;  %v1045_v35 = vpop.permute.xlu0 %1044 }
 0x1f4   : > { %1064 = vmatpush.bf16.msrb.mxu1 %v1056_v31 }
 0x1f8   : > { %1065 = vmatpush.bf16.msrb.mxu1 %v1045_v35  ;;  %v566_v35 = vsel %vm516_vm2, %v2078_v7, 0.0 }
 0x201   : > { %1732 = vmatmul.msk.bf16.gmra.mxu3 %vm453_vm0, %v885_v40 }
 0x202   : > { %1730 = vmatmul.msk.bf16.gmra.mxu2 %vm453_vm0, %v885_v40  ;;  %v1015_v40 = vpop.permute.xlu2 %1014 }
 0x203   : > { %v1024_v41 = vand.u32 %v1015_v40, %v2018_v34 }
 0x205   : > { %1032 = vmatpush.bf16.msra.mxu0 %v1024_v41 }
 0x211   : > { %1739 = vmatmul.msk.bf16.vlgmr.msrb.gmra.mxu3 %vm453_vm0, %v1100_v47 }
 0x212   : > { %1737 = vmatmul.msk.bf16.vlgmr.msrb.gmra.mxu2 %vm453_vm0, %v1100_v47  ;;  %v1013_v47 = vpop.permute.xlu1 %1012 }
 0x213   : > { %1033 = vmatpush.bf16.msra.mxu0 %v1013_v47 }
 0x221   : > { %1740 = vmatmul.msk.bf16.gmra.mxu3 %vm453_vm0, %v1102_v48 }
 0x222   : > { %1738 = vmatmul.msk.bf16.gmra.mxu2 %vm453_vm0, %v1102_v48 }
 0x234   : > { %v644_v49 = vpop.f32.mrf.mxu3 }
 0x235   : > { %v612_v50 = vpop.f32.mrf.mxu2 }
 0x236   : > { %v2124_v51 = vadd.f32 %v644_v49, %v612_v50 }
 0x23c   : > { %v646_v52 = vpop.f32.mrf.mxu3 }
 0x23d   : > { %v614_v53 = vpop.f32.mrf.mxu2 }
 0x23e   : > { %v2126_v54 = vadd.f32 %v646_v52, %v614_v53 }
 0x244   : > { %v649_v55 = vpop.f32.mrf.mxu3 }
 0x245   : > { %v617_v56 = vpop.f32.mrf.mxu2 }
 0x246   : > { %v2128_v57 = vadd.f32 %v649_v55, %v617_v56 }
 0x24c   : > { %v651_v58 = vpop.f32.mrf.mxu3 }
 0x24d   : > { %v619_v59 = vpop.f32.mrf.mxu2 }
 0x254   : > { %v2130_v60 = vpop.f32.mrf.mxu3 }
 0x255   : > { %v2132_v61 = vpop.f32.mrf.mxu2  ;;  %v740_v62 = vsel %vm516_vm2, %v2130_v60, -inf }
 0x256   : > { %v731_v63 = vsel %vm516_vm2, %v2132_v61, -inf  ;;  %741 = vmax.xlane.f32.xlu2 %v740_v62 }
 0x257   : > { %732 = vmax.xlane.f32.xlu1 %v731_v63 }
 0x25c   : > { %v2138_v0 = vpop.f32.mrf.mxu3 }
 0x25d   : > { %v2140_v1 = vpop.f32.mrf.mxu2  ;;  %v743_v4 = vsel %vm516_vm2, %v2138_v0, -inf }
 0x25e   : > { %v734_v5 = vsel %vm516_vm2, %v2140_v1, -inf }
 0x25f   : > { %735 = vmax.xlane.f32.xlu0 %v734_v5  ;;  %744 = vmax.xlane.f32.xlu1 %v743_v4 }
 0x264   : > { %v2146_v9 = vpop.f32.mrf.mxu3 }
 0x265   : > { %v2148_v11 = vpop.f32.mrf.mxu2  ;;  %v746_v12 = vsel %vm523_vm1, %v2146_v9, -inf }
 0x266   : > { %v737_v13 = vsel %vm523_vm1, %v2148_v11, -inf }
 0x267   : > { %747 = vmax.xlane.f32.xlu0 %v746_v12  ;;  %738 = vmax.xlane.f32.xlu2 %v737_v13 }
 0x26c   : > { %v729_v14 = vpop.f32.mrf.mxu3 }
 0x26d   : > { %v701_v15 = vpop.f32.mrf.mxu2 }
 0x274   : > { %v2156_v20 = vpop.f32.mrf.mxu3 }
 0x275   : > { %v2158_v21 = vpop.f32.mrf.mxu2  ;;  %v957_v52 = vsel %vm516_vm2, %v2156_v20, -inf }
 0x276   : > { %v948_v25 = vsel %vm516_vm2, %v2158_v21, -inf }
 0x277   : > { %949 = vmax.xlane.f32.xlu1 %v948_v25 }
 0x27b   : > { %1231 = vrot.lane.b32.xlu0 %v2051_v44, %s1905_s28 }
 0x27c   : > { %v2164_v26 = vpop.f32.mrf.mxu3 }
 0x27d   : > { %v2166_v27 = vpop.f32.mrf.mxu2  ;;  %v960_v28 = vsel %vm516_vm2, %v2164_v26, -inf }
 0x27e   : > { %v951_v30 = vsel %vm516_vm2, %v2166_v27, -inf }
 0x27f   : > { %961 = vmax.xlane.f32.xlu1 %v960_v28  ;;  %952 = vmax.xlane.f32.xlu2 %v951_v30 }
 0x284   : > { %v2173_v32 = vpop.f32.mrf.mxu3 }
 0x285   : > { %v2175_v33 = vpop.f32.mrf.mxu2  ;;  %v963_v44 = vsel %vm523_vm1, %v2173_v32, -inf }
 0x286   : > { %v954_v36 = vsel %vm523_vm1, %v2175_v33, -inf }
 0x287   : > { %964 = vmax.xlane.f32.xlu1 %v963_v44  ;;  %955 = vmax.xlane.f32.xlu2 %v954_v36 }
 0x28c   : > { %v946_v37 = vpop.f32.mrf.mxu3 }
 0x28d   : > { %v918_v38 = vpop.f32.mrf.mxu2 }
 0x294   : > { %v2182_v42 = vpop.f32.mrf.mxu3 }
 0x295   : > { %v2184_v43 = vpop.f32.mrf.mxu2  ;;  %v1174_v45 = vsel %vm516_vm2, %v2182_v42, -inf }
 0x296   : > { %1175 = vmax.xlane.f32.xlu1 %v1174_v45  ;;  %v1165_v55 = vsel %vm516_vm2, %v2184_v43, -inf }
 0x29c   : > { %v2192_v50 = vpop.f32.mrf.mxu3 }
 0x29d   : > { %v2188_v48 = vpop.f32.mrf.mxu2  ;;  %v1177_v53 = vsel %vm516_vm2, %v2192_v50, -inf }
 0x29e   : > { %v1168_v49 = vsel %vm516_vm2, %v2188_v48, -inf }
 0x29f   : > { %1169 = vmax.xlane.f32.xlu2 %v1168_v49  ;;  %v569_v49 = vsel %vm516_vm2, %v2083_v10, 0.0 }
 0x2a4   : > { %v2201_v56 = vpop.f32.mrf.mxu3 }
 0x2a5   : > { %958 = vmax.xlane.f32.xlu0 %v957_v52  ;;  %v2206_v59 = vpop.f32.mrf.mxu2  ;;  %v1180_v18 = vsel %vm523_vm1, %v2201_v56, -inf }
 0x2a7   : > { %1178 = vmax.xlane.f32.xlu2 %v1177_v53 }
 0x2ac   : > { %v1163_v58 = vpop.f32.mrf.mxu3 }
 0x2ad   : > { %1166 = vmax.xlane.f32.xlu0 %v1165_v55  ;;  %v1135_v13 = vpop.f32.mrf.mxu2  ;;  %v560_v58 = vsel %vm516_vm2, %v2080_v8, 0.0 }
 0x2af   : > { %1263 = vrot.lane.b32.xlu1 %v1982_v2, %s1909_s17 }
 0x2bf   : > { %1229 = vrot.lane.b32.xlu2 %v2057_v46, %s1905_s28 }
 0x2c1   : > { %1261 = vrot.lane.b32.xlu0 %v1985_v3, %s1909_s17 }
 0x2c9   : > { %v742_v62 = vpop.xlane.xlu2 %741 }
 0x2ca   : > { %v733_v63 = vpop.xlane.xlu1 %732 }
 0x2cb   : > { %v749_v4 = vmax.f32 %v733_v63, %v742_v62 }
 0x2cd   : > { %v752_v5 = vsub.f32 %v2132_v61, %v749_v4  ;;  %v761_v12 = vsub.f32 %v2130_v60, %v749_v4 }
 0x2cf   : > { %v755_v15 = vmul.f32 1.442695, %v752_v5  ;;  %v764_v17 = vmul.f32 1.442695, %v761_v12 }
 0x2d1   : > { %1824 = vpow2.f32 %v755_v15 }
 0x2d2   : > { %v736_v14 = vpop.xlane.xlu0 %735  ;;  %v745_v2 = vpop.xlane.xlu1 %744  ;;  %1826 = vpow2.f32 %v764_v17 }
 0x2d3   : > { %v750_v16 = vmax.f32 %v736_v14, %v745_v2 }
 0x2d5   : > { %v753_v46 = vsub.f32 %v2140_v1, %v750_v16  ;;  %v762_v3 = vsub.f32 %v2138_v0, %v750_v16 }
 0x2d7   : > { %v757_v19 = vmul.f32 1.442695, %v753_v46  ;;  %v766_v24 = vmul.f32 1.442695, %v762_v3  ;;  %v1825_v28 = vpop.eup %1824 }
 0x2d8   : > { %v1827_v29 = vpop.eup %1826  ;;  %v770_v10 = vsel %vm516_vm2, %v1825_v28, 0.0 }
 0x2d9   : > { %1828 = vpow2.f32 %v757_v19  ;;  %1181 = vmax.xlane.f32.xlu1 %v1180_v18 }
 0x2da   : > { %1830 = vpow2.f32 %v766_v24  ;;  %v748_v60 = vpop.xlane.xlu0 %747  ;;  %v739_v61 = vpop.xlane.xlu2 %738 }
 0x2db   : > { %v751_v25 = vmax.f32 %v739_v61, %v748_v60 }
 0x2dd   : > { %v754_v1 = vsub.f32 %v2148_v11, %v751_v25  ;;  %v763_v44 = vsub.f32 %v2146_v9, %v751_v25  ;;  %v779_v11 = vsel %vm516_vm2, %v1827_v29, 0.0  ;;  %v1171_v9 = vsel %vm523_vm1, %v2206_v59, -inf }
 0x2df   : > { %v1829_v30 = vpop.eup %1828  ;;  %v759_v37 = vmul.f32 1.442695, %v754_v1  ;;  %v768_v38 = vmul.f32 1.442695, %v763_v44 }
 0x2e0   : > { %v1831_v31 = vpop.eup %1830  ;;  %v791_v0 = vpack.c.bf16 %v1829_v30, %v1825_v28  ;;  %v773_v13 = vsel %vm516_vm2, %v1829_v30, 0.0 }
 0x2e1   : > { %567 = vadd.xlane.f32.xlu1 %v566_v35  ;;  %v793_v36 = vpack.c.bf16 %v1831_v31, %v1827_v29  ;;  %1832 = vpow2.f32 %v759_v37  ;;  %v782_v16 = vsel %vm516_vm2, %v1831_v31, 0.0 }
 0x2e2   : > { %1727 = vmatmul.msk.bf16.vlgmr.msra.gmra.mxu1 %vm516_vm2, %v791_v0  ;;  %1834 = vpow2.f32 %v768_v38 }
 0x2e3   : > { %1725 = vmatmul.msk.bf16.vlgmr.msrb.gmra.mxu0 %vm516_vm2, %v793_v36 }
 0x2e7   : > { %v1833_v40 = vpop.eup %1832 }
 0x2e8   : > { %558 = vadd.xlane.f32.xlu2 %v557_v39  ;;  %v1835_v45 = vpop.eup %1834  ;;  %v792_v6 = vpack.c.bf16 %v1833_v40, %v1833_v40  ;;  %v776_v3 = vsel %vm523_vm1, %v1833_v40, 0.0 }
 0x2e9   : > { %780 = vadd.xlane.f32.xlu1 %v779_v11  ;;  %v794_v52 = vpack.c.bf16 %v1835_v45, %v1835_v45  ;;  %v785_v17 = vsel %vm523_vm1, %v1835_v45, 0.0 }
 0x2ea   : > { %v950_v7 = vpop.xlane.xlu1 %949 }
 0x2eb   : > { %1172 = vmax.xlane.f32.xlu0 %v1171_v9 }
 0x2ed   : > { %v1232_v41 = vpop.permute.xlu0 %1231 }
 0x2ee   : > { %v1241_v47 = vand.u32 %v1232_v41, %v2018_v34 }
 0x2f0   : > { %570 = vadd.xlane.f32.xlu2 %v569_v49  ;;  %1249 = vmatpush.bf16.msrb.mxu0 %v1241_v47 }
 0x2f2   : > { %v953_v53 = vpop.xlane.xlu2 %952  ;;  %1728 = vmatmul.msk.bf16.gmra.mxu1 %vm516_vm2, %v792_v6  ;;  %v962_v55 = vpop.xlane.xlu1 %961 }
 0x2f3   : > { %1726 = vmatmul.msk.bf16.gmra.mxu0 %vm516_vm2, %v794_v52  ;;  %v967_v62 = vmax.f32 %v953_v53, %v962_v55  ;;  %561 = vadd.xlane.f32.xlu0 %v560_v58 }
 0x2f5   : > { %v970_v63 = vsub.f32 %v2166_v27, %v967_v62  ;;  %v979_v19 = vsub.f32 %v2164_v26, %v967_v62 }
 0x2f7   : > { %v974_v4 = vmul.f32 1.442695, %v970_v63  ;;  %v983_v25 = vmul.f32 1.442695, %v979_v19 }
 0x2f8   : > { %771 = vadd.xlane.f32.xlu2 %v770_v10 }
 0x2f9   : > { %1836 = vpow2.f32 %v974_v4 }
 0x2fa   : > { %v956_v5 = vpop.xlane.xlu2 %955  ;;  %v965_v12 = vpop.xlane.xlu1 %964 }
 0x2fb   : > { %v968_v14 = vmax.f32 %v956_v5, %v965_v12  ;;  %774 = vadd.xlane.f32.xlu0 %v773_v13 }
 0x2fd   : > { %v971_v2 = vsub.f32 %v2175_v33, %v968_v14  ;;  %v980_v0 = vsub.f32 %v2173_v32, %v968_v14 }
 0x2ff   : > { %v1837_v8 = vpop.eup %1836  ;;  %v976_v15 = vmul.f32 1.442695, %v971_v2  ;;  %v985_v37 = vmul.f32 1.442695, %v980_v0 }
 0x300   : > { %783 = vadd.xlane.f32.xlu2 %v782_v16  ;;  %v990_v27 = vsel %vm516_vm2, %v1837_v8, 0.0 }
 0x301   : > { %1838 = vpow2.f32 %v976_v15  ;;  %991 = vadd.xlane.f32.xlu1 %v990_v27 }
 0x302   : > { %1840 = vpow2.f32 %v983_v25 }
 0x303   : > { %786 = vadd.xlane.f32.xlu0 %v785_v17 }
 0x307   : > { %v2239_v46 = vpop.eup %1838 }
 0x308   : > { %777 = vadd.xlane.f32.xlu2 %v776_v3  ;;  %v993_v33 = vsel %vm523_vm1, %v2239_v46, 0.0  ;;  %v1009_v12 = vpack.c.bf16 %v2239_v46, %v2239_v46 }
 0x309   : > { %994 = vadd.xlane.f32.xlu1 %v993_v33  ;;  %v1176_v60 = vpop.xlane.xlu1 %1175 }
 0x312   : > { %v1170_v18 = vpop.xlane.xlu2 %1169 }
 0x318   : > { %v959_v24 = vpop.xlane.xlu0 %958 }
 0x319   : > { %v966_v61 = vmax.f32 %v950_v7, %v959_v24 }
 0x31a   : > { %v1179_v28 = vpop.xlane.xlu2 %1178 }
 0x31b   : > { %v969_v29 = vsub.f32 %v2158_v21, %v966_v61  ;;  %v978_v30 = vsub.f32 %v2156_v20, %v966_v61  ;;  %v1184_v44 = vmax.f32 %v1170_v18, %v1179_v28  ;;  %v1841_v21 = vpop.eup %1840 }
 0x31d   : > { %v972_v1 = vmul.f32 1.442695, %v969_v29  ;;  %v981_v31 = vmul.f32 1.442695, %v978_v30  ;;  %v1196_v20 = vsub.f32 %v2192_v50, %v1184_v44  ;;  %v1187_v45 = vsub.f32 %v2188_v48, %v1184_v44 }
 0x31e   : > { %v999_v48 = vsel %vm516_vm2, %v1841_v21, 0.0 }
 0x31f   : > { %1842 = vpow2.f32 %v972_v1  ;;  %v1200_v49 = vmul.f32 1.442695, %v1196_v20 }
 0x320   : > { %1844 = vpow2.f32 %v981_v31  ;;  %v1167_v35 = vpop.xlane.xlu0 %1166 }
 0x321   : > { %v1183_v36 = vmax.f32 %v1167_v35, %v1176_v60  ;;  %v1264_v26 = vpop.permute.xlu1 %1263  ;;  %1846 = vpow2.f32 %v985_v37 }
 0x322   : > { %v1273_v38 = vand.u32 %v1264_v26, %v2018_v34  ;;  %v1230_v39 = vpop.permute.xlu2 %1229 }
 0x323   : > { %v1186_v11 = vsub.f32 %v2184_v43, %v1183_v36  ;;  %1250 = vmatpush.bf16.msrb.mxu0 %v1230_v39  ;;  %v1195_v32 = vsub.f32 %v2182_v42, %v1183_v36  ;;  %v1191_v42 = vmul.f32 1.442695, %v1187_v45 }
 0x324   : > { %1281 = vmatpush.bf16.msra.mxu1 %v1273_v38 }
 0x325   : > { %v1843_v9 = vpop.eup %1842  ;;  %v1189_v7 = vmul.f32 1.442695, %v1186_v11  ;;  %v1198_v50 = vmul.f32 1.442695, %v1195_v32 }
 0x326   : > { %v1845_v40 = vpop.eup %1844  ;;  %v1008_v41 = vpack.c.bf16 %v1837_v8, %v1843_v9  ;;  %v987_v47 = vsel %vm516_vm2, %v1843_v9, 0.0 }
 0x327   : > { %v1010_v34 = vpack.c.bf16 %v1841_v21, %v1845_v40  ;;  %1848 = vpow2.f32 %v1189_v7  ;;  %v996_v43 = vsel %vm516_vm2, %v1845_v40, 0.0  ;;  %988 = vadd.xlane.f32.xlu0 %v987_v47  ;;  %v1847_v6 = vpop.eup %1846 }
 0x328   : > { %997 = vadd.xlane.f32.xlu2 %v996_v43  ;;  %1735 = vmatmul.msk.bf16.vlgmr.msrb.gmra.mxu1 %vm516_vm2, %v1008_v41  ;;  %1850 = vpow2.f32 %v1200_v49  ;;  %v1002_v55 = vsel %vm523_vm1, %v1847_v6, 0.0  ;;  %v1011_v14 = vpack.c.bf16 %v1847_v6, %v1847_v6 }
 0x329   : > { %1733 = vmatmul.msk.bf16.vlgmr.msra.gmra.mxu0 %vm516_vm2, %v1010_v34  ;;  %1852 = vpow2.f32 %v1198_v50 }
 0x32a   : > { %1854 = vpow2.f32 %v1191_v42 }
 0x32d   : > { %v1849_v52 = vpop.eup %1848 }
 0x32e   : > { %v1204_v53 = vsel %vm516_vm2, %v1849_v52, 0.0  ;;  %v1851_v58 = vpop.eup %1850 }
 0x32f   : > { %1000 = vadd.xlane.f32.xlu0 %v999_v48  ;;  %1205 = vadd.xlane.f32.xlu1 %v1204_v53  ;;  %v1853_v62 = vpop.eup %1852  ;;  %v1216_v5 = vsel %vm516_vm2, %v1851_v58, 0.0 }
 0x330   : > { %1003 = vadd.xlane.f32.xlu2 %v1002_v55  ;;  %v1855_v4 = vpop.eup %1854  ;;  %v1213_v10 = vsel %vm516_vm2, %v1853_v62, 0.0  ;;  %v1227_v8 = vpack.c.bf16 %v1851_v58, %v1853_v62 }
 0x331   : > { %v1207_v13 = vsel %vm516_vm2, %v1855_v4, 0.0  ;;  %v1225_v2 = vpack.c.bf16 %v1855_v4, %v1849_v52 }
 0x333   : > { %v1262_v63 = vpop.permute.xlu0 %1261 }
 0x334   : > { %1282 = vmatpush.bf16.msra.mxu1 %v1262_v63 }
 0x337   : > { %1214 = vadd.xlane.f32.xlu0 %v1213_v10  ;;  %1217 = vadd.xlane.f32.xlu1 %v1216_v5 }
 0x338   : > { %1208 = vadd.xlane.f32.xlu2 %v1207_v13  ;;  %1736 = vmatmul.msk.bf16.gmra.mxu1 %vm516_vm2, %v1009_v12 }
 0x339   : > { %1734 = vmatmul.msk.bf16.gmra.mxu0 %vm516_vm2, %v1011_v14 }
 0x348   : > { %1743 = vmatmul.msk.bf16.vlgmr.msra.gmra.mxu1 %vm516_vm2, %v1225_v2 }
 0x349   : > { %1741 = vmatmul.msk.bf16.vlgmr.msrb.gmra.mxu0 %vm516_vm2, %v1227_v8 }
 0x34c   : > { %v1182_v15 = vpop.xlane.xlu1 %1181 }
 0x354   : > { %v568_v16 = vpop.xlane.xlu1 %567 }
 0x35b   : > { %v559_v27 = vpop.xlane.xlu2 %558 }
 0x35c   : > { %v575_v17 = vadd.f32 %v568_v16, %v559_v27  ;;  %v781_v21 = vpop.xlane.xlu1 %780 }
 0x35e   : > { %1856 = vrcp.f32 %v575_v17  ;;  %v1173_v46 = vpop.xlane.xlu0 %1172 }
 0x35f   : > { %v1185_v3 = vmax.f32 %v1173_v46, %v1182_v15  ;;  %v850_v33 = vpop.f32.mrf.mxu1 }
 0x360   : > { %v818_v18 = vpop.f32.mrf.mxu0 }
 0x361   : > { %v1188_v19 = vsub.f32 %v2206_v59, %v1185_v3  ;;  %v1197_v24 = vsub.f32 %v2201_v56, %v1185_v3  ;;  %v851_v34 = vadd.f32 %v850_v33, %v818_v18 }
 0x363   : > { %v1193_v60 = vmul.f32 1.442695, %v1188_v19  ;;  %v1202_v61 = vmul.f32 1.442695, %v1197_v24  ;;  %v571_v25 = vpop.xlane.xlu2 %570 }
 0x364   : > { %v1857_v28 = vpop.eup %1856 }
 0x365   : > { %1858 = vpow2.f32 %v1193_v60  ;;  %v656_v29 = vmul.f32 %v1857_v28, %v2124_v51 }
 0x366   : > { %1860 = vpow2.f32 %v1202_v61  ;;  %v562_v30 = vpop.xlane.xlu0 %561 }
 0x367   : > { %v576_v1 = vadd.f32 %v571_v25, %v562_v30  ;;  %v852_v31 = vpop.f32.mrf.mxu1  ;;  %659 = vst.msk [vmem:[#allocation2] sm:$0xff] %vm453_vm0, %v656_v29 }
 0x368   : > { %v820_v0 = vpop.f32.mrf.mxu0 }
 0x369   : > { %1862 = vrcp.f32 %v576_v1  ;;  %v853_v49 = vadd.f32 %v852_v31, %v820_v0 }
 0x36b   : > { %v1859_v44 = vpop.eup %1858  ;;  %v772_v35 = vpop.xlane.xlu2 %771 }
 0x36c   : > { %v1861_v59 = vpop.eup %1860  ;;  %v1210_v56 = vsel %vm523_vm1, %v1859_v44, 0.0  ;;  %v1226_v36 = vpack.c.bf16 %v1859_v44, %v1859_v44  ;;  %v788_v9 = vadd.f32 %v781_v21, %v772_v35 }
 0x36d   : > { %v1219_v26 = vsel %vm523_vm1, %v1861_v59, 0.0  ;;  %1211 = vadd.xlane.f32.xlu0 %v1210_v56  ;;  %v1228_v37 = vpack.c.bf16 %v1861_v59, %v1861_v59 }
 0x36e   : > { %1220 = vadd.xlane.f32.xlu1 %v1219_v26  ;;  %1744 = vmatmul.msk.bf16.gmra.mxu1 %vm516_vm2, %v1226_v36  ;;  %1864 = vrcp.f32 %v788_v9  ;;  %v775_v32 = vpop.xlane.xlu0 %774 }
 0x36f   : > { %v1863_v51 = vpop.eup %1862  ;;  %1742 = vmatmul.msk.bf16.gmra.mxu0 %vm516_vm2, %v1228_v37  ;;  %v855_v38 = vpop.f32.mrf.mxu1 }
 0x370   : > { %v823_v39 = vpop.f32.mrf.mxu0  ;;  %v657_v11 = vmul.f32 %v1863_v51, %v2126_v54 }
 0x371   : > { %v2278_v20 = vadd.f32 %v855_v38, %v823_v39  ;;  %v563_v38 = vsel %vm523_vm1, %v2094_v22, 0.0  ;;  %v572_v22 = vsel %vm523_vm1, %v2096_v23, 0.0  ;;  %v1775_v23 = vld [vmem:[%s2378_s4] sm:$0xff] }
 0x372   : > { %660 = vst.msk [vmem:[#allocation2 + $0x8] sm:$0xff] %vm453_vm0, %v657_v11 }
 0x373   : > { %v784_v7 = vpop.xlane.xlu2 %783 }
 0x374   : > { %v789_v41 = vadd.f32 %v784_v7, %v775_v32  ;;  %v1865_v47 = vpop.eup %1864  ;;  %v992_v58 = vpop.xlane.xlu1 %991 }
 0x375   : > { %v862_v43 = vmul.f32 %v1865_v47, %v851_v34 }
 0x376   : > { %1866 = vrcp.f32 %v789_v41  ;;  %v787_v42 = vpop.xlane.xlu0 %786 }
 0x377   : > { %v857_v40 = vpop.f32.mrf.mxu1 }
 0x378   : > { %v825_v45 = vpop.f32.mrf.mxu0 }
 0x37b   : > { %v778_v6 = vpop.xlane.xlu2 %777 }
 0x37c   : > { %v1867_v54 = vpop.eup %1866  ;;  %v995_v15 = vpop.xlane.xlu1 %994  ;;  %v790_v0 = vadd.f32 %v787_v42, %v778_v6  ;;  %v1776_v42 = vld [vmem:[%s2378_s4 + $0x8] sm:$0xff] }
 0x37d   : > { %v863_v50 = vmul.f32 %v1867_v54, %v853_v49  ;;  %1361 = vmatpush.bf16.msra.mxu2 %v1776_v42 }
 0x381   : > { %868 = vrot.lane.b32.xlu0 %v862_v43, %s1910_s18  ;;  %1362 = vmatpush.bf16.msra.mxu2 %v1775_v23 }
 0x387   : > { %870 = vrot.lane.b32.xlu1 %v863_v50, %s1910_s18 }
 0x39a   : > { %v989_v52 = vpop.xlane.xlu0 %988 }
 0x39b   : > { %v998_v48 = vpop.xlane.xlu2 %997 }
 0x39c   : > { %v1005_v53 = vadd.f32 %v998_v48, %v989_v52 }
 0x39e   : > { %1868 = vrcp.f32 %v1005_v53 }
 0x3a2   : > { %v1001_v55 = vpop.xlane.xlu0 %1000  ;;  %v1206_v3 = vpop.xlane.xlu1 %1205 }
 0x3a3   : > { %v1006_v63 = vadd.f32 %v1001_v55, %v992_v58  ;;  %v1004_v46 = vpop.xlane.xlu2 %1003 }
 0x3a4   : > { %v1869_v5 = vpop.eup %1868  ;;  %v1007_v37 = vadd.f32 %v1004_v46, %v995_v15 }
 0x3a5   : > { %v1067_v62 = vpop.f32.mrf.mxu1  ;;  %1870 = vrcp.f32 %v1006_v63 }
 0x3a6   : > { %v1035_v4 = vpop.f32.mrf.mxu0 }
 0x3a7   : > { %v1068_v10 = vadd.f32 %v1067_v62, %v1035_v4  ;;  %v1778_v62 = vld [vmem:[%s2380_s6 + $0x8] sm:$0xff] }
 0x3a8   : > { %1402 = vmatpush.bf16.msra.mxu3 %v1778_v62 }
 0x3a9   : > { %v1079_v12 = vmul.f32 %v1869_v5, %v1068_v10 }
 0x3aa   : > { %v1215_v33 = vpop.xlane.xlu0 %1214  ;;  %v1218_v61 = vpop.xlane.xlu1 %1217 }
 0x3ab   : > { %1085 = vrot.lane.b32.xlu2 %v1079_v12, %s1911_s19  ;;  %v1871_v8 = vpop.eup %1870  ;;  %v1222_v19 = vadd.f32 %v1215_v33, %v1206_v3  ;;  %v1209_v60 = vpop.xlane.xlu2 %1208 }
 0x3ac   : > { %v1223_v28 = vadd.f32 %v1218_v61, %v1209_v60  ;;  %v1810_v61 = vld [vmem:[%s2381_s7] ss:$0 sm:$0xff] }
 0x3ad   : > { %v1069_v13 = vpop.f32.mrf.mxu1  ;;  %1872 = vrcp.f32 %v1222_v19 }
 0x3ae   : > { %v1037_v14 = vpop.f32.mrf.mxu0  ;;  %1874 = vrcp.f32 %v1223_v28 }
 0x3af   : > { %v1070_v2 = vadd.f32 %v1069_v13, %v1037_v14  ;;  %1876 = vrcp.f32 %v790_v0 }
 0x3b0   : > { %1878 = vrcp.f32 %v1007_v37 }
 0x3b1   : > { %v1080_v16 = vmul.f32 %v1871_v8, %v1070_v2 }
 0x3b3   : > { %1087 = vrot.lane.b32.xlu0 %v1080_v16, %s1911_s19  ;;  %v1873_v1 = vpop.eup %1872  ;;  %v1777_v16 = vld [vmem:[%s2380_s6] sm:$0xff] }
 0x3b4   : > { %v1875_v56 = vpop.eup %1874  ;;  %1403 = vmatpush.bf16.msra.mxu3 %v1777_v16 }
 0x3b5   : > { %v1072_v27 = vpop.f32.mrf.mxu1  ;;  %v1877_v26 = vpop.eup %1876 }
 0x3b6   : > { %v1040_v17 = vpop.f32.mrf.mxu0  ;;  %v864_v51 = vmul.f32 %v1877_v26, %v2278_v20  ;;  %v1879_v11 = vpop.eup %1878 }
 0x3b7   : > { %v1073_v39 = vadd.f32 %v1072_v27, %v1040_v17 }
 0x3b9   : > { %v1081_v21 = vmul.f32 %v1879_v11, %v1073_v39 }
 0x3bd   : > { %v1074_v18 = vpop.f32.mrf.mxu1 }
 0x3be   : > { %v1042_v24 = vpop.f32.mrf.mxu0 }
 0x3c5   : > { %v1284_v25 = vpop.f32.mrf.mxu1 }
 0x3c6   : > { %v1252_v29 = vpop.f32.mrf.mxu0 }
 0x3c7   : > { %v1285_v30 = vadd.f32 %v1284_v25, %v1252_v29 }
 0x3c9   : > { %v1296_v31 = vmul.f32 %v1873_v1, %v1285_v30 }
 0x3cb   : > { %1302 = vrot.lane.b32.xlu2 %v1296_v31, %s1912_s20 }
 0x3cd   : > { %v1286_v44 = vpop.f32.mrf.mxu1 }
 0x3ce   : > { %v1254_v35 = vpop.f32.mrf.mxu0 }
 0x3cf   : > { %v1287_v59 = vadd.f32 %v1286_v44, %v1254_v35 }
 0x3d1   : > { %v1297_v36 = vmul.f32 %v1875_v56, %v1287_v59 }
 0x3d3   : > { %1304 = vrot.lane.b32.xlu1 %v1297_v36, %s1912_s20 }
 0x3db   : > { %872 = vrot.lane.b32.xlu1 %v864_v51, %s1910_s18 }
 0x3dd   : > { %564 = vadd.xlane.f32.xlu0 %v563_v38 }
 0x3e0   : > { %v1212_v9 = vpop.xlane.xlu0 %1211 }
 0x3e1   : > { %v1221_v7 = vpop.xlane.xlu1 %1220 }
 0x3e2   : > { %v1224_v32 = vadd.f32 %v1221_v7, %v1212_v9 }
 0x3e3   : > { %1089 = vrot.lane.b32.xlu1 %v1081_v21, %s1911_s19  ;;  %s399_s19 = scalar_lea.vmem %s2374_s0, %s1976_s15 }
 0x3e4   : > { %1880 = vrcp.f32 %v1224_v32 }
 0x3ea   : > { %v1881_v20 = vpop.eup %1880 }
 0x3eb   : > { %v1289_v40 = vpop.f32.mrf.mxu1 }
 0x3ec   : > { %v1257_v41 = vpop.f32.mrf.mxu0 }
 0x3ed   : > { %v1290_v45 = vadd.f32 %v1289_v40, %v1257_v41 }
 0x3ef   : > { %v1298_v47 = vmul.f32 %v1881_v20, %v1290_v45 }
 0x3f1   : > { %1306 = vrot.lane.b32.xlu1 %v1298_v47, %s1912_s20 }
 0x3f3   : > { %v1291_v34 = vpop.f32.mrf.mxu1  ;;  %v869_v43 = vpop.permute.xlu0 %868 }
 0x3f4   : > { %v1259_v54 = vpop.f32.mrf.mxu0  ;;  %878 = vst.msk [vmem:[#allocation2] sm:$0xff] %vm877_vm4, %v869_v43  ;;  %573 = vadd.xlane.f32.xlu2 %v572_v22 }
 0x3f9   : > { %v871_v49 = vpop.permute.xlu1 %870 }
 0x3fa   : > { %879 = vst.msk [vmem:[#allocation2 + $0x8] sm:$0xff] %vm877_vm4, %v871_v49 }
 0x405   : > { %v1086_v50 = vpop.permute.xlu2 %1085 }
 0x406   : > { %1095 = vst.msk [vmem:[#allocation2] sm:$0xff] %vm1094_vm5, %v1086_v50 }
 0x425   : > { %v1088_v6 = vpop.permute.xlu0 %1087  ;;  %v1303_v52 = vpop.permute.xlu2 %1302 }
 0x426   : > { %1096 = vst.msk [vmem:[#allocation2 + $0x8] sm:$0xff] %vm1094_vm5, %v1088_v6 }
 0x427   : > { %1312 = vst.msk [vmem:[#allocation2] sm:$0xff] %vm1311_vm6, %v1303_v52 }
 0x42e   : > { %v1316_v53 = vld [vmem:[#allocation2] sm:$0xff] }
 0x445   : > { %v1305_v48 = vpop.permute.xlu1 %1304 }
 0x446   : > { %1313 = vst.msk [vmem:[#allocation2 + $0x8] sm:$0xff] %vm1311_vm6, %v1305_v48  ;;  %v1331_v48 = vld [vmem:[%s2382_s8] sm:$0xf] }
 0x44d   : > { %v1317_v55 = vld [vmem:[#allocation2 + $0x8] sm:$0xff]  ;;  %v873_v63 = vpop.permute.xlu1 %872 }
 0x44e   : > { %v1319_v58 = vpack.c.bf16 %v1317_v55, %v1316_v53 }
 0x450   : > { %1753 = vmatmul.msk.bf16.vlgmr.msra.gmra.mxu2 %vm1348_vm7, %v1319_v58  ;;  %v565_v4 = vpop.xlane.xlu0 %564  ;;  %v1559_v58 = vsel %vm1557_vm12, %v1331_v48, 0 }
 0x451   : > { %1568 = vmatpush.bf16.msra.mxu0 %v1559_v58 }
 0x455   : > { %v1090_v12 = vpop.permute.xlu1 %1089 }
 0x463   : > { %v1307_v2 = vpop.permute.xlu1 %1306 }
 0x467   : > { %v574_v10 = vpop.xlane.xlu2 %573 }
 0x468   : > { %v577_v5 = vadd.f32 %v574_v10, %v565_v4 }
 0x46a   : > { %1882 = vrcp.f32 %v577_v5 }
 0x470   : > { %v1883_v13 = vpop.eup %1882 }
 0x471   : > { %v658_v14 = vmul.f32 %v1883_v13, %v2128_v57  ;;  %v1809_v57 = vld [vmem:[%s2379_s5] ss:$0 sm:$0xff] }
 0x473   : > { %662 = vst.msk [vmem:[#allocation2 + $0x10] sm:$0x1] %vm661_vm8, %v658_v14 }
 0x474   : > { %881 = vst.msk [vmem:[#allocation2 + $0x10] sm:$0x1] %vm880_vm9, %v873_v63 }
 0x475   : > { %1098 = vst.msk [vmem:[#allocation2 + $0x10] sm:$0x1] %vm1097_vm10, %v1090_v12  ;;  %vm1594_vm10 = vcmask 253952  }
 0x476   : > { %1315 = vst.msk [vmem:[#allocation2 + $0x10] sm:$0x1] %vm1314_vm11, %v1307_v2  ;;  %vm1595_vm11 = vsmask.f32 256 }
 0x477   : > { %vm1596_vm12 = vmand %vm1594_vm10, %vm1595_vm11 }
 0x47d   : > { %v1318_v8 = vld [vmem:[#allocation2 + $0x10] sm:$0x1] }
 0x47e   : > { %v1320_v15 = vpack.c.bf16 %v1318_v8, %v1318_v8 }
 0x480   : > { %1754 = vmatmul.msk.bf16.gmra.mxu2 %vm1348_vm7, %v1320_v15 }
 0x4d3   : > { %v1364_v27 = vpop.f32.mrf.mxu2 }
 0x4d4   : > { %v2310_v46 = vadd.f32 %v1809_v57, %v1364_v27 }
 0x4db   : > { %v1366_v17 = vpop.f32.mrf.mxu2 }
 0x4dc   : > { %v2312_v3 = vadd.f32 %v1809_v57, %v1366_v17 }
 0x4de   : > { %v1373_v33 = vpack.c.bf16 %v2312_v3, %v2310_v46 }
 0x4e0   : > { %1763 = vmatmul.msk.bf16.vlgmr.msra.gmra.mxu3 %vm1348_vm7, %v1373_v33 }
 0x503   : > { %v1369_v18 = vpop.f32.mrf.mxu2 }
 0x504   : > { %v2317_v19 = vadd.f32 %v1809_v57, %v1369_v18 }
 0x506   : > { %v1374_v24 = vpack.c.bf16 %v2317_v19, %v2317_v19 }
 0x508   : > { %1764 = vmatmul.msk.bf16.gmra.mxu3 %vm1348_vm7, %v1374_v24 }
 0x50b   : > { %v1371_v60 = vpop.f32.mrf.mxu2 }
 0x563   : > { %v1405_v25 = vpop.f32.mrf.mxu3 }
 0x564   : > { %v2325_v28 = vadd.f32 %v1810_v61, %v1405_v25 }
 0x566   : > { %v2328_v29 = vmul.f32 0.70710677, %v2325_v28 }
 0x568   : > { %v1420_v30 = vmul.f32 %v2328_v29, %v2328_v29 }
 0x56a   : > { %v1421_v1 = vmin.f32 %v1420_v30, 16.0 }
 0x56b   : > { %v1407_v31 = vpop.f32.mrf.mxu3 }
 0x56c   : > { %v1422_v0 = vmul.f32 2.1237322e-06, %v1421_v1  ;;  %v1433_v44 = vmul.f32 3.8918573e-05, %v1421_v1  ;;  %v2332_v35 = vadd.f32 %v1810_v61, %v1407_v31 }
 0x56e   : > { %v1423_v59 = vadd.f32 0.00028619796, %v1422_v0  ;;  %v1434_v56 = vadd.f32 0.001143296, %v1433_v44  ;;  %v2335_v36 = vmul.f32 0.70710677, %v2332_v35 }
 0x56f   : > { %v1415_v48 = vmul.f32 0.5, %v2332_v35 }
 0x570   : > { %v1435_v26 = vmul.f32 %v1434_v56, %v1421_v1  ;;  %v1460_v37 = vmul.f32 %v2335_v36, %v2335_v36  ;;  %v1424_v51 = vmul.f32 %v1423_v59, %v1421_v1 }
 0x572   : > { %v1436_v38 = vadd.f32 0.014752088, %v1435_v26  ;;  %v1461_v39 = vmin.f32 %v1460_v37, 16.0  ;;  %v1425_v7 = vadd.f32 0.0036580483, %v1424_v51 }
 0x574   : > { %v1437_v11 = vmul.f32 %v1436_v38, %v1421_v1  ;;  %v1462_v21 = vmul.f32 2.1237322e-06, %v1461_v39  ;;  %v1473_v9 = vmul.f32 3.8918573e-05, %v1461_v39  ;;  %v1426_v34 = vmul.f32 %v1425_v7, %v1421_v1 }
 0x576   : > { %v1438_v32 = vadd.f32 0.112945676, %v1437_v11  ;;  %v1463_v40 = vadd.f32 0.00028619796, %v1462_v21  ;;  %v1474_v41 = vadd.f32 0.001143296, %v1473_v9 }
 0x577   : > { %v1427_v42 = vadd.f32 0.05243302, %v1426_v34 }
 0x578   : > { %v1439_v45 = vmul.f32 %v1438_v32, %v1421_v1  ;;  %v1464_v20 = vmul.f32 %v1463_v40, %v1461_v39  ;;  %v1475_v47 = vmul.f32 %v1474_v41, %v1461_v39 }
 0x579   : > { %v1428_v55 = vmul.f32 %v1427_v42, %v1421_v1 }
 0x57a   : > { %v1440_v43 = vadd.f32 0.4994258, %v1439_v45  ;;  %v1465_v22 = vadd.f32 0.0036580483, %v1464_v20  ;;  %v1476_v54 = vadd.f32 0.014752088, %v1475_v47 }
 0x57b   : > { %v1429_v5 = vadd.f32 0.18741608, %v1428_v55 }
 0x57c   : > { %v1441_v49 = vmul.f32 %v1440_v43, %v1421_v1  ;;  %v1477_v50 = vmul.f32 %v1476_v54, %v1461_v39  ;;  %v1466_v52 = vmul.f32 %v1465_v22, %v1461_v39 }
 0x57d   : > { %v1430_v8 = vmul.f32 %v1429_v5, %v1421_v1 }
 0x57e   : > { %v1442_v6 = vadd.f32 1.0, %v1441_v49  ;;  %v1478_v23 = vadd.f32 0.112945676, %v1477_v50  ;;  %v1467_v62 = vadd.f32 0.05243302, %v1466_v52 }
 0x57f   : > { %v1431_v24 = vadd.f32 1.1283791, %v1430_v8 }
 0x580   : > { %1884 = vrcp.f32 %v1442_v6  ;;  %v1479_v53 = vmul.f32 %v1478_v23, %v1461_v39  ;;  %v1468_v13 = vmul.f32 %v1467_v62, %v1461_v39  ;;  %v1454_v16 = vand.u32 2147483648, %v1442_v6 }
 0x581   : > { %v1452_v17 = vand.u32 2147483647, %v1442_v6  ;;  %vm1448_vm14 = vweird.f32 %v1442_v6  ;;  %v1414_v23 = vmul.f32 0.5, %v2325_v28 }
 0x582   : > { %v1480_v63 = vadd.f32 0.4994258, %v1479_v53  ;;  %v1469_v27 = vadd.f32 0.18741608, %v1468_v13  ;;  %v1455_v31 = vor.u32 1.1754944e-38, %v1454_v16 }
 0x583   : > { %vm1453_vm1 = vcmp.eq.f32.partialorder %v1452_v17, 8.507059e+37 }
 0x584   : > { %v1481_v4 = vmul.f32 %v1480_v63, %v1461_v39  ;;  %v1470_v0 = vmul.f32 %v1469_v27, %v1461_v39 }
 0x586   : > { %v1885_v10 = vpop.eup %1884  ;;  %v1482_v14 = vadd.f32 1.0, %v1481_v4  ;;  %v1471_v37 = vadd.f32 1.1283791, %v1470_v0 }
 0x587   : > { %v1444_v12 = vmul.f32 %v1885_v10, %v1442_v6  ;;  %vm1449_vm13 = vweird.f32 %v1885_v10 }
 0x588   : > { %1886 = vrcp.f32 %v1482_v14  ;;  %vm1450_vm15 = vmor %vm1448_vm14, %vm1449_vm13  ;;  %v1492_v51 = vand.u32 2147483647, %v1482_v14  ;;  %v1494_v38 = vand.u32 2147483648, %v1482_v14  ;;  %vm1488_vm3 = vweird.f32 %v1482_v14 }
 0x589   : > { %v1445_v2 = vsub.f32 1.0, %v1444_v12  ;;  %v1472_v45 = vmul.f32 %v1471_v37, %v2335_v36 }
 0x58a   : > { %vm1493_vm5 = vcmp.eq.f32.partialorder %v1492_v51, 8.507059e+37 }
 0x58b   : > { %v1446_v15 = vmul.f32 %v1885_v10, %v1445_v2  ;;  %v1410_v57 = vpop.f32.mrf.mxu3 }
 0x58c   : > { %v2342_v33 = vadd.f32 %v1810_v61, %v1410_v57  ;;  %v1432_v61 = vmul.f32 %v1431_v24, %v2328_v29  ;;  %v1495_v29 = vor.u32 1.1754944e-38, %v1494_v38 }
 0x58d   : > { %v1447_v18 = vadd.f32 %v1885_v10, %v1446_v15 }
 0x58e   : > { %v2345_v60 = vmul.f32 0.70710677, %v2342_v33  ;;  %v1887_v25 = vpop.eup %1886 }
 0x58f   : > { %v1451_v30 = vsel %vm1450_vm15, %v1885_v10, %v1447_v18  ;;  %v1484_v1 = vmul.f32 %v1887_v25, %v1482_v14  ;;  %vm1489_vm2 = vweird.f32 %v1887_v25 }
 0x590   : > { %v1500_v44 = vmul.f32 %v2345_v60, %v2345_v60  ;;  %v1456_v59 = vsel %vm1453_vm1, %v1455_v31, %v1451_v30  ;;  %vm1490_vm4 = vmor %vm1488_vm3, %vm1489_vm2 }
 0x591   : > { %v1485_v56 = vsub.f32 1.0, %v1484_v1  ;;  %v1457_v21 = vmul.f32 %v1456_v59, %v1432_v61 }
 0x592   : > { %v1501_v26 = vmin.f32 %v1500_v44, 16.0  ;;  %v1416_v44 = vmul.f32 0.5, %v2342_v33 }
 0x593   : > { %v1412_v11 = vpop.f32.mrf.mxu3  ;;  %v1486_v9 = vmul.f32 %v1887_v25, %v1485_v56  ;;  %v1765_v20 = vclamps-f32 %v1457_v21, 1.0 }
 0x594   : > { %v1502_v7 = vmul.f32 2.1237322e-06, %v1501_v26  ;;  %v1513_v32 = vmul.f32 3.8918573e-05, %v1501_v26 }
 0x595   : > { %v1487_v39 = vadd.f32 %v1887_v25, %v1486_v9  ;;  %v1540_v42 = vadd.f32 1.0, %v1765_v20 }
 0x596   : > { %v1503_v40 = vadd.f32 0.00028619796, %v1502_v7  ;;  %v1514_v41 = vadd.f32 0.001143296, %v1513_v32 }
 0x597   : > { %v1491_v47 = vsel %vm1490_vm4, %v1887_v25, %v1487_v39  ;;  %v1543_v58 = vmul.f32 %v1540_v42, %v1414_v23 }
 0x598   : > { %v1504_v34 = vmul.f32 %v1503_v40, %v1501_v26  ;;  %v1515_v43 = vmul.f32 %v1514_v41, %v1501_v26  ;;  %v1496_v22 = vsel %vm1493_vm5, %v1495_v29, %v1491_v47 }
 0x599   : > { %v1497_v54 = vmul.f32 %v1496_v22, %v1472_v45  ;;  %v423_v45 = vld [vmem:[%s399_s19 + $0x8] sm:$0x1] }
 0x59a   : > { %v1516_v49 = vadd.f32 0.014752088, %v1515_v43  ;;  %v1505_v50 = vadd.f32 0.0036580483, %v1504_v34  ;;  %v1581_v29 = vunpack.c.l.bf16 %v423_v45  ;;  %v1597_v43 = vld [vmem:[%s419_s24 + $0x8] sm:$0x1] }
 0x59b   : > { %v1766_v6 = vclamps-f32 %v1497_v54, 1.0 }
 0x59c   : > { %v1517_v52 = vmul.f32 %v1516_v49, %v1501_v26  ;;  %v1506_v55 = vmul.f32 %v1505_v50, %v1501_v26  ;;  %v1584_v20 = vadd.f32 %v1581_v29, %v2317_v19 }
 0x59d   : > { %v1541_v53 = vadd.f32 1.0, %v1766_v6 }
 0x59e   : > { %v1518_v36 = vadd.f32 0.112945676, %v1517_v52  ;;  %v1507_v5 = vadd.f32 0.05243302, %v1506_v55 }
 0x59f   : > { %v1544_v62 = vmul.f32 %v1541_v53, %v1415_v48 }
 0x5a0   : > { %v1519_v63 = vmul.f32 %v1518_v36, %v1501_v26  ;;  %v1508_v14 = vmul.f32 %v1507_v5, %v1501_v26 }
 0x5a1   : > { %v1546_v4 = vpack.c.bf16 %v1544_v62, %v1543_v58 }
 0x5a2   : > { %v1520_v10 = vadd.f32 0.4994258, %v1519_v63  ;;  %v1509_v2 = vadd.f32 0.18741608, %v1508_v14 }
 0x5a3   : > { %1768 = vmatmul.msk.bf16.vlgmr.msra.gmra.mxu0 %vm453_vm0, %v1546_v4 }
 0x5a4   : > { %v1521_v12 = vmul.f32 %v1520_v10, %v1501_v26  ;;  %v1510_v28 = vmul.f32 %v1509_v2, %v1501_v26  ;;  %v1780_v26 = vld [vmem:[%s399_s19] sm:$0xff]  }
 0x5a5   : > { %v1781_v37 = vunpack.c.l.bf16 %v1780_v26  ;;  %v1782_v21 = vunpack.c.h.bf16 %v1780_v26 }
 0x5a6   : > { %v1522_v13 = vadd.f32 1.0, %v1521_v12  ;;  %v1511_v27 = vadd.f32 1.1283791, %v1510_v28 }
 0x5a7   : > { %v1582_v38 = vadd.f32 %v1781_v37, %v2310_v46  ;;  %v1583_v32 = vadd.f32 %v1782_v21, %v2312_v3 }
 0x5a8   : > { %1888 = vrcp.f32 %v1522_v13  ;;  %v1534_v16 = vand.u32 2147483648, %v1522_v13  ;;  %v1532_v17 = vand.u32 2147483647, %v1522_v13  ;;  %vm1528_vm7 = vweird.f32 %v1522_v13 }
 0x5a9   : > { %v1512_v25 = vmul.f32 %v1511_v27, %v2345_v60  ;;  %v1811_v60 = vld [vmem:[%s2383_s9] ss:$0 sm:$0xff] }
 0x5aa   : > { %v1535_v24 = vor.u32 1.1754944e-38, %v1534_v16  ;;  %vm1533_vm9 = vcmp.eq.f32.partialorder %v1532_v17, 8.507059e+37 }
 0x5ae   : > { %v1889_v8 = vpop.eup %1888 }
 0x5af   : > { %v1524_v15 = vmul.f32 %v1889_v8, %v1522_v13  ;;  %vm1529_vm6 = vweird.f32 %v1889_v8 }
 0x5b0   : > { %vm1530_vm8 = vmor %vm1528_vm7, %vm1529_vm6 }
 0x5b1   : > { %v1525_v35 = vsub.f32 1.0, %v1524_v15 }
 0x5b3   : > { %v1526_v57 = vmul.f32 %v1889_v8, %v1525_v35 }
 0x5b5   : > { %v1527_v18 = vadd.f32 %v1889_v8, %v1526_v57 }
 0x5b7   : > { %v1531_v30 = vsel %vm1530_vm8, %v1889_v8, %v1527_v18 }
 0x5b8   : > { %v1536_v31 = vsel %vm1533_vm9, %v1535_v24, %v1531_v30 }
 0x5b9   : > { %v1537_v0 = vmul.f32 %v1536_v31, %v1512_v25 }
 0x5bb   : > { %v1767_v1 = vclamps-f32 %v1537_v0, 1.0 }
 0x5bd   : > { %v1542_v59 = vadd.f32 1.0, %v1767_v1 }
 0x5bf   : > { %v1545_v61 = vmul.f32 %v1542_v59, %v1416_v44 }
 0x5c1   : > { %v1547_v56 = vpack.c.bf16 %v1545_v61, %v1545_v61 }
 0x5c3   : > { %1769 = vmatmul.msk.bf16.gmra.mxu0 %vm453_vm0, %v1547_v56  ;;  %vm1591_vm0 = vcmask 257024  }
 0x620   : > { %v1570_v51 = vpop.f32.mrf.mxu0 }
 0x621   : > { %v1571_v11 = vadd.f32 %v1811_v60, %v1570_v51 }
 0x623   : > { %v1585_v33 = vadd.f32 %v1582_v38, %v1571_v11 }
 0x625   : > { %v1588_v9 = vpack.c.bf16 %v1585_v33, %v1585_v33 }
 0x627   : > { %1592 = vst.msk [vmem:[%s419_s24] sm:$0xf] %vm1591_vm0, %v1588_v9 }
 0x628   : > { %v1572_v7 = vpop.f32.mrf.mxu0 }
 0x629   : > { %v1573_v39 = vadd.f32 %v1811_v60, %v1572_v7 }
 0x62b   : > { %v1586_v40 = vadd.f32 %v1583_v32, %v1573_v39 }
 0x62d   : > { %v1589_v41 = vpack.c.bf16 %v1586_v40, %v1586_v40 }
 0x62f   : > { %1593 = vst.msk [vmem:[%s419_s24 + $0x4] sm:$0xf] %vm1591_vm0, %v1589_v41 }
 0x640   : > { %v1575_v46 = vpop.f32.mrf.mxu0 }
 0x641   : > { %v1576_v47 = vadd.f32 %v1811_v60, %v1575_v46 }
 0x643   : > { %v1587_v34 = vadd.f32 %v1584_v20, %v1576_v47 }
 0x645   : > { %v1590_v22 = vpack.c.bf16 %v1587_v34, %v1587_v34 }
 0x647   : > { %v1598_v54 = vsel %vm1596_vm12, %v1590_v22, %v1597_v43 }
 0x648   : > { %1599 = vst [vmem:[%s419_s24 + $0x8] sm:$0x1] %v1598_v54  ;;  %v1577_v49 = vpop.f32.mrf.mxu0 }
 0x649 PF: > { %s20_s13 = sadd.s32 1, %s1896_s13  }
 0x64a   : > { %p17_p4 = scmp.ge.s32.totalorder %s20_s13, 18  }
 0x64c   :  { %19 = sbr.rel (!%p17_p4) target bundleno = 1 (0x1), region = 99 }

// kernel: transformer_forward.11
= control target key start
LH: loop header
LB: loop body
LE: loop exit
PB: predicated region body
PF: predicated region fallthrough
CT: control target
= control target key end

     0   :  { %vm109_vm0 = vcmask 261120   ;;  %v4504_v18 = vmov 32.0   ;;  %s8931_s0 = inlined_call_operand.vmem [shape: bf16[272,32], index: 0, kind: input, shape index: {}]   ;;  %s8932_s1 = inlined_call_operand.vmem [shape: f32[1,32], index: 1, kind: input, shape index: {}]   ;;  %s8933_s2 = inlined_call_operand.vmem [shape: f32[1,32], index: 2, kind: input, shape index: {}]   ;;  %s8934_s3 = inlined_call_operand.vmem [shape: bf16[32,128], index: 3, kind: input, shape index: {}]   ;;  %s8935_s7 = inlined_call_operand.vmem [shape: bf16[32,8], index: 7, kind: input, shape index: {}]   ;;  %s8936_s4 = inlined_call_operand.vmem [shape: f32[1,128], index: 4, kind: input, shape index: {}]   ;;  %s8937_s8 = inlined_call_operand.vmem [shape: f32[1,8], index: 8, kind: input, shape index: {}]   ;;  %s8938_s5 = inlined_call_operand.vmem [shape: bf16[128,32], index: 5, kind: input, shape index: {}]   ;;  %s8939_s9 = inlined_call_operand.vmem [shape: bf16[8,32], index: 9, kind: input, shape index: {}]   ;;  %s8940_s6 = inlined_call_operand.vmem [shape: f32[1,32], index: 6, kind: input, shape index: {}]   ;;  %s8941_s10 = inlined_call_operand.vmem [shape: f32[1,32], index: 10, kind: input, shape index: {}]   ;;  %s8942_s11 = inlined_call_operand.vmem [shape: bf16[272,32], index: 11, kind: output, shape index: {}]  }
   0x1   :  { %v4184_v0 = vld [vmem:[%s8931_s0 + $0x8] sm:$0xff]   ;;  %v4117_v1 = vld [vmem:[%s8931_s0] sm:$0xff]   ;;  %v4185_v2 = vld [vmem:[%s8931_s0 + $0x10] sm:$0xff]   ;;  %4207 = vrcp.f32 %v4504_v18 }
   0x2   :  { %v4574_v3 = vunpack.c.l.bf16 %v4184_v0  ;;  %v4576_v4 = vunpack.c.l.bf16 %v4117_v1  ;;  %v4578_v5 = vunpack.c.l.bf16 %v4185_v2  ;;  %v4586_v9 = vunpack.c.h.bf16 %v4184_v0  ;;  %v4186_v15 = vld [vmem:[%s8931_s0 + $0x18] sm:$0xff]   ;;  %v4187_v47 = vld [vmem:[%s8931_s0 + $0x20] sm:$0xff]   ;;  %v4188_v59 = vld [vmem:[%s8931_s0 + $0x28] sm:$0xff]  }
   0x3   :  { %v4588_v10 = vunpack.c.h.bf16 %v4117_v1  ;;  %v4590_v11 = vunpack.c.h.bf16 %v4185_v2  ;;  %v4601_v16 = vunpack.c.l.bf16 %v4186_v15  ;;  %v4617_v37 = vunpack.c.h.bf16 %v4186_v15 }
   0x4   :  { %8995 = vst [vmem:[#allocation2_spill] sm:$0xff] %v4574_v3  ;;  %v116_v6 = vsel %vm109_vm0, %v4574_v3, 0.0  ;;  %v110_v7 = vsel %vm109_vm0, %v4576_v4, 0.0  ;;  %v122_v8 = vsel %vm109_vm0, %v4578_v5, 0.0  ;;  %v119_v12 = vsel %vm109_vm0, %v4586_v9, 0.0 }
   0x5   :  { %8996 = vst [vmem:[#allocation3_spill] sm:$0xff] %v4576_v4  ;;  %117 = vadd.xlane.f32.xlu1 %v116_v6  ;;  %111 = vadd.xlane.f32.xlu0 %v110_v7  ;;  %v113_v13 = vsel %vm109_vm0, %v4588_v10, 0.0  ;;  %v125_v14 = vsel %vm109_vm0, %v4590_v11, 0.0  ;;  %v128_v17 = vsel %vm109_vm0, %v4601_v16, 0.0  ;;  %v131_v44 = vsel %vm109_vm0, %v4617_v37, 0.0  ;;  %v4189_v7 = vld [vmem:[%s8931_s0 + $0x30] sm:$0xff]  }
   0x6   :  { %8997 = vst [vmem:[#allocation4_spill] sm:$0xff] %v4578_v5  ;;  %123 = vadd.xlane.f32.xlu2 %v122_v8  ;;  %v4646_v52 = vunpack.c.l.bf16 %v4187_v47  ;;  %v4661_v61 = vunpack.c.h.bf16 %v4188_v59  ;;  %v4665_v63 = vunpack.c.h.bf16 %v4187_v47  ;;  %v4678_v8 = vunpack.c.l.bf16 %v4189_v7 }
   0x7   :  { %8998 = vst [vmem:[#allocation5_spill] sm:$0xff] %v4586_v9  ;;  %v4208_v19 = vpop.eup %4207  ;;  %v4689_v18 = vunpack.c.h.bf16 %v4189_v7 }
   0x8   :  { %8999 = vst [vmem:[#allocation6_spill] sm:$0xff] %v4588_v10  ;;  %v213_v20 = vmul.f32 32.0, %v4208_v19  ;;  %vm217_vm1 = vweird.f32 %v4208_v19  ;;  %v134_v56 = vsel %vm109_vm0, %v4646_v52, 0.0  ;;  %v143_v1 = vsel %vm109_vm0, %v4661_v61, 0.0 }
   0x9   :  { %9000 = vst [vmem:[#allocation7_spill] sm:$0xff] %v4590_v11  ;;  %v137_v6 = vsel %vm109_vm0, %v4665_v63, 0.0 }
   0xa   :  { %9001 = vst [vmem:[#allocation8_spill] sm:$0xff] %v4601_v16  ;;  %v214_v21 = vsub.f32 1.0, %v213_v20  ;;  %v4696_v20 = vld [vmem:[%s8931_s0 + $0x38] sm:$0xff]  }
   0xb   :  { %9002 = vst [vmem:[#allocation9_spill] sm:$0xff] %v4617_v37 }
   0xc   :  { %v215_v22 = vmul.f32 %v4208_v19, %v214_v21  ;;  %9003 = vst [vmem:[#allocation10_spill] sm:$0xff] %v4646_v52  ;;  %v4699_v21 = vunpack.c.l.bf16 %v4696_v20 }
   0xd   :  { %120 = vadd.xlane.f32.xlu1 %v119_v12  ;;  %114 = vadd.xlane.f32.xlu0 %v113_v13  ;;  %9004 = vst [vmem:[#allocation11_spill] sm:$0xff] %v4661_v61  ;;  %v4682_v13 = vunpack.c.l.bf16 %v4188_v59 }
   0xe   :  { %126 = vadd.xlane.f32.xlu2 %v125_v14  ;;  %v216_v23 = vadd.f32 %v4208_v19, %v215_v22  ;;  %9005 = vst [vmem:[#allocation12_spill] sm:$0xff] %v4665_v63  ;;  %v146_v14 = vsel %vm109_vm0, %v4678_v8, 0.0  ;;  %v152_v22 = vsel %vm109_vm0, %v4699_v21, 0.0 }
   0xf   :  { %9006 = vst [vmem:[#allocation13_spill] sm:$0xff] %v4678_v8 }
  0x10   :  { %v4605_v24 = vsel %vm217_vm1, %v4208_v19, %v216_v23  ;;  %9007 = vst [vmem:[#allocation14_spill] sm:$0xff] %v4682_v13  ;;  %v149_v19 = vsel %vm109_vm0, %v4689_v18, 0.0 }
  0x11   :  { %9008 = vst [vmem:[#allocation15_spill] sm:$0xff] %v4689_v18 }
  0x12   :  { %9009 = vst [vmem:[#allocation16_spill] sm:$0xff] %v4699_v21 }
  0x16   :  { %129 = vadd.xlane.f32.xlu2 %v128_v17  ;;  %v140_v17 = vsel %vm109_vm0, %v4682_v13, 0.0 }
  0x78   :  { %v118_v25 = vpop.xlane.xlu1 %117  ;;  %v112_v26 = vpop.xlane.xlu0 %111 }
  0x79   :  { %v219_v27 = vmul.f32 %v4605_v24, %v112_v26  ;;  %v124_v28 = vpop.xlane.xlu2 %123  ;;  %v221_v38 = vmul.f32 %v4605_v24, %v118_v25  ;;  %v4105_v25 = vld [vmem:[%s8934_s3 + $0x8] sm:$0xff] }
  0x7a   :  { %v223_v36 = vmul.f32 %v4605_v24, %v124_v28  ;;  %v4115_v26 = vld [vmem:[%s8935_s7 + $0x8] sm:$0xff]  ;;  %1033 = vmatpush.bf16.msra.mxu0 %v4105_v25 }
  0x7b   :  { %v4609_v29 = vsub.f32 %v4576_v4, %v219_v27  ;;  %v4636_v46 = vsub.f32 %v4574_v3, %v221_v38  ;;  %2040 = vmatpush.bf16.msra.mxu2 %v4115_v26 }
  0x7c   :  { %v4627_v42 = vsub.f32 %v4578_v5, %v223_v36 }
  0x7d   :  { %v287_v30 = vmul.f32 %v4609_v29, %v4609_v29  ;;  %v289_v53 = vmul.f32 %v4636_v46, %v4636_v46 }
  0x7e   :  { %v291_v51 = vmul.f32 %v4627_v42, %v4627_v42 }
  0x7f   :  { %v321_v31 = vsel %vm109_vm0, %v287_v30, 0.0  ;;  %v327_v57 = vsel %vm109_vm0, %v289_v53, 0.0  ;;  %v4104_v30 = vld [vmem:[%s8934_s3] sm:$0xff] }
  0x80   :  { %v121_v32 = vpop.xlane.xlu1 %120  ;;  %322 = vadd.xlane.f32.xlu0 %v321_v31  ;;  %v115_v33 = vpop.xlane.xlu0 %114  ;;  %v333_v55 = vsel %vm109_vm0, %v291_v51, 0.0  ;;  %v4114_v31 = vld [vmem:[%s8935_s7] sm:$0xff]  ;;  %1034 = vmatpush.bf16.msra.mxu0 %v4104_v30 }
  0x81   :  { %v222_v34 = vmul.f32 %v4605_v24, %v121_v32  ;;  %v220_v35 = vmul.f32 %v4605_v24, %v115_v33  ;;  %v127_v41 = vpop.xlane.xlu2 %126  ;;  %2041 = vmatpush.bf16.msra.mxu2 %v4114_v31 }
  0x82   :  { %v224_v50 = vmul.f32 %v4605_v24, %v127_v41 }
  0x83   :  { %v4621_v39 = vsub.f32 %v4586_v9, %v222_v34  ;;  %v4624_v40 = vsub.f32 %v4588_v10, %v220_v35 }
  0x84   :  { %v4651_v54 = vsub.f32 %v4590_v11, %v224_v50 }
  0x85   :  { %v290_v43 = vmul.f32 %v4621_v39, %v4621_v39  ;;  %v288_v45 = vmul.f32 %v4624_v40, %v4624_v40 }
  0x86   :  { %v292_v62 = vmul.f32 %v4651_v54, %v4651_v54 }
  0x87   :  { %v330_v48 = vsel %vm109_vm0, %v290_v43, 0.0  ;;  %v324_v49 = vsel %vm109_vm0, %v288_v45, 0.0 }
  0x88   :  { %331 = vadd.xlane.f32.xlu2 %v330_v48  ;;  %132 = vadd.xlane.f32.xlu0 %v131_v44  ;;  %v336_v2 = vsel %vm109_vm0, %v292_v62, 0.0 }
  0x89   :  { %325 = vadd.xlane.f32.xlu1 %v324_v49  ;;  %v130_v58 = vpop.xlane.xlu2 %129 }
  0x8a   :  { %v225_v60 = vmul.f32 %v4605_v24, %v130_v58 }
  0x8c   :  { %v4668_v0 = vsub.f32 %v4601_v16, %v225_v60 }
  0x8e   :  { %v293_v12 = vmul.f32 %v4668_v0, %v4668_v0 }
  0x90   :  { %334 = vadd.xlane.f32.xlu2 %v333_v55  ;;  %135 = vadd.xlane.f32.xlu0 %v134_v56  ;;  %v339_v15 = vsel %vm109_vm0, %v293_v12, 0.0 }
  0x91   :  { %328 = vadd.xlane.f32.xlu1 %v327_v57 }
  0x98   :  { %144 = vadd.xlane.f32.xlu2 %v143_v1  ;;  %337 = vadd.xlane.f32.xlu0 %v336_v2 }
  0x99   :  { %138 = vadd.xlane.f32.xlu1 %v137_v6 }
  0xa0   :  { %147 = vadd.xlane.f32.xlu2 %v146_v14  ;;  %340 = vadd.xlane.f32.xlu0 %v339_v15 }
  0xa1   :  { %141 = vadd.xlane.f32.xlu1 %v140_v17 }
  0xa8   :  { %150 = vadd.xlane.f32.xlu0 %v149_v19 }
  0xb0   :  { %153 = vadd.xlane.f32.xlu0 %v152_v22 }
  0xf3   :  { %v323_v23 = vpop.xlane.xlu0 %322 }
  0xf4   :  { %v423_v27 = vmul.f32 %v323_v23, %v4605_v24 }
  0xf6   :  { %v457_v28 = vadd.f32 1e-05, %v423_v27 }
  0xf8   :  { %4209 = vrsqrt.f32 %v457_v28  ;;  %vm497_vm3 = vweird.f32 %v457_v28 }
  0xfb   :  { %v332_v32 = vpop.xlane.xlu2 %331  ;;  %v133_v33 = vpop.xlane.xlu0 %132 }
  0xfc   :  { %v426_v34 = vmul.f32 %v332_v32, %v4605_v24  ;;  %v326_v35 = vpop.xlane.xlu1 %325  ;;  %v226_v36 = vmul.f32 %v4605_v24, %v133_v33 }
  0xfd   :  { %v424_v38 = vmul.f32 %v326_v35, %v4605_v24  ;;  %v4757_v35 = vunpack.c.h.bf16 %v4696_v20 }
  0xfe   :  { %v4210_v41 = vpop.eup %4209  ;;  %v4719_v43 = vadd.f32 1e-05, %v426_v34  ;;  %v4722_v44 = vsub.f32 %v4617_v37, %v226_v36 }
  0xff   :  { %v492_v45 = vmul.f32 %v4210_v41, %v457_v28  ;;  %v458_v47 = vadd.f32 1e-05, %v424_v38  ;;  %vm498_vm2 = vweird.f32 %v4210_v41  ;;  %9012 = vst [vmem:[#allocation17_spill] sm:$0xff] %v4757_v35 }
 0x100   :  { %4211 = vrsqrt.f32 %v4719_v43  ;;  %v294_v48 = vmul.f32 %v4722_v44, %v4722_v44  ;;  %vm4745_vm4 = vmor %vm497_vm3, %vm498_vm2  ;;  %vm527_vm8 = vweird.f32 %v4719_v43 }
 0x101   :  { %v493_v49 = vmul.f32 %v4210_v41, %v492_v45  ;;  %4213 = vrsqrt.f32 %v458_v47  ;;  %vm507_vm6 = vweird.f32 %v458_v47 }
 0x102   :  { %v342_v50 = vsel %vm109_vm0, %v294_v48, 0.0 }
 0x103   :  { %v494_v51 = vmul.f32 0.5, %v493_v49  ;;  %v335_v53 = vpop.xlane.xlu2 %334  ;;  %343 = vadd.xlane.f32.xlu1 %v342_v50  ;;  %v136_v55 = vpop.xlane.xlu0 %135 }
 0x104   :  { %v329_v56 = vpop.xlane.xlu1 %328  ;;  %v227_v57 = vmul.f32 %v4605_v24, %v136_v55  ;;  %v427_v2 = vmul.f32 %v335_v53, %v4605_v24 }
 0x105   :  { %v495_v58 = vsub.f32 1.5, %v494_v51  ;;  %v425_v59 = vmul.f32 %v329_v56, %v4605_v24  ;;  %v4777_v51 = vld [vmem:[%s8932_s1] ss:$0 sm:$0xff] }
 0x106   :  { %v4730_v60 = vpop.eup %4211  ;;  %v4733_v62 = vsub.f32 %v4646_v52, %v227_v57  ;;  %v4743_v19 = vadd.f32 1e-05, %v427_v2  ;;  %v155_v57 = vsel %vm109_vm0, %v4757_v35, 0.0 }
 0x107   :  { %v4214_v1 = vpop.eup %4213  ;;  %v4736_v6 = vadd.f32 1e-05, %v425_v59  ;;  %v496_v12 = vmul.f32 %v4210_v41, %v495_v58  ;;  %v522_v14 = vmul.f32 %v4730_v60, %v4719_v43  ;;  %v4191_v58 = vld [vmem:[%s8931_s0 + $0x40] sm:$0xff]   ;;  %vm528_vm9 = vweird.f32 %v4730_v60 }
 0x108   :  { %v502_v7 = vmul.f32 %v4214_v1, %v458_v47  ;;  %v295_v17 = vmul.f32 %v4733_v62, %v4733_v62  ;;  %vm508_vm5 = vweird.f32 %v4214_v1  ;;  %vm4825_vm12 = vmor %vm527_vm8, %vm528_vm9  ;;  %vm537_vm1 = vweird.f32 %v4743_v19 }
 0x109   :  { %4215 = vrsqrt.f32 %v4736_v6  ;;  %v500_v33 = vsel %vm4745_vm4, %v4210_v41, %v496_v12  ;;  %v523_v28 = vmul.f32 %v4730_v60, %v522_v14  ;;  %vm509_vm7 = vmor %vm507_vm6, %vm508_vm5  ;;  %vm517_vm11 = vweird.f32 %v4736_v6 }
 0x10a   :  { %v503_v15 = vmul.f32 %v4214_v1, %v502_v7  ;;  %v345_v31 = vsel %vm109_vm0, %v295_v17, 0.0  ;;  %4217 = vrsqrt.f32 %v4743_v19  ;;  %v831_v49 = vmul.f32 %v500_v33, %v4609_v29 }
 0x10b   :  { %v145_v22 = vpop.xlane.xlu2 %144  ;;  %v338_v23 = vpop.xlane.xlu0 %337  ;;  %346 = vadd.xlane.f32.xlu1 %v345_v31  ;;  %v524_v53 = vmul.f32 0.5, %v523_v28 }
 0x10c   :  { %v504_v26 = vmul.f32 0.5, %v503_v15  ;;  %v230_v27 = vmul.f32 %v4605_v24, %v145_v22  ;;  %v139_v30 = vpop.xlane.xlu1 %138  ;;  %v428_v32 = vmul.f32 %v338_v23, %v4605_v24  ;;  %v868_v22 = vmul.f32 %v4777_v51, %v831_v49  ;;  %v4799_v23 = vld [vmem:[%s8933_s2] ss:$0 sm:$0xff] }
 0x10d   :  { %v228_v34 = vmul.f32 %v4605_v24, %v139_v30  ;;  %v525_v25 = vsub.f32 1.5, %v524_v53  ;;  %v4805_v30 = vunpack.c.l.bf16 %v4191_v58 }
 0x10e   :  { %v505_v36 = vsub.f32 1.5, %v504_v26  ;;  %v4760_v38 = vsub.f32 %v4661_v61, %v230_v27  ;;  %v4762_v45 = vadd.f32 1e-05, %v428_v32  ;;  %v905_v43 = vadd.f32 %v4799_v23, %v868_v22 }
 0x10f   :  { %v4764_v48 = vpop.eup %4215  ;;  %v4768_v41 = vsub.f32 %v4665_v63, %v228_v34  ;;  %9013 = vst [vmem:[#allocation18_spill] sm:$0xff] %v4805_v30 }
 0x110   :  { %v506_v50 = vmul.f32 %v4214_v1, %v505_v36  ;;  %v512_v20 = vmul.f32 %v4764_v48, %v4736_v6  ;;  %4219 = vrsqrt.f32 %v4762_v45  ;;  %v298_v47 = vmul.f32 %v4760_v38, %v4760_v38 }
 0x111   :  { %v296_v29 = vmul.f32 %v4768_v41, %v4768_v41  ;;  %vm518_vm10 = vweird.f32 %v4764_v48  ;;  %vm547_vm14 = vweird.f32 %v4762_v45 }
 0x112   :  { %v510_v55 = vsel %vm509_vm7, %v4214_v1, %v506_v50  ;;  %v513_v56 = vmul.f32 %v4764_v48, %v512_v20  ;;  %v354_v7 = vsel %vm109_vm0, %v298_v47, 0.0  ;;  %v526_v50 = vmul.f32 %v4730_v60, %v525_v25  ;;  %vm4835_vm13 = vmor %vm517_vm11, %vm518_vm10 }
 0x113   :  { %v832_v59 = vmul.f32 %v510_v55, %v4624_v40  ;;  %v148_v2 = vpop.xlane.xlu2 %147  ;;  %v4791_v12 = vpop.xlane.xlu0 %340  ;;  %355 = vadd.xlane.f32.xlu0 %v354_v7  ;;  %v348_v15 = vsel %vm109_vm0, %v296_v29, 0.0  ;;  %156 = vadd.xlane.f32.xlu1 %v155_v57  ;;  %v158_v29 = vsel %vm109_vm0, %v4805_v30, 0.0 }
 0x114   :  { %v514_v1 = vmul.f32 0.5, %v513_v56  ;;  %v231_v14 = vmul.f32 %v4605_v24, %v148_v2  ;;  %v142_v17 = vpop.xlane.xlu1 %141  ;;  %v4801_v40 = vpop.eup %4217  ;;  %349 = vadd.xlane.f32.xlu2 %v348_v15 }
 0x115   :  { %v229_v26 = vmul.f32 %v4605_v24, %v142_v17  ;;  %v869_v27 = vmul.f32 %v4777_v51, %v832_v59  ;;  %v532_v53 = vmul.f32 %v4801_v40, %v4743_v19  ;;  %vm538_vm2 = vweird.f32 %v4801_v40 }
 0x116   :  { %v4807_v31 = vpop.eup %4219  ;;  %v515_v32 = vsub.f32 1.5, %v514_v1  ;;  %v4812_v33 = vsub.f32 %v4678_v8, %v231_v14  ;;  %v4192_v14 = vld [vmem:[%s8931_s0 + $0x48] sm:$0xff]   ;;  %vm539_vm4 = vmor %vm537_vm1, %vm538_vm2 }
 0x117   :  { %v542_v28 = vmul.f32 %v4807_v31, %v4762_v45  ;;  %v4818_v34 = vsub.f32 %v4682_v13, %v229_v26  ;;  %v906_v49 = vadd.f32 %v4799_v23, %v869_v27  ;;  %v533_v17 = vmul.f32 %v4801_v40, %v532_v53 }
 0x118   :  { %v516_v36 = vmul.f32 %v4764_v48, %v515_v32  ;;  %v299_v47 = vmul.f32 %v4812_v33, %v4812_v33  ;;  %v4861_v26 = vunpack.c.h.bf16 %v4192_v14  ;;  %v4863_v27 = vunpack.c.h.bf16 %v4191_v58 }
 0x119   :  { %v297_v55 = vmul.f32 %v4818_v34, %v4818_v34  ;;  %v939_v56 = vpack.c.bf16 %v906_v49, %v905_v43  ;;  %v543_v59 = vmul.f32 %v4807_v31, %v542_v28  ;;  %vm548_vm15 = vweird.f32 %v4807_v31 }
 0x11a   :  { %v520_v57 = vsel %vm4835_vm13, %v4764_v48, %v516_v36  ;;  %v357_v2 = vsel %vm109_vm0, %v299_v47, 0.0  ;;  %v530_v48 = vsel %vm4825_vm12, %v4730_v60, %v526_v50  ;;  %9018 = vst [vmem:[#allocation19_spill] sm:$0xff] %v4861_v26  ;;  %v534_v36 = vmul.f32 0.5, %v533_v17  ;;  %vm549_vm3 = vmor %vm547_vm14, %vm548_vm15 }
 0x11b   :  { %v351_v7 = vsel %vm109_vm0, %v297_v55, 0.0  ;;  %v151_v1 = vpop.xlane.xlu0 %150  ;;  %3945 = vmatmul.msk.bf16.vlgmr.msra.gmra.mxu0 %vm109_vm0, %v939_v56  ;;  %4036 = vmatmul.msk.bf16.vlgmr.msra.gmra.mxu2 %vm109_vm0, %v939_v56  ;;  %v833_v22 = vmul.f32 %v520_v57, %v4636_v46  ;;  %9019 = vst [vmem:[#allocation20_spill] sm:$0xff] %v4863_v27  ;;  %v544_v32 = vmul.f32 0.5, %v543_v59  ;;  %v834_v28 = vmul.f32 %v530_v48, %v4621_v39  ;;  %v4193_v39 = vld [vmem:[%s8931_s0 + $0x50] sm:$0xff]  }
 0x11c   :  { %v232_v15 = vmul.f32 %v4605_v24, %v151_v1  ;;  %358 = vadd.xlane.f32.xlu0 %v357_v2  ;;  %352 = vadd.xlane.f32.xlu2 %v351_v7  ;;  %v167_v43 = vsel %vm109_vm0, %v4861_v26, 0.0  ;;  %v161_v46 = vsel %vm109_vm0, %v4863_v27, 0.0  ;;  %v535_v55 = vsub.f32 1.5, %v534_v36 }
 0x11d   :  { %159 = vadd.xlane.f32.xlu1 %v158_v29  ;;  %v870_v49 = vmul.f32 %v4777_v51, %v833_v22  ;;  %v545_v50 = vsub.f32 1.5, %v544_v32  ;;  %v871_v47 = vmul.f32 %v4777_v51, %v834_v28  ;;  %v4885_v29 = vunpack.c.l.bf16 %v4193_v39 }
 0x11e   :  { %v4859_v25 = vsub.f32 %v4689_v18, %v232_v15  ;;  %v4887_v57 = vunpack.c.l.bf16 %v4192_v14  ;;  %v536_v7 = vmul.f32 %v4801_v40, %v535_v55  ;;  %v4906_v32 = vunpack.c.h.bf16 %v4193_v39 }
 0x11f   :  { %v907_v56 = vadd.f32 %v4799_v23, %v870_v49  ;;  %9020 = vst [vmem:[#allocation21_spill] sm:$0xff] %v4885_v29  ;;  %v546_v45 = vmul.f32 %v4807_v31, %v545_v50  ;;  %v908_v59 = vadd.f32 %v4799_v23, %v871_v47  ;;  %v170_v14 = vsel %vm109_vm0, %v4885_v29, 0.0 }
 0x120   :  { %v300_v60 = vmul.f32 %v4859_v25, %v4859_v25  ;;  %9021 = vst [vmem:[#allocation22_spill] sm:$0xff] %v4887_v57  ;;  %v164_v19 = vsel %vm109_vm0, %v4887_v57, 0.0  ;;  %v540_v17 = vsel %vm539_vm4, %v4801_v40, %v536_v7  ;;  %v4916_v40 = vld [vmem:[%s8931_s0 + $0x58] sm:$0xff]   ;;  %v429_v50 = vmul.f32 %v4791_v12, %v4605_v24 }
 0x121   :  { %v940_v1 = vpack.c.bf16 %v908_v59, %v907_v56  ;;  %v550_v15 = vsel %vm549_vm3, %v4807_v31, %v546_v45  ;;  %9022 = vst [vmem:[#allocation23_spill] sm:$0xff] %v4906_v32  ;;  %v835_v28 = vmul.f32 %v540_v17, %v4627_v42  ;;  %v173_v31 = vsel %vm109_vm0, %v4906_v32, 0.0 }
 0x122   :  { %v360_v20 = vsel %vm109_vm0, %v300_v60, 0.0  ;;  %v836_v22 = vmul.f32 %v550_v15, %v4651_v54 }
 0x123   :  { %v154_v58 = vpop.xlane.xlu0 %153  ;;  %v872_v36 = vmul.f32 %v4777_v51, %v835_v28 }
 0x124   :  { %v233_v53 = vmul.f32 %v4605_v24, %v154_v58  ;;  %168 = vadd.xlane.f32.xlu0 %v167_v43  ;;  %162 = vadd.xlane.f32.xlu2 %v161_v46  ;;  %v873_v60 = vmul.f32 %v4777_v51, %v836_v22  ;;  %v4920_v43 = vunpack.c.l.bf16 %v4916_v40 }
 0x125   :  { %361 = vadd.xlane.f32.xlu1 %v360_v20  ;;  %v909_v42 = vadd.f32 %v4799_v23, %v872_v36  ;;  %v463_v20 = vadd.f32 1e-05, %v429_v50 }
 0x126   :  { %v4882_v6 = vsub.f32 %v4699_v21, %v233_v53  ;;  %v910_v54 = vadd.f32 %v4799_v23, %v873_v60  ;;  %9023 = vst [vmem:[#allocation24_spill] sm:$0xff] %v4920_v43  ;;  %v176_v49 = vsel %vm109_vm0, %v4920_v43, 0.0 }
 0x127   :  { %4221 = vrsqrt.f32 %v463_v20  ;;  %vm557_vm5 = vweird.f32 %v463_v20 }
 0x128   :  { %v301_v2 = vmul.f32 %v4882_v6, %v4882_v6  ;;  %v941_v46 = vpack.c.bf16 %v910_v54, %v909_v42 }
 0x12a   :  { %v363_v48 = vsel %vm109_vm0, %v301_v2, 0.0 }
 0x12b   :  { %3946 = vmatmul.msk.bf16.gmra.mxu0 %vm109_vm0, %v940_v1  ;;  %4037 = vmatmul.msk.bf16.gmra.mxu2 %vm109_vm0, %v940_v1 }
 0x12c   :  { %171 = vadd.xlane.f32.xlu0 %v170_v14  ;;  %165 = vadd.xlane.f32.xlu2 %v164_v19 }
 0x12d   :  { %364 = vadd.xlane.f32.xlu1 %v363_v48  ;;  %v4222_v58 = vpop.eup %4221 }
 0x12e   :  { %v552_v39 = vmul.f32 %v4222_v58, %v463_v20  ;;  %vm558_vm6 = vweird.f32 %v4222_v58 }
 0x12f   :  { %vm4934_vm7 = vmor %vm557_vm5, %vm558_vm6 }
 0x130   :  { %v553_v55 = vmul.f32 %v4222_v58, %v552_v39 }
 0x132   :  { %v554_v45 = vmul.f32 0.5, %v553_v55 }
 0x134   :  { %v555_v7 = vsub.f32 1.5, %v554_v45 }
 0x135   :  { %174 = vadd.xlane.f32.xlu1 %v173_v31 }
 0x136   :  { %v556_v15 = vmul.f32 %v4222_v58, %v555_v7 }
 0x138   :  { %v560_v36 = vsel %vm4934_vm7, %v4222_v58, %v556_v15 }
 0x139   :  { %v837_v39 = vmul.f32 %v560_v36, %v4668_v0 }
 0x13b   :  { %3947 = vmatmul.msk.bf16.gmra.mxu0 %vm109_vm0, %v941_v46  ;;  %4038 = vmatmul.msk.bf16.gmra.mxu2 %vm109_vm0, %v941_v46  ;;  %v874_v0 = vmul.f32 %v4777_v51, %v837_v39 }
 0x13d   :  { %177 = vadd.xlane.f32.xlu1 %v176_v49 }
 0x176   :  { %v344_v53 = vpop.xlane.xlu1 %343 }
 0x177   :  { %v430_v47 = vmul.f32 %v344_v53, %v4605_v24 }
 0x179   :  { %v464_v56 = vadd.f32 1e-05, %v430_v47 }
 0x17b   :  { %4223 = vrsqrt.f32 %v464_v56  ;;  %vm567_vm9 = vweird.f32 %v464_v56 }
 0x17e   :  { %v347_v59 = vpop.xlane.xlu1 %346 }
 0x17f   :  { %v431_v1 = vmul.f32 %v347_v59, %v4605_v24 }
 0x181   :  { %v4224_v2 = vpop.eup %4223  ;;  %v4931_v12 = vadd.f32 1e-05, %v431_v1 }
 0x182   :  { %v562_v14 = vmul.f32 %v4224_v2, %v464_v56  ;;  %vm568_vm8 = vweird.f32 %v4224_v2 }
 0x183   :  { %4225 = vrsqrt.f32 %v4931_v12  ;;  %vm569_vm10 = vmor %vm567_vm9, %vm568_vm8  ;;  %vm577_vm13 = vweird.f32 %v4931_v12 }
 0x184   :  { %v563_v19 = vmul.f32 %v4224_v2, %v562_v14 }
 0x186   :  { %v564_v17 = vmul.f32 0.5, %v563_v19  ;;  %v356_v22 = vpop.xlane.xlu0 %355  ;;  %v157_v31 = vpop.xlane.xlu1 %156 }
 0x187   :  { %v350_v60 = vpop.xlane.xlu2 %349  ;;  %v234_v42 = vmul.f32 %v4605_v24, %v157_v31  ;;  %v434_v55 = vmul.f32 %v356_v22, %v4605_v24 }
 0x188   :  { %v565_v28 = vsub.f32 1.5, %v564_v17  ;;  %v432_v54 = vmul.f32 %v350_v60, %v4605_v24  ;;  %v4113_v17 = vld [vmem:[%s8938_s5 + $0x38] sm:$0xff]  ;;  %v911_v60 = vadd.f32 %v4799_v23, %v874_v0 }
 0x189   :  { %v4942_v49 = vpop.eup %4225  ;;  %v4947_v20 = vsub.f32 %v4757_v35, %v234_v42  ;;  %v4961_v14 = vadd.f32 1e-05, %v434_v55  ;;  %1920 = vmatpush.bf16.msra.mxu1 %v4113_v17  ;;  %v5003_v17 = vunpack.c.h.bf16 %v4916_v40 }
 0x18a   :  { %v566_v46 = vmul.f32 %v4224_v2, %v565_v28  ;;  %v4944_v50 = vadd.f32 1e-05, %v432_v54  ;;  %v572_v58 = vmul.f32 %v4942_v49, %v4931_v12  ;;  %vm578_vm11 = vweird.f32 %v4942_v49 }
 0x18b   :  { %v302_v56 = vmul.f32 %v4947_v20, %v4947_v20  ;;  %9026 = vst [vmem:[#allocation25_spill] sm:$0xff] %v5003_v17  ;;  %vm5028_vm14 = vmor %vm577_vm13, %vm578_vm11  ;;  %vm607_vm2 = vweird.f32 %v4961_v14 }
 0x18c   :  { %v570_v53 = vsel %vm569_vm10, %v4224_v2, %v566_v46  ;;  %4227 = vrsqrt.f32 %v4944_v50  ;;  %v4982_v46 = vld [vmem:[%s8936_s4] ss:$0 sm:$0xff]  ;;  %vm587_vm15 = vweird.f32 %v4944_v50 }
 0x18d   :  { %v838_v47 = vmul.f32 %v570_v53, %v4722_v44  ;;  %v366_v7 = vsel %vm109_vm0, %v302_v56, 0.0  ;;  %v573_v44 = vmul.f32 %v4942_v49, %v572_v58  ;;  %4229 = vrsqrt.f32 %v4961_v14 }
 0x18e   :  { %367 = vadd.xlane.f32.xlu2 %v366_v7 }
 0x18f   :  { %v875_v45 = vmul.f32 %v4777_v51, %v838_v47  ;;  %v353_v59 = vpop.xlane.xlu2 %352  ;;  %v359_v1 = vpop.xlane.xlu0 %358  ;;  %v574_v31 = vmul.f32 0.5, %v573_v44  ;;  %v4112_v47 = vld [vmem:[%s8938_s5 + $0x30] sm:$0xff] }
 0x190   :  { %v160_v2 = vpop.xlane.xlu1 %159  ;;  %v433_v54 = vmul.f32 %v353_v59, %v4605_v24  ;;  %v435_v39 = vmul.f32 %v359_v1, %v4605_v24  ;;  %1921 = vmatpush.bf16.msra.mxu1 %v4112_v47 }
 0x191   :  { %v235_v19 = vmul.f32 %v4605_v24, %v160_v2  ;;  %v912_v15 = vadd.f32 %v4799_v23, %v875_v45  ;;  %v575_v45 = vsub.f32 1.5, %v574_v31 }
 0x192   :  { %v4965_v48 = vpop.eup %4227  ;;  %v4995_v2 = vadd.f32 1e-05, %v433_v54  ;;  %v5020_v54 = vld [vmem:[%s8937_s8] ss:$0 sm:$0xff] }
 0x193   :  { %v582_v22 = vmul.f32 %v4965_v48, %v4944_v50  ;;  %v4973_v28 = vsub.f32 %v4805_v30, %v235_v19  ;;  %v942_v42 = vpack.c.bf16 %v912_v15, %v911_v60  ;;  %v5000_v15 = vadd.f32 1e-05, %v435_v39  ;;  %v5008_v60 = vpop.eup %4229 }
 0x194   :  { %v576_v40 = vmul.f32 %v4942_v49, %v575_v45  ;;  %vm588_vm12 = vweird.f32 %v4965_v48  ;;  %4231 = vrsqrt.f32 %v4995_v2  ;;  %v602_v47 = vmul.f32 %v5008_v60, %v4961_v14 }
 0x195   :  { %v583_v36 = vmul.f32 %v4965_v48, %v582_v22  ;;  %v303_v53 = vmul.f32 %v4973_v28, %v4973_v28  ;;  %3948 = vmatmul.msk.bf16.gmra.mxu0 %vm109_vm0, %v942_v42  ;;  %4039 = vmatmul.msk.bf16.gmra.mxu2 %vm109_vm0, %v942_v42  ;;  %v4111_v22 = vld [vmem:[%s8938_s5 + $0x28] sm:$0xff]  ;;  %4233 = vrsqrt.f32 %v5000_v15  ;;  %vm5038_vm1 = vmor %vm587_vm15, %vm588_vm12  ;;  %vm608_vm3 = vweird.f32 %v5008_v60 }
 0x196   :  { %1922 = vmatpush.bf16.msra.mxu1 %v4111_v22  ;;  %vm5129_vm4 = vmor %vm607_vm2, %vm608_vm3  ;;  %vm617_vm5 = vweird.f32 %v5000_v15  ;;  %vm597_vm6 = vweird.f32 %v4995_v2 }
 0x197   :  { %v584_v58 = vmul.f32 0.5, %v583_v36  ;;  %v163_v55 = vpop.xlane.xlu2 %162  ;;  %v169_v56 = vpop.xlane.xlu0 %168  ;;  %v369_v7 = vsel %vm109_vm0, %v303_v53, 0.0 }
 0x198   :  { %v236_v59 = vmul.f32 %v4605_v24, %v163_v55  ;;  %v238_v1 = vmul.f32 %v4605_v24, %v169_v56  ;;  %v1036_v0 = vpop.f32.mrf.mxu0  ;;  %370 = vadd.xlane.f32.xlu2 %v369_v7  ;;  %v179_v56 = vsel %vm109_vm0, %v5003_v17, 0.0 }
 0x199   :  { %v585_v44 = vsub.f32 1.5, %v584_v58  ;;  %v4998_v19 = vadd.f32 %v4982_v46, %v1036_v0  ;;  %v362_v58 = vpop.xlane.xlu1 %361  ;;  %v580_v0 = vsel %vm5028_vm14, %v4942_v49, %v576_v40 }
 0x19a   :  { %v5012_v31 = vsub.f32 %v4863_v27, %v236_v59  ;;  %v5015_v36 = vsub.f32 %v4861_v26, %v238_v1  ;;  %v5052_v1 = vld [vmem:[%s8931_s0 + $0x60] sm:$0xff]   ;;  %v436_v22 = vmul.f32 %v362_v58, %v4605_v24  ;;  %v603_v27 = vmul.f32 %v5008_v60, %v602_v47  ;;  %v5070_v40 = vpop.eup %4231 }
 0x19b   :  { %v586_v42 = vmul.f32 %v4965_v48, %v585_v44  ;;  %v3962_v39 = vmul.f32 -1.702, %v4998_v19  ;;  %v5068_v49 = vunpack.c.l.bf16 %v5052_v1  ;;  %v5076_v58 = vpop.eup %4233  ;;  %vm598_vm7 = vweird.f32 %v5070_v40 }
 0x19c   :  { %v304_v50 = vmul.f32 %v5012_v31, %v5012_v31  ;;  %v306_v7 = vmul.f32 %v5015_v36, %v5015_v36  ;;  %vm618_vm8 = vweird.f32 %v5076_v58  ;;  %vm5193_vm10 = vmor %vm597_vm6, %vm598_vm7 }
 0x19d   :  { %v1189_v45 = vmul.f32 1.442695, %v3962_v39  ;;  %v590_v44 = vsel %vm5038_vm1, %v4965_v48, %v586_v42  ;;  %9031 = vst [vmem:[#allocation26_spill] sm:$0xff] %v5068_v49  ;;  %v839_v48 = vmul.f32 %v580_v0, %v4733_v62  ;;  %vm5211_vm11 = vmor %vm617_vm5, %vm618_vm8 }
 0x19e   :  { %v2043_v55 = vpop.f32.mrf.mxu2  ;;  %v378_v30 = vsel %vm109_vm0, %v306_v7, 0.0  ;;  %v840_v42 = vmul.f32 %v590_v44, %v4768_v41  ;;  %v592_v7 = vmul.f32 %v5070_v40, %v4995_v2  ;;  %v182_v41 = vsel %vm109_vm0, %v5068_v49, 0.0 }
 0x19f   :  { %v5043_v59 = vadd.f32 %v5020_v54, %v2043_v55  ;;  %v372_v55 = vsel %vm109_vm0, %v304_v50, 0.0  ;;  %v166_v26 = vpop.xlane.xlu2 %165  ;;  %4235 = vpow2.f32 %v1189_v45  ;;  %379 = vadd.xlane.f32.xlu1 %v378_v30  ;;  %v604_v50 = vmul.f32 0.5, %v603_v27  ;;  %v172_v0 = vpop.xlane.xlu0 %171  ;;  %v4110_v27 = vld [vmem:[%s8938_s5 + $0x20] sm:$0xff] }
 0x1a0   :  { %180 = vadd.xlane.f32.xlu2 %v179_v56  ;;  %373 = vadd.xlane.f32.xlu0 %v372_v55  ;;  %v237_v47 = vmul.f32 %v4605_v24, %v166_v26  ;;  %v5079_v56 = vadd.f32 1e-05, %v436_v22  ;;  %v1038_v62 = vpop.f32.mrf.mxu0  ;;  %v612_v45 = vmul.f32 %v5076_v58, %v5000_v15  ;;  %v876_v26 = vmul.f32 %v4777_v51, %v839_v48 }
 0x1a1   :  { %v5062_v39 = vmul.f32 0.70710677, %v5043_v59  ;;  %v877_v44 = vmul.f32 %v4777_v51, %v840_v42  ;;  %v5100_v21 = vpop.xlane.xlu1 %364  ;;  %1923 = vmatpush.bf16.msra.mxu1 %v4110_v27  ;;  %v605_v48 = vsub.f32 1.5, %v604_v50  ;;  %v593_v42 = vmul.f32 %v5070_v40, %v592_v7 }
 0x1a2   :  { %v5097_v55 = vsub.f32 %v4887_v57, %v237_v47  ;;  %4237 = vrsqrt.f32 %v5079_v56  ;;  %v239_v8 = vmul.f32 %v4605_v24, %v172_v0  ;;  %v613_v61 = vmul.f32 %v5076_v58, %v612_v45 }
 0x1a3   :  { %v2196_v53 = vmul.f32 %v5062_v39, %v5062_v39  ;;  %v913_v13 = vadd.f32 %v4799_v23, %v876_v26  ;;  %v914_v47 = vadd.f32 %v4799_v23, %v877_v44  ;;  %v606_v26 = vmul.f32 %v5008_v60, %v605_v48 }
 0x1a4   :  { %9032 = vst [vmem:[#allocation27_spill] sm:$0xff] %v5097_v55  ;;  %v305_v50 = vmul.f32 %v5097_v55, %v5097_v55  ;;  %vm627_vm9 = vweird.f32 %v5079_v56 }
 0x1a5   :  { %v5081_v12 = vmin.f32 %v2196_v53, 16.0  ;;  %v4236_v35 = vpop.eup %4235  ;;  %v943_v7 = vpack.c.bf16 %v914_v47, %v913_v13  ;;  %v610_v47 = vsel %vm5129_vm4, %v5008_v60, %v606_v26 }
 0x1a6   :  { %v2045_v53 = vpop.f32.mrf.mxu2  ;;  %v5110_v63 = vadd.f32 1.0, %v4236_v35  ;;  %v375_v14 = vsel %vm109_vm0, %v305_v50, 0.0 }
 0x1a7   :  { %v2209_v30 = vmul.f32 3.8918573e-05, %v5081_v12  ;;  %v2198_v22 = vmul.f32 2.1237322e-06, %v5081_v12  ;;  %v5108_v57 = vadd.f32 %v5020_v54, %v2045_v53  ;;  %3949 = vmatmul.msk.bf16.gmra.mxu0 %vm109_vm0, %v943_v7  ;;  %4040 = vmatmul.msk.bf16.gmra.mxu2 %vm109_vm0, %v943_v7  ;;  %v5138_v53 = vadd.f32 %v4982_v46, %v1038_v62 }
 0x1a8   :  { %183 = vadd.xlane.f32.xlu2 %v182_v41  ;;  %v5123_v35 = vpop.eup %4237  ;;  %4239 = vrcp.f32 %v5110_v63  ;;  %376 = vadd.xlane.f32.xlu0 %v375_v14  ;;  %vm1296_vm14 = vweird.f32 %v5110_v63 }
 0x1a9   :  { %v2210_v18 = vadd.f32 0.001143296, %v2209_v30  ;;  %v2199_v52 = vadd.f32 0.00028619796, %v2198_v22  ;;  %v5118_v30 = vsub.f32 %v4885_v29, %v239_v8  ;;  %v5121_v0 = vmul.f32 0.70710677, %v5108_v57  ;;  %v1041_v22 = vpop.f32.mrf.mxu0  ;;  %v175_v50 = vpop.xlane.xlu1 %174 }
 0x1aa   :  { %v614_v8 = vmul.f32 0.5, %v613_v61  ;;  %v622_v61 = vmul.f32 %v5123_v35, %v5079_v56  ;;  %v5154_v7 = vadd.f32 %v4982_v46, %v1041_v22  ;;  %v3963_v16 = vmul.f32 -1.702, %v5138_v53 }
 0x1ab   :  { %v2211_v41 = vmul.f32 %v2210_v18, %v5081_v12  ;;  %9033 = vst [vmem:[#allocation28_spill] sm:$0xff] %v5118_v30  ;;  %v594_v18 = vmul.f32 0.5, %v593_v42  ;;  %v2200_v44 = vmul.f32 %v2199_v52, %v5081_v12  ;;  %v2236_v48 = vmul.f32 %v5121_v0, %v5121_v0 }
 0x1ac   :  { %v307_v42 = vmul.f32 %v5118_v30, %v5118_v30  ;;  %v623_v13 = vmul.f32 %v5123_v35, %v622_v61  ;;  %v3964_v22 = vmul.f32 -1.702, %v5154_v7  ;;  %vm628_vm12 = vweird.f32 %v5123_v35 }
 0x1ad   :  { %v2212_v45 = vadd.f32 0.014752088, %v2211_v41  ;;  %v595_v62 = vsub.f32 1.5, %v594_v18  ;;  %v5151_v41 = vmin.f32 %v2236_v48, 16.0  ;;  %v2201_v14 = vadd.f32 0.0036580483, %v2200_v44  ;;  %vm5262_vm13 = vmor %vm627_vm9, %vm628_vm12 }
 0x1ae   :  { %v2048_v37 = vpop.f32.mrf.mxu2  ;;  %v5162_v18 = vpop.eup %4239  ;;  %v240_v44 = vmul.f32 %v4605_v24, %v175_v50  ;;  %v5168_v48 = vmul.f32 %v610_v47, %v4760_v38  ;;  %v1191_v47 = vmul.f32 1.442695, %v3963_v16 }
 0x1af   :  { %v2213_v27 = vmul.f32 %v2212_v45, %v5081_v12  ;;  %v615_v45 = vsub.f32 1.5, %v614_v8  ;;  %v2238_v60 = vmul.f32 2.1237322e-06, %v5151_v41  ;;  %v2249_v26 = vmul.f32 3.8918573e-05, %v5151_v41 }
 0x1b0   :  { %v5171_v11 = vadd.f32 %v5020_v54, %v2048_v37  ;;  %v596_v5 = vmul.f32 %v5070_v40, %v595_v62  ;;  %v1292_v38 = vmul.f32 %v5162_v18, %v5110_v63  ;;  %v5187_v62 = vsub.f32 %v4906_v32, %v240_v44 }
 0x1b1   :  { %v2214_v52 = vadd.f32 0.112945676, %v2213_v27  ;;  %v381_v27 = vsel %vm109_vm0, %v307_v42, 0.0  ;;  %v2250_v42 = vadd.f32 0.001143296, %v2249_v26  ;;  %v616_v50 = vmul.f32 %v5076_v58, %v615_v45  ;;  %v1043_v10 = vpop.f32.mrf.mxu0 }
 0x1b2   :  { %382 = vadd.xlane.f32.xlu1 %v381_v27  ;;  %v5176_v27 = vmul.f32 0.5, %v5043_v59  ;;  %9036 = vst [vmem:[#allocation29_spill] sm:$0xff] %v5187_v62  ;;  %v1193_v59 = vmul.f32 1.442695, %v3964_v22  ;;  %v600_v44 = vsel %vm5193_vm10, %v5070_v40, %v596_v5  ;;  %vm1297_vm1 = vweird.f32 %v5162_v18 }
 0x1b3   :  { %v2215_v29 = vmul.f32 %v2214_v52, %v5081_v12  ;;  %v2239_v52 = vadd.f32 0.00028619796, %v2238_v60  ;;  %v2251_v37 = vmul.f32 %v2250_v42, %v5151_v41  ;;  %v624_v60 = vmul.f32 0.5, %v623_v13  ;;  %vm5297_vm2 = vmor %vm1296_vm14, %vm1297_vm1 }
 0x1b4   :  { %v5202_v13 = vunpack.c.h.bf16 %v5052_v1  ;;  %v1293_v1 = vsub.f32 1.0, %v1292_v38 }
 0x1b5   :  { %v2216_v8 = vadd.f32 0.4994258, %v2215_v29  ;;  %v2202_v29 = vmul.f32 %v2201_v14, %v5081_v12  ;;  %v2240_v45 = vmul.f32 %v2239_v52, %v5151_v41  ;;  %v2252_v16 = vadd.f32 0.014752088, %v2251_v37 }
 0x1b6   :  { %9039 = vst [vmem:[#allocation30_spill] sm:$0xff] %v5202_v13  ;;  %v5218_v52 = vmul.f32 %v5100_v21, %v4605_v24  ;;  %v625_v40 = vsub.f32 1.5, %v624_v60  ;;  %v185_v15 = vsel %vm109_vm0, %v5202_v13, 0.0  ;;  %v5230_v21 = vld [vmem:[%s8931_s0 + $0x68] sm:$0xff]   ;;  %v1300_v60 = vand.u32 2147483647, %v5110_v63 }
 0x1b7   :  { %v2217_v61 = vmul.f32 %v2216_v8, %v5081_v12  ;;  %v5199_v8 = vmul.f32 0.70710677, %v5171_v11  ;;  %v2203_v22 = vadd.f32 0.05243302, %v2202_v29  ;;  %v2253_v42 = vmul.f32 %v2252_v16, %v5151_v41  ;;  %186 = vadd.xlane.f32.xlu0 %v185_v15  ;;  %v4109_v16 = vld [vmem:[%s8938_s5 + $0x18] sm:$0xff] }
 0x1b8   :  { %v308_v29 = vmul.f32 %v5187_v62, %v5187_v62  ;;  %v2241_v38 = vadd.f32 0.0036580483, %v2240_v45  ;;  %v1294_v2 = vmul.f32 %v5162_v18, %v1293_v1  ;;  %v5248_v45 = vunpack.c.h.bf16 %v5230_v21  ;;  %1924 = vmatpush.bf16.msra.mxu1 %v4109_v16 }
 0x1b9   :  { %v5184_v26 = vadd.f32 1.0, %v2217_v61  ;;  %v2276_v5 = vmul.f32 %v5199_v8, %v5199_v8  ;;  %v620_v61 = vsel %vm5211_vm11, %v5076_v58, %v616_v50  ;;  %v626_v15 = vmul.f32 %v5123_v35, %v625_v40 }
 0x1ba   :  { %v384_v14 = vsel %vm109_vm0, %v308_v29, 0.0  ;;  %9042 = vst [vmem:[#allocation31_spill] sm:$0xff] %v5248_v45  ;;  %vm5270_vm15 = vcmp.eq.f32.partialorder %v1300_v60, 8.507059e+37  ;;  %v1295_v32 = vadd.f32 %v5162_v18, %v1294_v2  ;;  %v191_v3 = vsel %vm109_vm0, %v5248_v45, 0.0 }
 0x1bb   :  { %4241 = vrcp.f32 %v5184_v26  ;;  %v5235_v37 = vmin.f32 %v2276_v5, 16.0  ;;  %385 = vadd.xlane.f32.xlu2 %v384_v14  ;;  %v5254_v5 = vmul.f32 %v620_v61, %v4812_v33  ;;  %v1302_v14 = vand.u32 2147483648, %v5110_v63  ;;  %192 = vadd.xlane.f32.xlu1 %v191_v3 }
 0x1bc   :  { %4243 = vpow2.f32 %v1191_v47  ;;  %v2254_v47 = vadd.f32 0.112945676, %v2253_v42  ;;  %v630_v60 = vsel %vm5262_vm13, %v5123_v35, %v626_v15  ;;  %vm2224_vm4 = vweird.f32 %v5184_v26 }
 0x1bd   :  { %4245 = vpow2.f32 %v1193_v59  ;;  %v2204_v59 = vmul.f32 %v2203_v22, %v5081_v12  ;;  %v2289_v50 = vmul.f32 3.8918573e-05, %v5235_v37  ;;  %v841_v22 = vmul.f32 %v600_v44, %v4818_v34 }
 0x1be   :  { %v2255_v58 = vmul.f32 %v2254_v47, %v5151_v41  ;;  %v2278_v29 = vmul.f32 2.1237322e-06, %v5235_v37  ;;  %v2242_v34 = vmul.f32 %v2241_v38, %v5151_v41  ;;  %v4108_v38 = vld [vmem:[%s8938_s5 + $0x10] sm:$0xff]  ;;  %v1303_v15 = vor.u32 1.1754944e-38, %v1302_v14 }
 0x1bf   :  { %v2205_v56 = vadd.f32 0.18741608, %v2204_v59  ;;  %v2290_v16 = vadd.f32 0.001143296, %v2289_v50  ;;  %v178_v50 = vpop.xlane.xlu1 %177  ;;  %1925 = vmatpush.bf16.msra.mxu1 %v4108_v38  ;;  %v5307_v47 = vmul.f32 0.5, %v5108_v57 }
 0x1c0   :  { %v2256_v44 = vadd.f32 0.4994258, %v2255_v58  ;;  %v2279_v59 = vadd.f32 0.00028619796, %v2278_v29  ;;  %v2243_v4 = vadd.f32 0.05243302, %v2242_v34  ;;  %v241_v63 = vmul.f32 %v4605_v24, %v178_v50 }
 0x1c1   :  { %v5250_v42 = vpop.eup %4241  ;;  %v2291_v2 = vmul.f32 %v2290_v16, %v5235_v37  ;;  %v2206_v29 = vmul.f32 %v2205_v56, %v5081_v12  ;;  %v5315_v12 = vmul.f32 %v630_v60, %v4859_v25  ;;  %v2228_v56 = vand.u32 2147483647, %v5184_v26 }
 0x1c2   :  { %v4244_v1 = vpop.eup %4243  ;;  %v2220_v33 = vmul.f32 %v5250_v42, %v5184_v26  ;;  %v2257_v9 = vmul.f32 %v2256_v44, %v5151_v41  ;;  %v5336_v38 = vsub.f32 %v4920_v43, %v241_v63  ;;  %v5339_v60 = vadd.f32 %v4982_v46, %v1043_v10 }
 0x1c3   :  { %v4246_v40 = vpop.eup %4245  ;;  %v5286_v58 = vadd.f32 1.0, %v4244_v1  ;;  %v2292_v3 = vadd.f32 0.014752088, %v2291_v2  ;;  %v878_v1 = vmul.f32 %v4777_v51, %v841_v22  ;;  %v2280_v22 = vmul.f32 %v2279_v59, %v5235_v37 }
 0x1c4   :  { %v2221_v44 = vsub.f32 1.0, %v2220_v33  ;;  %v5289_v62 = vadd.f32 1.0, %v2257_v9  ;;  %v5291_v55 = vadd.f32 1.0, %v4246_v40  ;;  %v1299_v9 = vsel %vm5297_vm2, %v5162_v18, %v1295_v32  ;;  %v4107_v33 = vld [vmem:[%s8938_s5 + $0x8] sm:$0xff]  ;;  %v2050_v40 = vpop.f32.mrf.mxu2  ;;  %9049 = vst [vmem:[#allocation32_spill] sm:$0xff] %v5336_v38 }
 0x1c5   :  { %v879_v32 = vmul.f32 %v4777_v51, %v5168_v48  ;;  %v2244_v18 = vmul.f32 %v2243_v4, %v5151_v41  ;;  %v2293_v34 = vmul.f32 %v2292_v3, %v5235_v37  ;;  %1926 = vmatpush.bf16.msra.mxu1 %v4107_v33  ;;  %v5327_v25 = vsel %vm5270_vm15, %v1303_v15, %v1299_v9  ;;  %v4106_v51 = vld [vmem:[%s8938_s5] sm:$0xff] }
 0x1c6   :  { %4247 = vrcp.f32 %v5289_v62  ;;  %v2222_v57 = vmul.f32 %v5250_v42, %v2221_v44  ;;  %v2207_v14 = vadd.f32 1.1283791, %v2206_v29  ;;  %v915_v16 = vadd.f32 %v4799_v23, %v878_v1  ;;  %v1046_v1 = vpop.f32.mrf.mxu0 }
 0x1c7   :  { %4249 = vrcp.f32 %v5286_v58  ;;  %v2230_v4 = vand.u32 2147483648, %v5184_v26  ;;  %v2294_v48 = vadd.f32 0.112945676, %v2293_v34  ;;  %v2281_v61 = vadd.f32 0.0036580483, %v2280_v22 }
 0x1c8   :  { %4251 = vrcp.f32 %v5291_v55  ;;  %v916_v59 = vadd.f32 %v4799_v23, %v879_v32  ;;  %v5343_v2 = vadd.f32 %v5020_v54, %v2050_v40  ;;  %v5346_v50 = vunpack.c.l.bf16 %v5230_v21  ;;  %v4197_v40 = vld [vmem:[%s8931_s0 + $0x70] sm:$0xff]  }
 0x1c9   :  { %v2223_v35 = vadd.f32 %v5250_v42, %v2222_v57  ;;  %vm2225_vm3 = vweird.f32 %v5250_v42  ;;  %v2245_v15 = vadd.f32 0.18741608, %v2244_v18  ;;  %v2295_v29 = vmul.f32 %v2294_v48, %v5235_v37  ;;  %1927 = vmatpush.bf16.msra.mxu1 %v4106_v51 }
 0x1ca   :  { %9050 = vst [vmem:[#allocation33_spill] sm:$0xff] %v5346_v50  ;;  %v2208_v23 = vmul.f32 %v2207_v14, %v5062_v39  ;;  %v944_v3 = vpack.c.bf16 %v916_v59, %v915_v16  ;;  %vm5361_vm5 = vcmp.eq.f32.partialorder %v2228_v56, 8.507059e+37  ;;  %v3965_v22 = vmul.f32 -1.702, %v5339_v60  ;;  %vm5370_vm6 = vmor %vm2224_vm4, %vm2225_vm3 }
 0x1cb   :  { %v2296_v33 = vadd.f32 0.4994258, %v2295_v29  ;;  %v309_v32 = vmul.f32 %v5336_v38, %v5336_v38  ;;  %v2231_v26 = vor.u32 1.1754944e-38, %v2230_v4  ;;  %v2282_v57 = vmul.f32 %v2281_v61, %v5235_v37 }
 0x1cc   :  { %v5348_v44 = vpop.eup %4247  ;;  %3950 = vmatmul.msk.bf16.gmra.mxu0 %vm109_vm0, %v944_v3  ;;  %v5377_v18 = vmul.f32 0.70710677, %v5343_v2  ;;  %4041 = vmatmul.msk.bf16.gmra.mxu2 %vm109_vm0, %v944_v3  ;;  %v188_v34 = vsel %vm109_vm0, %v5346_v50, 0.0  ;;  %v2227_v14 = vsel %vm5370_vm6, %v5250_v42, %v2223_v35  ;;  %v2246_v56 = vmul.f32 %v2245_v15, %v5151_v41 }
 0x1cd   :  { %v5353_v10 = vpop.eup %4249  ;;  %v2260_v21 = vmul.f32 %v5348_v44, %v5289_v62  ;;  %v2297_v51 = vmul.f32 %v2296_v33, %v5235_v37  ;;  %189 = vadd.xlane.f32.xlu0 %v188_v34  ;;  %v1195_v3 = vmul.f32 1.442695, %v3965_v22  ;;  %v387_v42 = vsel %vm109_vm0, %v309_v32, 0.0 }
 0x1ce   :  { %v5359_v9 = vpop.eup %4251  ;;  %v2316_v59 = vmul.f32 %v5377_v18, %v5377_v18  ;;  %v5399_v41 = vunpack.c.l.bf16 %v4197_v40  ;;  %v2232_v35 = vsel %vm5361_vm5, %v2231_v26, %v2227_v14  ;;  %v2283_v15 = vadd.f32 0.05243302, %v2282_v57  ;;  %388 = vadd.xlane.f32.xlu2 %v387_v42  ;;  %v2053_v26 = vpop.f32.mrf.mxu2 }
 0x1cf   :  { %v2261_v16 = vsub.f32 1.0, %v2260_v21  ;;  %v1322_v4 = vmul.f32 %v5359_v9, %v5291_v55  ;;  %v5396_v29 = vadd.f32 1.0, %v2297_v51  ;;  %v5406_v33 = vadd.f32 %v4982_v46, %v1046_v1 }
 0x1d0   :  { %9055 = vst [vmem:[#allocation34_spill] sm:$0xff] %v5399_v41  ;;  %v5403_v21 = vmin.f32 %v2316_v59, 16.0  ;;  %v2247_v39 = vadd.f32 1.1283791, %v2246_v56  ;;  %v2268_v51 = vand.u32 2147483647, %v5289_v62  ;;  %vm2264_vm7 = vweird.f32 %v5289_v62  ;;  %v1048_v59 = vpop.f32.mrf.mxu0 }
 0x1d1   :  { %v2262_v34 = vmul.f32 %v5348_v44, %v2261_v16  ;;  %4253 = vrcp.f32 %v5396_v29  ;;  %v1323_v22 = vsub.f32 1.0, %v1322_v4  ;;  %v2233_v57 = vmul.f32 %v2232_v35, %v2208_v23 }
 0x1d2   :  { %v2318_v63 = vmul.f32 2.1237322e-06, %v5403_v21  ;;  %v2329_v32 = vmul.f32 3.8918573e-05, %v5403_v21  ;;  %4255 = vpow2.f32 %v1195_v3  ;;  %v194_v1 = vsel %vm109_vm0, %v5399_v41, 0.0 }
 0x1d3   :  { %v3966_v14 = vmul.f32 -1.702, %v5406_v33  ;;  %vm2265_vm8 = vweird.f32 %v5348_v44  ;;  %vm1326_vm9 = vweird.f32 %v5291_v55  ;;  %v2284_v56 = vmul.f32 %v2283_v15, %v5235_v37  ;;  %195 = vadd.xlane.f32.xlu1 %v194_v1 }
 0x1d4   :  { %v2319_v16 = vadd.f32 0.00028619796, %v2318_v63  ;;  %v2330_v4 = vadd.f32 0.001143296, %v2329_v32  ;;  %v2263_v42 = vadd.f32 %v5348_v44, %v2262_v34  ;;  %v5422_v23 = vadd.f32 %v5020_v54, %v2053_v26  ;;  %vm5445_vm11 = vmor %vm2264_vm7, %vm2265_vm8 }
 0x1d5   :  { %v1197_v48 = vmul.f32 1.442695, %v3966_v14  ;;  %v5424_v3 = vunpack.c.h.bf16 %v4197_v40  ;;  %v2270_v35 = vand.u32 2147483648, %v5289_v62  ;;  %v1324_v61 = vmul.f32 %v5359_v9, %v1323_v22 }
 0x1d6   :  { %v2320_v43 = vmul.f32 %v2319_v16, %v5403_v21  ;;  %v2331_v15 = vmul.f32 %v2330_v4, %v5403_v21  ;;  %vm1327_vm10 = vweird.f32 %v5359_v9  ;;  %v5434_v34 = vmul.f32 0.70710677, %v5422_v23 }
 0x1d7   :  { %9056 = vst [vmem:[#allocation35_spill] sm:$0xff] %v5424_v3  ;;  %v5430_v63 = vpop.eup %4253  ;;  %v197_v32 = vsel %vm109_vm0, %v5424_v3, 0.0  ;;  %v5439_v40 = vadd.f32 %v4982_v46, %v1048_v59  ;;  %v4053_v26 = vclamps-f32 %v2233_v57, 1.0  ;;  %v2285_v1 = vadd.f32 0.18741608, %v2284_v56  ;;  %vm5469_vm13 = vmor %vm1326_vm9, %vm1327_vm10 }
 0x1d8   :  { %v2321_v14 = vadd.f32 0.0036580483, %v2320_v43  ;;  %198 = vadd.xlane.f32.xlu2 %v197_v32  ;;  %v1307_v16 = vmul.f32 %v5353_v10, %v5286_v58  ;;  %v4256_v4 = vpop.eup %4255  ;;  %v2267_v46 = vsel %vm5445_vm11, %v5348_v44, %v2263_v42  ;;  %v2332_v57 = vadd.f32 0.014752088, %v2331_v15 }
 0x1d9   :  { %4257 = vpow2.f32 %v1197_v48  ;;  %v2356_v62 = vmul.f32 %v5434_v34, %v5434_v34  ;;  %v2271_v59 = vor.u32 1.1754944e-38, %v2270_v35  ;;  %v1325_v38 = vadd.f32 %v5359_v9, %v1324_v61 }
 0x1da   :  { %v2300_v43 = vmul.f32 %v5430_v63, %v5396_v29  ;;  %v2322_v56 = vmul.f32 %v2321_v14, %v5403_v21  ;;  %vm2269_vm12 = vcmp.eq.f32.partialorder %v2268_v51, 8.507059e+37  ;;  %v2333_v32 = vmul.f32 %v2332_v57, %v5403_v21 }
 0x1db   :  { %v5461_v30 = vmin.f32 %v2356_v62, 16.0  ;;  %v3967_v44 = vmul.f32 -1.702, %v5439_v40  ;;  %v3556_v42 = vadd.f32 1.0, %v4053_v26  ;;  %v2248_v48 = vmul.f32 %v2247_v39, %v5121_v0 }
 0x1dc   :  { %v2272_v15 = vsel %vm2269_vm12, %v2271_v59, %v2267_v46  ;;  %v1308_v22 = vsub.f32 1.0, %v1307_v16  ;;  %v2286_v51 = vmul.f32 %v2285_v1, %v5235_v37  ;;  %v5474_v35 = vadd.f32 1.0, %v4256_v4 }
 0x1dd   :  { %v2334_v14 = vadd.f32 0.112945676, %v2333_v32  ;;  %v2369_v57 = vmul.f32 3.8918573e-05, %v5461_v30  ;;  %v1329_v0 = vsel %vm5469_vm13, %v5359_v9, %v1325_v38  ;;  %v9061_v39 = vand.u32 2147483648, %v5291_v55 }
 0x1de   :  { %v2301_v16 = vsub.f32 1.0, %v2300_v43  ;;  %v2323_v46 = vadd.f32 0.05243302, %v2322_v56  ;;  %v2273_v59 = vmul.f32 %v2272_v15, %v2248_v48  ;;  %v1199_v37 = vmul.f32 1.442695, %v3967_v44 }
 0x1df   :  { %v1333_v26 = vor.u32 1.1754944e-38, %v9061_v39  ;;  %v4258_v62 = vpop.eup %4257  ;;  %v2335_v3 = vmul.f32 %v2334_v14, %v5403_v21  ;;  %v2370_v50 = vadd.f32 0.001143296, %v2369_v57  ;;  %v5485_v1 = vmul.f32 %v5327_v25, %v4998_v19 }
 0x1e0   :  { %v5488_v4 = vmul.f32 %v3556_v42, %v5176_v27  ;;  %v9062_v38 = vand.u32 2147483647, %v5291_v55  ;;  %v1309_v9 = vmul.f32 %v5353_v10, %v1308_v22  ;;  %v2287_v56 = vadd.f32 1.1283791, %v2286_v51 }
 0x1e1   :  { %4259 = vrcp.f32 %v5474_v35  ;;  %v2336_v32 = vadd.f32 0.4994258, %v2335_v3  ;;  %v2302_v48 = vmul.f32 %v5430_v63, %v2301_v16  ;;  %v2324_v44 = vmul.f32 %v2323_v46, %v5403_v21 }
 0x1e2   :  { %vm1331_vm14 = vcmp.eq.f32.partialorder %v9062_v38, 8.507059e+37  ;;  %v5496_v15 = vadd.f32 1.0, %v4258_v62  ;;  %v2371_v19 = vmul.f32 %v2370_v50, %v5461_v30  ;;  %v4054_v27 = vclamps-f32 %v2273_v59, 1.0  ;;  %v2055_v59 = vpop.f32.mrf.mxu2 }
 0x1e3   :  { %v1334_v43 = vsel %vm1331_vm14, %v1333_v26, %v1329_v0  ;;  %v2310_v25 = vand.u32 2147483648, %v5396_v29  ;;  %v2337_v55 = vmul.f32 %v2336_v32, %v5403_v21  ;;  %4261 = vpow2.f32 %v1199_v37 }
 0x1e4   :  { %vm2305_vm15 = vweird.f32 %v5430_v63  ;;  %v2358_v42 = vmul.f32 2.1237322e-06, %v5461_v30  ;;  %v1310_v3 = vadd.f32 %v5353_v10, %v1309_v9  ;;  %vm1312_vm1 = vweird.f32 %v5353_v10 }
 0x1e5   :  { %v5505_v22 = vadd.f32 1.0, %v2337_v55  ;;  %v2372_v61 = vadd.f32 0.014752088, %v2371_v19  ;;  %vm1311_vm2 = vweird.f32 %v5286_v58  ;;  %v1317_v50 = vand.u32 2147483648, %v5286_v58 }
 0x1e6   :  { %v5510_v51 = vadd.f32 %v5430_v63, %v2302_v48  ;;  %v2325_v14 = vadd.f32 0.18741608, %v2324_v44  ;;  %4263 = vrcp.f32 %v5496_v15  ;;  %v1315_v57 = vand.u32 2147483647, %v5286_v58  ;;  %vm5524_vm4 = vmor %vm1311_vm2, %vm1312_vm1 }
 0x1e7   :  { %v5514_v0 = vpop.eup %4259  ;;  %v5517_v39 = vmul.f32 %v1334_v43, %v5154_v7  ;;  %v5520_v26 = vmul.f32 %v2287_v56, %v5199_v8  ;;  %vm2304_vm3 = vweird.f32 %v5396_v29  ;;  %4265 = vrcp.f32 %v5505_v22  ;;  %v5537_v8 = vld [vmem:[%s8931_s0 + $0x78] sm:$0xff]  }
 0x1e8   :  { %v2308_v46 = vand.u32 2147483647, %v5396_v29  ;;  %v5529_v62 = vor.u32 1.1754944e-38, %v2310_v25  ;;  %v2359_v58 = vadd.f32 0.00028619796, %v2358_v42  ;;  %v1314_v7 = vsel %vm5524_vm4, %v5353_v10, %v1310_v3  ;;  %vm5543_vm5 = vmor %vm2304_vm3, %vm2305_vm15 }
 0x1e9   :  { %v4262_v37 = vpop.eup %4261  ;;  %v5539_v38 = vadd.f32 1.0, %v4054_v27  ;;  %v2373_v9 = vmul.f32 %v2372_v61, %v5461_v30  ;;  %v1318_v43 = vor.u32 1.1754944e-38, %v1317_v50  ;;  %v5551_v10 = vld [vmem:[%s8932_s1] ss:$0 sm:$0xff]  ;;  %v2326_v48 = vmul.f32 %v2325_v14, %v5403_v21 }
 0x1ea   :  { %v880_v56 = vmul.f32 %v5551_v10, %v5254_v5  ;;  %vm1316_vm6 = vcmp.eq.f32.partialorder %v1315_v57, 8.507059e+37  ;;  %v881_v44 = vmul.f32 %v5551_v10, %v5315_v12  ;;  %v5563_v25 = vadd.f32 %v5020_v54, %v2055_v59  ;;  %v5577_v12 = vld [vmem:[%s8933_s2] ss:$0 sm:$0xff] }
 0x1eb   :  { %v2374_v19 = vadd.f32 0.112945676, %v2373_v9  ;;  %v1319_v27 = vsel %vm1316_vm6, %v1318_v43, %v1314_v7  ;;  %v5566_v55 = vunpack.c.l.bf16 %v5537_v8  ;;  %v2360_v42 = vmul.f32 %v2359_v58, %v5461_v30  ;;  %v3641_v29 = vld [vmem:[%s8939_s9] sm:$0xf] }
 0x1ec   :  { %v5568_v5 = vpop.eup %4263  ;;  %v5571_v3 = vadd.f32 1.0, %v4262_v37  ;;  %v1802_v21 = vmul.f32 %v1319_v27, %v5138_v53  ;;  %v918_v61 = vadd.f32 %v5577_v12, %v881_v44  ;;  %v917_v14 = vadd.f32 %v5577_v12, %v880_v56 }
 0x1ed   :  { %9067 = vst [vmem:[#allocation36_spill] sm:$0xff] %v5566_v55  ;;  %v4266_v54 = vpop.eup %4265  ;;  %v2375_v50 = vmul.f32 %v2374_v19, %v5461_v30  ;;  %v5583_v57 = vmul.f32 0.70710677, %v5563_v25  ;;  %v200_v16 = vsel %vm109_vm0, %v5566_v55, 0.0  ;;  %vm5587_vm7 = vcmp.eq.f32.partialorder %v2308_v46, 8.507059e+37 }
 0x1ee   :  { %v2327_v58 = vadd.f32 1.1283791, %v2326_v48  ;;  %v2340_v7 = vmul.f32 %v4266_v54, %v5505_v22  ;;  %v2348_v59 = vand.u32 2147483647, %v5505_v22  ;;  %v2350_v37 = vand.u32 2147483648, %v5505_v22  ;;  %201 = vadd.xlane.f32.xlu2 %v200_v16 }
 0x1ef   :  { %v2376_v9 = vadd.f32 0.4994258, %v2375_v50  ;;  %v1835_v43 = vpack.c.bf16 %v1802_v21, %v5485_v1  ;;  %v945_v56 = vpack.c.bf16 %v918_v61, %v917_v14  ;;  %v2396_v44 = vmul.f32 %v5583_v57, %v5583_v57 }
 0x1f0   :  { %v2341_v19 = vsub.f32 1.0, %v2340_v7  ;;  %v1352_v46 = vmul.f32 %v5568_v5, %v5496_v15  ;;  %4267 = vrcp.f32 %v5571_v3  ;;  %v1337_v48 = vmul.f32 %v5514_v0, %v5474_v35 }
 0x1f1   :  { %vm2344_vm8 = vweird.f32 %v5505_v22  ;;  %v2361_v27 = vadd.f32 0.0036580483, %v2360_v42  ;;  %v2377_v50 = vmul.f32 %v2376_v9, %v5461_v30  ;;  %1928 = vmatmul.bf16.vlgmr.msra.gmra.mxu1 %v1835_v43  ;;  %3951 = vmatmul.msk.bf16.gmra.mxu0 %vm109_vm0, %v945_v56  ;;  %v5605_v1 = vmin.f32 %v2396_v44, 16.0 }
 0x1f2   :  { %v2342_v21 = vmul.f32 %v4266_v54, %v2341_v19  ;;  %vm2345_vm9 = vweird.f32 %v4266_v54  ;;  %vm5607_vm10 = vcmp.eq.f32.partialorder %v2348_v59, 8.507059e+37  ;;  %4042 = vmatmul.msk.bf16.gmra.mxu2 %vm109_vm0, %v945_v56  ;;  %v1338_v14 = vsub.f32 1.0, %v1337_v48 }
 0x1f3   :  { %v2351_v16 = vor.u32 1.1754944e-38, %v2350_v37  ;;  %v5612_v7 = vadd.f32 1.0, %v2377_v50  ;;  %v2398_v42 = vmul.f32 2.1237322e-06, %v5605_v1  ;;  %v2409_v9 = vmul.f32 3.8918573e-05, %v5605_v1  ;;  %vm2346_vm12 = vmor %vm2344_vm8, %vm2345_vm9 }
 0x1f4   :  { %v2343_v43 = vadd.f32 %v4266_v54, %v2342_v21  ;;  %v1353_v32 = vsub.f32 1.0, %v1352_v46  ;;  %v1339_v44 = vmul.f32 %v5514_v0, %v1338_v14  ;;  %vm1342_vm11 = vweird.f32 %v5514_v0 }
 0x1f5   :  { %4269 = vrcp.f32 %v5612_v7  ;;  %vm1341_vm13 = vweird.f32 %v5474_v35  ;;  %v1345_v59 = vand.u32 2147483647, %v5474_v35  ;;  %v1347_v37 = vand.u32 2147483648, %v5474_v35 }
 0x1f6   :  { %v5624_v56 = vpop.eup %4267  ;;  %v2347_v19 = vsel %vm2346_vm12, %v4266_v54, %v2343_v43  ;;  %v2399_v48 = vadd.f32 0.00028619796, %v2398_v42  ;;  %v2410_v46 = vadd.f32 0.001143296, %v2409_v9  ;;  %v1340_v50 = vadd.f32 %v5514_v0, %v1339_v44  ;;  %vm5642_vm14 = vmor %vm1341_vm13, %vm1342_vm11 }
 0x1f7   :  { %v3591_v21 = vmul.f32 %v5539_v38, %v5307_v47  ;;  %v9072_v22 = vsel %vm5543_vm5, %v5430_v63, %v5510_v51  ;;  %v2328_v35 = vmul.f32 %v2327_v58, %v5377_v18  ;;  %v2352_v54 = vsel %vm5607_vm10, %v2351_v16, %v2347_v19 }
 0x1f8   :  { %v2312_v14 = vsel %vm5587_vm7, %v5529_v62, %v9072_v22  ;;  %vm1356_vm15 = vweird.f32 %v5496_v15  ;;  %v2362_v47 = vmul.f32 %v2361_v27, %v5461_v30  ;;  %v2400_v63 = vmul.f32 %v2399_v48, %v5605_v1 }
 0x1f9   :  { %v2411_v51 = vmul.f32 %v2410_v46, %v5605_v1  ;;  %v1344_v18 = vsel %vm5642_vm14, %v5514_v0, %v1340_v50  ;;  %v1354_v62 = vmul.f32 %v5568_v5, %v1353_v32  ;;  %v1348_v38 = vor.u32 1.1754944e-38, %v1347_v37 }
 0x1fa   :  { %vm3698_vm1 = vcmask 1043456   ;;  %v1367_v53 = vmul.f32 %v5624_v56, %v5571_v3  ;;  %v2353_v58 = vmul.f32 %v2352_v54, %v2328_v35  ;;  %vm1346_vm2 = vcmp.eq.f32.partialorder %v1345_v59, 8.507059e+37 }
 0x1fb   :  { %v2412_v27 = vadd.f32 0.014752088, %v2411_v51  ;;  %v3700_v61 = vsel %vm3698_vm1, %v3641_v29, 0  ;;  %v5659_v16 = vpop.eup %4269  ;;  %v1360_v9 = vand.u32 2147483647, %v5496_v15  ;;  %v1349_v43 = vsel %vm1346_vm2, %v1348_v38, %v1344_v18 }
 0x1fc   :  { %v2401_v0 = vadd.f32 0.0036580483, %v2400_v63  ;;  %3709 = vmatpush.bf16.msra.mxu3 %v3700_v61  ;;  %v1368_v32 = vsub.f32 1.0, %v1367_v53  ;;  %v2313_v44 = vmul.f32 %v2312_v14, %v5520_v26  ;;  %v1362_v37 = vand.u32 2147483648, %v5496_v15 }
 0x1fd   :  { %v2363_v19 = vadd.f32 0.05243302, %v2362_v47  ;;  %v2380_v48 = vmul.f32 %v5659_v16, %v5612_v7  ;;  %v2413_v46 = vmul.f32 %v2412_v27, %v5605_v1  ;;  %v1804_v59 = vmul.f32 %v1349_v43, %v5339_v60 }
 0x1fe   :  { %v3624_v50 = vpack.c.bf16 %v3591_v21, %v5488_v4  ;;  %vm3646_vm3 = vcmask 64512   ;;  %v4056_v22 = vclamps-f32 %v2353_v58, 1.0  ;;  %v1355_v35 = vadd.f32 %v5568_v5, %v1354_v62 }
 0x1ff   :  { %vm1357_vm4 = vweird.f32 %v5568_v5  ;;  %v1369_v26 = vmul.f32 %v5624_v56, %v1368_v32  ;;  %v2402_v14 = vmul.f32 %v2401_v0, %v5605_v1  ;;  %v2414_v54 = vadd.f32 0.112945676, %v2413_v46 }
 0x200   :  { %v1836_v42 = vpack.c.bf16 %v1804_v59, %v5517_v39  ;;  %4087 = vmatmul.msk.bf16.vlgmr.msra.gmra.mxu3 %vm3646_vm3, %v3624_v50  ;;  %vm1372_vm5 = vweird.f32 %v5624_v56  ;;  %v4055_v60 = vclamps-f32 %v2313_v44, 1.0  ;;  %v2364_v4 = vmul.f32 %v2363_v19, %v5461_v30  ;;  %vm5681_vm6 = vmor %vm1356_vm15, %vm1357_vm4 }
 0x201   :  { %v1370_v21 = vadd.f32 %v5624_v56, %v1369_v26  ;;  %v1377_v47 = vand.u32 2147483648, %v5571_v3  ;;  %v2381_v51 = vsub.f32 1.0, %v2380_v48  ;;  %v2415_v39 = vmul.f32 %v2414_v54, %v5605_v1  ;;  %v368_v0 = vpop.xlane.xlu2 %367 }
 0x202   :  { %1933 = vmatmul.bf16.gmra.mxu1 %v1836_v42  ;;  %vm1371_vm7 = vweird.f32 %v5571_v3  ;;  %v1375_v18 = vand.u32 2147483647, %v5571_v3  ;;  %v5689_v62 = vadd.f32 1e-05, %v5218_v52  ;;  %v2131_v38 = vmul.f32 0.5, %v5343_v2 }
 0x203   :  { %v1359_v15 = vsel %vm5681_vm6, %v5568_v5, %v1355_v35  ;;  %vm5695_vm8 = vcmp.eq.f32.partialorder %v1360_v9, 8.507059e+37  ;;  %vm5701_vm9 = vmor %vm1371_vm7, %vm1372_vm5  ;;  %v3559_v3 = vadd.f32 1.0, %v4056_v22  ;;  %v2403_v58 = vadd.f32 0.05243302, %v2402_v14 }
 0x204   :  { %v2416_v52 = vadd.f32 0.4994258, %v2415_v39  ;;  %v1374_v2 = vsel %vm5701_vm9, %v5624_v56, %v1370_v21  ;;  %v3558_v27 = vadd.f32 1.0, %v4055_v60  ;;  %v1363_v61 = vor.u32 1.1754944e-38, %v1362_v37 }
 0x205   :  { %v2365_v5 = vadd.f32 0.18741608, %v2364_v4  ;;  %v1378_v9 = vor.u32 1.1754944e-38, %v1377_v47  ;;  %v2382_v43 = vmul.f32 %v5659_v16, %v2381_v51  ;;  %vm1376_vm10 = vcmp.eq.f32.partialorder %v1375_v18, 8.507059e+37 }
 0x206   :  { %v2417_v32 = vmul.f32 %v2416_v52, %v5605_v1  ;;  %v438_v44 = vmul.f32 %v368_v0, %v4605_v24  ;;  %v2130_v19 = vmul.f32 0.5, %v5171_v11  ;;  %v1364_v48 = vsel %vm5695_vm8, %v1363_v61, %v1359_v15 }
 0x207   :  { %v1379_v46 = vsel %vm1376_vm10, %v1378_v9, %v1374_v2  ;;  %v3593_v59 = vmul.f32 %v3559_v3, %v2131_v38  ;;  %v2404_v56 = vmul.f32 %v2403_v58, %v5605_v1  ;;  %4271 = vrsqrt.f32 %v5689_v62 }
 0x208   :  { %v2418_v37 = vadd.f32 1.0, %v2417_v32  ;;  %v5715_v50 = vadd.f32 1e-05, %v438_v44  ;;  %v3592_v22 = vmul.f32 %v3558_v27, %v2130_v19  ;;  %v2366_v35 = vmul.f32 %v2365_v5, %v5461_v30 }
 0x209   :  { %v2383_v26 = vadd.f32 %v5659_v16, %v2382_v43  ;;  %vm2385_vm11 = vweird.f32 %v5659_v16  ;;  %v1806_v11 = vmul.f32 %v1379_v46, %v5439_v40  ;;  %v1805_v14 = vmul.f32 %v1364_v48, %v5406_v33 }
 0x20a   :  { %4273 = vrcp.f32 %v2418_v37  ;;  %v2390_v54 = vand.u32 2147483648, %v5612_v7  ;;  %vm2384_vm12 = vweird.f32 %v5612_v7  ;;  %v2388_v42 = vand.u32 2147483647, %v5612_v7 }
 0x20b   :  { %4275 = vrsqrt.f32 %v5715_v50  ;;  %v2405_v60 = vadd.f32 0.18741608, %v2404_v56  ;;  %v3625_v4 = vpack.c.bf16 %v3593_v59, %v3592_v22  ;;  %vm2386_vm13 = vmor %vm2384_vm12, %vm2385_vm11  ;;  %v2367_v30 = vadd.f32 1.1283791, %v2366_v35  ;;  %v371_v0 = vpop.xlane.xlu2 %370 }
 0x20c   :  { %v2387_v21 = vsel %vm2386_vm13, %v5659_v16, %v2383_v26  ;;  %v1837_v47 = vpack.c.bf16 %v1806_v11, %v1805_v14  ;;  %v2391_v40 = vor.u32 1.1754944e-38, %v2390_v54  ;;  %vm2389_vm14 = vcmp.eq.f32.partialorder %v2388_v42, 8.507059e+37 }
 0x20d   :  { %v5728_v63 = vpop.eup %4271  ;;  %v2406_v33 = vmul.f32 %v2405_v60, %v5605_v1  ;;  %v2368_v15 = vmul.f32 %v2367_v30, %v5434_v34  ;;  %v2430_v58 = vand.u32 2147483648, %v2418_v37  ;;  %v2428_v52 = vand.u32 2147483647, %v2418_v37  ;;  %v5744_v34 = vld [vmem:[%s8937_s8] ss:$0 sm:$0xff] }
 0x20e   :  { %v2392_v18 = vsel %vm2389_vm14, %v2391_v40, %v2387_v21  ;;  %v632_v38 = vmul.f32 %v5728_v63, %v5689_v62  ;;  %vm2424_vm1 = vweird.f32 %v2418_v37  ;;  %v2132_v54 = vmul.f32 0.5, %v5422_v23 }
 0x20f   :  { %v2393_v53 = vmul.f32 %v2392_v18, %v2368_v15  ;;  %v2407_v3 = vadd.f32 1.1283791, %v2406_v33  ;;  %v2431_v44 = vor.u32 1.1754944e-38, %v2430_v58  ;;  %vm2429_vm4 = vcmp.eq.f32.partialorder %v2428_v52, 8.507059e+37 }
 0x210   :  { %v4274_v51 = vpop.eup %4273  ;;  %4088 = vmatmul.msk.bf16.gmra.mxu3 %vm3646_vm3, %v3625_v4  ;;  %v633_v61 = vmul.f32 %v5728_v63, %v632_v38  ;;  %v2133_v42 = vmul.f32 0.5, %v5563_v25  ;;  %vm637_vm5 = vweird.f32 %v5689_v62  ;;  %vm638_vm6 = vweird.f32 %v5728_v63  ;;  %v5773_v62 = vld [vmem:[%s8936_s4] ss:$0 sm:$0xff] }
 0x211   :  { %v5732_v39 = vpop.eup %4275  ;;  %v2420_v7 = vmul.f32 %v4274_v51, %v2418_v37  ;;  %vm2425_vm15 = vweird.f32 %v4274_v51  ;;  %v4057_v43 = vclamps-f32 %v2393_v53, 1.0  ;;  %v2408_v32 = vmul.f32 %v2407_v3, %v5583_v57  ;;  %vm5765_vm8 = vmor %vm637_vm5, %vm638_vm6 }
 0x212   :  { %1938 = vmatmul.bf16.gmra.mxu1 %v1837_v47  ;;  %v642_v16 = vmul.f32 %v5732_v39, %v5715_v50  ;;  %vm2426_vm2 = vmor %vm2424_vm1, %vm2425_vm15  ;;  %v634_v59 = vmul.f32 0.5, %v633_v61  ;;  %v1051_v4 = vpop.f32.mrf.mxu0  ;;  %vm648_vm7 = vweird.f32 %v5732_v39  ;;  %vm647_vm9 = vweird.f32 %v5715_v50 }
 0x213   :  { %v2421_v29 = vsub.f32 1.0, %v2420_v7  ;;  %v3560_v26 = vadd.f32 1.0, %v4057_v43  ;;  %v5776_v18 = vadd.f32 %v5773_v62, %v1051_v4  ;;  %vm649_vm10 = vmor %vm647_vm9, %vm648_vm7  ;;  %v374_v52 = vpop.xlane.xlu0 %373 }
 0x214   :  { %v643_v2 = vmul.f32 %v5732_v39, %v642_v16  ;;  %v635_v57 = vsub.f32 1.5, %v634_v59  ;;  %v440_v61 = vmul.f32 %v374_v52, %v4605_v24 }
 0x215   :  { %v2422_v1 = vmul.f32 %v4274_v51, %v2421_v29  ;;  %v3594_v21 = vmul.f32 %v3560_v26, %v2132_v54  ;;  %v439_v29 = vmul.f32 %v371_v0, %v4605_v24  ;;  %v3968_v53 = vmul.f32 -1.702, %v5776_v18  ;;  %v380_v0 = vpop.xlane.xlu1 %379 }
 0x216   :  { %v644_v48 = vmul.f32 0.5, %v643_v2  ;;  %v636_v33 = vmul.f32 %v5728_v63, %v635_v57 }
 0x217   :  { %v2423_v9 = vadd.f32 %v4274_v51, %v2422_v1 }
 0x218   :  { %v2058_v27 = vpop.f32.mrf.mxu2  ;;  %v645_v11 = vsub.f32 1.5, %v644_v48  ;;  %v640_v50 = vsel %vm5765_vm8, %v5728_v63, %v636_v33 }
 0x219   :  { %v5747_v5 = vadd.f32 %v5744_v34, %v2058_v27  ;;  %v2427_v19 = vsel %vm2426_vm2, %v4274_v51, %v2423_v9  ;;  %v181_v51 = vpop.xlane.xlu2 %180  ;;  %v845_v1 = vmul.f32 %v640_v50, %v4882_v6  ;;  %v1201_v27 = vmul.f32 1.442695, %v3968_v53 }
 0x21a   :  { %v2432_v56 = vsel %vm2429_vm4, %v2431_v44, %v2427_v19  ;;  %v646_v40 = vmul.f32 %v5732_v39, %v645_v11  ;;  %v242_v38 = vmul.f32 %v4605_v24, %v181_v51  ;;  %v5803_v44 = vadd.f32 1e-05, %v440_v61 }
 0x21b   :  { %v5751_v46 = vmul.f32 0.70710677, %v5747_v5  ;;  %v2433_v22 = vmul.f32 %v2432_v56, %v2408_v32  ;;  %v882_v43 = vmul.f32 %v5551_v10, %v845_v1  ;;  %v442_v32 = vmul.f32 %v380_v0, %v4605_v24 }
 0x21c   :  { %v650_v15 = vsel %vm649_vm10, %v5732_v39, %v646_v40  ;;  %v5789_v58 = vsub.f32 %v5003_v17, %v242_v38  ;;  %v5792_v39 = vadd.f32 1e-05, %v439_v29  ;;  %v377_v29 = vpop.xlane.xlu0 %376  ;;  %vm667_vm13 = vweird.f32 %v5803_v44 }
 0x21d   :  { %v2436_v35 = vmul.f32 %v5751_v46, %v5751_v46  ;;  %v4058_v37 = vclamps-f32 %v2433_v22, 1.0  ;;  %v846_v3 = vmul.f32 %v650_v15, %v4947_v20  ;;  %v919_v59 = vadd.f32 %v5577_v12, %v882_v43 }
 0x21e   :  { %9083 = vst [vmem:[#allocation37_spill] sm:$0xff] %v5789_v58  ;;  %v310_v63 = vmul.f32 %v5789_v58, %v5789_v58  ;;  %4277 = vrsqrt.f32 %v5792_v39  ;;  %v5809_v26 = vadd.f32 1e-05, %v442_v32  ;;  %vm657_vm12 = vweird.f32 %v5792_v39 }
 0x21f   :  { %v5755_v14 = vmin.f32 %v2436_v35, 16.0  ;;  %v3561_v60 = vadd.f32 1.0, %v4058_v37  ;;  %v883_v9 = vmul.f32 %v5551_v10, %v846_v3  ;;  %4279 = vpow2.f32 %v1201_v27 }
 0x220   :  { %v390_v6 = vsel %vm109_vm0, %v310_v63, 0.0  ;;  %v2060_v56 = vpop.f32.mrf.mxu2  ;;  %4281 = vrsqrt.f32 %v5803_v44  ;;  %vm687_vm14 = vweird.f32 %v5809_v26 }
 0x221   :  { %v2449_v30 = vmul.f32 3.8918573e-05, %v5755_v14  ;;  %v3595_v47 = vmul.f32 %v3561_v60, %v2133_v42  ;;  %391 = vadd.xlane.f32.xlu0 %v390_v6  ;;  %v920_v19 = vadd.f32 %v5577_v12, %v883_v9  ;;  %v5813_v37 = vadd.f32 %v5744_v34, %v2060_v56 }
 0x222   :  { %v2438_v42 = vmul.f32 2.1237322e-06, %v5755_v14  ;;  %4283 = vrsqrt.f32 %v5809_v26  ;;  %v441_v6 = vmul.f32 %v377_v29, %v4605_v24 }
 0x223   :  { %v3626_v25 = vpack.c.bf16 %v3595_v47, %v3594_v21  ;;  %v2450_v7 = vadd.f32 0.001143296, %v2449_v30  ;;  %v946_v22 = vpack.c.bf16 %v920_v19, %v919_v59  ;;  %v5819_v54 = vmul.f32 0.70710677, %v5813_v37 }
 0x224   :  { %v5807_v35 = vpop.eup %4277  ;;  %v2439_v51 = vadd.f32 0.00028619796, %v2438_v42 }
 0x225   :  { %4089 = vmatmul.msk.bf16.gmra.mxu3 %vm3646_vm3, %v3626_v25  ;;  %v2451_v16 = vmul.f32 %v2450_v7, %v5755_v14  ;;  %v4280_v11 = vpop.eup %4279  ;;  %3952 = vmatmul.msk.bf16.gmra.mxu0 %vm109_vm0, %v946_v22  ;;  %v652_v60 = vmul.f32 %v5807_v35, %v5792_v39  ;;  %v2476_v30 = vmul.f32 %v5819_v54, %v5819_v54  ;;  %v184_v7 = vpop.xlane.xlu2 %183  ;;  %vm658_vm11 = vweird.f32 %v5807_v35 }
 0x226   :  { %4043 = vmatmul.msk.bf16.gmra.mxu2 %vm109_vm0, %v946_v22  ;;  %v5825_v4 = vadd.f32 1.0, %v4280_v11  ;;  %v5829_v47 = vpop.eup %4281  ;;  %v2440_v50 = vmul.f32 %v2439_v51, %v5755_v14  ;;  %v243_v1 = vmul.f32 %v4605_v24, %v184_v7  ;;  %v5864_v11 = vadd.f32 1e-05, %v441_v6  ;;  %vm5881_vm15 = vmor %vm657_vm12, %vm658_vm11 }
 0x227   :  { %v2452_v2 = vadd.f32 0.014752088, %v2451_v16  ;;  %v5831_v40 = vmin.f32 %v2476_v30, 16.0  ;;  %v653_v33 = vmul.f32 %v5807_v35, %v652_v60  ;;  %v662_v23 = vmul.f32 %v5829_v47, %v5803_v44  ;;  %v383_v16 = vpop.xlane.xlu1 %382 }
 0x228   :  { %4285 = vrcp.f32 %v5825_v4  ;;  %v5839_v15 = vpop.eup %4283  ;;  %v2441_v9 = vadd.f32 0.0036580483, %v2440_v50  ;;  %v443_v0 = vmul.f32 %v383_v16, %v4605_v24  ;;  %v5853_v43 = vsub.f32 %v5068_v49, %v243_v1  ;;  %v1053_v50 = vpop.f32.mrf.mxu0 }
 0x229   :  { %v2453_v20 = vmul.f32 %v2452_v2, %v5755_v14  ;;  %v2489_v38 = vmul.f32 3.8918573e-05, %v5831_v40  ;;  %v654_v3 = vmul.f32 0.5, %v653_v33  ;;  %v682_v52 = vmul.f32 %v5839_v15, %v5809_v26 }
 0x22a   :  { %v663_v2 = vmul.f32 %v5829_v47, %v662_v23  ;;  %9084 = vst [vmem:[#allocation38_spill] sm:$0xff] %v5853_v43  ;;  %v2442_v56 = vmul.f32 %v2441_v9, %v5755_v14  ;;  %v5861_v22 = vadd.f32 1e-05, %v443_v0  ;;  %v311_v42 = vmul.f32 %v5853_v43, %v5853_v43  ;;  %v187_v23 = vpop.xlane.xlu0 %186 }
 0x22b   :  { %v2454_v48 = vadd.f32 0.112945676, %v2453_v20  ;;  %v2490_v53 = vadd.f32 0.001143296, %v2489_v38  ;;  %v655_v20 = vsub.f32 1.5, %v654_v3  ;;  %v683_v19 = vmul.f32 %v5839_v15, %v682_v52  ;;  %v2063_v3 = vpop.f32.mrf.mxu2 }
 0x22c   :  { %v2443_v16 = vadd.f32 0.05243302, %v2442_v56  ;;  %v244_v29 = vmul.f32 %v4605_v24, %v187_v23  ;;  %vm688_vm1 = vweird.f32 %v5839_v15  ;;  %vm668_vm2 = vweird.f32 %v5829_v47 }
 0x22d   :  { %v2455_v57 = vmul.f32 %v2454_v48, %v5755_v14  ;;  %v2491_v61 = vmul.f32 %v2490_v53, %v5831_v40  ;;  %v664_v48 = vmul.f32 0.5, %v663_v2  ;;  %v656_v30 = vmul.f32 %v5807_v35, %v655_v20  ;;  %vm5916_vm5 = vmor %vm667_vm13, %vm668_vm2 }
 0x22e   :  { %v5849_v63 = vpop.eup %4285  ;;  %vm1386_vm4 = vweird.f32 %v5825_v4  ;;  %v5901_v6 = vadd.f32 %v5744_v34, %v2063_v3  ;;  %vm5950_vm7 = vmor %vm687_vm14, %vm688_vm1  ;;  %vm697_vm14 = vweird.f32 %v5861_v22 }
 0x22f   :  { %v2456_v21 = vadd.f32 0.4994258, %v2455_v57  ;;  %v2492_v32 = vadd.f32 0.014752088, %v2491_v61  ;;  %v1382_v59 = vmul.f32 %v5849_v63, %v5825_v4  ;;  %v193_v60 = vpop.xlane.xlu1 %192  ;;  %v665_v51 = vsub.f32 1.5, %v664_v48 }
 0x230   :  { %v246_v7 = vmul.f32 %v4605_v24, %v193_v60  ;;  %v660_v1 = vsel %vm5881_vm15, %v5807_v35, %v656_v30  ;;  %v2444_v35 = vmul.f32 %v2443_v16, %v5755_v14  ;;  %v5909_v48 = vsub.f32 %v5202_v13, %v244_v29  ;;  %v386_v60 = vpop.xlane.xlu2 %385 }
 0x231   :  { %v2457_v25 = vmul.f32 %v2456_v21, %v5755_v14  ;;  %v2493_v57 = vmul.f32 %v2492_v32, %v5831_v40  ;;  %v684_v21 = vmul.f32 0.5, %v683_v19  ;;  %v1383_v33 = vsub.f32 1.0, %v1382_v59 }
 0x232   :  { %v666_v2 = vmul.f32 %v5829_v47, %v665_v51  ;;  %v5898_v20 = vsub.f32 %v5248_v45, %v246_v7  ;;  %v5905_v32 = vadd.f32 %v5773_v62, %v1053_v50  ;;  %v2478_v19 = vmul.f32 2.1237322e-06, %v5831_v40  ;;  %9088 = vst [vmem:[#allocation40_spill] sm:$0xff] %v5909_v48 }
 0x233   :  { %v5846_v27 = vadd.f32 1.0, %v2457_v25  ;;  %v393_v25 = vsel %vm109_vm0, %v311_v42, 0.0  ;;  %v2494_v53 = vadd.f32 0.112945676, %v2493_v57  ;;  %v685_v52 = vsub.f32 1.5, %v684_v21 }
 0x234   :  { %394 = vadd.xlane.f32.xlu0 %v393_v25  ;;  %v1384_v61 = vmul.f32 %v5849_v63, %v1383_v33  ;;  %9087 = vst [vmem:[#allocation39_spill] sm:$0xff] %v5898_v20  ;;  %v847_v59 = vmul.f32 %v660_v1, %v4973_v28  ;;  %v1392_v57 = vand.u32 2147483648, %v5825_v4  ;;  %v5923_v30 = vmul.f32 0.70710677, %v5901_v6 }
 0x235   :  { %4287 = vrcp.f32 %v5846_v27  ;;  %v2495_v42 = vmul.f32 %v2494_v53, %v5831_v40  ;;  %v5928_v28 = vmul.f32 %v5839_v15, %v685_v52  ;;  %v670_v44 = vsel %vm5916_vm5, %v5829_v47, %v666_v2 }
 0x236   :  { %4289 = vrsqrt.f32 %v5861_v22  ;;  %v5934_v51 = vadd.f32 %v5849_v63, %v1384_v61  ;;  %vm1387_vm6 = vweird.f32 %v5849_v63  ;;  %v2516_v25 = vmul.f32 %v5923_v30, %v5923_v30  ;;  %v1056_v61 = vpop.f32.mrf.mxu0 }
 0x237   :  { %4291 = vrsqrt.f32 %v5864_v11  ;;  %v5942_v7 = vunpack.c.h.bf16 %v5537_v8  ;;  %v314_v16 = vmul.f32 %v5898_v20, %v5898_v20  ;;  %v2445_v50 = vadd.f32 0.18741608, %v2444_v35  ;;  %vm5976_vm8 = vmor %vm1386_vm4, %vm1387_vm6 }
 0x238   :  { %v3969_v29 = vmul.f32 -1.702, %v5905_v32  ;;  %v2479_v39 = vadd.f32 0.00028619796, %v2478_v19  ;;  %v312_v53 = vmul.f32 %v5909_v48, %v5909_v48  ;;  %v2496_v3 = vadd.f32 0.4994258, %v2495_v42 }
 0x239   :  { %9091 = vst [vmem:[#allocation41_spill] sm:$0xff] %v5942_v7  ;;  %v5959_v1 = vmin.f32 %v2516_v25, 16.0  ;;  %v203_v26 = vsel %vm109_vm0, %v5942_v7, 0.0  ;;  %v848_v52 = vmul.f32 %v670_v44, %v5012_v31  ;;  %v5980_v56 = vor.u32 1.1754944e-38, %v1392_v57 }
 0x23a   :  { %v396_v35 = vsel %vm109_vm0, %v312_v53, 0.0  ;;  %v2480_v53 = vmul.f32 %v2479_v39, %v5831_v40  ;;  %v1203_v19 = vmul.f32 1.442695, %v3969_v29  ;;  %v5994_v9 = vadd.f32 %v5773_v62, %v1056_v61 }
 0x23b   :  { %v5874_v38 = vpop.eup %4287  ;;  %v2529_v44 = vmul.f32 3.8918573e-05, %v5959_v1  ;;  %397 = vadd.xlane.f32.xlu1 %v396_v35  ;;  %v884_v45 = vmul.f32 %v5551_v10, %v847_v59  ;;  %v885_v25 = vmul.f32 %v5551_v10, %v848_v52  ;;  %v9096_v39 = vand.u32 2147483647, %v5825_v4 }
 0x23c   :  { %v2460_v0 = vmul.f32 %v5874_v38, %v5846_v27  ;;  %v5925_v21 = vpop.eup %4289  ;;  %204 = vadd.xlane.f32.xlu0 %v203_v26  ;;  %v444_v26 = vmul.f32 %v386_v60, %v4605_v24  ;;  %vm2465_vm9 = vweird.f32 %v5874_v38  ;;  %v2468_v60 = vand.u32 2147483647, %v5846_v27 }
 0x23d   :  { %v5937_v33 = vpop.eup %4291  ;;  %v692_v8 = vmul.f32 %v5925_v21, %v5861_v22  ;;  %v2530_v35 = vadd.f32 0.001143296, %v2529_v44  ;;  %vm6007_vm10 = vcmp.eq.f32.partialorder %v9096_v39, 8.507059e+37  ;;  %vm2464_vm11 = vweird.f32 %v5846_v27  ;;  %v2065_v44 = vpop.f32.mrf.mxu2 }
 0x23e   :  { %v2461_v23 = vsub.f32 1.0, %v2460_v0  ;;  %v672_v2 = vmul.f32 %v5937_v33, %v5864_v11  ;;  %v402_v0 = vsel %vm109_vm0, %v314_v16, 0.0  ;;  %v2446_v16 = vmul.f32 %v2445_v50, %v5755_v14  ;;  %vm6018_vm12 = vmor %vm2464_vm11, %vm2465_vm9  ;;  %v6069_v31 = vpop.f32.mrf.mxu0 }
 0x23f   :  { %403 = vadd.xlane.f32.xlu2 %v402_v0  ;;  %v693_v57 = vmul.f32 %v5925_v21, %v692_v8  ;;  %v2470_v50 = vand.u32 2147483648, %v5846_v27  ;;  %v2481_v10 = vadd.f32 0.0036580483, %v2480_v53  ;;  %v6012_v59 = vadd.f32 1e-05, %v444_v26  ;;  %v9113_v8 = vld [vmem:[#allocation28_spill] sm:$0xff] }
 0x240   :  { %v2462_v42 = vmul.f32 %v5874_v38, %v2461_v23  ;;  %v2497_v23 = vmul.f32 %v2496_v3, %v5831_v40  ;;  %v673_v0 = vmul.f32 %v5937_v33, %v672_v2  ;;  %v2447_v3 = vadd.f32 1.1283791, %v2446_v16 }
 0x241   :  { %v6003_v29 = vpop.xlane.xlu2 %388  ;;  %v694_v52 = vmul.f32 0.5, %v693_v57  ;;  %v3970_v61 = vmul.f32 -1.702, %v5994_v9  ;;  %4293 = vpow2.f32 %v1203_v19  ;;  %v921_v16 = vadd.f32 %v5577_v12, %v884_v45 }
 0x242   :  { %v2463_v14 = vadd.f32 %v5874_v38, %v2462_v42  ;;  %v6014_v2 = vadd.f32 1.0, %v2497_v23  ;;  %v2531_v42 = vmul.f32 %v2530_v35, %v5959_v1  ;;  %v674_v39 = vmul.f32 0.5, %v673_v0  ;;  %v6030_v23 = vld [vmem:[%s8931_s0 + $0x80] sm:$0xff]  }
 0x243   :  { %v922_v27 = vadd.f32 %v5577_v12, %v885_v25  ;;  %vm2469_vm13 = vcmp.eq.f32.partialorder %v2468_v60, 8.507059e+37  ;;  %v2471_v26 = vor.u32 1.1754944e-38, %v2470_v50  ;;  %v2482_v35 = vmul.f32 %v2481_v10, %v5831_v40 }
 0x244   :  { %v2467_v53 = vsel %vm6018_vm12, %v5874_v38, %v2463_v14  ;;  %v2532_v57 = vadd.f32 0.014752088, %v2531_v42  ;;  %4295 = vrsqrt.f32 %v6012_v59  ;;  %v6035_v12 = vadd.f32 %v5744_v34, %v2065_v44 }
 0x245   :  { %v947_v45 = vpack.c.bf16 %v922_v27, %v921_v16  ;;  %v695_v25 = vsub.f32 1.5, %v694_v52  ;;  %4297 = vrcp.f32 %v6014_v2  ;;  %v1205_v38 = vmul.f32 1.442695, %v3970_v61 }
 0x246   :  { %v196_v19 = vpop.xlane.xlu1 %195  ;;  %v2533_v0 = vmul.f32 %v2532_v57, %v5959_v1  ;;  %v2472_v14 = vsel %vm2469_vm13, %v2471_v26, %v2467_v53  ;;  %v675_v60 = vsub.f32 1.5, %v674_v39  ;;  %v6041_v50 = vmul.f32 0.70710677, %v6035_v12  ;;  %v190_v39 = vpop.xlane.xlu0 %189 }
 0x247   :  { %3953 = vmatmul.msk.bf16.gmra.mxu0 %vm109_vm0, %v947_v45  ;;  %4044 = vmatmul.msk.bf16.gmra.mxu2 %vm109_vm0, %v947_v45  ;;  %v6045_v10 = vunpack.c.l.bf16 %v6030_v23  ;;  %v2448_v42 = vmul.f32 %v2447_v3, %v5751_v46  ;;  %vm698_vm15 = vweird.f32 %v5925_v21  ;;  %v247_v52 = vmul.f32 %v4605_v24, %v196_v19  ;;  %v4294_v61 = vpop.eup %4293 }
 0x248   :  { %v2483_v44 = vadd.f32 0.05243302, %v2482_v35  ;;  %v2534_v4 = vadd.f32 0.112945676, %v2533_v0  ;;  %v2556_v16 = vmul.f32 %v6041_v50, %v6041_v50  ;;  %v9102_v46 = vsel %vm5976_vm8, %v5849_v63, %v5934_v51  ;;  %vm6087_vm2 = vmor %vm697_vm14, %vm698_vm15 }
 0x249   :  { %9101 = vst [vmem:[#allocation42_spill] sm:$0xff] %v6045_v10  ;;  %v206_v27 = vsel %vm109_vm0, %v6045_v10, 0.0  ;;  %v1394_v3 = vsel %vm6007_vm10, %v5980_v56, %v9102_v46  ;;  %v2134_v53 = vmul.f32 0.5, %v5747_v5  ;;  %v2473_v26 = vmul.f32 %v2472_v14, %v2448_v42  ;;  %v9111_v46 = vld [vmem:[#allocation35_spill] sm:$0xff] }
 0x24a   :  { %4299 = vpow2.f32 %v1205_v38  ;;  %207 = vadd.xlane.f32.xlu0 %v206_v27  ;;  %v6064_v35 = vpop.eup %4295  ;;  %v696_v19 = vmul.f32 %v5925_v21, %v695_v25  ;;  %v676_v45 = vmul.f32 %v5937_v33, %v675_v60  ;;  %vm678_vm1 = vweird.f32 %v5937_v33 }
 0x24b   :  { %v199_v57 = vpop.xlane.xlu2 %198  ;;  %v6071_v63 = vmin.f32 %v2556_v16, 16.0  ;;  %v6073_v51 = vpop.eup %4297  ;;  %v9103_v5 = vsel %vm5950_vm7, %v5839_v15, %v5928_v28  ;;  %v2535_v25 = vmul.f32 %v2534_v4, %v5959_v1  ;;  %v6093_v38 = vsub.f32 %v5399_v41, %v247_v52 }
 0x24c   :  { %v6081_v56 = vmul.f32 %v9103_v5, %v5015_v36  ;;  %v245_v47 = vmul.f32 %v4605_v24, %v190_v39  ;;  %vm677_vm4 = vweird.f32 %v5864_v11  ;;  %v6097_v15 = vadd.f32 1.0, %v4294_v61  ;;  %v9109_v39 = vld [vmem:[#allocation33_spill] sm:$0xff] }
 0x24d   :  { %9106 = vst [vmem:[#allocation43_spill] sm:$0xff] %v6093_v38  ;;  %v2484_v36 = vmul.f32 %v2483_v44, %v5831_v40  ;;  %v248_v28 = vmul.f32 %v4605_v24, %v199_v57  ;;  %v6102_v22 = vmul.f32 %v1394_v3, %v5776_v18  ;;  %v4059_v0 = vclamps-f32 %v2473_v26, 1.0  ;;  %vm6106_vm5 = vmor %vm677_vm4, %vm678_vm1 }
 0x24e   :  { %v6111_v60 = vmul.f32 0.5, %v5813_v37  ;;  %v702_v11 = vmul.f32 %v6064_v35, %v6012_v59  ;;  %v700_v42 = vsel %vm6087_vm2, %v5925_v21, %v696_v19  ;;  %v680_v18 = vsel %vm6106_vm5, %v5937_v33, %v676_v45 }
 0x24f   :  { %v2500_v52 = vmul.f32 %v6073_v51, %v6014_v2  ;;  %v2569_v61 = vmul.f32 3.8918573e-05, %v6071_v63  ;;  %v2518_v37 = vmul.f32 2.1237322e-06, %v5959_v1  ;;  %v2536_v4 = vadd.f32 0.4994258, %v2535_v25  ;;  %v2068_v5 = vpop.f32.mrf.mxu2 }
 0x250   :  { %v4300_v44 = vpop.eup %4299  ;;  %v6126_v16 = vsub.f32 %v9109_v39, %v245_v47  ;;  %v315_v27 = vmul.f32 %v6093_v38, %v6093_v38  ;;  %4301 = vrcp.f32 %v6097_v15  ;;  %v2485_v21 = vadd.f32 0.18741608, %v2484_v36  ;;  %v9114_v47 = vld [vmem:[#allocation27_spill] sm:$0xff] }
 0x251   :  { %v2558_v33 = vmul.f32 2.1237322e-06, %v6071_v63  ;;  %v6133_v3 = vsub.f32 %v9111_v46, %v248_v28  ;;  %v3562_v26 = vadd.f32 1.0, %v4059_v0  ;;  %v703_v57 = vmul.f32 %v6064_v35, %v702_v11 }
 0x252   :  { %9110 = vst [vmem:[#allocation44_spill] sm:$0xff] %v6126_v16  ;;  %v2570_v19 = vadd.f32 0.001143296, %v2569_v61  ;;  %v405_v45 = vsel %vm109_vm0, %v315_v27, 0.0  ;;  %v6138_v25 = vmul.f32 %v700_v42, %v9113_v8  ;;  %v6141_v14 = vmul.f32 %v680_v18, %v9114_v47  ;;  %v1061_v42 = vpop.f32.mrf.mxu0 }
 0x253   :  { %9112 = vst [vmem:[#allocation45_spill] sm:$0xff] %v6133_v3  ;;  %v2501_v41 = vsub.f32 1.0, %v2500_v52  ;;  %v6143_v36 = vadd.f32 1.0, %v4300_v44  ;;  %406 = vadd.xlane.f32.xlu2 %v405_v45  ;;  %v2519_v39 = vadd.f32 0.00028619796, %v2518_v37  ;;  %v2537_v28 = vmul.f32 %v2536_v4, %v5959_v1 }
 0x254   :  { %v2571_v0 = vmul.f32 %v2570_v19, %v6071_v63  ;;  %v313_v11 = vmul.f32 %v6126_v16, %v6126_v16  ;;  %v2486_v61 = vmul.f32 %v2485_v21, %v5831_v40  ;;  %v2559_v27 = vadd.f32 0.00028619796, %v2558_v33 }
 0x255   :  { %v6151_v8 = vadd.f32 %v5744_v34, %v2068_v5  ;;  %v316_v18 = vmul.f32 %v6133_v3, %v6133_v3  ;;  %v6155_v52 = vmul.f32 %v3562_v26, %v2134_v53  ;;  %v704_v44 = vmul.f32 0.5, %v703_v57 }
 0x256   :  { %v2572_v37 = vadd.f32 0.014752088, %v2571_v0  ;;  %v399_v4 = vsel %vm109_vm0, %v313_v11, 0.0  ;;  %v6158_v19 = vpop.eup %4301  ;;  %v2502_v45 = vmul.f32 %v6073_v51, %v2501_v41  ;;  %4303 = vrcp.f32 %v6143_v36 }
 0x257   :  { %400 = vadd.xlane.f32.xlu1 %v399_v4  ;;  %v6163_v40 = vmul.f32 0.70710677, %v6151_v8  ;;  %v408_v21 = vsel %vm109_vm0, %v316_v18, 0.0  ;;  %v2520_v33 = vmul.f32 %v2519_v39, %v5959_v1  ;;  %v6167_v53 = vadd.f32 1.0, %v2537_v28 }
 0x258   :  { %v2573_v26 = vmul.f32 %v2572_v37, %v6071_v63  ;;  %409 = vadd.xlane.f32.xlu0 %v408_v21  ;;  %v6171_v57 = vunpack.c.h.bf16 %v6030_v23  ;;  %v2487_v5 = vadd.f32 1.1283791, %v2486_v61  ;;  %vm707_vm6 = vweird.f32 %v6012_v59 }
 0x259   :  { %v2560_v41 = vmul.f32 %v2559_v27, %v6071_v63  ;;  %v2596_v47 = vmul.f32 %v6163_v40, %v6163_v40  ;;  %vm2504_vm7 = vweird.f32 %v6014_v2  ;;  %v2510_v39 = vand.u32 2147483648, %v6014_v2 }
 0x25a   :  { %9115 = vst [vmem:[#allocation28_spill] sm:$0xff] %v6171_v57  ;;  %v6181_v28 = vadd.f32 %v5773_v62, %v6069_v31  ;;  %v1397_v23 = vmul.f32 %v6158_v19, %v6097_v15  ;;  %v2503_v0 = vadd.f32 %v6073_v51, %v2502_v45  ;;  %vm2505_vm8 = vweird.f32 %v6073_v51 }
 0x25b   :  { %v2574_v11 = vadd.f32 0.112945676, %v2573_v26  ;;  %v6187_v61 = vmin.f32 %v2596_v47, 16.0  ;;  %v705_v27 = vsub.f32 1.5, %v704_v44  ;;  %v2521_v18 = vadd.f32 0.0036580483, %v2520_v33  ;;  %vm6202_vm9 = vmor %vm2504_vm7, %vm2505_vm8 }
 0x25c   :  { %4305 = vrcp.f32 %v6167_v53  ;;  %v209_v37 = vsel %vm109_vm0, %v6171_v57, 0.0  ;;  %v6192_v4 = vpop.eup %4303  ;;  %v2508_v31 = vand.u32 2147483647, %v6014_v2  ;;  %v2561_v21 = vadd.f32 0.0036580483, %v2560_v41 }
 0x25d   :  { %v6196_v46 = vadd.f32 %v5773_v62, %v1061_v42  ;;  %v2609_v45 = vmul.f32 3.8918573e-05, %v6187_v61  ;;  %v2488_v26 = vmul.f32 %v2487_v5, %v5819_v54  ;;  %v2511_v33 = vor.u32 1.1754944e-38, %v2510_v39  ;;  %v1063_v54 = vpop.f32.mrf.mxu0 }
 0x25e   :  { %vm708_vm10 = vweird.f32 %v6064_v35  ;;  %v1398_v47 = vsub.f32 1.0, %v1397_v23  ;;  %v2507_v41 = vsel %vm6202_vm9, %v6073_v51, %v2503_v0  ;;  %v3971_v42 = vmul.f32 -1.702, %v6181_v28 }
 0x25f   :  { %v2575_v13 = vmul.f32 %v2574_v11, %v6071_v63  ;;  %v2610_v49 = vadd.f32 0.001143296, %v2609_v45  ;;  %210 = vadd.xlane.f32.xlu1 %v209_v37  ;;  %v706_v2 = vmul.f32 %v6064_v35, %v705_v27  ;;  %v1412_v5 = vmul.f32 %v6192_v4, %v6143_v36  ;;  %vm6219_vm12 = vmor %vm707_vm6, %vm708_vm10 }
 0x260   :  { %v1422_v39 = vand.u32 2147483648, %v6143_v36  ;;  %v2522_v23 = vmul.f32 %v2521_v18, %v5959_v1  ;;  %vm2509_vm11 = vcmp.eq.f32.partialorder %v2508_v31, 8.507059e+37  ;;  %v6224_v0 = vmul.f32 0.5, %v5901_v6 }
 0x261   :  { %v2562_v11 = vmul.f32 %v2561_v21, %v6071_v63  ;;  %v3972_v27 = vmul.f32 -1.702, %v6196_v46  ;;  %v2512_v45 = vsel %vm2509_vm11, %v2511_v33, %v2507_v41  ;;  %v2611_v44 = vmul.f32 %v2610_v49, %v6187_v61 }
 0x262   :  { %v6228_v37 = vpop.eup %4305  ;;  %v6232_v18 = vadd.f32 %v5773_v62, %v1063_v54  ;;  %v1399_v59 = vmul.f32 %v6158_v19, %v1398_v47  ;;  %v1420_v31 = vand.u32 2147483647, %v6143_v36  ;;  %v6238_v6 = vmul.f32 %v6003_v29, %v4605_v24 }
 0x263   :  { %v1207_v17 = vmul.f32 1.442695, %v3971_v42  ;;  %v2576_v21 = vadd.f32 0.4994258, %v2575_v13  ;;  %v710_v3 = vsel %vm6219_vm12, %v6064_v35, %v706_v2  ;;  %v1413_v33 = vsub.f32 1.0, %v1412_v5 }
 0x264   :  { %v6243_v41 = vor.u32 1.1754944e-38, %v1422_v39  ;;  %v2523_v49 = vadd.f32 0.05243302, %v2522_v23  ;;  %v2513_v54 = vmul.f32 %v2512_v45, %v2488_v26  ;;  %v2540_v47 = vmul.f32 %v6228_v37, %v6167_v53 }
 0x265   :  { %v2563_v16 = vadd.f32 0.05243302, %v2562_v11  ;;  %v1209_v38 = vmul.f32 1.442695, %v3972_v27  ;;  %vm1416_vm13 = vweird.f32 %v6143_v36  ;;  %v2612_v29 = vadd.f32 0.014752088, %v2611_v44 }
 0x266   :  { %v3973_v42 = vmul.f32 -1.702, %v6232_v18  ;;  %v1400_v13 = vadd.f32 %v6158_v19, %v1399_v59  ;;  %vm1402_vm14 = vweird.f32 %v6158_v19  ;;  %4307 = vpow2.f32 %v1207_v17  ;;  %v9120_v11 = vld [vmem:[#allocation29_spill] sm:$0xff] }
 0x267   :  { %v2577_v35 = vmul.f32 %v2576_v21, %v6071_v63  ;;  %v2598_v2 = vmul.f32 2.1237322e-06, %v6187_v61  ;;  %v1407_v26 = vand.u32 2147483648, %v6097_v15  ;;  %v1414_v5 = vmul.f32 %v6192_v4, %v1413_v33 }
 0x268   :  { %v2524_v39 = vmul.f32 %v2523_v49, %v5959_v1  ;;  %vm1401_vm15 = vweird.f32 %v6097_v15  ;;  %v1405_v23 = vand.u32 2147483647, %v6097_v15  ;;  %v4060_v51 = vclamps-f32 %v2513_v54, 1.0 }
 0x269   :  { %v6259_v27 = vmul.f32 %v710_v3, %v9120_v11  ;;  %v2564_v17 = vmul.f32 %v2563_v16, %v6071_v63  ;;  %4309 = vpow2.f32 %v1209_v38  ;;  %vm6262_vm1 = vmor %vm1401_vm15, %vm1402_vm14  ;;  %v2541_v44 = vsub.f32 1.0, %v2540_v47  ;;  %v2070_v38 = vpop.f32.mrf.mxu2 }
 0x26a   :  { %v2613_v59 = vmul.f32 %v2612_v29, %v6187_v61  ;;  %v1211_v21 = vmul.f32 1.442695, %v3973_v42  ;;  %v1404_v33 = vsel %vm6262_vm1, %v6158_v19, %v1400_v13  ;;  %v6271_v15 = vmul.f32 0.5, %v6035_v12  ;;  %v202_v42 = vpop.xlane.xlu2 %201 }
 0x26b   :  { %v6273_v3 = vadd.f32 1.0, %v2577_v35  ;;  %v2599_v49 = vadd.f32 0.00028619796, %v2598_v2  ;;  %v1408_v16 = vor.u32 1.1754944e-38, %v1407_v26  ;;  %v1415_v54 = vadd.f32 %v6192_v4, %v1414_v5  ;;  %v6284_v35 = vld [vmem:[%s8932_s1] ss:$0 sm:$0xff] }
 0x26c   :  { %vm1417_vm2 = vweird.f32 %v6192_v4  ;;  %vm6277_vm4 = vcmp.eq.f32.partialorder %v1420_v31, 8.507059e+37  ;;  %v2525_v29 = vadd.f32 0.18741608, %v2524_v39  ;;  %vm1406_vm5 = vcmp.eq.f32.partialorder %v1405_v23, 8.507059e+37  ;;  %v4308_v19 = vpop.eup %4307 }
 0x26d   :  { %v3563_v13 = vadd.f32 1.0, %v4060_v51  ;;  %v2565_v12 = vadd.f32 0.18741608, %v2564_v17  ;;  %v1409_v11 = vsel %vm1406_vm5, %v1408_v16, %v1404_v33  ;;  %v886_v2 = vmul.f32 %v6284_v35, %v6141_v14  ;;  %vm6294_vm6 = vmor %vm1416_vm13, %vm1417_vm2 }
 0x26e   :  { %v2542_v31 = vmul.f32 %v6228_v37, %v2541_v44  ;;  %v2614_v26 = vadd.f32 0.112945676, %v2613_v59  ;;  %4311 = vpow2.f32 %v1211_v21  ;;  %v1808_v5 = vmul.f32 %v1409_v11, %v5905_v32  ;;  %v1066_v59 = vpop.f32.mrf.mxu0 }
 0x26f   :  { %v4310_v39 = vpop.eup %4309  ;;  %4313 = vrcp.f32 %v6273_v3  ;;  %v2600_v51 = vmul.f32 %v2599_v49, %v6187_v61  ;;  %v249_v14 = vmul.f32 %v4605_v24, %v202_v42  ;;  %v887_v17 = vmul.f32 %v6284_v35, %v6081_v56  ;;  %v6316_v56 = vld [vmem:[%s8933_s2] ss:$0 sm:$0xff] }
 0x270   :  { %v1419_v32 = vsel %vm6294_vm6, %v6192_v4, %v1415_v54  ;;  %v2526_v45 = vmul.f32 %v2525_v29, %v5959_v1  ;;  %v2550_v36 = vand.u32 2147483648, %v6167_v53  ;;  %v6308_v44 = vadd.f32 1.0, %v4308_v19 }
 0x271   :  { %vm2545_vm7 = vweird.f32 %v6228_v37  ;;  %v2566_v21 = vmul.f32 %v2565_v12, %v6071_v63  ;;  %v1838_v33 = vpack.c.bf16 %v1808_v5, %v6102_v22  ;;  %v923_v4 = vadd.f32 %v6316_v56, %v886_v2 }
 0x272   :  { %v2543_v1 = vadd.f32 %v6228_v37, %v2542_v31  ;;  %v6320_v49 = vadd.f32 1.0, %v4310_v39  ;;  %v2615_v16 = vmul.f32 %v2614_v26, %v6187_v61  ;;  %v6324_v54 = vadd.f32 %v5744_v34, %v2070_v38 }
 0x273   :  { %v6327_v63 = vmul.f32 %v3563_v13, %v6111_v60  ;;  %v2601_v22 = vadd.f32 0.0036580483, %v2600_v51  ;;  %v6330_v29 = vsub.f32 %v5566_v55, %v249_v14  ;;  %1943 = vmatmul.bf16.gmra.mxu1 %v1838_v33  ;;  %v924_v42 = vadd.f32 %v6316_v56, %v887_v17 }
 0x274   :  { %v4312_v19 = vpop.eup %4311  ;;  %v2527_v12 = vadd.f32 1.1283791, %v2526_v45  ;;  %vm2544_vm8 = vweird.f32 %v6167_v53  ;;  %v2548_v11 = vand.u32 2147483647, %v6167_v53  ;;  %4315 = vrcp.f32 %v6308_v44 }
 0x275   :  { %9127 = vst [vmem:[#allocation27_spill] sm:$0xff] %v6330_v29  ;;  %v6336_v38 = vpop.eup %4313  ;;  %v1424_v60 = vsel %vm6277_vm4, %v6243_v41, %v1419_v32  ;;  %vm6343_vm9 = vmor %vm2544_vm8, %vm2545_vm7  ;;  %v2551_v2 = vor.u32 1.1754944e-38, %v2550_v36  ;;  %v2567_v31 = vadd.f32 1.1283791, %v2566_v21  ;;  %v948_v26 = vpack.c.bf16 %v924_v42, %v923_v4  ;;  %v2073_v5 = vpop.f32.mrf.mxu2 }
 0x276   :  { %v2547_v53 = vsel %vm6343_vm9, %v6228_v37, %v2543_v1  ;;  %4317 = vrcp.f32 %v6320_v49  ;;  %v2616_v39 = vadd.f32 0.4994258, %v2615_v16  ;;  %v6352_v47 = vmul.f32 0.70710677, %v6324_v54 }
 0x277   :  { %v2602_v41 = vmul.f32 %v2601_v22, %v6187_v61  ;;  %v6355_v23 = vadd.f32 1.0, %v4312_v19  ;;  %3954 = vmatmul.msk.bf16.gmra.mxu0 %vm109_vm0, %v948_v26  ;;  %4045 = vmatmul.msk.bf16.gmra.mxu2 %vm109_vm0, %v948_v26  ;;  %v317_v51 = vmul.f32 %v6330_v29, %v6330_v29  ;;  %v6362_v14 = vadd.f32 %v5773_v62, %v1066_v59 }
 0x278   :  { %vm2549_vm10 = vcmp.eq.f32.partialorder %v2548_v11, 8.507059e+37  ;;  %v2580_v37 = vmul.f32 %v6336_v38, %v6273_v3  ;;  %v2636_v17 = vmul.f32 %v6352_v47, %v6352_v47  ;;  %v6369_v32 = vadd.f32 %v5744_v34, %v2073_v5  ;;  %v1068_v34 = vpop.f32.mrf.mxu0 }
 0x279   :  { %v6372_v45 = vmul.f32 %v1424_v60, %v5994_v9  ;;  %v2528_v36 = vmul.f32 %v2527_v12, %v5923_v30  ;;  %v2552_v21 = vsel %vm2549_vm10, %v2551_v2, %v2547_v53  ;;  %v411_v33 = vsel %vm109_vm0, %v317_v51, 0.0 }
 0x27a   :  { %v6376_v59 = vpop.eup %4315  ;;  %v6379_v4 = vmul.f32 %v2567_v31, %v6041_v50  ;;  %v2588_v1 = vand.u32 2147483647, %v6273_v3  ;;  %v2617_v16 = vmul.f32 %v2616_v39, %v6187_v61  ;;  %v6383_v22 = vmin.f32 %v2636_v17, 16.0  ;;  %412 = vadd.xlane.f32.xlu1 %v411_v33 }
 0x27b   :  { %v2603_v9 = vadd.f32 0.05243302, %v2602_v41  ;;  %4319 = vrcp.f32 %v6355_v23  ;;  %v3974_v30 = vmul.f32 -1.702, %v6362_v14  ;;  %v6388_v42 = vmul.f32 0.70710677, %v6369_v32 }
 0x27c   :  { %v6390_v19 = vpop.eup %4317  ;;  %v2553_v50 = vmul.f32 %v2552_v21, %v2528_v36  ;;  %v2581_v12 = vsub.f32 1.0, %v2580_v37  ;;  %v2638_v11 = vmul.f32 2.1237322e-06, %v6383_v22  ;;  %v2649_v60 = vmul.f32 3.8918573e-05, %v6383_v22 }
 0x27d   :  { %v1213_v13 = vmul.f32 1.442695, %v3974_v30  ;;  %v2676_v2 = vmul.f32 %v6388_v42, %v6388_v42  ;;  %v6397_v31 = vadd.f32 %v5773_v62, %v1068_v34  ;;  %v1427_v26 = vmul.f32 %v6376_v59, %v6308_v44 }
 0x27e   :  { %v2590_v5 = vand.u32 2147483648, %v6273_v3  ;;  %v1450_v53 = vand.u32 2147483647, %v6320_v49  ;;  %v6403_v39 = vadd.f32 1.0, %v2617_v16  ;;  %v2650_v41 = vadd.f32 0.001143296, %v2649_v60 }
 0x27f   :  { %vm2584_vm11 = vweird.f32 %v6273_v3  ;;  %v1442_v51 = vmul.f32 %v6390_v19, %v6320_v49  ;;  %v2604_v37 = vmul.f32 %v2603_v9, %v6187_v61  ;;  %v6409_v17 = vmin.f32 %v2676_v2, 16.0 }
 0x280   :  { %v3975_v62 = vmul.f32 -1.702, %v6397_v31  ;;  %v4061_v36 = vclamps-f32 %v2553_v50, 1.0  ;;  %v2582_v21 = vmul.f32 %v6336_v38, %v2581_v12  ;;  %v2651_v33 = vmul.f32 %v2650_v41, %v6383_v22 }
 0x281   :  { %v1428_v34 = vsub.f32 1.0, %v1427_v26  ;;  %v6414_v16 = vpop.eup %4319  ;;  %v2639_v30 = vadd.f32 0.00028619796, %v2638_v11  ;;  %4321 = vpow2.f32 %v1213_v13  ;;  %v2689_v60 = vmul.f32 3.8918573e-05, %v6409_v17 }
 0x282   :  { %v1215_v55 = vmul.f32 1.442695, %v3975_v62  ;;  %v2591_v29 = vor.u32 1.1754944e-38, %v2590_v5  ;;  %v1452_v9 = vand.u32 2147483648, %v6320_v49  ;;  %4323 = vrcp.f32 %v6403_v39 }
 0x283   :  { %v2652_v2 = vadd.f32 0.014752088, %v2651_v33  ;;  %v1443_v43 = vsub.f32 1.0, %v1442_v51  ;;  %v2605_v50 = vadd.f32 0.18741608, %v2604_v37  ;;  %v3564_v12 = vadd.f32 1.0, %v4061_v36 }
 0x284   :  { %v2690_v48 = vadd.f32 0.001143296, %v2689_v60  ;;  %4325 = vpow2.f32 %v1215_v55  ;;  %vm6419_vm12 = vcmp.eq.f32.partialorder %v2588_v1, 8.507059e+37  ;;  %v1457_v11 = vmul.f32 %v6414_v16, %v6355_v23 }
 0x285   :  { %v2653_v13 = vmul.f32 %v2652_v2, %v6383_v22  ;;  %v1429_v5 = vmul.f32 %v6376_v59, %v1428_v34  ;;  %v2583_v41 = vadd.f32 %v6336_v38, %v2582_v21  ;;  %vm2585_vm13 = vweird.f32 %v6336_v38 }
 0x286   :  { %v2640_v51 = vmul.f32 %v2639_v30, %v6383_v22  ;;  %v2691_v55 = vmul.f32 %v2690_v48, %v6409_v17  ;;  %v6431_v37 = vor.u32 1.1754944e-38, %v1452_v9  ;;  %v1465_v1 = vand.u32 2147483647, %v6355_v23  ;;  %vm6443_vm1 = vmor %vm2584_vm11, %vm2585_vm13 }
 0x287   :  { %v1467_v62 = vand.u32 2147483648, %v6355_v23  ;;  %v2654_v36 = vadd.f32 0.112945676, %v2653_v13  ;;  %v4322_v33 = vpop.eup %4321  ;;  %v1444_v60 = vmul.f32 %v6390_v19, %v1443_v43  ;;  %vm1446_vm14 = vweird.f32 %v6320_v49 }
 0x288   :  { %vm1447_vm15 = vweird.f32 %v6390_v19  ;;  %v2606_v21 = vmul.f32 %v2605_v50, %v6187_v61  ;;  %v2692_v34 = vadd.f32 0.014752088, %v2691_v55  ;;  %v6439_v30 = vpop.eup %4323  ;;  %v1458_v9 = vsub.f32 1.0, %v1457_v11 }
 0x289   :  { %v2655_v2 = vmul.f32 %v2654_v36, %v6383_v22  ;;  %v1430_v43 = vadd.f32 %v6376_v59, %v1429_v5  ;;  %vm1432_vm2 = vweird.f32 %v6376_v59  ;;  %v2587_v61 = vsel %vm6443_vm1, %v6336_v38, %v2583_v41  ;;  %v1929_v41 = vpop.f32.mrf.mxu1  ;;  %vm6496_vm9 = vmor %vm1446_vm14, %vm1447_vm15 }
 0x28a   :  { %v4326_v13 = vpop.eup %4325  ;;  %v2641_v50 = vadd.f32 0.0036580483, %v2640_v51  ;;  %vm1431_vm4 = vweird.f32 %v6308_v44  ;;  %v1437_v3 = vand.u32 2147483648, %v6308_v44  ;;  %v6455_v20 = vadd.f32 1.0, %v4322_v33 }
 0x28b   :  { %v2656_v55 = vadd.f32 0.4994258, %v2655_v2  ;;  %v2693_v11 = vmul.f32 %v2692_v34, %v6409_v17  ;;  %v1435_v36 = vand.u32 2147483647, %v6308_v44  ;;  %v1445_v5 = vadd.f32 %v6390_v19, %v1444_v60  ;;  %vm6471_vm7 = vmor %vm1431_vm4, %vm1432_vm2 }
 0x28c   :  { %vm6460_vm5 = vcmp.eq.f32.partialorder %v1450_v53, 8.507059e+37  ;;  %v2607_v48 = vadd.f32 1.1283791, %v2606_v21  ;;  %v2620_v38 = vmul.f32 %v6439_v30, %v6403_v39  ;;  %vm1461_vm6 = vweird.f32 %v6355_v23 }
 0x28d   :  { %v6467_v51 = vadd.f32 1.0, %v4326_v13  ;;  %v2657_v44 = vmul.f32 %v2656_v55, %v6383_v22  ;;  %v2678_v53 = vmul.f32 2.1237322e-06, %v6409_v17  ;;  %v2694_v60 = vadd.f32 0.112945676, %v2693_v11 }
 0x28e   :  { %v1434_v21 = vsel %vm6471_vm7, %v6376_v59, %v1430_v43  ;;  %v2592_v34 = vsel %vm6419_vm12, %v2591_v29, %v2587_v61  ;;  %v1459_v2 = vmul.f32 %v6414_v16, %v1458_v9  ;;  %v2642_v13 = vmul.f32 %v2641_v50, %v6383_v22 }
 0x28f   :  { %v1438_v10 = vor.u32 1.1754944e-38, %v1437_v3  ;;  %v6484_v58 = vadd.f32 1.0, %v2657_v44  ;;  %4327 = vrcp.f32 %v6455_v20  ;;  %v2695_v55 = vmul.f32 %v2694_v60, %v6409_v17 }
 0x290   :  { %vm1436_vm8 = vcmp.eq.f32.partialorder %v1435_v36, 8.507059e+37  ;;  %v6489_v11 = vmul.f32 %v3564_v12, %v6224_v0  ;;  %v2621_v33 = vsub.f32 1.0, %v2620_v38  ;;  %4329 = vrcp.f32 %v6467_v51 }
 0x291   :  { %v1439_v59 = vsel %vm1436_vm8, %v1438_v10, %v1434_v21  ;;  %vm1462_vm10 = vweird.f32 %v6414_v16  ;;  %v1468_v26 = vor.u32 1.1754944e-38, %v1467_v62  ;;  %4331 = vrcp.f32 %v6484_v58  ;;  %v6515_v62 = vld [vmem:[%s8940_s6] ss:$0 sm:$0xff]  ;;  %v1931_v21 = vpop.f32.mrf.mxu1 }
 0x292   :  { %v2679_v9 = vadd.f32 0.00028619796, %v2678_v53  ;;  %v2593_v0 = vmul.f32 %v2592_v34, %v6379_v4  ;;  %v1449_v10 = vsel %vm6496_vm9, %v6390_v19, %v1445_v5  ;;  %v2628_v12 = vand.u32 2147483647, %v6403_v39  ;;  %v2075_v5 = vpop.f32.mrf.mxu2  ;;  %vm6535_vm13 = vmor %vm1461_vm6, %vm1462_vm10 }
 0x293   :  { %v1460_v49 = vadd.f32 %v6414_v16, %v1459_v2  ;;  %vm6508_vm11 = vcmp.eq.f32.partialorder %v1465_v1, 8.507059e+37  ;;  %v6518_v61 = vmul.f32 %v2607_v48, %v6163_v40  ;;  %v2643_v4 = vadd.f32 0.05243302, %v2642_v13  ;;  %v6561_v13 = vld [vmem:[%s8937_s8] ss:$0 sm:$0xff] }
 0x294   :  { %v2696_v50 = vadd.f32 0.4994258, %v2695_v55  ;;  %v1810_v19 = vmul.f32 %v1439_v59, %v6181_v28  ;;  %v2622_v3 = vmul.f32 %v6439_v30, %v2621_v33  ;;  %vm2624_vm12 = vweird.f32 %v6403_v39  ;;  %v9148_v28 = vld [vmem:[#allocation3_spill] sm:$0xff] }
 0x295   :  { %v2630_v1 = vand.u32 2147483648, %v6403_v39  ;;  %v888_v36 = vmul.f32 %v6284_v35, %v6138_v25  ;;  %v6526_v38 = vpop.eup %4327  ;;  %v1454_v40 = vsel %vm6460_vm5, %v6431_v37, %v1449_v10  ;;  %v2680_v48 = vmul.f32 %v2679_v9, %v6409_v17 }
 0x296   :  { %v1839_v44 = vpack.c.bf16 %v1810_v19, %v6372_v45  ;;  %v889_v25 = vmul.f32 %v6284_v35, %v6259_v27  ;;  %v6543_v53 = vpop.eup %4329  ;;  %v4062_v60 = vclamps-f32 %v2593_v0, 1.0  ;;  %vm6545_vm14 = vcmp.eq.f32.partialorder %v2628_v12, 8.507059e+37 }
 0x297   :  { %v1464_v23 = vsel %vm6535_vm13, %v6414_v16, %v1460_v49  ;;  %v1930_v37 = vadd.f32 %v6515_v62, %v1929_v41  ;;  %v6553_v34 = vpop.eup %4331  ;;  %v2644_v45 = vmul.f32 %v2643_v4, %v6383_v22  ;;  %v2697_v27 = vmul.f32 %v2696_v50, %v6409_v17 }
 0x298   :  { %1948 = vmatmul.bf16.gmra.mxu1 %v1839_v44  ;;  %v926_v2 = vadd.f32 %v6316_v56, %v889_v25  ;;  %v6564_v55 = vadd.f32 %v6561_v13, %v2075_v5  ;;  %v2623_v16 = vadd.f32 %v6439_v30, %v2622_v3  ;;  %vm2625_vm15 = vweird.f32 %v6439_v30 }
 0x299   :  { %v2660_v41 = vmul.f32 %v6553_v34, %v6484_v58  ;;  %v925_v33 = vadd.f32 %v6316_v56, %v888_v36  ;;  %v6572_v59 = vmul.f32 %v1454_v40, %v6196_v46  ;;  %v2681_v29 = vadd.f32 0.0036580483, %v2680_v48  ;;  %vm6581_vm1 = vmor %vm2624_vm12, %vm2625_vm15 }
 0x29a   :  { %v1932_v9 = vadd.f32 %v6515_v62, %v1931_v21  ;;  %v1487_v0 = vmul.f32 %v6543_v53, %v6467_v51  ;;  %v3565_v10 = vadd.f32 1.0, %v4062_v60  ;;  %v1472_v49 = vmul.f32 %v6526_v38, %v6455_v20 }
 0x29b   :  { %v2661_v12 = vsub.f32 1.0, %v2660_v41  ;;  %v949_v4 = vpack.c.bf16 %v926_v2, %v925_v33  ;;  %v1469_v46 = vsel %vm6508_vm11, %v1468_v26, %v1464_v23  ;;  %v2645_v19 = vadd.f32 0.18741608, %v2644_v45  ;;  %v9149_v23 = vld [vmem:[#allocation6_spill] sm:$0xff] }
 0x29c   :  { %v6587_v3 = vadd.f32 1.0, %v2697_v27  ;;  %v6590_v36 = vmul.f32 0.70710677, %v6564_v55  ;;  %v2627_v5 = vsel %vm6581_vm1, %v6439_v30, %v2623_v16  ;;  %v2631_v40 = vor.u32 1.1754944e-38, %v2630_v1 }
 0x29d   :  { %v2662_v39 = vmul.f32 %v6553_v34, %v2661_v12  ;;  %v3796_v48 = vadd.f32 %v9148_v28, %v1930_v37  ;;  %3955 = vmatmul.msk.bf16.gmra.mxu0 %vm109_vm0, %v949_v4  ;;  %4046 = vmatmul.msk.bf16.gmra.mxu2 %vm109_vm0, %v949_v4  ;;  %v2682_v26 = vmul.f32 %v2681_v29, %v6409_v17  ;;  %v1488_v43 = vsub.f32 1.0, %v1487_v0  ;;  %v6635_v29 = vld [vmem:[%s8941_s10] ss:$0 sm:$0xff] }
 0x29e   :  { %v2716_v44 = vmul.f32 %v6590_v36, %v6590_v36  ;;  %v3627_v25 = vpack.c.bf16 %v6327_v63, %v6155_v52  ;;  %v6605_v30 = vmul.f32 %v3565_v10, %v6271_v15  ;;  %v1812_v1 = vmul.f32 %v1469_v46, %v6232_v18 }
 0x29f   :  { %v1473_v60 = vsub.f32 1.0, %v1472_v49  ;;  %v6609_v37 = vadd.f32 %v9149_v23, %v1932_v9  ;;  %v6613_v21 = vsel %vm6545_vm14, %v2631_v40, %v2627_v5  ;;  %v2646_v45 = vmul.f32 %v2645_v19, %v6383_v22  ;;  %v3711_v9 = vpop.f32.mrf.mxu3 }
 0x2a0   :  { %4333 = vrcp.f32 %v6587_v3  ;;  %v6617_v27 = vmin.f32 %v2716_v44, 16.0  ;;  %4090 = vmatmul.msk.bf16.gmra.mxu3 %vm3646_vm3, %v3627_v25  ;;  %v2663_v52 = vadd.f32 %v6553_v34, %v2662_v39  ;;  %vm2665_vm2 = vweird.f32 %v6553_v34 }
 0x2a1   :  { %v2670_v18 = vand.u32 2147483648, %v6484_v58  ;;  %vm1476_vm4 = vweird.f32 %v6455_v20  ;;  %v1482_v15 = vand.u32 2147483648, %v6455_v20  ;;  %v2683_v63 = vadd.f32 0.05243302, %v2682_v26 }
 0x2a2   :  { %v1489_v57 = vmul.f32 %v6543_v53, %v1488_v43  ;;  %v2718_v22 = vmul.f32 2.1237322e-06, %v6617_v27  ;;  %v2729_v2 = vmul.f32 3.8918573e-05, %v6617_v27  ;;  %vm2664_vm5 = vweird.f32 %v6484_v58 }
 0x2a3   :  { %v2668_v16 = vand.u32 2147483647, %v6484_v58  ;;  %v1474_v41 = vmul.f32 %v6526_v38, %v1473_v60  ;;  %v1495_v33 = vand.u32 2147483647, %v6467_v51  ;;  %v2647_v0 = vadd.f32 1.1283791, %v2646_v45  ;;  %vm6639_vm6 = vmor %vm2664_vm5, %vm2665_vm2 }
 0x2a4   :  { %v2719_v12 = vadd.f32 0.00028619796, %v2718_v22  ;;  %v2730_v49 = vadd.f32 0.001143296, %v2729_v2  ;;  %v1840_v58 = vpack.c.bf16 %v1812_v1, %v6572_v59  ;;  %v2667_v4 = vsel %vm6639_vm6, %v6553_v34, %v2663_v52  ;;  %v1934_v34 = vpop.f32.mrf.mxu1 }
 0x2a5   :  { %v2671_v50 = vor.u32 1.1754944e-38, %v2670_v18  ;;  %v1497_v46 = vand.u32 2147483648, %v6467_v51  ;;  %v3712_v19 = vadd.f32 %v6635_v29, %v3711_v9  ;;  %v1490_v40 = vadd.f32 %v6543_v53, %v1489_v57 }
 0x2a6   :  { %v6649_v5 = vpop.eup %4333  ;;  %vm1492_vm7 = vweird.f32 %v6543_v53  ;;  %v2720_v39 = vmul.f32 %v2719_v12, %v6617_v27  ;;  %v2731_v28 = vmul.f32 %v2730_v49, %v6617_v27  ;;  %vm2669_vm8 = vcmp.eq.f32.partialorder %v2668_v16, 8.507059e+37 }
 0x2a7   :  { %v1475_v59 = vadd.f32 %v6526_v38, %v1474_v41  ;;  %vm1477_vm9 = vweird.f32 %v6526_v38  ;;  %v3830_v26 = vadd.f32 %v3796_v48, %v3712_v19  ;;  %v2672_v43 = vsel %vm2669_vm8, %v2671_v50, %v2667_v4 }
 0x2a8   :  { %vm1491_vm10 = vweird.f32 %v6467_v51  ;;  %v2721_v44 = vadd.f32 0.0036580483, %v2720_v39  ;;  %v2732_v25 = vadd.f32 0.014752088, %v2731_v28  ;;  %1953 = vmatmul.bf16.gmra.mxu1 %v1840_v58  ;;  %v2648_v1 = vmul.f32 %v2647_v0, %v6352_v47  ;;  %vm6669_vm13 = vmor %vm1476_vm4, %vm1477_vm9 }
 0x2a9   :  { %v2700_v60 = vmul.f32 %v6649_v5, %v6587_v3  ;;  %vm6663_vm11 = vmor %vm1491_vm10, %vm1492_vm7  ;;  %v3864_v45 = vpack.c.bf16 %v3830_v26, %v3830_v26  ;;  %vm3898_vm12 = vcmask 257024   ;;  %v1480_v48 = vand.u32 2147483647, %v6455_v20  ;;  %v3713_v20 = vpop.f32.mrf.mxu3 }
 0x2aa   :  { %v2684_v47 = vmul.f32 %v2683_v63, %v6409_v17  ;;  %v1494_v52 = vsel %vm6663_vm11, %v6543_v53, %v1490_v40  ;;  %v2733_v18 = vmul.f32 %v2732_v25, %v6617_v27  ;;  %v2673_v57 = vmul.f32 %v2672_v43, %v2648_v1  ;;  %v9156_v1 = vld [vmem:[#allocation2_spill] sm:$0xff] }
 0x2ab   :  { %v1479_v22 = vsel %vm6669_vm13, %v6526_v38, %v1475_v59  ;;  %vm1496_vm14 = vcmp.eq.f32.partialorder %v1495_v33, 8.507059e+37  ;;  %v1498_v2 = vor.u32 1.1754944e-38, %v1497_v46  ;;  %3899 = vst.msk [vmem:[%s8942_s11] sm:$0xf] %vm3898_vm12, %v3864_v45  ;;  %v2722_v63 = vmul.f32 %v2721_v44, %v6617_v27 }
 0x2ac   :  { %v2734_v16 = vadd.f32 0.112945676, %v2733_v18  ;;  %v3714_v53 = vadd.f32 %v6635_v29, %v3713_v20  ;;  %v3628_v41 = vpack.c.bf16 %v6605_v30, %v6489_v11  ;;  %v1483_v9 = vor.u32 1.1754944e-38, %v1482_v15  ;;  %v1936_v19 = vpop.f32.mrf.mxu1 }
 0x2ad   :  { %v2701_v0 = vsub.f32 1.0, %v2700_v60  ;;  %v1499_v10 = vsel %vm1496_vm14, %v1498_v2, %v1494_v52  ;;  %v2633_v38 = vmul.f32 %v6613_v21, %v6518_v61  ;;  %vm1481_vm15 = vcmp.eq.f32.partialorder %v1480_v48, 8.507059e+37 }
 0x2ae   :  { %v2735_v33 = vmul.f32 %v2734_v16, %v6617_v27  ;;  %v3831_v12 = vadd.f32 %v6609_v37, %v3714_v53  ;;  %v6695_v49 = vadd.f32 1e-05, %v6238_v6  ;;  %v4064_v58 = vclamps-f32 %v2673_v57, 1.0 }
 0x2af   :  { %v1484_v4 = vsel %vm1481_vm15, %v1483_v9, %v1479_v22  ;;  %v2685_v50 = vadd.f32 0.18741608, %v2684_v47  ;;  %v1814_v46 = vmul.f32 %v1499_v10, %v6397_v31  ;;  %v2723_v11 = vadd.f32 0.05243302, %v2722_v63  ;;  %v392_v31 = vpop.xlane.xlu0 %391 }
 0x2b0   :  { %v2736_v30 = vadd.f32 0.4994258, %v2735_v33  ;;  %v3865_v15 = vpack.c.bf16 %v3831_v12, %v3831_v12  ;;  %4091 = vmatmul.msk.bf16.gmra.mxu3 %vm3646_vm3, %v3628_v41  ;;  %v2702_v61 = vmul.f32 %v6649_v5, %v2701_v0  ;;  %v1935_v21 = vadd.f32 %v6515_v62, %v1934_v34  ;;  %v9159_v41 = vld [vmem:[#allocation5_spill] sm:$0xff] }
 0x2b1   :  { %v4063_v40 = vclamps-f32 %v2633_v38, 1.0  ;;  %v1813_v37 = vmul.f32 %v1484_v4, %v6362_v14  ;;  %4335 = vrsqrt.f32 %v6695_v49  ;;  %v3567_v39 = vadd.f32 1.0, %v4064_v58  ;;  %v3716_v59 = vpop.f32.mrf.mxu3 }
 0x2b2   :  { %v2737_v6 = vmul.f32 %v2736_v30, %v6617_v27  ;;  %3900 = vst.msk [vmem:[%s8942_s11 + $0x4] sm:$0xf] %vm3898_vm12, %v3865_v15  ;;  %v2686_v28 = vmul.f32 %v2685_v50, %v6409_v17  ;;  %v446_v34 = vmul.f32 %v392_v31, %v4605_v24  ;;  %v2724_v26 = vmul.f32 %v2723_v11, %v6617_v27 }
 0x2b3   :  { %v1841_v14 = vpack.c.bf16 %v1814_v46, %v1813_v37  ;;  %v3717_v44 = vadd.f32 %v6635_v29, %v3716_v59  ;;  %v2703_v25 = vadd.f32 %v6649_v5, %v2702_v61  ;;  %vm2705_vm1 = vweird.f32 %v6649_v5 }
 0x2b4   :  { %v6711_v43 = vadd.f32 1.0, %v2737_v6  ;;  %v3798_v60 = vadd.f32 %v9156_v1, %v1935_v21  ;;  %v6717_v23 = vadd.f32 1e-05, %v446_v34  ;;  %v3566_v45 = vadd.f32 1.0, %v4063_v40  ;;  %v1939_v0 = vpop.f32.mrf.mxu1  ;;  %v9160_v34 = vld [vmem:[#allocation4_spill] sm:$0xff] }
 0x2b5   :  { %v2139_v17 = vmul.f32 0.5, %v6324_v54  ;;  %v2710_v51 = vand.u32 2147483648, %v6587_v3  ;;  %vm2704_vm2 = vweird.f32 %v6587_v3  ;;  %v2708_v48 = vand.u32 2147483647, %v6587_v3 }
 0x2b6   :  { %4337 = vrcp.f32 %v6711_v43  ;;  %v1937_v47 = vadd.f32 %v6515_v62, %v1936_v19  ;;  %v3832_v52 = vadd.f32 %v3798_v60, %v3717_v44  ;;  %v2138_v18 = vmul.f32 0.5, %v6151_v8  ;;  %vm6726_vm4 = vmor %vm2704_vm2, %vm2705_vm1  ;;  %v2078_v8 = vpop.f32.mrf.mxu2 }
 0x2b7   :  { %v3601_v57 = vmul.f32 %v3567_v39, %v2139_v17  ;;  %v2725_v2 = vadd.f32 0.18741608, %v2724_v26  ;;  %4339 = vrsqrt.f32 %v6717_v23  ;;  %v6731_v54 = vpop.eup %4335  ;;  %v2687_v20 = vadd.f32 1.1283791, %v2686_v28  ;;  %v1071_v17 = vpop.f32.mrf.mxu0 }
 0x2b8   :  { %1958 = vmatmul.bf16.gmra.mxu1 %v1841_v14  ;;  %v2707_v3 = vsel %vm6726_vm4, %v6649_v5, %v2703_v25  ;;  %v3866_v63 = vpack.c.bf16 %v3832_v52, %v3832_v52  ;;  %v3600_v16 = vmul.f32 %v3566_v45, %v2138_v18  ;;  %v2711_v53 = vor.u32 1.1754944e-38, %v2710_v51  ;;  %v395_v45 = vpop.xlane.xlu0 %394 }
 0x2b9   :  { %vm2709_vm5 = vcmp.eq.f32.partialorder %v2708_v48, 8.507059e+37  ;;  %v3799_v9 = vadd.f32 %v9159_v41, %v1937_v47  ;;  %v3718_v10 = vpop.f32.mrf.mxu3  ;;  %v2726_v12 = vmul.f32 %v2725_v2, %v6617_v27  ;;  %v2688_v4 = vmul.f32 %v2687_v20, %v6388_v42 }
 0x2ba   :  { %3901 = vst.msk [vmem:[%s8942_s11 + $0x8] sm:$0xf] %vm3898_vm12, %v3866_v63  ;;  %v2712_v33 = vsel %vm2709_vm5, %v2711_v53, %v2707_v3  ;;  %v3719_v5 = vadd.f32 %v6635_v29, %v3718_v10  ;;  %v3629_v58 = vpack.c.bf16 %v3601_v57, %v3600_v16  ;;  %v6746_v46 = vadd.f32 %v6561_v13, %v2078_v8 }
 0x2bb   :  { %v712_v15 = vmul.f32 %v6731_v54, %v6695_v49  ;;  %v2713_v61 = vmul.f32 %v2712_v33, %v2688_v4  ;;  %v1940_v27 = vadd.f32 %v6515_v62, %v1939_v0  ;;  %v2727_v19 = vadd.f32 1.1283791, %v2726_v12  ;;  %v398_v33 = vpop.xlane.xlu1 %397 }
 0x2bc   :  { %v4338_v38 = vpop.eup %4337  ;;  %v3833_v30 = vadd.f32 %v3799_v9, %v3719_v5  ;;  %v2748_v40 = vand.u32 2147483647, %v6711_v43  ;;  %v2750_v42 = vand.u32 2147483648, %v6711_v43  ;;  %v6759_v39 = vmul.f32 0.70710677, %v6746_v46  ;;  %v1941_v48 = vpop.f32.mrf.mxu1 }
 0x2bd   :  { %v2740_v50 = vmul.f32 %v4338_v38, %v6711_v43  ;;  %v6748_v11 = vpop.eup %4339  ;;  %vm2745_vm6 = vweird.f32 %v4338_v38  ;;  %v713_v28 = vmul.f32 %v6731_v54, %v712_v15  ;;  %vm2744_vm7 = vweird.f32 %v6711_v43  ;;  %v404_v9 = vpop.xlane.xlu2 %403 }
 0x2be   :  { %v3867_v37 = vpack.c.bf16 %v3833_v30, %v3833_v30  ;;  %v722_v31 = vmul.f32 %v6748_v11, %v6717_v23  ;;  %v3800_v26 = vadd.f32 %v9160_v34, %v1940_v27  ;;  %v4065_v44 = vclamps-f32 %v2713_v61, 1.0  ;;  %vm2746_vm8 = vmor %vm2744_vm7, %vm2745_vm6 }
 0x2bf   :  { %v2741_v21 = vsub.f32 1.0, %v2740_v50  ;;  %v2728_v25 = vmul.f32 %v2727_v19, %v6590_v36  ;;  %v2751_v1 = vor.u32 1.1754944e-38, %v2750_v42  ;;  %vm2749_vm9 = vcmp.eq.f32.partialorder %v2748_v40, 8.507059e+37  ;;  %v6776_v36 = vld [vmem:[%s8936_s4] ss:$0 sm:$0xff] }
 0x2c0   :  { %4092 = vmatmul.msk.bf16.gmra.mxu3 %vm3646_vm3, %v3629_v58  ;;  %3902 = vst.msk [vmem:[%s8942_s11 + $0xc] sm:$0xf] %vm3898_vm12, %v3867_v37  ;;  %v723_v47 = vmul.f32 %v6748_v11, %v722_v31  ;;  %v2756_v43 = vmul.f32 %v6759_v39, %v6759_v39  ;;  %v714_v57 = vmul.f32 0.5, %v713_v28  ;;  %v6779_v2 = vadd.f32 %v6776_v36, %v1071_v17  ;;  %v9161_v58 = vld [vmem:[#allocation7_spill] sm:$0xff]  ;;  %v205_v27 = vpop.xlane.xlu0 %204 }
 0x2c1   :  { %v2742_v6 = vmul.f32 %v4338_v38, %v2741_v21  ;;  %v3721_v14 = vpop.f32.mrf.mxu3  ;;  %v3568_v20 = vadd.f32 1.0, %v4065_v44  ;;  %v1942_v3 = vadd.f32 %v6515_v62, %v1941_v48  ;;  %vm717_vm10 = vweird.f32 %v6695_v49 }
 0x2c2   :  { %v3722_v60 = vadd.f32 %v6635_v29, %v3721_v14  ;;  %v724_v53 = vmul.f32 0.5, %v723_v47  ;;  %v6782_v8 = vmin.f32 %v2756_v43, 16.0  ;;  %v2140_v41 = vmul.f32 0.5, %v6369_v32 }
 0x2c3   :  { %v2743_v59 = vadd.f32 %v4338_v38, %v2742_v6  ;;  %v715_v0 = vsub.f32 1.5, %v714_v57  ;;  %v2141_v10 = vmul.f32 0.5, %v6564_v55  ;;  %v3976_v12 = vmul.f32 -1.702, %v6779_v2  ;;  %v1073_v57 = vpop.f32.mrf.mxu0 }
 0x2c4   :  { %v3834_v18 = vadd.f32 %v3800_v26, %v3722_v60  ;;  %vm718_vm11 = vweird.f32 %v6731_v54  ;;  %v3602_v5 = vmul.f32 %v3568_v20, %v2140_v41  ;;  %v3801_v4 = vadd.f32 %v9161_v58, %v1942_v3 }
 0x2c5   :  { %v2747_v51 = vsel %vm2746_vm8, %v4338_v38, %v2743_v59  ;;  %v725_v30 = vsub.f32 1.5, %v724_v53  ;;  %v450_v15 = vmul.f32 %v404_v9, %v4605_v24  ;;  %v2769_v61 = vmul.f32 3.8918573e-05, %v6782_v8  ;;  %vm6801_vm13 = vmor %vm717_vm10, %vm718_vm11 }
 0x2c6   :  { %v2752_v52 = vsel %vm2749_vm9, %v2751_v1, %v2747_v51  ;;  %v3868_v63 = vpack.c.bf16 %v3834_v18, %v3834_v18  ;;  %v448_v55 = vmul.f32 %v398_v33, %v4605_v24  ;;  %v716_v19 = vmul.f32 %v6731_v54, %v715_v0  ;;  %v9165_v51 = vld [vmem:[#allocation37_spill] sm:$0xff] }
 0x2c7   :  { %v2753_v22 = vmul.f32 %v2752_v52, %v2728_v25  ;;  %v1217_v42 = vmul.f32 1.442695, %v3976_v12  ;;  %v447_v6 = vmul.f32 %v395_v45, %v4605_v24  ;;  %v2770_v31 = vadd.f32 0.001143296, %v2769_v61  ;;  %v9164_v45 = vld [vmem:[#allocation32_spill] sm:$0xff] }
 0x2c8   :  { %3903 = vst.msk [vmem:[%s8942_s11 + $0x10] sm:$0xf] %vm3898_vm12, %v3868_v63  ;;  %v726_v28 = vmul.f32 %v6748_v11, %v725_v30  ;;  %vm728_vm14 = vweird.f32 %v6748_v11  ;;  %v6809_v59 = vadd.f32 1e-05, %v450_v15  ;;  %v250_v34 = vmul.f32 %v4605_v24, %v205_v27  ;;  %v208_v30 = vpop.xlane.xlu0 %207 }
 0x2c9   :  { %v4066_v16 = vclamps-f32 %v2753_v22, 1.0  ;;  %v3723_v62 = vpop.f32.mrf.mxu3  ;;  %v6816_v49 = vadd.f32 1e-05, %v448_v55  ;;  %v2771_v26 = vmul.f32 %v2770_v31, %v6782_v8  ;;  %v720_v14 = vsel %vm6801_vm13, %v6731_v54, %v716_v19 }
 0x2ca   :  { %v3724_v32 = vadd.f32 %v6635_v29, %v3723_v62  ;;  %vm727_vm15 = vweird.f32 %v6717_v23  ;;  %4341 = vpow2.f32 %v1217_v42  ;;  %v6823_v44 = vadd.f32 1e-05, %v447_v6 }
 0x2cb   :  { %v3569_v38 = vadd.f32 1.0, %v4066_v16  ;;  %vm729_vm1 = vmor %vm727_vm15, %vm728_vm14  ;;  %v2772_v25 = vadd.f32 0.014752088, %v2771_v26  ;;  %4343 = vrsqrt.f32 %v6809_v59  ;;  %v6828_v60 = vsub.f32 %v5942_v7, %v250_v34  ;;  %v2080_v16 = vpop.f32.mrf.mxu2 }
 0x2cc   :  { %v3835_v21 = vadd.f32 %v3801_v4, %v3724_v32  ;;  %v730_v1 = vsel %vm729_vm1, %v6748_v11, %v726_v28  ;;  %v853_v17 = vmul.f32 %v720_v14, %v9164_v45  ;;  %4345 = vrsqrt.f32 %v6816_v49 }
 0x2cd   :  { %v3603_v50 = vmul.f32 %v3569_v38, %v2141_v10  ;;  %v2758_v54 = vmul.f32 2.1237322e-06, %v6782_v8  ;;  %v2773_v23 = vmul.f32 %v2772_v25, %v6782_v8  ;;  %v854_v48 = vmul.f32 %v730_v1, %v9165_v51  ;;  %v9166_v1 = vld [vmem:[#allocation42_spill] sm:$0xff] }
 0x2ce   :  { %v3869_v29 = vpack.c.bf16 %v3835_v21, %v3835_v21  ;;  %4347 = vrsqrt.f32 %v6823_v44  ;;  %v318_v11 = vmul.f32 %v6828_v60, %v6828_v60  ;;  %v890_v22 = vmul.f32 %v6284_v35, %v853_v17 }
 0x2cf   :  { %v3630_v40 = vpack.c.bf16 %v3603_v50, %v3602_v5  ;;  %v2774_v47 = vadd.f32 0.112945676, %v2773_v23  ;;  %v2759_v52 = vadd.f32 0.00028619796, %v2758_v54  ;;  %v6844_v63 = vadd.f32 %v6776_v36, %v1073_v57 }
 0x2d0   :  { %3904 = vst.msk [vmem:[%s8942_s11 + $0x14] sm:$0xf] %vm3898_vm12, %v3869_v29  ;;  %v4342_v43 = vpop.eup %4341  ;;  %v414_v3 = vsel %vm109_vm0, %v318_v11, 0.0  ;;  %v891_v0 = vmul.f32 %v6284_v35, %v854_v48  ;;  %v6852_v10 = vadd.f32 %v6561_v13, %v2080_v16  ;;  %v927_v12 = vadd.f32 %v6316_v56, %v890_v22  ;;  %v401_v29 = vpop.xlane.xlu1 %400 }
 0x2d1   :  { %4093 = vmatmul.msk.bf16.gmra.mxu3 %vm3646_vm3, %v3630_v40  ;;  %v2775_v18 = vmul.f32 %v2774_v47, %v6782_v8  ;;  %v6840_v20 = vpop.eup %4343  ;;  %v6848_v41 = vadd.f32 1.0, %v4342_v43  ;;  %415 = vadd.xlane.f32.xlu2 %v414_v3  ;;  %v2760_v62 = vmul.f32 %v2759_v52, %v6782_v8  ;;  %v3977_v33 = vmul.f32 -1.702, %v6844_v63  ;;  %v407_v40 = vpop.xlane.xlu2 %406 }
 0x2d2   :  { %v6846_v53 = vpop.eup %4345  ;;  %v762_v5 = vmul.f32 %v6840_v20, %v6809_v59  ;;  %v928_v35 = vadd.f32 %v6316_v56, %v891_v0  ;;  %v6867_v32 = vmul.f32 0.70710677, %v6852_v10  ;;  %v251_v42 = vmul.f32 %v4605_v24, %v208_v30 }
 0x2d3   :  { %v2776_v9 = vadd.f32 0.4994258, %v2775_v18  ;;  %v742_v58 = vmul.f32 %v6846_v53, %v6816_v49  ;;  %4349 = vrcp.f32 %v6848_v41  ;;  %v2761_v61 = vadd.f32 0.0036580483, %v2760_v62 }
 0x2d4   :  { %v6854_v38 = vpop.eup %4347  ;;  %v950_v15 = vpack.c.bf16 %v928_v35, %v927_v12  ;;  %v1219_v21 = vmul.f32 1.442695, %v3977_v33  ;;  %v763_v55 = vmul.f32 %v6840_v20, %v762_v5  ;;  %v2796_v56 = vmul.f32 %v6867_v32, %v6867_v32 }
 0x2d5   :  { %v2777_v4 = vmul.f32 %v2776_v9, %v6782_v8  ;;  %v732_v50 = vmul.f32 %v6854_v38, %v6823_v44  ;;  %v743_v27 = vmul.f32 %v6846_v53, %v742_v58  ;;  %v2762_v28 = vmul.f32 %v2761_v61, %v6782_v8 }
 0x2d6   :  { %3956 = vmatmul.msk.bf16.gmra.mxu0 %vm109_vm0, %v950_v15  ;;  %4047 = vmatmul.msk.bf16.gmra.mxu2 %vm109_vm0, %v950_v15  ;;  %v6881_v6 = vmin.f32 %v2796_v56, 16.0  ;;  %4351 = vpow2.f32 %v1219_v21  ;;  %v764_v34 = vmul.f32 0.5, %v763_v55  ;;  %v451_v14 = vmul.f32 %v407_v40, %v4605_v24 }
 0x2d7   :  { %v6873_v19 = vadd.f32 1.0, %v2777_v4  ;;  %v733_v37 = vmul.f32 %v6854_v38, %v732_v50  ;;  %v744_v26 = vmul.f32 0.5, %v743_v27  ;;  %v449_v25 = vmul.f32 %v401_v29, %v4605_v24  ;;  %v1076_v27 = vpop.f32.mrf.mxu0 }
 0x2d8   :  { %v6890_v45 = vsub.f32 %v9166_v1, %v251_v42  ;;  %v2809_v17 = vmul.f32 3.8918573e-05, %v6881_v6  ;;  %v2798_v51 = vmul.f32 2.1237322e-06, %v6881_v6  ;;  %vm767_vm2 = vweird.f32 %v6809_v59  ;;  %v211_v35 = vpop.xlane.xlu1 %210 }
 0x2d9   :  { %v6883_v31 = vpop.eup %4349  ;;  %4353 = vrcp.f32 %v6873_v19  ;;  %v734_v54 = vmul.f32 0.5, %v733_v37  ;;  %v2763_v48 = vadd.f32 0.05243302, %v2762_v28  ;;  %v765_v47 = vsub.f32 1.5, %v764_v34  ;;  %v9172_v37 = vld [vmem:[#allocation28_spill] sm:$0xff] }
 0x2da   :  { %9167 = vst [vmem:[#allocation29_spill] sm:$0xff] %v6890_v45  ;;  %v1502_v23 = vmul.f32 %v6883_v31, %v6848_v41  ;;  %v745_v43 = vsub.f32 1.5, %v744_v26  ;;  %vm747_vm4 = vweird.f32 %v6816_v49  ;;  %v6898_v11 = vadd.f32 1e-05, %v451_v14  ;;  %v7025_v34 = vld [vmem:[%s8932_s1] ss:$0 sm:$0xff] }
 0x2db   :  { %v6901_v18 = vmul.f32 0.5, %v6746_v46  ;;  %v6903_v57 = vadd.f32 1e-05, %v449_v25  ;;  %v2810_v22 = vadd.f32 0.001143296, %v2809_v17  ;;  %v319_v3 = vmul.f32 %v6890_v45, %v6890_v45 }
 0x2dc   :  { %v4352_v52 = vpop.eup %4351  ;;  %v735_v9 = vsub.f32 1.5, %v734_v54  ;;  %vm768_vm5 = vweird.f32 %v6840_v20  ;;  %v1503_v0 = vsub.f32 1.0, %v1502_v23  ;;  %v2799_v62 = vadd.f32 0.00028619796, %v2798_v51  ;;  %v2083_v51 = vpop.f32.mrf.mxu2 }
 0x2dd   :  { %vm748_vm6 = vweird.f32 %v6846_v53  ;;  %v2764_v33 = vmul.f32 %v2763_v48, %v6782_v8  ;;  %v2811_v46 = vmul.f32 %v2810_v22, %v6881_v6  ;;  %v417_v12 = vsel %vm109_vm0, %v319_v3, 0.0  ;;  %vm6921_vm7 = vmor %vm767_vm2, %vm768_vm5  ;;  %v9176_v3 = vld [vmem:[#allocation39_spill] sm:$0xff] }
 0x2de   :  { %v766_v5 = vmul.f32 %v6840_v20, %v765_v47  ;;  %v746_v58 = vmul.f32 %v6846_v53, %v745_v43  ;;  %4355 = vrsqrt.f32 %v6898_v11  ;;  %v6917_v4 = vadd.f32 1.0, %v4352_v52  ;;  %418 = vadd.xlane.f32.xlu0 %v417_v12  ;;  %vm6938_vm10 = vmor %vm747_vm4, %vm748_vm6 }
 0x2df   :  { %v6907_v16 = vpop.eup %4353  ;;  %4357 = vrsqrt.f32 %v6903_v57  ;;  %v2812_v15 = vadd.f32 0.014752088, %v2811_v46  ;;  %v252_v61 = vmul.f32 %v4605_v24, %v211_v35  ;;  %v736_v21 = vmul.f32 %v6854_v38, %v735_v9  ;;  %v9177_v9 = vld [vmem:[#allocation40_spill] sm:$0xff] }
 0x2e0   :  { %v2780_v30 = vmul.f32 %v6907_v16, %v6873_v19  ;;  %vm738_vm8 = vweird.f32 %v6854_v38  ;;  %v1504_v55 = vmul.f32 %v6883_v31, %v1503_v0  ;;  %v2800_v59 = vmul.f32 %v2799_v62, %v6881_v6 }
 0x2e1   :  { %vm737_vm9 = vweird.f32 %v6823_v44  ;;  %v2765_v40 = vadd.f32 0.18741608, %v2764_v33  ;;  %v2813_v42 = vmul.f32 %v2812_v15, %v6881_v6  ;;  %v6944_v29 = vsub.f32 %v9172_v37, %v252_v61  ;;  %v9178_v33 = vld [vmem:[#allocation38_spill] sm:$0xff] }
 0x2e2   :  { %v770_v28 = vsel %vm6921_vm7, %v6840_v20, %v766_v5  ;;  %v750_v44 = vsel %vm6938_vm10, %v6846_v53, %v746_v58  ;;  %v1510_v49 = vand.u32 2147483647, %v6848_v41  ;;  %4359 = vrcp.f32 %v6917_v4  ;;  %vm6954_vm11 = vmor %vm737_vm9, %vm738_vm8 }
 0x2e3   :  { %9173 = vst [vmem:[#allocation3_spill] sm:$0xff] %v6944_v29  ;;  %v1512_v26 = vand.u32 2147483648, %v6848_v41  ;;  %v2781_v14 = vsub.f32 1.0, %v2780_v30  ;;  %v2814_v25 = vadd.f32 0.112945676, %v2813_v42  ;;  %v320_v17 = vmul.f32 %v6944_v29, %v6944_v29 }
 0x2e4   :  { %v6961_v20 = vpop.eup %4355  ;;  %v740_v53 = vsel %vm6954_vm11, %v6854_v38, %v736_v21  ;;  %v6967_v54 = vadd.f32 %v6883_v31, %v1504_v55  ;;  %vm1507_vm13 = vweird.f32 %v6883_v31  ;;  %v2801_v23 = vadd.f32 0.0036580483, %v2800_v59 }
 0x2e5   :  { %v6970_v48 = vpop.eup %4357  ;;  %v2766_v47 = vmul.f32 %v2765_v40, %v6782_v8  ;;  %v2815_v43 = vmul.f32 %v2814_v25, %v6881_v6  ;;  %v6975_v52 = vadd.f32 %v6561_v13, %v2083_v51  ;;  %v420_v22 = vsel %vm109_vm0, %v320_v17, 0.0 }
 0x2e6   :  { %v6979_v38 = vmul.f32 %v770_v28, %v9176_v3  ;;  %v856_v0 = vmul.f32 %v750_v44, %v9177_v9  ;;  %vm1506_vm14 = vweird.f32 %v6848_v41  ;;  %v6984_v62 = vadd.f32 %v6776_v36, %v1076_v27  ;;  %421 = vadd.xlane.f32.xlu1 %v420_v22  ;;  %v1078_v28 = vpop.f32.mrf.mxu0 }
 0x2e7   :  { %v855_v8 = vmul.f32 %v740_v53, %v9178_v33  ;;  %v1513_v46 = vor.u32 1.1754944e-38, %v1512_v26  ;;  %v2782_v12 = vmul.f32 %v6907_v16, %v2781_v14  ;;  %v2816_v5 = vadd.f32 0.4994258, %v2815_v43  ;;  %vm6992_vm15 = vmor %vm1506_vm14, %vm1507_vm13 }
 0x2e8   :  { %v6988_v58 = vpop.eup %4359  ;;  %v772_v41 = vmul.f32 %v6961_v20, %v6898_v11  ;;  %v752_v50 = vmul.f32 %v6970_v48, %v6903_v57  ;;  %v2802_v30 = vmul.f32 %v2801_v23, %v6881_v6  ;;  %v7002_v15 = vmul.f32 0.70710677, %v6975_v52 }
 0x2e9   :  { %v1509_v61 = vsel %vm6992_vm15, %v6883_v31, %v6967_v54  ;;  %vm7008_vm1 = vcmp.eq.f32.partialorder %v1510_v49, 8.507059e+37  ;;  %v2767_v55 = vadd.f32 1.1283791, %v2766_v47  ;;  %v2788_v59 = vand.u32 2147483647, %v6873_v19  ;;  %v410_v49 = vpop.xlane.xlu0 %409 }
 0x2ea   :  { %v2817_v27 = vmul.f32 %v2816_v5, %v6881_v6  ;;  %vm2785_vm2 = vweird.f32 %v6907_v16  ;;  %v2790_v56 = vand.u32 2147483648, %v6873_v19  ;;  %v3978_v40 = vmul.f32 -1.702, %v6984_v62 }
 0x2eb   :  { %v2836_v42 = vmul.f32 %v7002_v15, %v7002_v15  ;;  %v2783_v31 = vadd.f32 %v6907_v16, %v2782_v12  ;;  %v1517_v44 = vmul.f32 %v6988_v58, %v6917_v4  ;;  %v892_v26 = vmul.f32 %v7025_v34, %v855_v8  ;;  %v7057_v8 = vld [vmem:[%s8933_s2] ss:$0 sm:$0xff] }
 0x2ec   :  { %v893_v14 = vmul.f32 %v7025_v34, %v856_v0  ;;  %v773_v25 = vmul.f32 %v6961_v20, %v772_v41  ;;  %v753_v17 = vmul.f32 %v6970_v48, %v752_v50  ;;  %v2803_v53 = vadd.f32 0.05243302, %v2802_v30 }
 0x2ed   :  { %v7031_v54 = vmin.f32 %v2836_v42, 16.0  ;;  %vm2784_vm4 = vweird.f32 %v6873_v19  ;;  %vm7034_vm5 = vcmp.eq.f32.partialorder %v2788_v59, 8.507059e+37  ;;  %v7038_v51 = vadd.f32 1.0, %v2817_v27 }
 0x2ee   :  { %v7041_v47 = vadd.f32 %v6776_v36, %v1078_v28  ;;  %vm7045_vm6 = vmor %vm2784_vm4, %vm2785_vm2  ;;  %v2791_v22 = vor.u32 1.1754944e-38, %v2790_v56  ;;  %v452_v3 = vmul.f32 %v410_v49, %v4605_v24  ;;  %v1221_v9 = vmul.f32 1.442695, %v3978_v40  ;;  %v2085_v56 = vpop.f32.mrf.mxu2 }
 0x2ef   :  { %v2849_v19 = vmul.f32 3.8918573e-05, %v7031_v54  ;;  %v2787_v0 = vsel %vm7045_vm6, %v6907_v16, %v2783_v31  ;;  %v1518_v33 = vsub.f32 1.0, %v1517_v44  ;;  %v929_v12 = vadd.f32 %v7057_v8, %v892_v26 }
 0x2f0   :  { %v930_v5 = vadd.f32 %v7057_v8, %v893_v14  ;;  %v774_v35 = vmul.f32 0.5, %v773_v25  ;;  %v754_v41 = vmul.f32 0.5, %v753_v17  ;;  %v2804_v50 = vmul.f32 %v2803_v53, %v6881_v6 }
 0x2f1   :  { %v2850_v30 = vadd.f32 0.001143296, %v2849_v19  ;;  %4361 = vrcp.f32 %v7038_v51  ;;  %v2838_v59 = vmul.f32 2.1237322e-06, %v7031_v54  ;;  %v3979_v16 = vmul.f32 -1.702, %v7041_v47  ;;  %v413_v19 = vpop.xlane.xlu1 %412 }
 0x2f2   :  { %v951_v27 = vpack.c.bf16 %v930_v5, %v929_v12  ;;  %v1514_v40 = vsel %vm7008_vm1, %v1513_v46, %v1509_v61  ;;  %v2792_v42 = vsel %vm7034_vm5, %v2791_v22, %v2787_v0  ;;  %v7069_v28 = vadd.f32 1e-05, %v452_v3 }
 0x2f3   :  { %4363 = vpow2.f32 %v1221_v9  ;;  %v2768_v31 = vmul.f32 %v2767_v55, %v6759_v39  ;;  %vm777_vm7 = vweird.f32 %v6898_v11  ;;  %v1519_v44 = vmul.f32 %v6988_v58, %v1518_v33 }
 0x2f4   :  { %v2851_v49 = vmul.f32 %v2850_v30, %v7031_v54  ;;  %3957 = vmatmul.msk.bf16.gmra.mxu0 %vm109_vm0, %v951_v27  ;;  %4048 = vmatmul.msk.bf16.gmra.mxu2 %vm109_vm0, %v951_v27  ;;  %v775_v21 = vsub.f32 1.5, %v774_v35  ;;  %v755_v46 = vsub.f32 1.5, %v754_v41  ;;  %v2805_v61 = vadd.f32 0.18741608, %v2804_v50 }
 0x2f5   :  { %v7078_v26 = vadd.f32 %v6561_v13, %v2085_v56  ;;  %v2793_v14 = vmul.f32 %v2792_v42, %v2768_v31  ;;  %v2839_v25 = vadd.f32 0.00028619796, %v2838_v59  ;;  %v1223_v39 = vmul.f32 1.442695, %v3979_v16  ;;  %v1081_v59 = vpop.f32.mrf.mxu0 }
 0x2f6   :  { %v2852_v17 = vadd.f32 0.014752088, %v2851_v49  ;;  %vm778_vm8 = vweird.f32 %v6961_v20  ;;  %vm758_vm9 = vweird.f32 %v6970_v48  ;;  %vm1521_vm10 = vweird.f32 %v6917_v4 }
 0x2f7   :  { %4365 = vrsqrt.f32 %v7069_v28  ;;  %v7084_v55 = vpop.eup %4361  ;;  %v1520_v53 = vadd.f32 %v6988_v58, %v1519_v44  ;;  %vm1522_vm11 = vweird.f32 %v6988_v58  ;;  %v1525_v13 = vand.u32 2147483647, %v6917_v4  ;;  %vm7100_vm13 = vmor %vm777_vm7, %vm778_vm8 }
 0x2f8   :  { %v2853_v23 = vmul.f32 %v2852_v17, %v7031_v54  ;;  %v776_v22 = vmul.f32 %v6961_v20, %v775_v21  ;;  %v756_v3 = vmul.f32 %v6970_v48, %v755_v46  ;;  %v1527_v9 = vand.u32 2147483648, %v6917_v4  ;;  %vm7114_vm15 = vmor %vm1521_vm10, %vm1522_vm11 }
 0x2f9   :  { %v4364_v43 = vpop.eup %4363  ;;  %v7094_v0 = vmul.f32 0.70710677, %v7078_v26  ;;  %v4067_v33 = vclamps-f32 %v2793_v14, 1.0  ;;  %v2806_v5 = vmul.f32 %v2805_v61, %v6881_v6  ;;  %v2840_v35 = vmul.f32 %v2839_v25, %v7031_v54  ;;  %v9193_v25 = vld [vmem:[#allocation43_spill] sm:$0xff] }
 0x2fa   :  { %4367 = vpow2.f32 %v1223_v39  ;;  %v7107_v41 = vmul.f32 %v1514_v40, %v6779_v2  ;;  %vm757_vm14 = vweird.f32 %v6903_v57  ;;  %v2820_v50 = vmul.f32 %v7084_v55, %v7038_v51 }
 0x2fb   :  { %v2854_v6 = vadd.f32 0.112945676, %v2853_v23  ;;  %v1524_v30 = vsel %vm7114_vm15, %v6988_v58, %v1520_v53  ;;  %vm1526_vm1 = vcmp.eq.f32.partialorder %v1525_v13, 8.507059e+37  ;;  %v7123_v2 = vadd.f32 1.0, %v4364_v43  ;;  %vm7133_vm2 = vmor %vm757_vm14, %vm758_vm9  ;;  %v9194_v13 = vld [vmem:[#allocation44_spill] sm:$0xff] }
 0x2fc   :  { %v453_v57 = vmul.f32 %v413_v19, %v4605_v24  ;;  %v780_v4 = vsel %vm7100_vm13, %v6961_v20, %v776_v22  ;;  %v1528_v56 = vor.u32 1.1754944e-38, %v1527_v9  ;;  %v2876_v40 = vmul.f32 %v7094_v0, %v7094_v0 }
 0x2fd   :  { %v7126_v16 = vpop.eup %4365  ;;  %v2855_v58 = vmul.f32 %v2854_v6, %v7031_v54  ;;  %v3570_v42 = vadd.f32 1.0, %v4067_v33  ;;  %v760_v31 = vsel %vm7133_vm2, %v6970_v48, %v756_v3  ;;  %v2807_v44 = vadd.f32 1.1283791, %v2806_v5  ;;  %v2088_v48 = vpop.f32.mrf.mxu2 }
 0x2fe   :  { %v2841_v49 = vadd.f32 0.0036580483, %v2840_v35  ;;  %v1529_v20 = vsel %vm1526_vm1, %v1528_v56, %v1524_v30  ;;  %v7144_v21 = vmul.f32 0.5, %v6852_v10  ;;  %v2821_v46 = vsub.f32 1.0, %v2820_v50  ;;  %v7179_v35 = vld [vmem:[%s8937_s8] ss:$0 sm:$0xff]  ;;  %v1083_v56 = vpop.f32.mrf.mxu0 }
 0x2ff   :  { %v2856_v61 = vadd.f32 0.4994258, %v2855_v58  ;;  %v7147_v17 = vmul.f32 %v780_v4, %v9193_v25  ;;  %v782_v39 = vmul.f32 %v7126_v16, %v7069_v28  ;;  %4369 = vrcp.f32 %v7123_v2 }
 0x300   :  { %v4368_v14 = vpop.eup %4367  ;;  %v7152_v53 = vadd.f32 1e-05, %v453_v57  ;;  %v7155_v23 = vmul.f32 %v760_v31, %v9194_v13  ;;  %v7158_v10 = vmul.f32 0.5, %v6975_v52  ;;  %v7161_v22 = vmin.f32 %v2876_v40, 16.0 }
 0x301   :  { %v2857_v43 = vmul.f32 %v2856_v61, %v7031_v54  ;;  %v7164_v3 = vmul.f32 %v3570_v42, %v6901_v18  ;;  %v1816_v9 = vmul.f32 %v1529_v20, %v6844_v63  ;;  %v7168_v19 = vmul.f32 %v2807_v44, %v6867_v32 }
 0x302   :  { %v2842_v33 = vmul.f32 %v2841_v49, %v7031_v54  ;;  %v2822_v12 = vmul.f32 %v7084_v55, %v2821_v46  ;;  %v7174_v52 = vadd.f32 1.0, %v4368_v14  ;;  %v7182_v18 = vadd.f32 %v7179_v35, %v2088_v48  ;;  %v1944_v48 = vpop.f32.mrf.mxu1 }
 0x303   :  { %v7172_v5 = vadd.f32 1.0, %v2857_v43  ;;  %v2828_v63 = vand.u32 2147483647, %v7038_v51  ;;  %v783_v32 = vmul.f32 %v7126_v16, %v782_v39  ;;  %4371 = vrsqrt.f32 %v7152_v53 }
 0x304   :  { %v2878_v11 = vmul.f32 2.1237322e-06, %v7161_v22  ;;  %vm2824_vm4 = vweird.f32 %v7038_v51  ;;  %v2830_v50 = vand.u32 2147483648, %v7038_v51  ;;  %v895_v6 = vmul.f32 %v7025_v34, %v6979_v38 }
 0x305   :  { %4373 = vrcp.f32 %v7172_v5  ;;  %v7193_v30 = vpop.eup %4369  ;;  %vm2825_vm5 = vweird.f32 %v7084_v55  ;;  %v2889_v4 = vmul.f32 3.8918573e-05, %v7161_v22  ;;  %v7198_v27 = vadd.f32 %v6776_v36, %v1081_v59 }
 0x306   :  { %v2879_v57 = vadd.f32 0.00028619796, %v2878_v11  ;;  %v2823_v58 = vadd.f32 %v7084_v55, %v2822_v12  ;;  %v2843_v40 = vadd.f32 0.05243302, %v2842_v33  ;;  %4375 = vrcp.f32 %v7174_v52  ;;  %vm7224_vm9 = vmor %vm2824_vm4, %vm2825_vm5 }
 0x307   :  { %v7203_v42 = vmul.f32 0.70710677, %v7182_v18  ;;  %vm7205_vm6 = vcmp.eq.f32.partialorder %v2828_v63, 8.507059e+37  ;;  %v784_v31 = vmul.f32 0.5, %v783_v32  ;;  %vm787_vm7 = vweird.f32 %v7069_v28 }
 0x308   :  { %vm788_vm8 = vweird.f32 %v7126_v16  ;;  %v2890_v59 = vadd.f32 0.001143296, %v2889_v4  ;;  %v2831_v44 = vor.u32 1.1754944e-38, %v2830_v50  ;;  %v1532_v49 = vmul.f32 %v7193_v30, %v7123_v2 }
 0x309   :  { %v2916_v20 = vmul.f32 %v7203_v42, %v7203_v42  ;;  %v7216_v46 = vadd.f32 %v6776_v36, %v1083_v56  ;;  %v7218_v61 = vpop.eup %4371  ;;  %v2880_v25 = vmul.f32 %v2879_v57, %v7161_v22  ;;  %v3980_v13 = vmul.f32 -1.702, %v7198_v27  ;;  %vm7277_vm10 = vmor %vm787_vm7, %vm788_vm8 }
 0x30a   :  { %v2891_v39 = vmul.f32 %v2890_v59, %v7161_v22  ;;  %v1842_v43 = vpack.c.bf16 %v1816_v9, %v7107_v41  ;;  %v2827_v12 = vsel %vm7224_vm9, %v7084_v55, %v2823_v58  ;;  %v2844_v63 = vmul.f32 %v2843_v40, %v7031_v54  ;;  %v7250_v55 = vld [vmem:[%s8940_s6] ss:$0 sm:$0xff] }
 0x30b   :  { %v7232_v33 = vpop.eup %4373  ;;  %v7239_v32 = vmin.f32 %v2916_v20, 16.0  ;;  %v785_v11 = vsub.f32 1.5, %v784_v31  ;;  %v1542_v50 = vand.u32 2147483648, %v7123_v2  ;;  %v3981_v41 = vmul.f32 -1.702, %v7216_v46 }
 0x30c   :  { %v2860_v57 = vmul.f32 %v7232_v33, %v7172_v5  ;;  %1963 = vmatmul.bf16.gmra.mxu1 %v1842_v43  ;;  %v7245_v9 = vpop.eup %4375  ;;  %v2892_v4 = vadd.f32 0.014752088, %v2891_v39  ;;  %v7253_v56 = vadd.f32 %v7250_v55, %v1944_v48  ;;  %v2832_v31 = vsel %vm7205_vm6, %v2831_v44, %v2827_v12 }
 0x30d   :  { %v2918_v58 = vmul.f32 2.1237322e-06, %v7239_v32  ;;  %v2929_v40 = vmul.f32 3.8918573e-05, %v7239_v32  ;;  %v1533_v59 = vsub.f32 1.0, %v1532_v49  ;;  %v894_v37 = vmul.f32 %v7025_v34, %v7155_v23 }
 0x30e   :  { %v2881_v20 = vadd.f32 0.0036580483, %v2880_v25  ;;  %v1225_v14 = vmul.f32 1.442695, %v3980_v13  ;;  %v2845_v43 = vadd.f32 0.18741608, %v2844_v63  ;;  %v2893_v39 = vmul.f32 %v2892_v4, %v7161_v22 }
 0x30f   :  { %v2930_v51 = vadd.f32 0.001143296, %v2929_v40  ;;  %v2861_v1 = vsub.f32 1.0, %v2860_v57  ;;  %v1547_v48 = vmul.f32 %v7245_v9, %v7174_v52  ;;  %v2919_v7 = vadd.f32 0.00028619796, %v2918_v58 }
 0x310   :  { %v1227_v29 = vmul.f32 1.442695, %v3981_v41  ;;  %v2894_v45 = vadd.f32 0.112945676, %v2893_v39  ;;  %v931_v44 = vadd.f32 %v7057_v8, %v894_v37  ;;  %v932_v49 = vadd.f32 %v7057_v8, %v895_v6 }
 0x311   :  { %v2931_v38 = vmul.f32 %v2930_v51, %v7239_v32  ;;  %v7268_v25 = vmul.f32 %v7126_v16, %v785_v11  ;;  %v7270_v13 = vor.u32 1.1754944e-38, %v1542_v50  ;;  %v2882_v23 = vmul.f32 %v2881_v20, %v7161_v22 }
 0x312   :  { %4377 = vpow2.f32 %v1225_v14  ;;  %v1534_v37 = vmul.f32 %v7193_v30, %v1533_v59  ;;  %v2895_v6 = vmul.f32 %v2894_v45, %v7161_v22  ;;  %v952_v63 = vpack.c.bf16 %v932_v49, %v931_v44 }
 0x313   :  { %v2932_v51 = vadd.f32 0.014752088, %v2931_v38  ;;  %v2833_v11 = vmul.f32 %v2832_v31, %v7168_v19  ;;  %vm1536_vm11 = vweird.f32 %v7123_v2  ;;  %v1548_v50 = vsub.f32 1.0, %v1547_v48 }
 0x314   :  { %v2920_v57 = vmul.f32 %v2919_v7, %v7239_v32  ;;  %4379 = vpow2.f32 %v1227_v29  ;;  %v2846_v28 = vmul.f32 %v2845_v43, %v7031_v54  ;;  %v2862_v41 = vmul.f32 %v7232_v33, %v2861_v1  ;;  %3958 = vmatmul.msk.bf16.gmra.mxu0 %vm109_vm0, %v952_v63  ;;  %4049 = vmatmul.msk.bf16.gmra.mxu2 %vm109_vm0, %v952_v63 }
 0x315   :  { %v7289_v4 = vmul.f32 0.5, %v7078_v26  ;;  %v2896_v58 = vadd.f32 0.4994258, %v2895_v6  ;;  %v790_v45 = vsel %vm7277_vm10, %v7126_v16, %v7268_v25  ;;  %vm1537_vm13 = vweird.f32 %v7193_v30  ;;  %v2090_v16 = vpop.f32.mrf.mxu2 }
 0x316   :  { %v2883_v7 = vadd.f32 0.05243302, %v2882_v23  ;;  %v2933_v29 = vmul.f32 %v2932_v51, %v7239_v32  ;;  %v1535_v1 = vadd.f32 %v7193_v30, %v1534_v37  ;;  %vm1551_vm14 = vweird.f32 %v7174_v52  ;;  %vm7337_vm6 = vmor %vm1536_vm11, %vm1537_vm13 }
 0x317   :  { %v1557_v54 = vand.u32 2147483648, %v7174_v52  ;;  %v2897_v26 = vmul.f32 %v2896_v58, %v7161_v22  ;;  %v4068_v40 = vclamps-f32 %v2833_v11, 1.0  ;;  %v1549_v31 = vmul.f32 %v7245_v9, %v1548_v50 }
 0x318   :  { %v4378_v19 = vpop.eup %4377  ;;  %v2921_v59 = vadd.f32 0.0036580483, %v2920_v57  ;;  %v2934_v20 = vadd.f32 0.112945676, %v2933_v29  ;;  %v9201_v14 = vand.u32 2147483647, %v7123_v2  ;;  %v2863_v48 = vadd.f32 %v7232_v33, %v2862_v41  ;;  %v1946_v2 = vpop.f32.mrf.mxu1 }
 0x319   :  { %v2847_v39 = vadd.f32 1.1283791, %v2846_v28  ;;  %vm2865_vm1 = vweird.f32 %v7232_v33  ;;  %v7312_v38 = vadd.f32 1.0, %v2897_v26  ;;  %vm2864_vm2 = vweird.f32 %v7172_v5 }
 0x31a   :  { %vm7306_vm15 = vcmp.eq.f32.partialorder %v9201_v14, 8.507059e+37  ;;  %v4380_v44 = vpop.eup %4379  ;;  %v2870_v49 = vand.u32 2147483648, %v7172_v5  ;;  %v2884_v25 = vmul.f32 %v2883_v7, %v7161_v22  ;;  %v2935_v23 = vmul.f32 %v2934_v20, %v7239_v32  ;;  %vm7325_vm4 = vmor %vm2864_vm2, %vm2865_vm1 }
 0x31b   :  { %v2868_v12 = vand.u32 2147483647, %v7172_v5  ;;  %4381 = vrcp.f32 %v7312_v38  ;;  %v7320_v37 = vadd.f32 1.0, %v4378_v19  ;;  %v7323_v6 = vadd.f32 %v7179_v35, %v2090_v16  ;;  %v1086_v5 = vpop.f32.mrf.mxu0 }
 0x31c   :  { %v1550_v63 = vadd.f32 %v7245_v9, %v1549_v31  ;;  %vm1552_vm5 = vweird.f32 %v7245_v9  ;;  %v1555_v11 = vand.u32 2147483647, %v7174_v52  ;;  %v2922_v50 = vmul.f32 %v2921_v59, %v7239_v32 }
 0x31d   :  { %v2867_v28 = vsel %vm7325_vm4, %v7232_v33, %v2863_v48  ;;  %v1558_v41 = vor.u32 1.1754944e-38, %v1557_v54  ;;  %v2936_v58 = vadd.f32 0.4994258, %v2935_v23  ;;  %v7344_v7 = vadd.f32 1.0, %v4380_v44  ;;  %vm7354_vm8 = vmor %vm1551_vm14, %vm1552_vm5  ;;  %v9210_v44 = vld [vmem:[#allocation45_spill] sm:$0xff] }
 0x31e   :  { %v3571_v29 = vadd.f32 1.0, %v4068_v40  ;;  %v1539_v26 = vsel %vm7337_vm6, %v7193_v30, %v1535_v1  ;;  %v2871_v19 = vor.u32 1.1754944e-38, %v2870_v49  ;;  %v2885_v31 = vadd.f32 0.18741608, %v2884_v25 }
 0x31f   :  { %v2848_v59 = vmul.f32 %v2847_v39, %v7002_v15  ;;  %vm2869_vm7 = vcmp.eq.f32.partialorder %v2868_v12, 8.507059e+37  ;;  %4383 = vrcp.f32 %v7320_v37  ;;  %v7360_v54 = vmul.f32 0.70710677, %v7323_v6  ;;  %v9211_v12 = vld [vmem:[#allocation8_spill] sm:$0xff] }
 0x320   :  { %v2872_v30 = vsel %vm2869_vm7, %v2871_v19, %v2867_v28  ;;  %v1554_v1 = vsel %vm7354_vm8, %v7245_v9, %v1550_v63  ;;  %v2923_v15 = vadd.f32 0.05243302, %v2922_v50  ;;  %v7366_v40 = vadd.f32 %v6776_v36, %v1086_v5 }
 0x321   :  { %v7368_v20 = vpop.eup %4381  ;;  %v2937_v52 = vmul.f32 %v2936_v58, %v7239_v32  ;;  %v1947_v16 = vadd.f32 %v7250_v55, %v1946_v2  ;;  %4385 = vrcp.f32 %v7344_v7  ;;  %v2956_v14 = vmul.f32 %v7360_v54, %v7360_v54 }
 0x322   :  { %v1544_v39 = vsel %vm7306_vm15, %v7270_v13, %v1539_v26  ;;  %vm1556_vm9 = vcmp.eq.f32.partialorder %v1555_v11, 8.507059e+37  ;;  %v2886_v9 = vmul.f32 %v2885_v31, %v7161_v22  ;;  %v2900_v48 = vmul.f32 %v7368_v20, %v7312_v38  ;;  %v2093_v11 = vpop.f32.mrf.mxu2 }
 0x323   :  { %v7382_v49 = vmul.f32 %v790_v45, %v9210_v44  ;;  %v2873_v25 = vmul.f32 %v2872_v30, %v2848_v59  ;;  %v1559_v23 = vsel %vm1556_vm9, %v1558_v41, %v1554_v1  ;;  %v7386_v51 = vadd.f32 %v9211_v12, %v7253_v56  ;;  %v9212_v56 = vld [vmem:[#allocation9_spill] sm:$0xff]  ;;  %v1088_v31 = vpop.f32.mrf.mxu0 }
 0x324   :  { %v1572_v63 = vand.u32 2147483648, %v7320_v37  ;;  %v2924_v43 = vmul.f32 %v2923_v15, %v7239_v32  ;;  %v7390_v13 = vmin.f32 %v2956_v14, 16.0  ;;  %v3982_v22 = vmul.f32 -1.702, %v7366_v40 }
 0x325   :  { %v7393_v50 = vpop.eup %4383  ;;  %v7396_v45 = vmul.f32 %v3571_v29, %v7144_v21  ;;  %v1817_v5 = vmul.f32 %v1544_v39, %v6984_v62  ;;  %v7399_v57 = vadd.f32 1.0, %v2937_v52  ;;  %v7402_v28 = vadd.f32 %v9212_v56, %v1947_v16 }
 0x326   :  { %v1818_v41 = vmul.f32 %v1559_v23, %v7041_v47  ;;  %v2887_v58 = vadd.f32 1.1283791, %v2886_v9  ;;  %v2901_v26 = vsub.f32 1.0, %v2900_v48  ;;  %v1570_v19 = vand.u32 2147483647, %v7320_v37 }
 0x327   :  { %v7406_v2 = vpop.eup %4385  ;;  %v4069_v59 = vclamps-f32 %v2873_v25, 1.0  ;;  %v2958_v21 = vmul.f32 2.1237322e-06, %v7390_v13  ;;  %v2969_v29 = vmul.f32 3.8918573e-05, %v7390_v13  ;;  %v7411_v62 = vadd.f32 %v7179_v35, %v2093_v11 }
 0x328   :  { %v1562_v33 = vmul.f32 %v7393_v50, %v7320_v37  ;;  %v7415_v30 = vor.u32 1.1754944e-38, %v1572_v63  ;;  %v2925_v47 = vadd.f32 0.18741608, %v2924_v43  ;;  %v1229_v1 = vmul.f32 1.442695, %v3982_v22  ;;  %v1949_v22 = vpop.f32.mrf.mxu1 }
 0x329   :  { %4387 = vrcp.f32 %v7399_v57  ;;  %v2970_v15 = vadd.f32 0.001143296, %v2969_v29  ;;  %v7419_v52 = vmul.f32 0.70710677, %v7411_v62  ;;  %v7422_v16 = vadd.f32 %v6776_v36, %v1088_v31 }
 0x32a   :  { %v7425_v14 = vmul.f32 %v2887_v58, %v7094_v0  ;;  %v2902_v39 = vmul.f32 %v7368_v20, %v2901_v26  ;;  %v1577_v9 = vmul.f32 %v7406_v2, %v7344_v7  ;;  %v1585_v48 = vand.u32 2147483647, %v7344_v7 }
 0x32b   :  { %v3572_v44 = vadd.f32 1.0, %v4069_v59  ;;  %v1587_v25 = vand.u32 2147483648, %v7344_v7  ;;  %v2959_v23 = vadd.f32 0.00028619796, %v2958_v21  ;;  %v2971_v12 = vmul.f32 %v2970_v15, %v7390_v13 }
 0x32c   :  { %vm2904_vm10 = vweird.f32 %v7312_v38  ;;  %v1563_v36 = vsub.f32 1.0, %v1562_v33  ;;  %4389 = vpow2.f32 %v1229_v1  ;;  %v2996_v0 = vmul.f32 %v7419_v52, %v7419_v52 }
 0x32d   :  { %v2926_v63 = vmul.f32 %v2925_v47, %v7239_v32  ;;  %v2972_v43 = vadd.f32 0.014752088, %v2971_v12  ;;  %v3983_v11 = vmul.f32 -1.702, %v7422_v16  ;;  %v1843_v56 = vpack.c.bf16 %v1818_v41, %v1817_v5 }
 0x32e   :  { %v2903_v58 = vadd.f32 %v7368_v20, %v2902_v39  ;;  %vm2905_vm11 = vweird.f32 %v7368_v20  ;;  %v2908_v26 = vand.u32 2147483647, %v7312_v38  ;;  %vm1566_vm13 = vweird.f32 %v7320_v37 }
 0x32f   :  { %v1578_v31 = vsub.f32 1.0, %v1577_v9  ;;  %v7442_v59 = vpop.eup %4387  ;;  %v2910_v21 = vand.u32 2147483648, %v7312_v38  ;;  %v2960_v32 = vmul.f32 %v2959_v23, %v7390_v13  ;;  %v2973_v29 = vmul.f32 %v2972_v43, %v7390_v13  ;;  %1968 = vmatmul.bf16.gmra.mxu1 %v1843_v56  ;;  %vm7459_vm15 = vmor %vm2904_vm10, %vm2905_vm11  ;;  %v7464_v9 = vpop.f32.mrf.mxu3  ;;  %v9219_v56 = vld [vmem:[#allocation10_spill] sm:$0xff] }
 0x330   :  { %v1231_v33 = vmul.f32 1.442695, %v3983_v11  ;;  %v7448_v5 = vmul.f32 %v3572_v44, %v7158_v10  ;;  %v1564_v41 = vmul.f32 %v7393_v50, %v1563_v36  ;;  %vm1581_vm14 = vweird.f32 %v7344_v7 }
 0x331   :  { %v1950_v47 = vadd.f32 %v7250_v55, %v1949_v22  ;;  %v7453_v1 = vmin.f32 %v2996_v0, 16.0  ;;  %vm1567_vm1 = vweird.f32 %v7393_v50  ;;  %v2927_v10 = vadd.f32 1.1283791, %v2926_v63 }
 0x332   :  { %v2974_v39 = vadd.f32 0.112945676, %v2973_v29  ;;  %4391 = vpow2.f32 %v1231_v33  ;;  %v4390_v44 = vpop.eup %4389  ;;  %v2907_v23 = vsel %vm7459_vm15, %v7368_v20, %v2903_v58  ;;  %vm2909_vm2 = vcmp.eq.f32.partialorder %v2908_v26, 8.507059e+37  ;;  %vm7498_vm7 = vmor %vm1566_vm13, %vm1567_vm1 }
 0x333   :  { %v2940_v38 = vmul.f32 %v7442_v59, %v7399_v57  ;;  %v1579_v12 = vmul.f32 %v7406_v2, %v1578_v31  ;;  %v2911_v36 = vor.u32 1.1754944e-38, %v2910_v21  ;;  %vm7472_vm4 = vcmp.eq.f32.partialorder %v1570_v19, 8.507059e+37 }
 0x334   :  { %v1588_v63 = vor.u32 1.1754944e-38, %v1587_v25  ;;  %v2961_v43 = vadd.f32 0.0036580483, %v2960_v32  ;;  %v2975_v22 = vmul.f32 %v2974_v39, %v7390_v13  ;;  %v1565_v11 = vadd.f32 %v7393_v50, %v1564_v41 }
 0x335   :  { %vm1582_vm5 = vweird.f32 %v7406_v2  ;;  %vm7479_vm6 = vcmp.eq.f32.partialorder %v1585_v48, 8.507059e+37  ;;  %v7484_v58 = vadd.f32 %v9219_v56, %v1950_v47  ;;  %v3009_v19 = vmul.f32 3.8918573e-05, %v7453_v1 }
 0x336   :  { %v2912_v26 = vsel %vm2909_vm2, %v2911_v36, %v2907_v23  ;;  %v7488_v31 = vmul.f32 %v2927_v10, %v7203_v42  ;;  %v2976_v25 = vadd.f32 0.4994258, %v2975_v22  ;;  %v7490_v21 = vadd.f32 1.0, %v4390_v44  ;;  %vm7519_vm9 = vmor %vm1581_vm14, %vm1582_vm5 }
 0x337   :  { %v2941_v32 = vsub.f32 1.0, %v2940_v38  ;;  %v2948_v29 = vand.u32 2147483647, %v7399_v57  ;;  %v1580_v48 = vadd.f32 %v7406_v2, %v1579_v12  ;;  %v3010_v33 = vadd.f32 0.001143296, %v3009_v19  ;;  %v1951_v38 = vpop.f32.mrf.mxu1  ;;  %v3728_v22 = vpop.f32.mrf.mxu3 }
 0x338   :  { %v4392_v41 = vpop.eup %4391  ;;  %v2950_v42 = vand.u32 2147483648, %v7399_v57  ;;  %v2962_v15 = vmul.f32 %v2961_v43, %v7390_v13  ;;  %v2977_v10 = vmul.f32 %v2976_v25, %v7390_v13  ;;  %v897_v39 = vmul.f32 %v7025_v34, %v7382_v49  ;;  %v2095_v43 = vpop.f32.mrf.mxu2 }
 0x339   :  { %v2913_v44 = vmul.f32 %v2912_v26, %v7425_v14  ;;  %v1569_v23 = vsel %vm7498_vm7, %v7393_v50, %v1565_v11  ;;  %vm2944_vm8 = vweird.f32 %v7399_v57  ;;  %v3011_v37 = vmul.f32 %v3010_v33, %v7453_v1 }
 0x33a   :  { %v7513_v12 = vadd.f32 1.0, %v4392_v41  ;;  %v7523_v49 = vadd.f32 1.0, %v2977_v10  ;;  %4393 = vrcp.f32 %v7490_v21  ;;  %v2998_v50 = vmul.f32 2.1237322e-06, %v7453_v1 }
 0x33b   :  { %v896_v14 = vmul.f32 %v7025_v34, %v7147_v17  ;;  %v2942_v11 = vmul.f32 %v7442_v59, %v2941_v32  ;;  %v1584_v7 = vsel %vm7519_vm9, %v7406_v2, %v1580_v48  ;;  %v3012_v56 = vadd.f32 0.014752088, %v3011_v37 }
 0x33c   :  { %4395 = vrcp.f32 %v7513_v12  ;;  %v2963_v19 = vadd.f32 0.05243302, %v2962_v15  ;;  %v1952_v26 = vadd.f32 %v7250_v55, %v1951_v38  ;;  %v934_v25 = vadd.f32 %v7057_v8, %v897_v39 }
 0x33d   :  { %4397 = vrcp.f32 %v7523_v49  ;;  %v4070_v33 = vclamps-f32 %v2913_v44, 1.0  ;;  %v1574_v34 = vsel %vm7472_vm4, %v7415_v30, %v1569_v23  ;;  %v3013_v17 = vmul.f32 %v3012_v56, %v7453_v1  ;;  %v9226_v44 = vld [vmem:[#allocation12_spill] sm:$0xff] }
 0x33e   :  { %v7542_v32 = vadd.f32 %v7179_v35, %v2095_v43  ;;  %vm7544_vm10 = vcmp.eq.f32.partialorder %v2948_v29, 8.507059e+37  ;;  %v1589_v48 = vsel %vm7479_vm6, %v1588_v63, %v1584_v7  ;;  %v2999_v41 = vadd.f32 0.00028619796, %v2998_v50  ;;  %v7588_v43 = vld [vmem:[%s8941_s10] ss:$0 sm:$0xff] }
 0x33f   :  { %v933_v47 = vadd.f32 %v7057_v8, %v896_v14  ;;  %v2943_v15 = vadd.f32 %v7442_v59, %v2942_v11  ;;  %vm2945_vm11 = vweird.f32 %v7442_v59  ;;  %v2951_v30 = vor.u32 1.1754944e-38, %v2950_v42  ;;  %v3731_v11 = vpop.f32.mrf.mxu3 }
 0x340   :  { %v3014_v0 = vadd.f32 0.112945676, %v3013_v17  ;;  %v7553_v10 = vpop.eup %4393  ;;  %v7556_v39 = vmul.f32 %v1574_v34, %v7198_v27  ;;  %v2964_v29 = vmul.f32 %v2963_v19, %v7390_v13  ;;  %v7560_v23 = vadd.f32 %v9226_v44, %v1952_v26  ;;  %vm7575_vm13 = vmor %vm2944_vm8, %vm2945_vm11 }
 0x341   :  { %v953_v63 = vpack.c.bf16 %v934_v25, %v933_v47  ;;  %v3573_v8 = vadd.f32 1.0, %v4070_v33  ;;  %v7565_v37 = vmul.f32 %v1589_v48, %v7216_v46  ;;  %v7569_v38 = vmul.f32 0.70710677, %v7542_v32 }
 0x342   :  { %v7562_v20 = vpop.eup %4395  ;;  %v3015_v42 = vmul.f32 %v3014_v0, %v7453_v1  ;;  %v1600_v50 = vand.u32 2147483647, %v7490_v21  ;;  %v3000_v14 = vmul.f32 %v2999_v41, %v7453_v1  ;;  %v3727_v57 = vadd.f32 %v7588_v43, %v7464_v9 }
 0x343   :  { %v7571_v36 = vpop.eup %4397  ;;  %v1607_v46 = vmul.f32 %v7562_v20, %v7513_v12  ;;  %3959 = vmatmul.msk.bf16.gmra.mxu0 %vm109_vm0, %v953_v63  ;;  %4050 = vmatmul.msk.bf16.gmra.mxu2 %vm109_vm0, %v953_v63  ;;  %v2947_v7 = vsel %vm7575_vm13, %v7442_v59, %v2943_v15  ;;  %v1592_v19 = vmul.f32 %v7553_v10, %v7490_v21  ;;  %v1602_v26 = vand.u32 2147483648, %v7490_v21 }
 0x344   :  { %v2980_v56 = vmul.f32 %v7571_v36, %v7523_v49  ;;  %v2965_v25 = vadd.f32 0.18741608, %v2964_v29  ;;  %v3016_v33 = vadd.f32 0.4994258, %v3015_v42  ;;  %v3036_v34 = vmul.f32 %v7569_v38, %v7569_v38  ;;  %v1954_v29 = vpop.f32.mrf.mxu1 }
 0x345   :  { %v3836_v9 = vadd.f32 %v7386_v51, %v3727_v57  ;;  %v7604_v17 = vmul.f32 %v3573_v8, %v7289_v4  ;;  %v1608_v59 = vsub.f32 1.0, %v1607_v46  ;;  %v3729_v41 = vadd.f32 %v7588_v43, %v3728_v22 }
 0x346   :  { %v2981_v48 = vsub.f32 1.0, %v2980_v56  ;;  %v3001_v47 = vadd.f32 0.0036580483, %v3000_v14  ;;  %v3017_v15 = vmul.f32 %v3016_v33, %v7453_v1  ;;  %v7608_v0 = vmin.f32 %v3036_v34, 16.0 }
 0x347   :  { %v3870_v44 = vpack.c.bf16 %v3836_v9, %v3836_v9  ;;  %v7612_v63 = vsel %vm7544_vm10, %v2951_v30, %v2947_v7  ;;  %v1593_v42 = vsub.f32 1.0, %v1592_v19  ;;  %v7614_v51 = vor.u32 1.1754944e-38, %v1602_v26  ;;  %v3733_v7 = vpop.f32.mrf.mxu3 }
 0x348   :  { %v3837_v4 = vadd.f32 %v7402_v28, %v3729_v41  ;;  %v2966_v8 = vmul.f32 %v2965_v25, %v7390_v13  ;;  %v7618_v27 = vadd.f32 1.0, %v3017_v15  ;;  %v3038_v22 = vmul.f32 2.1237322e-06, %v7608_v0 }
 0x349   :  { %v3049_v14 = vmul.f32 3.8918573e-05, %v7608_v0  ;;  %v2982_v46 = vmul.f32 %v7571_v36, %v2981_v48  ;;  %vm1596_vm14 = vweird.f32 %v7490_v21  ;;  %v1609_v2 = vmul.f32 %v7562_v20, %v1608_v59  ;;  %3905 = vst.msk [vmem:[%s8942_s11 + $0x18] sm:$0xf] %vm3898_vm12, %v3870_v44 }
 0x34a   :  { %v3871_v28 = vpack.c.bf16 %v3837_v4, %v3837_v4  ;;  %v3631_v13 = vpack.c.bf16 %v7396_v45, %v7164_v3  ;;  %v2988_v30 = vand.u32 2147483647, %v7523_v49  ;;  %vm1597_vm15 = vweird.f32 %v7553_v10 }
 0x34b   :  { %v3002_v57 = vmul.f32 %v3001_v47, %v7453_v1  ;;  %4399 = vrcp.f32 %v7618_v27  ;;  %vm2984_vm1 = vweird.f32 %v7523_v49  ;;  %v1594_v56 = vmul.f32 %v7553_v10, %v1593_v42  ;;  %vm7687_vm9 = vmor %vm1596_vm14, %vm1597_vm15 }
 0x34c   :  { %v3039_v19 = vadd.f32 0.00028619796, %v3038_v22  ;;  %v3050_v26 = vadd.f32 0.001143296, %v3049_v14  ;;  %3906 = vst.msk [vmem:[%s8942_s11 + $0x1c] sm:$0xf] %vm3898_vm12, %v3871_v28  ;;  %4094 = vmatmul.msk.bf16.gmra.mxu3 %vm3646_vm3, %v3631_v13  ;;  %vm2985_vm2 = vweird.f32 %v7571_v36  ;;  %vm1611_vm4 = vweird.f32 %v7513_v12 }
 0x34d   :  { %v2990_v3 = vand.u32 2147483648, %v7523_v49  ;;  %vm1612_vm5 = vweird.f32 %v7562_v20  ;;  %v2983_v45 = vadd.f32 %v7571_v36, %v2982_v46  ;;  %v1610_v25 = vadd.f32 %v7562_v20, %v1609_v2  ;;  %vm7668_vm7 = vmor %vm2984_vm1, %vm2985_vm2 }
 0x34e   :  { %v3040_v33 = vmul.f32 %v3039_v19, %v7608_v0  ;;  %v3051_v34 = vmul.f32 %v3050_v26, %v7608_v0  ;;  %v1615_v9 = vand.u32 2147483647, %v7513_v12  ;;  %v1617_v48 = vand.u32 2147483648, %v7513_v12  ;;  %vm7656_vm6 = vmor %vm1611_vm4, %vm1612_vm5 }
 0x34f   :  { %v1844_v59 = vpack.c.bf16 %v7565_v37, %v7556_v39  ;;  %v3732_v41 = vadd.f32 %v7588_v43, %v3731_v11  ;;  %v1595_v47 = vadd.f32 %v7553_v10, %v1594_v56  ;;  %v1955_v42 = vadd.f32 %v7250_v55, %v1954_v29  ;;  %v1956_v11 = vpop.f32.mrf.mxu1  ;;  %v9237_v56 = vld [vmem:[#allocation14_spill] sm:$0xff] }
 0x350   :  { %v3052_v44 = vadd.f32 0.014752088, %v3051_v34  ;;  %v3734_v4 = vadd.f32 %v7588_v43, %v3733_v7  ;;  %v2967_v14 = vadd.f32 1.1283791, %v2966_v8  ;;  %vm7672_vm8 = vcmp.eq.f32.partialorder %v2988_v30, 8.507059e+37 }
 0x351   :  { %v7662_v22 = vpop.eup %4399  ;;  %v3003_v37 = vadd.f32 0.05243302, %v3002_v57  ;;  %1973 = vmatmul.bf16.gmra.mxu1 %v1844_v59  ;;  %v3838_v29 = vadd.f32 %v7484_v58, %v3732_v41  ;;  %v2987_v8 = vsel %vm7668_vm7, %v7571_v36, %v2983_v45  ;;  %v2991_v46 = vor.u32 1.1754944e-38, %v2990_v3  ;;  %v3736_v57 = vpop.f32.mrf.mxu3 }
 0x352   :  { %v1614_v49 = vsel %vm7656_vm6, %v7562_v20, %v1610_v25  ;;  %v3041_v2 = vadd.f32 0.0036580483, %v3040_v33  ;;  %v3020_v58 = vmul.f32 %v7662_v22, %v7618_v27  ;;  %v3053_v13 = vmul.f32 %v3052_v44, %v7608_v0 }
 0x353   :  { %v3872_v36 = vpack.c.bf16 %v3838_v29, %v3838_v29  ;;  %v3839_v30 = vadd.f32 %v7560_v23, %v3734_v4  ;;  %v1599_v20 = vsel %vm7687_vm9, %v7553_v10, %v1595_v47  ;;  %vm1616_vm10 = vcmp.eq.f32.partialorder %v1615_v9, 8.507059e+37 }
 0x354   :  { %v1618_v7 = vor.u32 1.1754944e-38, %v1617_v48  ;;  %v3806_v19 = vadd.f32 %v9237_v56, %v1955_v42  ;;  %v2992_v26 = vsel %vm7672_vm8, %v2991_v46, %v2987_v8  ;;  %v3054_v3 = vadd.f32 0.112945676, %v3053_v13 }
 0x355   :  { %3907 = vst.msk [vmem:[%s8942_s11 + $0x20] sm:$0xf] %vm3898_vm12, %v3872_v36  ;;  %v3873_v45 = vpack.c.bf16 %v3839_v30, %v3839_v30  ;;  %v3737_v23 = vadd.f32 %v7588_v43, %v3736_v57  ;;  %v2968_v25 = vmul.f32 %v2967_v14, %v7360_v54  ;;  %v3004_v10 = vmul.f32 %v3003_v37, %v7453_v1 }
 0x356   :  { %v1619_v33 = vsel %vm1616_vm10, %v1618_v7, %v1614_v49  ;;  %v3042_v34 = vmul.f32 %v3041_v2, %v7608_v0  ;;  %vm1601_vm11 = vcmp.eq.f32.partialorder %v1600_v50, 8.507059e+37  ;;  %v3021_v9 = vsub.f32 1.0, %v3020_v58 }
 0x357   :  { %v3055_v48 = vmul.f32 %v3054_v3, %v7608_v0  ;;  %3908 = vst.msk [vmem:[%s8942_s11 + $0x24] sm:$0xf] %vm3898_vm12, %v3873_v45  ;;  %v3840_v59 = vadd.f32 %v3806_v19, %v3737_v23  ;;  %v2993_v41 = vmul.f32 %v2992_v26, %v2968_v25  ;;  %v1604_v54 = vsel %vm1601_vm11, %v7614_v51, %v1599_v20  ;;  %v1959_v37 = vpop.f32.mrf.mxu1  ;;  %v1091_v45 = vpop.f32.mrf.mxu0 }
 0x358   :  { %v1957_v47 = vadd.f32 %v7250_v55, %v1956_v11  ;;  %v3632_v15 = vpack.c.bf16 %v7604_v17, %v7448_v5  ;;  %v2953_v21 = vmul.f32 %v7612_v63, %v7488_v31  ;;  %v1822_v50 = vmul.f32 %v1619_v33, %v7422_v16  ;;  %v9238_v17 = vld [vmem:[#allocation11_spill] sm:$0xff]  ;;  %v416_v11 = vpop.xlane.xlu2 %415 }
 0x359   :  { %v3056_v44 = vadd.f32 0.4994258, %v3055_v48  ;;  %v3874_v42 = vpack.c.bf16 %v3840_v59, %v3840_v59  ;;  %v3005_v4 = vadd.f32 0.18741608, %v3004_v10  ;;  %v3043_v14 = vadd.f32 0.05243302, %v3042_v34  ;;  %v3738_v5 = vpop.f32.mrf.mxu3  ;;  %v2098_v19 = vpop.f32.mrf.mxu2 }
 0x35a   :  { %v1821_v12 = vmul.f32 %v1604_v54, %v7366_v40  ;;  %v3022_v39 = vmul.f32 %v7662_v22, %v3021_v9  ;;  %v4072_v31 = vclamps-f32 %v2993_v41, 1.0  ;;  %v3807_v16 = vadd.f32 %v9238_v17, %v1957_v47  ;;  %v9241_v48 = vld [vmem:[#allocation13_spill] sm:$0xff] }
 0x35b   :  { %v3057_v51 = vmul.f32 %v3056_v44, %v7608_v0  ;;  %3909 = vst.msk [vmem:[%s8942_s11 + $0x28] sm:$0xf] %vm3898_vm12, %v3874_v42  ;;  %v3739_v63 = vadd.f32 %v7588_v43, %v3738_v5  ;;  %v4071_v40 = vclamps-f32 %v2953_v21, 1.0  ;;  %v454_v46 = vmul.f32 %v416_v11, %v4605_v24 }
 0x35c   :  { %4095 = vmatmul.msk.bf16.gmra.mxu3 %vm3646_vm3, %v3632_v15  ;;  %v1845_v8 = vpack.c.bf16 %v1822_v50, %v1821_v12  ;;  %v792_v49 = vmul.f32 %v7218_v61, %v7152_v53  ;;  %v3006_v2 = vmul.f32 %v3005_v4, %v7453_v1  ;;  %v3044_v28 = vmul.f32 %v3043_v14, %v7608_v0 }
 0x35d   :  { %v7733_v29 = vadd.f32 1.0, %v3057_v51  ;;  %v3841_v58 = vadd.f32 %v3807_v16, %v3739_v63  ;;  %v3023_v13 = vadd.f32 %v7662_v22, %v3022_v39  ;;  %vm3025_vm13 = vweird.f32 %v7662_v22 }
 0x35e   :  { %v3030_v36 = vand.u32 2147483648, %v7618_v27  ;;  %v3575_v30 = vadd.f32 1.0, %v4072_v31  ;;  %v1960_v57 = vadd.f32 %v7250_v55, %v1959_v37  ;;  %v7745_v7 = vadd.f32 1e-05, %v454_v46  ;;  %v9242_v46 = vld [vmem:[#allocation15_spill] sm:$0xff] }
 0x35f   :  { %4401 = vrcp.f32 %v7733_v29  ;;  %v3875_v20 = vpack.c.bf16 %v3841_v58, %v3841_v58  ;;  %v3574_v56 = vadd.f32 1.0, %v4071_v40  ;;  %vm3024_vm14 = vweird.f32 %v7618_v27  ;;  %v1961_v15 = vpop.f32.mrf.mxu1 }
 0x360   :  { %v3028_v1 = vand.u32 2147483647, %v7618_v27  ;;  %v793_v26 = vmul.f32 %v7218_v61, %v792_v49  ;;  %v2147_v3 = vmul.f32 0.5, %v7323_v6  ;;  %vm7751_vm15 = vmor %vm3024_vm14, %vm3025_vm13  ;;  %v3045_v23 = vadd.f32 0.18741608, %v3044_v28 }
 0x361   :  { %1978 = vmatmul.bf16.gmra.mxu1 %v1845_v8  ;;  %3910 = vst.msk [vmem:[%s8942_s11 + $0x2c] sm:$0xf] %vm3898_vm12, %v3875_v20  ;;  %4403 = vrsqrt.f32 %v7745_v7  ;;  %v2146_v27 = vmul.f32 0.5, %v7182_v18  ;;  %v3007_v25 = vadd.f32 1.1283791, %v3006_v2  ;;  %v3027_v10 = vsel %vm7751_vm15, %v7662_v22, %v3023_v13  ;;  %v3741_v6 = vpop.f32.mrf.mxu3 }
 0x362   :  { %v7765_v33 = vadd.f32 %v7179_v35, %v2098_v19  ;;  %v3609_v34 = vmul.f32 %v3575_v30, %v2147_v3  ;;  %v3031_v9 = vor.u32 1.1754944e-38, %v3030_v36  ;;  %v3808_v59 = vadd.f32 %v9241_v48, %v1960_v57 }
 0x363   :  { %v3742_v41 = vadd.f32 %v7588_v43, %v3741_v6  ;;  %v3608_v47 = vmul.f32 %v3574_v56, %v2146_v27  ;;  %vm3029_vm1 = vcmp.eq.f32.partialorder %v3028_v1, 8.507059e+37  ;;  %v3046_v22 = vmul.f32 %v3045_v23, %v7608_v0 }
 0x364   :  { %v7770_v18 = vmul.f32 0.70710677, %v7765_v33  ;;  %v3032_v21 = vsel %vm3029_vm1, %v3031_v9, %v3027_v10  ;;  %v794_v44 = vmul.f32 0.5, %v793_v26  ;;  %v3008_v42 = vmul.f32 %v3007_v25, %v7419_v52 }
 0x365   :  { %v4402_v54 = vpop.eup %4401  ;;  %v3842_v35 = vadd.f32 %v3808_v59, %v3742_v41  ;;  %v1962_v39 = vadd.f32 %v7250_v55, %v1961_v15  ;;  %v3633_v51 = vpack.c.bf16 %v3609_v34, %v3608_v47  ;;  %v3070_v31 = vand.u32 2147483648, %v7733_v29  ;;  %v419_v41 = vpop.xlane.xlu0 %418 }
 0x366   :  { %v3060_v50 = vmul.f32 %v4402_v54, %v7733_v29  ;;  %v3076_v4 = vmul.f32 %v7770_v18, %v7770_v18  ;;  %v3033_v5 = vmul.f32 %v3032_v21, %v3008_v42  ;;  %v3047_v17 = vadd.f32 1.1283791, %v3046_v22  ;;  %v422_v15 = vpop.xlane.xlu1 %421  ;;  %v1093_v42 = vpop.f32.mrf.mxu0 }
 0x367   :  { %v7777_v14 = vpop.eup %4403  ;;  %v3876_v37 = vpack.c.bf16 %v3842_v35, %v3842_v35  ;;  %vm3065_vm2 = vweird.f32 %v4402_v54  ;;  %v3068_v52 = vand.u32 2147483647, %v7733_v29  ;;  %v795_v63 = vsub.f32 1.5, %v794_v44 }
 0x368   :  { %v3061_v12 = vsub.f32 1.0, %v3060_v50  ;;  %v802_v0 = vmul.f32 %v7777_v14, %v7745_v7  ;;  %v7789_v40 = vmin.f32 %v3076_v4, 16.0  ;;  %vm3064_vm4 = vweird.f32 %v7733_v29  ;;  %v7838_v4 = vld [vmem:[%s8932_s1] ss:$0 sm:$0xff] }
 0x369   :  { %3911 = vst.msk [vmem:[%s8942_s11 + $0x30] sm:$0xf] %vm3898_vm12, %v3876_v37  ;;  %v3743_v55 = vpop.f32.mrf.mxu3  ;;  %v3809_v49 = vadd.f32 %v9242_v46, %v1962_v39  ;;  %vm797_vm5 = vweird.f32 %v7152_v53  ;;  %v4073_v28 = vclamps-f32 %v3033_v5, 1.0  ;;  %vm3066_vm6 = vmor %vm3064_vm4, %vm3065_vm2  ;;  %v3071_v58 = vor.u32 1.1754944e-38, %v3070_v31 }
 0x36a   :  { %v3062_v16 = vmul.f32 %v4402_v54, %v3061_v12  ;;  %v803_v11 = vmul.f32 %v7777_v14, %v802_v0  ;;  %v3744_v2 = vadd.f32 %v7588_v43, %v3743_v55  ;;  %v3048_v36 = vmul.f32 %v3047_v17, %v7569_v38  ;;  %v2100_v12 = vpop.f32.mrf.mxu2  ;;  %v7860_v17 = vld [vmem:[%s8933_s2] ss:$0 sm:$0xff] }
 0x36b   :  { %vm3069_vm7 = vcmp.eq.f32.partialorder %v3068_v52, 8.507059e+37  ;;  %vm798_vm8 = vweird.f32 %v7218_v61  ;;  %v3089_v56 = vmul.f32 3.8918573e-05, %v7789_v40  ;;  %v796_v43 = vmul.f32 %v7218_v61, %v795_v63 }
 0x36c   :  { %v3063_v8 = vadd.f32 %v4402_v54, %v3062_v16  ;;  %4096 = vmatmul.msk.bf16.gmra.mxu3 %vm3646_vm3, %v3633_v51  ;;  %v804_v13 = vmul.f32 0.5, %v803_v11  ;;  %v3843_v57 = vadd.f32 %v3809_v49, %v3744_v2  ;;  %vm7802_vm9 = vmor %vm797_vm5, %vm798_vm8  ;;  %v3576_v38 = vadd.f32 1.0, %v4073_v28  ;;  %v7847_v51 = vld [vmem:[%s8937_s8] ss:$0 sm:$0xff] }
 0x36d   :  { %vm808_vm10 = vweird.f32 %v7777_v14  ;;  %v3090_v27 = vadd.f32 0.001143296, %v3089_v56  ;;  %v2148_v25 = vmul.f32 0.5, %v7411_v62  ;;  %v2149_v53 = vmul.f32 0.5, %v7542_v32  ;;  %v7823_v62 = vld [vmem:[%s8936_s4] ss:$0 sm:$0xff] }
 0x36e   :  { %v3067_v30 = vsel %vm3066_vm6, %v4402_v54, %v3063_v8  ;;  %v805_v20 = vsub.f32 1.5, %v804_v13  ;;  %v3877_v19 = vpack.c.bf16 %v3843_v57, %v3843_v57  ;;  %v800_v6 = vsel %vm7802_vm9, %v7218_v61, %v796_v43  ;;  %v9245_v61 = vld [vmem:[#allocation27_spill] sm:$0xff] }
 0x36f   :  { %v3072_v29 = vsel %vm3069_vm7, %v3071_v58, %v3067_v30  ;;  %vm807_vm11 = vweird.f32 %v7745_v7  ;;  %v3091_v34 = vmul.f32 %v3090_v27, %v7789_v40  ;;  %v3610_v9 = vmul.f32 %v3576_v38, %v2148_v25 }
 0x370   :  { %v3073_v1 = vmul.f32 %v3072_v29, %v3048_v36  ;;  %3912 = vst.msk [vmem:[%s8942_s11 + $0x34] sm:$0xf] %vm3898_vm12, %v3877_v19  ;;  %v806_v23 = vmul.f32 %v7777_v14, %v805_v20  ;;  %vm809_vm13 = vmor %vm807_vm11, %vm808_vm10  ;;  %v7826_v32 = vadd.f32 %v7823_v62, %v1091_v45  ;;  %v861_v47 = vmul.f32 %v800_v6, %v9245_v61 }
 0x371   :  { %v3092_v54 = vadd.f32 0.014752088, %v3091_v34  ;;  %v455_v22 = vmul.f32 %v419_v41, %v4605_v24  ;;  %v456_v44 = vmul.f32 %v422_v15, %v4605_v24  ;;  %v7850_v24 = vadd.f32 %v7847_v51, %v2100_v12 }
 0x372   :  { %v4074_v3 = vclamps-f32 %v3073_v1, 1.0  ;;  %v810_v59 = vsel %vm809_vm13, %v7777_v14, %v806_v23  ;;  %v3984_v50 = vmul.f32 -1.702, %v7826_v32  ;;  %v898_v14 = vmul.f32 %v7838_v4, %v861_v47 }
 0x373   :  { %v862_v21 = vmul.f32 %v810_v59, %v6828_v60  ;;  %v3093_v35 = vmul.f32 %v3092_v54, %v7789_v40  ;;  %v7841_v60 = vadd.f32 1e-05, %v455_v22  ;;  %v7853_v31 = vadd.f32 %v7823_v62, %v1093_v42  ;;  %v1096_v59 = vpop.f32.mrf.mxu0 }
 0x374   :  { %v3577_v10 = vadd.f32 1.0, %v4074_v3  ;;  %v1233_v37 = vmul.f32 1.442695, %v3984_v50  ;;  %v7855_v0 = vadd.f32 1e-05, %v456_v44  ;;  %v935_v16 = vadd.f32 %v7860_v17, %v898_v14 }
 0x375   :  { %v899_v39 = vmul.f32 %v7838_v4, %v862_v21  ;;  %v3094_v5 = vadd.f32 0.112945676, %v3093_v35  ;;  %v7865_v63 = vmul.f32 0.70710677, %v7850_v24  ;;  %4405 = vrsqrt.f32 %v7841_v60 }
 0x376   :  { %v3611_v48 = vmul.f32 %v3577_v10, %v2149_v53  ;;  %v3078_v55 = vmul.f32 2.1237322e-06, %v7789_v40  ;;  %4407 = vpow2.f32 %v1233_v37  ;;  %v3985_v49 = vmul.f32 -1.702, %v7853_v31 }
 0x377   :  { %v936_v52 = vadd.f32 %v7860_v17, %v899_v39  ;;  %v3116_v8 = vmul.f32 %v7865_v63, %v7865_v63  ;;  %v3095_v46 = vmul.f32 %v3094_v5, %v7789_v40  ;;  %4409 = vrsqrt.f32 %v7855_v0  ;;  %v2103_v47 = vpop.f32.mrf.mxu2 }
 0x378   :  { %v3634_v7 = vpack.c.bf16 %v3611_v48, %v3610_v9  ;;  %v3079_v28 = vadd.f32 0.00028619796, %v3078_v55  ;;  %v1235_v36 = vmul.f32 1.442695, %v3985_v49  ;;  %v7905_v61 = vadd.f32 %v7823_v62, %v1096_v59 }
 0x379   :  { %v954_v11 = vpack.c.bf16 %v936_v52, %v935_v16  ;;  %v7875_v2 = vmin.f32 %v3116_v8, 16.0  ;;  %v3096_v13 = vadd.f32 0.4994258, %v3095_v46  ;;  %v7908_v15 = vadd.f32 %v7847_v51, %v2103_v47 }
 0x37a   :  { %v3080_v56 = vmul.f32 %v3079_v28, %v7789_v40  ;;  %4411 = vpow2.f32 %v1235_v36  ;;  %v3986_v12 = vmul.f32 -1.702, %v7905_v61  ;;  %vm817_vm14 = vweird.f32 %v7841_v60 }
 0x37b   :  { %3960 = vmatmul.msk.bf16.gmra.mxu0 %vm109_vm0, %v954_v11  ;;  %4051 = vmatmul.msk.bf16.gmra.mxu2 %vm109_vm0, %v954_v11  ;;  %v3129_v58 = vmul.f32 3.8918573e-05, %v7875_v2  ;;  %v7879_v30 = vpop.eup %4405  ;;  %v3097_v43 = vmul.f32 %v3096_v13, %v7789_v40  ;;  %v3118_v34 = vmul.f32 2.1237322e-06, %v7875_v2  ;;  %v7913_v42 = vmul.f32 0.70710677, %v7908_v15 }
 0x37c   :  { %4097 = vmatmul.msk.bf16.gmra.mxu3 %vm3646_vm3, %v3634_v7  ;;  %v4408_v29 = vpop.eup %4407  ;;  %v812_v19 = vmul.f32 %v7879_v30, %v7841_v60  ;;  %v3081_v3 = vadd.f32 0.0036580483, %v3080_v56  ;;  %vm818_vm15 = vweird.f32 %v7879_v30  ;;  %v1237_v28 = vmul.f32 1.442695, %v3986_v12 }
 0x37d   :  { %v3130_v57 = vadd.f32 0.001143296, %v3129_v58  ;;  %v7881_v20 = vpop.eup %4409  ;;  %v7888_v26 = vadd.f32 1.0, %v4408_v29  ;;  %v7893_v27 = vadd.f32 1.0, %v3097_v43  ;;  %v3119_v50 = vadd.f32 0.00028619796, %v3118_v34  ;;  %vm7939_vm2 = vmor %vm817_vm14, %vm818_vm15 }
 0x37e   :  { %v822_v38 = vmul.f32 %v7881_v20, %v7855_v0  ;;  %v813_v23 = vmul.f32 %v7879_v30, %v812_v19  ;;  %v3082_v6 = vmul.f32 %v3081_v3, %v7789_v40  ;;  %v3156_v16 = vmul.f32 %v7913_v42, %v7913_v42 }
 0x37f   :  { %v3131_v1 = vmul.f32 %v3130_v57, %v7875_v2  ;;  %4413 = vrcp.f32 %v7888_v26  ;;  %v3120_v55 = vmul.f32 %v3119_v50, %v7875_v2  ;;  %vm828_vm1 = vweird.f32 %v7881_v20 }
 0x380   :  { %v4412_v53 = vpop.eup %4411  ;;  %v823_v10 = vmul.f32 %v7881_v20, %v822_v38  ;;  %v814_v48 = vmul.f32 0.5, %v813_v23  ;;  %4415 = vrcp.f32 %v7893_v27  ;;  %v3083_v22 = vadd.f32 0.05243302, %v3082_v6 }
 0x381   :  { %v3132_v45 = vadd.f32 0.014752088, %v3131_v1  ;;  %v7901_v41 = vadd.f32 1.0, %v4412_v53  ;;  %v7931_v46 = vmin.f32 %v3156_v16, 16.0  ;;  %v3121_v29 = vadd.f32 0.0036580483, %v3120_v55 }
 0x382   :  { %v824_v7 = vmul.f32 0.5, %v823_v10  ;;  %v815_v44 = vsub.f32 1.5, %v814_v48  ;;  %v3084_v52 = vmul.f32 %v3083_v22, %v7789_v40  ;;  %vm827_vm4 = vweird.f32 %v7855_v0  ;;  %v9248_v53 = vld [vmem:[#allocation29_spill] sm:$0xff] }
 0x383   :  { %v3133_v25 = vmul.f32 %v3132_v45, %v7875_v2  ;;  %4417 = vrcp.f32 %v7901_v41  ;;  %v3169_v56 = vmul.f32 3.8918573e-05, %v7931_v46  ;;  %v1632_v19 = vand.u32 2147483648, %v7888_v26  ;;  %vm829_vm5 = vmor %vm827_vm4, %vm828_vm1 }
 0x384   :  { %v825_v37 = vsub.f32 1.5, %v824_v7  ;;  %v816_v8 = vmul.f32 %v7879_v30, %v815_v44  ;;  %v3085_v60 = vadd.f32 0.18741608, %v3084_v52  ;;  %v3158_v38 = vmul.f32 2.1237322e-06, %v7931_v46 }
 0x385   :  { %v3134_v9 = vadd.f32 0.112945676, %v3133_v25  ;;  %v7910_v21 = vpop.eup %4413  ;;  %v3170_v3 = vadd.f32 0.001143296, %v3169_v56  ;;  %v3122_v0 = vmul.f32 %v3121_v29, %v7875_v2  ;;  %v1630_v34 = vand.u32 2147483647, %v7888_v26 }
 0x386   :  { %v7918_v39 = vpop.eup %4415  ;;  %v1622_v5 = vmul.f32 %v7910_v21, %v7888_v26  ;;  %v826_v58 = vmul.f32 %v7881_v20, %v825_v37  ;;  %v820_v1 = vsel %vm7939_vm2, %v7879_v30, %v816_v8  ;;  %v3086_v30 = vmul.f32 %v3085_v60, %v7789_v40 }
 0x387   :  { %v3135_v54 = vmul.f32 %v3134_v9, %v7875_v2  ;;  %v3100_v49 = vmul.f32 %v7918_v39, %v7893_v27  ;;  %v863_v10 = vmul.f32 %v820_v1, %v9248_v53  ;;  %v3171_v6 = vmul.f32 %v3170_v3, %v7931_v46 }
 0x388   :  { %v1623_v13 = vsub.f32 1.0, %v1622_v5  ;;  %v830_v45 = vsel %vm829_vm5, %v7881_v20, %v826_v58  ;;  %v3110_v9 = vand.u32 2147483648, %v7893_v27  ;;  %v9249_v20 = vld [vmem:[#allocation3_spill] sm:$0xff]  ;;  %vm1626_vm6 = vweird.f32 %v7888_v26 }
 0x389   :  { %v3136_v35 = vadd.f32 0.4994258, %v3135_v54  ;;  %v7937_v36 = vpop.eup %4417  ;;  %v3101_v43 = vsub.f32 1.0, %v3100_v49  ;;  %v864_v59 = vmul.f32 %v830_v45, %v9249_v20  ;;  %v7965_v54 = vor.u32 1.1754944e-38, %v1632_v19  ;;  %v1098_v49 = vpop.f32.mrf.mxu0 }
 0x38a   :  { %v1624_v23 = vmul.f32 %v7910_v21, %v1623_v13  ;;  %v1637_v25 = vmul.f32 %v7937_v36, %v7901_v41  ;;  %v3159_v7 = vadd.f32 0.00028619796, %v3158_v38  ;;  %vm1627_vm7 = vweird.f32 %v7910_v21 }
 0x38b   :  { %v3137_v14 = vmul.f32 %v3136_v35, %v7875_v2  ;;  %v3102_v47 = vmul.f32 %v7918_v39, %v3101_v43  ;;  %v3172_v50 = vadd.f32 0.014752088, %v3171_v6  ;;  %v3087_v44 = vadd.f32 1.1283791, %v3086_v30  ;;  %v2105_v43 = vpop.f32.mrf.mxu2  ;;  %vm8011_vm13 = vmor %vm1626_vm6, %vm1627_vm7 }
 0x38c   :  { %v7969_v40 = vadd.f32 %v7910_v21, %v1624_v23  ;;  %v1638_v22 = vsub.f32 1.0, %v1637_v25  ;;  %vm3104_vm8 = vweird.f32 %v7893_v27  ;;  %v900_v12 = vmul.f32 %v7838_v4, %v863_v10 }
 0x38d   :  { %v7926_v11 = vadd.f32 1.0, %v3137_v14  ;;  %v3123_v14 = vadd.f32 0.05243302, %v3122_v0  ;;  %v3108_v37 = vand.u32 2147483647, %v7893_v27  ;;  %v3111_v5 = vor.u32 1.1754944e-38, %v3110_v9 }
 0x38e   :  { %v3173_v52 = vmul.f32 %v3172_v50, %v7931_v46  ;;  %v3103_v55 = vadd.f32 %v7918_v39, %v3102_v47  ;;  %vm3105_vm9 = vweird.f32 %v7918_v39  ;;  %v3160_v8 = vmul.f32 %v3159_v7, %v7931_v46 }
 0x38f   :  { %4419 = vrcp.f32 %v7926_v11  ;;  %v1639_v58 = vmul.f32 %v7937_v36, %v1638_v22  ;;  %v7986_v60 = vadd.f32 %v7823_v62, %v1098_v49  ;;  %v1645_v29 = vand.u32 2147483647, %v7901_v41  ;;  %vm8001_vm10 = vmor %vm3104_vm8, %vm3105_vm9 }
 0x390   :  { %4421 = vpow2.f32 %v1237_v28  ;;  %v901_v28 = vmul.f32 %v7838_v4, %v864_v59  ;;  %v3174_v57 = vadd.f32 0.112945676, %v3173_v52  ;;  %v3124_v56 = vmul.f32 %v3123_v14, %v7875_v2 }
 0x391   :  { %v937_v1 = vadd.f32 %v7860_v17, %v900_v12  ;;  %v3987_v3 = vmul.f32 -1.702, %v7986_v60  ;;  %v7995_v45 = vadd.f32 %v7847_v51, %v2105_v43  ;;  %vm1642_vm11 = vweird.f32 %v7937_v36  ;;  %v1101_v50 = vpop.f32.mrf.mxu0 }
 0x392   :  { %v938_v19 = vadd.f32 %v7860_v17, %v901_v28  ;;  %v3175_v4 = vmul.f32 %v3174_v57, %v7931_v46  ;;  %v1647_v17 = vand.u32 2147483648, %v7901_v41  ;;  %v3161_v25 = vadd.f32 0.0036580483, %v3160_v8 }
 0x393   :  { %vm8015_vm14 = vcmp.eq.f32.partialorder %v1630_v34, 8.507059e+37  ;;  %v3107_v30 = vsel %vm8001_vm10, %v7918_v39, %v3103_v55  ;;  %v1640_v0 = vadd.f32 %v7937_v36, %v1639_v58  ;;  %v1629_v26 = vsel %vm8011_vm13, %v7910_v21, %v7969_v40 }
 0x394   :  { %v955_v53 = vpack.c.bf16 %v938_v19, %v937_v1  ;;  %v3176_v6 = vadd.f32 0.4994258, %v3175_v4  ;;  %v3125_v9 = vadd.f32 0.18741608, %v3124_v56  ;;  %v1239_v20 = vmul.f32 1.442695, %v3987_v3 }
 0x395   :  { %v7961_v48 = vpop.eup %4419  ;;  %v8030_v34 = vmul.f32 0.70710677, %v7995_v45  ;;  %vm3109_vm15 = vcmp.eq.f32.partialorder %v3108_v37, 8.507059e+37  ;;  %vm1641_vm1 = vweird.f32 %v7901_v41  ;;  %v3088_v47 = vmul.f32 %v3087_v44, %v7770_v18 }
 0x396   :  { %v4422_v35 = vpop.eup %4421  ;;  %v3140_v16 = vmul.f32 %v7961_v48, %v7926_v11  ;;  %3961 = vmatmul.msk.bf16.gmra.mxu0 %vm109_vm0, %v955_v53  ;;  %4052 = vmatmul.msk.bf16.gmra.mxu2 %vm109_vm0, %v955_v53  ;;  %v3177_v59 = vmul.f32 %v3176_v6, %v7931_v46  ;;  %v3112_v7 = vsel %vm3109_vm15, %v3111_v5, %v3107_v30  ;;  %vm8039_vm2 = vmor %vm1641_vm1, %vm1642_vm11  ;;  %vm1646_vm0 = vcmp.eq.f32.partialorder %v1645_v29, 8.507059e+37 }
 0x397   :  { %v7983_v13 = vadd.f32 1.0, %v4422_v35  ;;  %v3162_v40 = vmul.f32 %v3161_v25, %v7931_v46  ;;  %v3196_v22 = vmul.f32 %v8030_v34, %v8030_v34  ;;  %v1644_v41 = vsel %vm8039_vm2, %v7937_v36, %v1640_v0  ;;  %v2108_v1 = vpop.f32.mrf.mxu2 }
 0x398   :  { %v3141_v38 = vsub.f32 1.0, %v3140_v16  ;;  %v8049_v35 = vadd.f32 1.0, %v3177_v59  ;;  %v8052_v18 = vadd.f32 %v7823_v62, %v1101_v50  ;;  %v1648_v44 = vor.u32 1.1754944e-38, %v1647_v17 }
 0x399   :  { %4423 = vrcp.f32 %v7983_v13  ;;  %v3126_v14 = vmul.f32 %v3125_v9, %v7875_v2  ;;  %v8055_v12 = vmin.f32 %v3196_v22, 16.0  ;;  %v3113_v5 = vmul.f32 %v3112_v7, %v3088_v47  ;;  %v1103_v27 = vpop.f32.mrf.mxu0 }
 0x39a   :  { %v3142_v39 = vmul.f32 %v7961_v48, %v3141_v38  ;;  %4425 = vpow2.f32 %v1239_v20  ;;  %vm3145_vm4 = vweird.f32 %v7961_v48  ;;  %v1649_v36 = vsel %vm1646_vm0, %v1648_v44, %v1644_v41 }
 0x39b   :  { %4427 = vrcp.f32 %v8049_v35  ;;  %v3148_v52 = vand.u32 2147483647, %v7926_v11  ;;  %v3150_v55 = vand.u32 2147483648, %v7926_v11  ;;  %v3163_v8 = vadd.f32 0.05243302, %v3162_v40 }
 0x39c   :  { %v3143_v16 = vadd.f32 %v7961_v48, %v3142_v39  ;;  %vm3144_vm5 = vweird.f32 %v7926_v11  ;;  %v3198_v2 = vmul.f32 2.1237322e-06, %v8055_v12  ;;  %v3209_v49 = vmul.f32 3.8918573e-05, %v8055_v12 }
 0x39d   :  { %v3988_v28 = vmul.f32 -1.702, %v8052_v18  ;;  %v1634_v58 = vsel %vm8015_vm14, %v7965_v54, %v1629_v26  ;;  %v3127_v57 = vadd.f32 1.1283791, %v3126_v14  ;;  %vm8071_vm6 = vmor %vm3144_vm5, %vm3145_vm4  ;;  %v8081_v38 = vadd.f32 %v7847_v51, %v2108_v1 }
 0x39e   :  { %v3147_v11 = vsel %vm8071_vm6, %v7961_v48, %v3143_v16  ;;  %v3210_v19 = vadd.f32 0.001143296, %v3209_v49  ;;  %v4075_v54 = vclamps-f32 %v3113_v5, 1.0  ;;  %v1824_v3 = vmul.f32 %v1649_v36, %v7853_v31  ;;  %v1964_v36 = vpop.f32.mrf.mxu1 }
 0x39f   :  { %v8057_v37 = vpop.eup %4423  ;;  %v1241_v43 = vmul.f32 1.442695, %v3988_v28  ;;  %v3151_v23 = vor.u32 1.1754944e-38, %v3150_v55  ;;  %v3164_v17 = vmul.f32 %v3163_v8, %v7931_v46  ;;  %v1823_v53 = vmul.f32 %v1634_v58, %v7826_v32 }
 0x3a0   :  { %v1652_v56 = vmul.f32 %v8057_v37, %v7983_v13  ;;  %v4426_v4 = vpop.eup %4425  ;;  %vm3149_vm7 = vcmp.eq.f32.partialorder %v3148_v52, 8.507059e+37  ;;  %v3199_v10 = vadd.f32 0.00028619796, %v3198_v2  ;;  %v3211_v48 = vmul.f32 %v3210_v19, %v8055_v12  ;;  %v8131_v19 = vld [vmem:[%s8940_s6] ss:$0 sm:$0xff] }
 0x3a1   :  { %v8085_v25 = vpop.eup %4427  ;;  %v3128_v30 = vmul.f32 %v3127_v57, %v7865_v63  ;;  %v3152_v0 = vsel %vm3149_vm7, %v3151_v23, %v3147_v11  ;;  %v8092_v31 = vadd.f32 1.0, %v4426_v4  ;;  %4429 = vpow2.f32 %v1241_v43 }
 0x3a2   :  { %v1653_v6 = vsub.f32 1.0, %v1652_v56  ;;  %v3180_v26 = vmul.f32 %v8085_v25, %v8049_v35  ;;  %v3212_v9 = vadd.f32 0.014752088, %v3211_v48  ;;  %v8095_v20 = vmul.f32 0.70710677, %v8081_v38 }
 0x3a3   :  { %v3578_v32 = vadd.f32 1.0, %v4075_v54  ;;  %v3165_v39 = vadd.f32 0.18741608, %v3164_v17  ;;  %v8098_v59 = vadd.f32 %v7823_v62, %v1103_v27  ;;  %v1846_v47 = vpack.c.bf16 %v1824_v3, %v1823_v53  ;;  %v2110_v3 = vpop.f32.mrf.mxu2 }
 0x3a4   :  { %v3153_v7 = vmul.f32 %v3152_v0, %v3128_v30  ;;  %v3200_v63 = vmul.f32 %v3199_v10, %v8055_v12  ;;  %v3213_v21 = vmul.f32 %v3212_v9, %v8055_v12  ;;  %v3236_v40 = vmul.f32 %v8095_v20, %v8095_v20 }
 0x3a5   :  { %v2150_v22 = vmul.f32 0.5, %v7765_v33  ;;  %v1654_v50 = vmul.f32 %v8057_v37, %v1653_v6  ;;  %v3181_v41 = vsub.f32 1.0, %v3180_v26  ;;  %v3989_v44 = vmul.f32 -1.702, %v8098_v59  ;;  %1983 = vmatmul.bf16.gmra.mxu1 %v1846_v47 }
 0x3a6   :  { %v1660_v14 = vand.u32 2147483647, %v7983_v13  ;;  %v1662_v5 = vand.u32 2147483648, %v7983_v13  ;;  %4431 = vrcp.f32 %v8092_v31  ;;  %v3214_v16 = vadd.f32 0.112945676, %v3213_v21 }
 0x3a7   :  { %v2151_v52 = vmul.f32 0.5, %v7850_v24  ;;  %v8112_v55 = vmul.f32 0.5, %v7908_v15  ;;  %v3166_v33 = vmul.f32 %v3165_v39, %v7931_v46  ;;  %v8115_v8 = vmin.f32 %v3236_v40, 16.0  ;;  %v4430_v2 = vpop.eup %4429 }
 0x3a8   :  { %v8117_v49 = vmul.f32 %v3578_v32, %v2150_v22  ;;  %v4076_v28 = vclamps-f32 %v3153_v7, 1.0  ;;  %v3201_v58 = vadd.f32 0.0036580483, %v3200_v63  ;;  %v3215_v57 = vmul.f32 %v3214_v16, %v8055_v12  ;;  %v1966_v63 = vpop.f32.mrf.mxu1 }
 0x3a9   :  { %v1655_v29 = vadd.f32 %v8057_v37, %v1654_v50  ;;  %vm1657_vm8 = vweird.f32 %v8057_v37  ;;  %v3182_v24 = vmul.f32 %v8085_v25, %v3181_v41  ;;  %v1243_v56 = vmul.f32 1.442695, %v3989_v44  ;;  %v9266_v50 = vld [vmem:[#allocation16_spill] sm:$0xff] }
 0x3aa   :  { %vm1656_vm9 = vweird.f32 %v7983_v13  ;;  %vm8124_vm10 = vcmp.eq.f32.partialorder %v1660_v14, 8.507059e+37  ;;  %v1663_v46 = vor.u32 1.1754944e-38, %v1662_v5  ;;  %v3216_v1 = vadd.f32 0.4994258, %v3215_v57 }
 0x3ab   :  { %v3167_v11 = vadd.f32 1.1283791, %v3166_v33  ;;  %v1965_v43 = vadd.f32 %v8131_v19, %v1964_v36  ;;  %v8134_v4 = vadd.f32 1.0, %v4430_v2  ;;  %v3238_v54 = vmul.f32 2.1237322e-06, %v8115_v8  ;;  %vm8141_vm11 = vmor %vm1656_vm9, %vm1657_vm8 }
 0x3ac   :  { %v8137_v13 = vpop.eup %4431  ;;  %v3579_v23 = vadd.f32 1.0, %v4076_v28  ;;  %v3202_v53 = vmul.f32 %v3201_v58, %v8055_v12  ;;  %v3217_v10 = vmul.f32 %v3216_v1, %v8055_v12  ;;  %v3249_v48 = vmul.f32 3.8918573e-05, %v8115_v8 }
 0x3ad   :  { %v1659_v27 = vsel %vm8141_vm11, %v8057_v37, %v1655_v29  ;;  %v3183_v30 = vadd.f32 %v8085_v25, %v3182_v24  ;;  %vm3185_vm13 = vweird.f32 %v8085_v25  ;;  %4433 = vpow2.f32 %v1243_v56 }
 0x3ae   :  { %v8153_v0 = vadd.f32 1.0, %v3217_v10  ;;  %v3239_v6 = vadd.f32 0.00028619796, %v3238_v54  ;;  %v3250_v26 = vadd.f32 0.001143296, %v3249_v48  ;;  %v8156_v9 = vadd.f32 %v7847_v51, %v2110_v3 }
 0x3af   :  { %v3190_v32 = vand.u32 2147483648, %v8049_v35  ;;  %v1667_v39 = vmul.f32 %v8137_v13, %v8092_v31  ;;  %v8162_v47 = vmul.f32 0.5, %v7995_v45  ;;  %4435 = vrcp.f32 %v8134_v4 }
 0x3b0   :  { %vm3184_vm14 = vweird.f32 %v8049_v35  ;;  %v3188_v37 = vand.u32 2147483647, %v8049_v35  ;;  %v3203_v7 = vadd.f32 0.05243302, %v3202_v53  ;;  %4437 = vrcp.f32 %v8153_v0 }
 0x3b1   :  { %v8168_v21 = vmul.f32 %v3579_v23, %v2151_v52  ;;  %v1664_v40 = vsel %vm8124_vm10, %v1663_v46, %v1659_v27  ;;  %v3168_v22 = vmul.f32 %v3167_v11, %v7913_v42  ;;  %vm8175_vm15 = vmor %vm3184_vm14, %vm3185_vm13  ;;  %v8180_v41 = vadd.f32 %v9266_v50, %v1965_v43  ;;  %v9267_v23 = vld [vmem:[#allocation17_spill] sm:$0xff] }
 0x3b2   :  { %v3187_v35 = vsel %vm8175_vm15, %v8085_v25, %v3183_v30  ;;  %v3240_v44 = vmul.f32 %v3239_v6, %v8115_v8  ;;  %v3251_v14 = vmul.f32 %v3250_v26, %v8115_v8  ;;  %v8188_v5 = vmul.f32 0.70710677, %v8156_v9 }
 0x3b3   :  { %v4434_v16 = vpop.eup %4433  ;;  %v3191_v36 = vor.u32 1.1754944e-38, %v3190_v32  ;;  %v1668_v52 = vsub.f32 1.0, %v1667_v39  ;;  %v1677_v33 = vand.u32 2147483648, %v8092_v31  ;;  %v1967_v2 = vadd.f32 %v8131_v19, %v1966_v63 }
 0x3b4   :  { %vm3189_vm1 = vcmp.eq.f32.partialorder %v3188_v37, 8.507059e+37  ;;  %v3204_v28 = vmul.f32 %v3203_v7, %v8055_v12  ;;  %v3252_v58 = vadd.f32 0.014752088, %v3251_v14  ;;  %v3276_v25 = vmul.f32 %v8188_v5, %v8188_v5 }
 0x3b5   :  { %v8195_v57 = vpop.eup %4435  ;;  %v8198_v29 = vmul.f32 %v1664_v40, %v7905_v61  ;;  %v3192_v24 = vsel %vm3189_vm1, %v3191_v36, %v3187_v35  ;;  %v8200_v56 = vadd.f32 1.0, %v4434_v16  ;;  %vm1671_vm2 = vweird.f32 %v8092_v31 }
 0x3b6   :  { %v8205_v46 = vpop.eup %4437  ;;  %v1675_v1 = vand.u32 2147483647, %v8092_v31  ;;  %v3241_v11 = vadd.f32 0.0036580483, %v3240_v44  ;;  %v3253_v43 = vmul.f32 %v3252_v58, %v8115_v8  ;;  %v1669_v54 = vmul.f32 %v8137_v13, %v1668_v52 }
 0x3b7   :  { %v8211_v3 = vor.u32 1.1754944e-38, %v1677_v33  ;;  %v3220_v61 = vmul.f32 %v8205_v46, %v8153_v0  ;;  %v8216_v17 = vadd.f32 %v9267_v23, %v1967_v2  ;;  %v3193_v53 = vmul.f32 %v3192_v24, %v3168_v22 }
 0x3b8   :  { %v3205_v10 = vadd.f32 0.18741608, %v3204_v28  ;;  %v3254_v48 = vadd.f32 0.112945676, %v3253_v43  ;;  %v8218_v27 = vmin.f32 %v3276_v25, 16.0  ;;  %v1682_v26 = vmul.f32 %v8195_v57, %v8134_v4  ;;  %v1969_v28 = vpop.f32.mrf.mxu1 }
 0x3b9   :  { %v3221_v6 = vsub.f32 1.0, %v3220_v61  ;;  %4439 = vrcp.f32 %v8200_v56  ;;  %vm1672_vm0 = vweird.f32 %v8137_v13  ;;  %v1690_v37 = vand.u32 2147483647, %v8134_v4 }
 0x3ba   :  { %v3242_v7 = vmul.f32 %v3241_v11, %v8115_v8  ;;  %v3255_v63 = vmul.f32 %v3254_v48, %v8115_v8  ;;  %vm8230_vm4 = vcmp.eq.f32.partialorder %v1675_v1, 8.507059e+37  ;;  %v3278_v45 = vmul.f32 2.1237322e-06, %v8218_v27  ;;  %vm8250_vm5 = vmor %vm1671_vm2, %vm1672_vm0 }
 0x3bb   :  { %v3222_v22 = vmul.f32 %v8205_v46, %v3221_v6  ;;  %v3289_v50 = vmul.f32 3.8918573e-05, %v8218_v27  ;;  %v1670_v44 = vadd.f32 %v8137_v13, %v1669_v54  ;;  %v1692_v14 = vand.u32 2147483648, %v8134_v4 }
 0x3bc   :  { %v4077_v36 = vclamps-f32 %v3193_v53, 1.0  ;;  %v3206_v52 = vmul.f32 %v3205_v10, %v8055_v12  ;;  %v1683_v33 = vsub.f32 1.0, %v1682_v26  ;;  %v3279_v2 = vadd.f32 0.00028619796, %v3278_v45 }
 0x3bd   :  { %v3243_v58 = vadd.f32 0.05243302, %v3242_v7  ;;  %v3290_v24 = vadd.f32 0.001143296, %v3289_v50  ;;  %v3223_v12 = vadd.f32 %v8205_v46, %v3222_v22  ;;  %vm3225_vm6 = vweird.f32 %v8205_v46 }
 0x3be   :  { %vm1686_vm7 = vweird.f32 %v8134_v4  ;;  %v3280_v43 = vmul.f32 %v3279_v2, %v8218_v27  ;;  %v1674_v61 = vsel %vm8250_vm5, %v8137_v13, %v1670_v44  ;;  %v3230_v31 = vand.u32 2147483648, %v8153_v0 }
 0x3bf   :  { %v8244_v1 = vpop.eup %4439  ;;  %v3291_v53 = vmul.f32 %v3290_v24, %v8218_v27  ;;  %vm3224_vm8 = vweird.f32 %v8153_v0  ;;  %v3228_v10 = vand.u32 2147483647, %v8153_v0  ;;  %v1684_v48 = vmul.f32 %v8195_v57, %v1683_v33 }
 0x3c0   :  { %v1106_v42 = vpop.f32.mrf.mxu0  ;;  %v3207_v6 = vadd.f32 1.1283791, %v3206_v52  ;;  %vm8273_vm9 = vmor %vm3224_vm8, %vm3225_vm6  ;;  %v3244_v13 = vmul.f32 %v3243_v58, %v8115_v8  ;;  %v3580_v7 = vadd.f32 1.0, %v4077_v36  ;;  %vm8284_vm10 = vcmp.eq.f32.partialorder %v1690_v37, 8.507059e+37  ;;  %v8303_v11 = vpop.f32.mrf.mxu1 }
 0x3c1   :  { %v8203_v15 = vadd.f32 %v7823_v62, %v1106_v42  ;;  %v3256_v42 = vadd.f32 0.4994258, %v3255_v63  ;;  %v3227_v0 = vsel %vm8273_vm9, %v8205_v46, %v3223_v12  ;;  %v3281_v22 = vadd.f32 0.0036580483, %v3280_v43 }
 0x3c2   :  { %v3292_v45 = vadd.f32 0.014752088, %v3291_v53  ;;  %v1970_v36 = vadd.f32 %v8131_v19, %v1969_v28  ;;  %vm3229_vm11 = vcmp.eq.f32.partialorder %v3228_v10, 8.507059e+37  ;;  %v1685_v46 = vadd.f32 %v8195_v57, %v1684_v48  ;;  %v9278_v53 = vld [vmem:[#allocation18_spill] sm:$0xff] }
 0x3c3   :  { %v3990_v32 = vmul.f32 -1.702, %v8203_v15  ;;  %v3257_v25 = vmul.f32 %v3256_v42, %v8115_v8  ;;  %v1679_v42 = vsel %vm8230_vm4, %v8211_v3, %v1674_v61  ;;  %vm1687_vm13 = vweird.f32 %v8195_v57 }
 0x3c4   :  { %v3293_v37 = vmul.f32 %v3292_v45, %v8218_v27  ;;  %v1693_v2 = vor.u32 1.1754944e-38, %v1692_v14  ;;  %v3245_v58 = vadd.f32 0.18741608, %v3244_v13  ;;  %v3282_v24 = vmul.f32 %v3281_v22, %v8218_v27  ;;  %vm8316_vm14 = vmor %vm1686_vm7, %vm1687_vm13 }
 0x3c5   :  { %v1245_v16 = vmul.f32 1.442695, %v3990_v32  ;;  %v8265_v23 = vadd.f32 1.0, %v3257_v25  ;;  %v1697_v32 = vmul.f32 %v8244_v1, %v8200_v56  ;;  %v8308_v43 = vmul.f32 %v3580_v7, %v8112_v55 }
 0x3c6   :  { %v2113_v30 = vpop.f32.mrf.mxu2  ;;  %v3294_v40 = vadd.f32 0.112945676, %v3293_v37  ;;  %v1826_v61 = vmul.f32 %v1679_v42, %v7986_v60  ;;  %v3208_v14 = vmul.f32 %v3207_v6, %v8030_v34  ;;  %v8321_v10 = vadd.f32 %v9278_v53, %v1970_v36 }
 0x3c7   :  { %v8238_v35 = vadd.f32 %v7847_v51, %v2113_v30  ;;  %4441 = vpow2.f32 %v1245_v16  ;;  %v3231_v16 = vor.u32 1.1754944e-38, %v3230_v31  ;;  %v1698_v25 = vsub.f32 1.0, %v1697_v32 }
 0x3c8   :  { %4443 = vrcp.f32 %v8265_v23  ;;  %v1689_v55 = vsel %vm8316_vm14, %v8195_v57, %v1685_v46  ;;  %vm1701_vm15 = vweird.f32 %v8200_v56  ;;  %v1705_v60 = vand.u32 2147483647, %v8200_v56  ;;  %v1108_v48 = vpop.f32.mrf.mxu0 }
 0x3c9   :  { %v8259_v54 = vmul.f32 0.70710677, %v8238_v35  ;;  %v3232_v33 = vsel %vm3229_vm11, %v3231_v16, %v3227_v0  ;;  %v1707_v34 = vand.u32 2147483648, %v8200_v56  ;;  %v3246_v4 = vmul.f32 %v3245_v58, %v8115_v8 }
 0x3ca   :  { %v3295_v26 = vmul.f32 %v3294_v40, %v8218_v27  ;;  %v1699_v32 = vmul.f32 %v8244_v1, %v1698_v25  ;;  %v3283_v7 = vadd.f32 0.05243302, %v3282_v24  ;;  %v1694_v0 = vsel %vm8284_vm10, %v1693_v2, %v1689_v55 }
 0x3cb   :  { %v3316_v30 = vmul.f32 %v8259_v54, %v8259_v54  ;;  %v8338_v45 = vadd.f32 %v7823_v62, %v1108_v48  ;;  %v1847_v8 = vpack.c.bf16 %v1826_v61, %v8198_v29  ;;  %vm1702_vm1 = vweird.f32 %v8244_v1 }
 0x3cc   :  { %v3296_v22 = vadd.f32 0.4994258, %v3295_v26  ;;  %v3247_v46 = vadd.f32 1.1283791, %v3246_v4  ;;  %vm8349_vm2 = vcmp.eq.f32.partialorder %v1705_v60, 8.507059e+37  ;;  %v1700_v58 = vadd.f32 %v8244_v1, %v1699_v32  ;;  %vm8380_vm4 = vmor %vm1701_vm15, %vm1702_vm1 }
 0x3cd   :  { %v4442_v44 = vpop.eup %4441  ;;  %v8294_v52 = vmin.f32 %v3316_v30, 16.0  ;;  %v3233_v30 = vmul.f32 %v3232_v33, %v3208_v14  ;;  %v3991_v29 = vmul.f32 -1.702, %v8338_v45  ;;  %1988 = vmatmul.bf16.gmra.mxu1 %v1847_v8  ;;  %v3268_v2 = vand.u32 2147483647, %v8265_v23 }
 0x3ce   :  { %v8300_v3 = vadd.f32 1.0, %v4442_v44  ;;  %v8305_v12 = vpop.eup %4443  ;;  %v2115_v13 = vpop.f32.mrf.mxu2  ;;  %v3297_v62 = vmul.f32 %v3296_v22, %v8218_v27  ;;  %v1708_v25 = vor.u32 1.1754944e-38, %v1707_v34  ;;  %v8363_v14 = vmul.f32 %v1694_v0, %v8052_v18 }
 0x3cf   :  { %v8224_v39 = vpop.f32.mrf.mxu3  ;;  %v3329_v28 = vmul.f32 3.8918573e-05, %v8294_v52  ;;  %v3260_v6 = vmul.f32 %v8305_v12, %v8265_v23  ;;  %v3318_v44 = vmul.f32 2.1237322e-06, %v8294_v52  ;;  %v8345_v16 = vadd.f32 %v7847_v51, %v2115_v13  ;;  %v8369_v60 = vpop.f32.mrf.mxu1 }
 0x3d0   :  { %4445 = vrcp.f32 %v8300_v3  ;;  %v4078_v33 = vclamps-f32 %v3233_v30, 1.0  ;;  %v3284_v51 = vmul.f32 %v3283_v7, %v8218_v27  ;;  %v8358_v24 = vadd.f32 1.0, %v3297_v62 }
 0x3d1   :  { %v3330_v57 = vadd.f32 0.001143296, %v3329_v28  ;;  %v3261_v63 = vsub.f32 1.0, %v3260_v6  ;;  %v1247_v28 = vmul.f32 1.442695, %v3991_v29  ;;  %v3270_v31 = vand.u32 2147483648, %v8265_v23 }
 0x3d2   :  { %v3319_v53 = vadd.f32 0.00028619796, %v3318_v44  ;;  %v8367_v55 = vmul.f32 0.70710677, %v8345_v16  ;;  %v8372_v48 = vmul.f32 %v3247_v46, %v8095_v20  ;;  %vm3264_vm0 = vweird.f32 %v8265_v23  ;;  %v8391_v6 = vld [vmem:[%s8941_s10] ss:$0 sm:$0xff] }
 0x3d3   :  { %v3331_v42 = vmul.f32 %v3330_v57, %v8294_v52  ;;  %v3262_v34 = vmul.f32 %v8305_v12, %v3261_v63  ;;  %4447 = vrcp.f32 %v8358_v24  ;;  %v3581_v30 = vadd.f32 1.0, %v4078_v33 }
 0x3d4   :  { %v1704_v20 = vsel %vm8380_vm4, %v8244_v1, %v1700_v58  ;;  %v3285_v4 = vadd.f32 0.18741608, %v3284_v51  ;;  %v3747_v56 = vadd.f32 %v8391_v6, %v8224_v39  ;;  %4449 = vpow2.f32 %v1247_v28 }
 0x3d5   :  { %v3332_v40 = vadd.f32 0.014752088, %v3331_v42  ;;  %v3356_v32 = vmul.f32 %v8367_v55, %v8367_v55  ;;  %vm8400_vm5 = vcmp.eq.f32.partialorder %v3268_v2, 8.507059e+37  ;;  %v3271_v7 = vor.u32 1.1754944e-38, %v3270_v31 }
 0x3d6   :  { %v8360_v61 = vpop.eup %4445  ;;  %v3320_v57 = vmul.f32 %v3319_v53, %v8294_v52  ;;  %v1972_v0 = vadd.f32 %v8131_v19, %v8303_v11  ;;  %v3263_v22 = vadd.f32 %v8305_v12, %v3262_v34  ;;  %vm3265_vm6 = vweird.f32 %v8305_v12 }
 0x3d7   :  { %v8288_v50 = vpop.f32.mrf.mxu3  ;;  %v1712_v26 = vmul.f32 %v8360_v61, %v8300_v3  ;;  %v3333_v13 = vmul.f32 %v3332_v40, %v8294_v52  ;;  %v8411_v44 = vmin.f32 %v3356_v32, 16.0  ;;  %v8414_v42 = vmul.f32 %v3581_v30, %v8162_v47  ;;  %vm8427_vm7 = vmor %vm3264_vm0, %vm3265_vm6 }
 0x3d8   :  { %v1709_v46 = vsel %vm8349_vm2, %v1708_v25, %v1704_v20  ;;  %v3286_v63 = vmul.f32 %v3285_v4, %v8218_v27  ;;  %v3844_v62 = vadd.f32 %v8180_v41, %v3747_v56  ;;  %v1720_v41 = vand.u32 2147483647, %v8300_v3  ;;  %v8442_v20 = vpop.f32.mrf.mxu1 }
 0x3d9   :  { %v3334_v8 = vadd.f32 0.112945676, %v3333_v13  ;;  %v8420_v11 = vpop.eup %4447  ;;  %v1713_v29 = vsub.f32 1.0, %v1712_v26  ;;  %v3358_v2 = vmul.f32 2.1237322e-06, %v8411_v44  ;;  %v1722_v37 = vand.u32 2147483648, %v8300_v3 }
 0x3da   :  { %v3369_v58 = vmul.f32 3.8918573e-05, %v8411_v44  ;;  %v3300_v27 = vmul.f32 %v8420_v11, %v8358_v24  ;;  %v3321_v51 = vadd.f32 0.0036580483, %v3320_v57  ;;  %v4450_v25 = vpop.eup %4449  ;;  %v3267_v40 = vsel %vm8427_vm7, %v8305_v12, %v3263_v22 }
 0x3db   :  { %v3335_v33 = vmul.f32 %v3334_v8, %v8294_v52  ;;  %v3359_v31 = vadd.f32 0.00028619796, %v3358_v2  ;;  %v8438_v34 = vadd.f32 1.0, %v4450_v25  ;;  %v3878_v18 = vpack.c.bf16 %v3844_v62, %v3844_v62  ;;  %v9289_v8 = vld [vmem:[#allocation20_spill] sm:$0xff] }
 0x3dc   :  { %v3370_v23 = vadd.f32 0.001143296, %v3369_v58  ;;  %v3301_v53 = vsub.f32 1.0, %v3300_v27  ;;  %v3749_v30 = vadd.f32 %v8391_v6, %v8288_v50  ;;  %v3287_v4 = vadd.f32 1.1283791, %v3286_v63 }
 0x3dd   :  { %v3336_v28 = vadd.f32 0.4994258, %v3335_v33  ;;  %v1714_v56 = vmul.f32 %v8360_v61, %v1713_v29  ;;  %v1828_v12 = vmul.f32 %v1709_v46, %v8098_v59  ;;  %vm1716_vm8 = vweird.f32 %v8300_v3  ;;  %3913 = vst.msk [vmem:[%s8942_s11 + $0x38] sm:$0xf] %vm3898_vm12, %v3878_v18 }
 0x3de   :  { %v3371_v13 = vmul.f32 %v3370_v23, %v8411_v44  ;;  %v1723_v32 = vor.u32 1.1754944e-38, %v1722_v37  ;;  %4451 = vrcp.f32 %v8438_v34  ;;  %v3272_v57 = vsel %vm8400_vm5, %v3271_v7, %v3267_v40 }
 0x3df   :  { %v8347_v36 = vpop.f32.mrf.mxu3  ;;  %v3337_v26 = vmul.f32 %v3336_v28, %v8294_v52  ;;  %vm8458_vm9 = vcmp.eq.f32.partialorder %v1720_v41, 8.507059e+37  ;;  %v3322_v59 = vmul.f32 %v3321_v51, %v8294_v52  ;;  %v3813_v46 = vadd.f32 %v9289_v8, %v1972_v0 }
 0x3e0   :  { %v3360_v63 = vmul.f32 %v3359_v31, %v8411_v44  ;;  %v3302_v62 = vmul.f32 %v8420_v11, %v3301_v53  ;;  %v3372_v33 = vadd.f32 0.014752088, %v3371_v13  ;;  %v3845_v2 = vadd.f32 %v8216_v17, %v3749_v30 }
 0x3e1   :  { %v8466_v29 = vadd.f32 1.0, %v3337_v26  ;;  %v8470_v1 = vmul.f32 %v3287_v4, %v8188_v5  ;;  %v3308_v7 = vand.u32 2147483647, %v8358_v24  ;;  %v1715_v58 = vadd.f32 %v8360_v61, %v1714_v56 }
 0x3e2   :  { %vm1717_vm10 = vweird.f32 %v8360_v61  ;;  %v8476_v0 = vmul.f32 %v3272_v57, %v8372_v48  ;;  %vm3304_vm11 = vweird.f32 %v8358_v24  ;;  %v3310_v47 = vand.u32 2147483648, %v8358_v24 }
 0x3e3   :  { %v3373_v27 = vmul.f32 %v3372_v33, %v8411_v44  ;;  %vm3305_vm13 = vweird.f32 %v8420_v11  ;;  %v3323_v17 = vadd.f32 0.05243302, %v3322_v59  ;;  %v3361_v5 = vadd.f32 0.0036580483, %v3360_v63  ;;  %vm8485_vm14 = vmor %vm1716_vm8, %vm1717_vm10 }
 0x3e4   :  { %v3879_v41 = vpack.c.bf16 %v3845_v2, %v3845_v2  ;;  %v4452_v37 = vpop.eup %4451  ;;  %v3303_v51 = vadd.f32 %v8420_v11, %v3302_v62  ;;  %4453 = vrcp.f32 %v8466_v29  ;;  %v3635_v40 = vpack.c.bf16 %v8168_v21, %v8117_v49  ;;  %vm8514_vm1 = vmor %vm3304_vm11, %vm3305_vm13 }
 0x3e5   :  { %v3374_v48 = vadd.f32 0.112945676, %v3373_v27  ;;  %vm8492_vm15 = vcmp.eq.f32.partialorder %v3308_v7, 8.507059e+37  ;;  %v1719_v31 = vsel %vm8485_vm14, %v8360_v61, %v1715_v58  ;;  %v1727_v3 = vmul.f32 %v4452_v37, %v8438_v34  ;;  %v1979_v61 = vpop.f32.mrf.mxu1 }
 0x3e6   :  { %3914 = vst.msk [vmem:[%s8942_s11 + $0x3c] sm:$0xf] %vm3898_vm12, %v3879_v41  ;;  %v1848_v23 = vpack.c.bf16 %v1828_v12, %v8363_v14  ;;  %v3311_v53 = vor.u32 1.1754944e-38, %v3310_v47  ;;  %v1735_v49 = vand.u32 2147483647, %v8438_v34  ;;  %4098 = vmatmul.msk.bf16.gmra.mxu3 %vm3646_vm3, %v3635_v40  ;;  %v3752_v18 = vadd.f32 %v8391_v6, %v8347_v36 }
 0x3e7   :  { %v8407_v39 = vpop.f32.mrf.mxu3  ;;  %v3375_v21 = vmul.f32 %v3374_v48, %v8411_v44  ;;  %v3324_v14 = vmul.f32 %v3323_v17, %v8294_v52  ;;  %v1728_v56 = vsub.f32 1.0, %v1727_v3  ;;  %v1737_v26 = vand.u32 2147483648, %v8438_v34 }
 0x3e8   :  { %1993 = vmatmul.bf16.gmra.mxu1 %v1848_v23  ;;  %v3754_v13 = vadd.f32 %v8391_v6, %v8407_v39  ;;  %v3307_v36 = vsel %vm8514_vm1, %v8420_v11, %v3303_v51  ;;  %v1724_v24 = vsel %vm8458_vm9, %v1723_v32, %v1719_v31  ;;  %v3362_v12 = vmul.f32 %v3361_v5, %v8411_v44  ;;  %v9298_v5 = vld [vmem:[#allocation22_spill] sm:$0xff]  ;;  %v9299_v51 = vld [vmem:[#allocation19_spill] sm:$0xff] }
 0x3e9   :  { %v1975_v57 = vadd.f32 %v8131_v19, %v8369_v60  ;;  %v1729_v59 = vmul.f32 %v4452_v37, %v1728_v56  ;;  %vm1732_vm2 = vweird.f32 %v4452_v37  ;;  %v3376_v8 = vadd.f32 0.4994258, %v3375_v21 }
 0x3ea   :  { %v3846_v63 = vadd.f32 %v8321_v10, %v3752_v18  ;;  %v8531_v62 = vpop.eup %4453  ;;  %vm1731_vm0 = vweird.f32 %v8438_v34  ;;  %vm8534_vm4 = vcmp.eq.f32.partialorder %v1735_v49, 8.507059e+37  ;;  %v1977_v11 = vadd.f32 %v8131_v19, %v8442_v20  ;;  %v9300_v18 = vld [vmem:[#allocation21_spill] sm:$0xff] }
 0x3eb   :  { %v3847_v32 = vadd.f32 %v3813_v46, %v3754_v13  ;;  %v1730_v22 = vadd.f32 %v4452_v37, %v1729_v59  ;;  %v1738_v33 = vor.u32 1.1754944e-38, %v1737_v26  ;;  %v3377_v60 = vmul.f32 %v3376_v8, %v8411_v44  ;;  %vm1733_vm5 = vmor %vm1731_vm0, %vm1732_vm2 }
 0x3ec   :  { %v3880_v2 = vpack.c.bf16 %v3846_v63, %v3846_v63  ;;  %v3312_v10 = vsel %vm8492_vm15, %v3311_v53, %v3307_v36  ;;  %v3363_v7 = vadd.f32 0.05243302, %v3362_v12  ;;  %v1980_v34 = vadd.f32 %v8131_v19, %v1979_v61  ;;  %v9301_v63 = vld [vmem:[#allocation23_spill] sm:$0xff] }
 0x3ed   :  { %v3881_v58 = vpack.c.bf16 %v3847_v32, %v3847_v32  ;;  %v3340_v47 = vmul.f32 %v8531_v62, %v8466_v29  ;;  %v1734_v27 = vsel %vm1733_vm5, %v4452_v37, %v1730_v22  ;;  %v8546_v17 = vadd.f32 1.0, %v3377_v60  ;;  %v1981_v3 = vpop.f32.mrf.mxu1 }
 0x3ee   :  { %3915 = vst.msk [vmem:[%s8942_s11 + $0x40] sm:$0xf] %vm3898_vm12, %v3880_v2  ;;  %v1739_v46 = vsel %vm8534_vm4, %v1738_v33, %v1734_v27  ;;  %v3814_v41 = vadd.f32 %v9298_v5, %v1975_v57  ;;  %v3815_v25 = vadd.f32 %v9299_v51, %v1977_v11  ;;  %v3636_v40 = vpack.c.bf16 %v8414_v42, %v8308_v43  ;;  %v8606_v2 = vld [vmem:[%s8937_s8] ss:$0 sm:$0xff] }
 0x3ef   :  { %v8454_v50 = vpop.f32.mrf.mxu3  ;;  %3916 = vst.msk [vmem:[%s8942_s11 + $0x44] sm:$0xf] %vm3898_vm12, %v3881_v58  ;;  %4455 = vrcp.f32 %v8546_v17  ;;  %v3313_v28 = vmul.f32 %v3312_v10, %v8470_v1  ;;  %v3364_v31 = vmul.f32 %v3363_v7, %v8411_v44  ;;  %v1829_v49 = vmul.f32 %v1724_v24, %v8203_v15 }
 0x3f0   :  { %v3757_v20 = vadd.f32 %v8391_v6, %v8454_v50  ;;  %v1830_v50 = vmul.f32 %v1739_v46, %v8338_v45  ;;  %v3341_v21 = vsub.f32 1.0, %v3340_v47  ;;  %v3816_v61 = vadd.f32 %v9300_v18, %v1980_v34 }
 0x3f1   :  { %v4079_v43 = vclamps-f32 %v8476_v0, 1.0  ;;  %v3325_v42 = vadd.f32 0.18741608, %v3324_v14  ;;  %v1982_v56 = vadd.f32 %v8131_v19, %v1981_v3  ;;  %v4080_v13 = vclamps-f32 %v3313_v28, 1.0 }
 0x3f2   :  { %v3848_v23 = vadd.f32 %v3814_v41, %v3757_v20  ;;  %v1849_v1 = vpack.c.bf16 %v1830_v50, %v1829_v49  ;;  %v3365_v36 = vadd.f32 0.18741608, %v3364_v31  ;;  %v3342_v24 = vmul.f32 %v8531_v62, %v3341_v21 }
 0x3f3   :  { %v3582_v14 = vadd.f32 1.0, %v4079_v43  ;;  %v2155_v19 = vmul.f32 0.5, %v8156_v9  ;;  %v3326_v12 = vmul.f32 %v3325_v42, %v8294_v52  ;;  %vm3344_vm6 = vweird.f32 %v8466_v29  ;;  %v8597_v52 = vld [vmem:[%s8936_s4] ss:$0 sm:$0xff] }
 0x3f4   :  { %v3882_v45 = vpack.c.bf16 %v3848_v23, %v3848_v23  ;;  %v3817_v39 = vadd.f32 %v9301_v63, %v1982_v56  ;;  %v3583_v22 = vadd.f32 1.0, %v4080_v13  ;;  %v3366_v33 = vmul.f32 %v3365_v36, %v8411_v44 }
 0x3f5   :  { %v4456_v15 = vpop.eup %4455  ;;  %v3343_v7 = vadd.f32 %v8531_v62, %v3342_v24  ;;  %vm3345_vm7 = vweird.f32 %v8531_v62  ;;  %v3390_v34 = vand.u32 2147483648, %v8546_v17  ;;  %v3388_v44 = vand.u32 2147483647, %v8546_v17 }
 0x3f6   :  { %3917 = vst.msk [vmem:[%s8942_s11 + $0x48] sm:$0xf] %vm3898_vm12, %v3882_v45  ;;  %v3380_v57 = vmul.f32 %v4456_v15, %v8546_v17  ;;  %4099 = vmatmul.msk.bf16.gmra.mxu3 %vm3646_vm3, %v3636_v40  ;;  %vm3385_vm8 = vweird.f32 %v4456_v15  ;;  %v3348_v20 = vand.u32 2147483647, %v8466_v29  ;;  %v3350_v46 = vand.u32 2147483648, %v8466_v29  ;;  %vm8623_vm9 = vmor %vm3344_vm6, %vm3345_vm7 }
 0x3f7   :  { %v3758_v30 = vpop.f32.mrf.mxu3  ;;  %vm3384_vm10 = vweird.f32 %v8546_v17  ;;  %v2154_v40 = vmul.f32 0.5, %v8081_v38  ;;  %v3617_v50 = vmul.f32 %v3583_v22, %v2155_v19  ;;  %v3327_v28 = vadd.f32 1.1283791, %v3326_v12 }
 0x3f8   :  { %v3759_v37 = vadd.f32 %v8391_v6, %v3758_v30  ;;  %v1111_v8 = vpop.f32.mrf.mxu0  ;;  %1998 = vmatmul.bf16.gmra.mxu1 %v1849_v1  ;;  %v3381_v60 = vsub.f32 1.0, %v3380_v57  ;;  %vm3386_vm11 = vmor %vm3384_vm10, %vm3385_vm8  ;;  %v3391_v31 = vor.u32 1.1754944e-38, %v3390_v34  ;;  %v3347_v29 = vsel %vm8623_vm9, %v8531_v62, %v3343_v7 }
 0x3f9   :  { %v8600_v11 = vadd.f32 %v8597_v52, %v1111_v8  ;;  %vm3389_vm13 = vcmp.eq.f32.partialorder %v3388_v44, 8.507059e+37  ;;  %v3351_v23 = vor.u32 1.1754944e-38, %v3350_v46  ;;  %v3616_v49 = vmul.f32 %v3582_v14, %v2154_v40 }
 0x3fa   :  { %v3849_v53 = vadd.f32 %v3815_v25, %v3759_v37  ;;  %v3382_v47 = vmul.f32 %v4456_v15, %v3381_v60  ;;  %v3367_v25 = vadd.f32 1.1283791, %v3366_v33  ;;  %vm3349_vm14 = vcmp.eq.f32.partialorder %v3348_v20, 8.507059e+37 }
 0x3fb   :  { %v3992_v41 = vmul.f32 -1.702, %v8600_v11  ;;  %v3328_v43 = vmul.f32 %v3327_v28, %v8259_v54  ;;  %v2157_v14 = vmul.f32 0.5, %v8345_v16  ;;  %v2156_v8 = vmul.f32 0.5, %v8238_v35 }
 0x3fc   :  { %v3883_v4 = vpack.c.bf16 %v3849_v53, %v3849_v53  ;;  %v3383_v37 = vadd.f32 %v4456_v15, %v3382_v47  ;;  %v3368_v21 = vmul.f32 %v3367_v25, %v8367_v55 }
 0x3fd   :  { %v1249_v53 = vmul.f32 1.442695, %v3992_v41 }
 0x3fe   :  { %3918 = vst.msk [vmem:[%s8942_s11 + $0x4c] sm:$0xf] %vm3898_vm12, %v3883_v4  ;;  %v2118_v32 = vpop.f32.mrf.mxu2  ;;  %v3387_v17 = vsel %vm3386_vm11, %v4456_v15, %v3383_v37 }
 0x3ff   :  { %v3761_v48 = vpop.f32.mrf.mxu3  ;;  %v8609_v10 = vadd.f32 %v8606_v2, %v2118_v32  ;;  %v3392_v38 = vsel %vm3389_vm13, %v3391_v31, %v3387_v17  ;;  %4457 = vpow2.f32 %v1249_v53 }
 0x400   :  { %v3762_v30 = vadd.f32 %v8391_v6, %v3761_v48  ;;  %v3393_v42 = vmul.f32 %v3392_v38, %v3368_v21  ;;  %v1113_v57 = vpop.f32.mrf.mxu0 }
 0x401   :  { %v8616_v27 = vmul.f32 0.70710677, %v8609_v10 }
 0x402   :  { %v3850_v26 = vadd.f32 %v3816_v61, %v3762_v30  ;;  %v3352_v61 = vsel %vm3349_vm14, %v3351_v23, %v3347_v29  ;;  %v3637_v30 = vpack.c.bf16 %v3617_v50, %v3616_v49  ;;  %v4082_v1 = vclamps-f32 %v3393_v42, 1.0 }
 0x403   :  { %v3396_v48 = vmul.f32 %v8616_v27, %v8616_v27  ;;  %v3353_v62 = vmul.f32 %v3352_v61, %v3328_v43 }
 0x404   :  { %v3884_v0 = vpack.c.bf16 %v3850_v26, %v3850_v26  ;;  %v3585_v24 = vadd.f32 1.0, %v4082_v1 }
 0x405   :  { %v8639_v3 = vmin.f32 %v3396_v48, 16.0  ;;  %v4081_v13 = vclamps-f32 %v3353_v62, 1.0  ;;  %v4458_v36 = vpop.eup %4457 }
 0x406   :  { %3919 = vst.msk [vmem:[%s8942_s11 + $0x50] sm:$0xf] %vm3898_vm12, %v3884_v0  ;;  %4100 = vmatmul.msk.bf16.gmra.mxu3 %vm3646_vm3, %v3637_v30  ;;  %v8649_v19 = vadd.f32 1.0, %v4458_v36  ;;  %v3619_v63 = vmul.f32 %v3585_v24, %v2157_v14 }
 0x407   :  { %v3763_v59 = vpop.f32.mrf.mxu3  ;;  %v3409_v18 = vmul.f32 3.8918573e-05, %v8639_v3  ;;  %v3398_v4 = vmul.f32 2.1237322e-06, %v8639_v3  ;;  %v3584_v54 = vadd.f32 1.0, %v4081_v13 }
 0x408   :  { %v3764_v9 = vadd.f32 %v8391_v6, %v3763_v59  ;;  %4459 = vrcp.f32 %v8649_v19  ;;  %vm1746_vm15 = vweird.f32 %v8649_v19  ;;  %v1752_v24 = vand.u32 2147483648, %v8649_v19 }
 0x409   :  { %v3410_v45 = vadd.f32 0.001143296, %v3409_v18  ;;  %v3399_v55 = vadd.f32 0.00028619796, %v3398_v4  ;;  %v3618_v33 = vmul.f32 %v3584_v54, %v2156_v8 }
 0x40a   :  { %v3851_v58 = vadd.f32 %v3817_v39, %v3764_v9  ;;  %v8655_v39 = vadd.f32 %v8597_v52, %v1113_v57  ;;  %v2120_v9 = vpop.f32.mrf.mxu2 }
 0x40b   :  { %v3411_v56 = vmul.f32 %v3410_v45, %v8639_v3  ;;  %v3400_v12 = vmul.f32 %v3399_v55, %v8639_v3  ;;  %v8658_v22 = vadd.f32 %v8606_v2, %v2120_v9  ;;  %v3638_v34 = vpack.c.bf16 %v3619_v63, %v3618_v33 }
 0x40c   :  { %v3885_v5 = vpack.c.bf16 %v3851_v58, %v3851_v58  ;;  %v3993_v60 = vmul.f32 -1.702, %v8655_v39  ;;  %v1750_v55 = vand.u32 2147483647, %v8649_v19 }
 0x40d   :  { %v3412_v26 = vadd.f32 0.014752088, %v3411_v56  ;;  %v3401_v16 = vadd.f32 0.0036580483, %v3400_v12  ;;  %v8664_v35 = vmul.f32 0.70710677, %v8658_v22 }
 0x40e   :  { %3920 = vst.msk [vmem:[%s8942_s11 + $0x54] sm:$0xf] %vm3898_vm12, %v3885_v5  ;;  %v1251_v58 = vmul.f32 1.442695, %v3993_v60  ;;  %v8672_v46 = vpop.eup %4459  ;;  %vm1751_vm11 = vcmp.eq.f32.partialorder %v1750_v55, 8.507059e+37 }
 0x40f   :  { %v3413_v15 = vmul.f32 %v3412_v26, %v8639_v3  ;;  %v3402_v44 = vmul.f32 %v3401_v16, %v8639_v3  ;;  %v3436_v20 = vmul.f32 %v8664_v35, %v8664_v35  ;;  %v1742_v37 = vmul.f32 %v8672_v46, %v8649_v19 }
 0x410   :  { %4461 = vpow2.f32 %v1251_v58  ;;  %vm1747_vm1 = vweird.f32 %v8672_v46  ;;  %v1753_v19 = vor.u32 1.1754944e-38, %v1752_v24 }
 0x411   :  { %v3414_v0 = vadd.f32 0.112945676, %v3413_v15  ;;  %v8675_v5 = vmin.f32 %v3436_v20, 16.0  ;;  %v3403_v41 = vadd.f32 0.05243302, %v3402_v44  ;;  %v1743_v49 = vsub.f32 1.0, %v1742_v37  ;;  %vm8755_vm9 = vmor %vm1746_vm15, %vm1747_vm1 }
 0x413   :  { %v3415_v59 = vmul.f32 %v3414_v0, %v8639_v3  ;;  %v3438_v51 = vmul.f32 2.1237322e-06, %v8675_v5  ;;  %v3449_v25 = vmul.f32 3.8918573e-05, %v8675_v5  ;;  %v1116_v29 = vpop.f32.mrf.mxu0  ;;  %v3404_v17 = vmul.f32 %v3403_v41, %v8639_v3 }
 0x414   :  { %v8692_v61 = vadd.f32 %v8597_v52, %v1116_v29  ;;  %v1744_v62 = vmul.f32 %v8672_v46, %v1743_v49 }
 0x415   :  { %v3416_v32 = vadd.f32 0.4994258, %v3415_v59  ;;  %v3439_v40 = vadd.f32 0.00028619796, %v3438_v51  ;;  %v3450_v50 = vadd.f32 0.001143296, %v3449_v25 }
 0x416   :  { %4101 = vmatmul.msk.bf16.gmra.mxu3 %vm3646_vm3, %v3638_v34  ;;  %v4462_v48 = vpop.eup %4461  ;;  %v3405_v43 = vadd.f32 0.18741608, %v3404_v17  ;;  %v3994_v45 = vmul.f32 -1.702, %v8692_v61  ;;  %v1745_v12 = vadd.f32 %v8672_v46, %v1744_v62 }
 0x417   :  { %v3417_v7 = vmul.f32 %v3416_v32, %v8639_v3  ;;  %v8683_v31 = vadd.f32 1.0, %v4462_v48  ;;  %v3440_v38 = vmul.f32 %v3439_v40, %v8675_v5  ;;  %v3451_v53 = vmul.f32 %v3450_v50, %v8675_v5 }
 0x418   :  { %v1253_v26 = vmul.f32 1.442695, %v3994_v45  ;;  %v3406_v0 = vmul.f32 %v3405_v43, %v8639_v3 }
 0x419   :  { %v8666_v47 = vadd.f32 1.0, %v3417_v7  ;;  %v3441_v21 = vadd.f32 0.0036580483, %v3440_v38  ;;  %v3452_v18 = vadd.f32 0.014752088, %v3451_v53  ;;  %v2123_v56 = vpop.f32.mrf.mxu2  ;;  %v1767_v34 = vand.u32 2147483648, %v8683_v31 }
 0x41a   :  { %v8701_v15 = vadd.f32 %v8606_v2, %v2123_v56  ;;  %v3407_v41 = vadd.f32 1.1283791, %v3406_v0  ;;  %vm1761_vm6 = vweird.f32 %v8683_v31  ;;  %v1765_v25 = vand.u32 2147483647, %v8683_v31 }
 0x41b   :  { %4463 = vrcp.f32 %v8666_v47  ;;  %v3453_v42 = vmul.f32 %v3452_v18, %v8675_v5  ;;  %v3442_v4 = vmul.f32 %v3441_v21, %v8675_v5  ;;  %v1118_v14 = vpop.f32.mrf.mxu0  ;;  %vm3424_vm2 = vweird.f32 %v8666_v47 }
 0x41c   :  { %4465 = vrcp.f32 %v8683_v31  ;;  %v3428_v8 = vand.u32 2147483647, %v8666_v47  ;;  %v8713_v9 = vmul.f32 0.70710677, %v8701_v15  ;;  %v8718_v33 = vadd.f32 %v8597_v52, %v1118_v14 }
 0x41d   :  { %v3454_v1 = vadd.f32 0.112945676, %v3453_v42  ;;  %v3443_v57 = vadd.f32 0.05243302, %v3442_v4  ;;  %4467 = vpow2.f32 %v1253_v26  ;;  %v3430_v16 = vand.u32 2147483648, %v8666_v47 }
 0x41e   :  { %v3476_v7 = vmul.f32 %v8713_v9, %v8713_v9  ;;  %v3995_v20 = vmul.f32 -1.702, %v8718_v33  ;;  %vm3429_vm7 = vcmp.eq.f32.partialorder %v3428_v8, 8.507059e+37  ;;  %v1768_v53 = vor.u32 1.1754944e-38, %v1767_v34 }
 0x41f   :  { %v3455_v59 = vmul.f32 %v3454_v1, %v8675_v5  ;;  %v3444_v58 = vmul.f32 %v3443_v57, %v8675_v5  ;;  %v3431_v17 = vor.u32 1.1754944e-38, %v3430_v16  ;;  %v1749_v18 = vsel %vm8755_vm9, %v8672_v46, %v1745_v12 }
 0x420   :  { %v8745_v29 = vmin.f32 %v3476_v7, 16.0  ;;  %v1255_v38 = vmul.f32 1.442695, %v3995_v20  ;;  %vm1766_vm10 = vcmp.eq.f32.partialorder %v1765_v25, 8.507059e+37  ;;  %v3408_v43 = vmul.f32 %v3407_v41, %v8616_v27 }
 0x421   :  { %v8681_v28 = vpop.eup %4463  ;;  %v3456_v3 = vadd.f32 0.4994258, %v3455_v59  ;;  %v2125_v37 = vpop.f32.mrf.mxu2  ;;  %v3445_v49 = vadd.f32 0.18741608, %v3444_v58 }
 0x422   :  { %v3420_v23 = vmul.f32 %v8681_v28, %v8666_v47  ;;  %v4466_v13 = vpop.eup %4465  ;;  %vm3425_vm0 = vweird.f32 %v8681_v28  ;;  %v8761_v21 = vadd.f32 %v8606_v2, %v2125_v37  ;;  %v3478_v45 = vmul.f32 2.1237322e-06, %v8745_v29 }
 0x423   :  { %v1757_v54 = vmul.f32 %v4466_v13, %v8683_v31  ;;  %vm1762_vm4 = vweird.f32 %v4466_v13  ;;  %v3457_v44 = vmul.f32 %v3456_v3, %v8675_v5  ;;  %vm8729_vm5 = vmor %vm3424_vm2, %vm3425_vm0  ;;  %v4468_v48 = vpop.eup %4467  ;;  %v3489_v62 = vmul.f32 3.8918573e-05, %v8745_v29 }
 0x424   :  { %v3421_v30 = vsub.f32 1.0, %v3420_v23  ;;  %vm8739_vm8 = vmor %vm1761_vm6, %vm1762_vm4  ;;  %v8749_v23 = vadd.f32 1.0, %v4468_v48  ;;  %v1754_v2 = vsel %vm1751_vm11, %v1753_v19, %v1749_v18  ;;  %v3446_v56 = vmul.f32 %v3445_v49, %v8675_v5 }
 0x425   :  { %v1758_v63 = vsub.f32 1.0, %v1757_v54  ;;  %v8743_v47 = vadd.f32 1.0, %v3457_v44  ;;  %v8772_v46 = vmul.f32 0.70710677, %v8761_v21  ;;  %v3490_v26 = vadd.f32 0.001143296, %v3489_v62 }
 0x426   :  { %v3422_v36 = vmul.f32 %v8681_v28, %v3421_v30  ;;  %v1831_v55 = vmul.f32 %v1754_v2, %v8600_v11  ;;  %v3447_v14 = vadd.f32 1.1283791, %v3446_v56  ;;  %v2159_v19 = vmul.f32 0.5, %v8658_v22 }
 0x427   :  { %v1759_v60 = vmul.f32 %v4466_v13, %v1758_v63  ;;  %4469 = vrcp.f32 %v8743_v47  ;;  %v3516_v27 = vmul.f32 %v8772_v46, %v8772_v46  ;;  %v3491_v54 = vmul.f32 %v3490_v26, %v8745_v29 }
 0x428   :  { %v3423_v32 = vadd.f32 %v8681_v28, %v3422_v36  ;;  %4471 = vrcp.f32 %v8749_v23  ;;  %v3479_v36 = vadd.f32 0.00028619796, %v3478_v45  ;;  %v3470_v8 = vand.u32 2147483648, %v8743_v47 }
 0x429   :  { %v1760_v51 = vadd.f32 %v4466_v13, %v1759_v60  ;;  %4473 = vpow2.f32 %v1255_v38  ;;  %v3492_v63 = vadd.f32 0.014752088, %v3491_v54  ;;  %v3468_v3 = vand.u32 2147483647, %v8743_v47 }
 0x42a   :  { %v3427_v40 = vsel %vm8729_vm5, %v8681_v28, %v3423_v32  ;;  %v3480_v11 = vmul.f32 %v3479_v36, %v8745_v29  ;;  %vm3464_vm14 = vweird.f32 %v8743_v47  ;;  %v3471_v52 = vor.u32 1.1754944e-38, %v3470_v8 }
 0x42b   :  { %v1764_v31 = vsel %vm8739_vm8, %v4466_v13, %v1760_v51  ;;  %v3432_v30 = vsel %vm3429_vm7, %v3431_v17, %v3427_v40  ;;  %v3493_v34 = vmul.f32 %v3492_v63, %v8745_v29  ;;  %v3448_v40 = vmul.f32 %v3447_v14, %v8664_v35 }
 0x42c   :  { %v1769_v42 = vsel %vm1766_vm10, %v1768_v53, %v1764_v31  ;;  %v3433_v4 = vmul.f32 %v3432_v30, %v3408_v43  ;;  %v3481_v25 = vadd.f32 0.0036580483, %v3480_v11  ;;  %vm3469_vm1 = vcmp.eq.f32.partialorder %v3468_v3, 8.507059e+37 }
 0x42d   :  { %v1832_v1 = vmul.f32 %v1769_v42, %v8655_v39  ;;  %v4470_v13 = vpop.eup %4469  ;;  %v8784_v39 = vmin.f32 %v3516_v27, 16.0  ;;  %v3494_v51 = vadd.f32 0.112945676, %v3493_v34  ;;  %v2158_v31 = vmul.f32 0.5, %v8609_v10 }
 0x42e   :  { %v8777_v24 = vpop.eup %4471  ;;  %v3460_v0 = vmul.f32 %v4470_v13, %v8743_v47  ;;  %v4083_v5 = vclamps-f32 %v3433_v4, 1.0  ;;  %vm3465_vm13 = vweird.f32 %v4470_v13  ;;  %v3482_v35 = vmul.f32 %v3481_v25, %v8745_v29 }
 0x42f   :  { %v1772_v12 = vmul.f32 %v8777_v24, %v8749_v23  ;;  %v4474_v57 = vpop.eup %4473  ;;  %v1850_v32 = vpack.c.bf16 %v1832_v1, %v1831_v55  ;;  %v3518_v60 = vmul.f32 2.1237322e-06, %v8784_v39  ;;  %v3529_v58 = vmul.f32 3.8918573e-05, %v8784_v39  ;;  %vm3466_vm15 = vmor %vm3464_vm14, %vm3465_vm13 }
 0x430   :  { %v3461_v59 = vsub.f32 1.0, %v3460_v0  ;;  %v8789_v16 = vadd.f32 1.0, %v4474_v57  ;;  %v3586_v44 = vadd.f32 1.0, %v4083_v5  ;;  %v3495_v17 = vmul.f32 %v3494_v51, %v8745_v29 }
 0x431   :  { %2003 = vmatmul.bf16.gmra.mxu1 %v1850_v32  ;;  %v1773_v20 = vsub.f32 1.0, %v1772_v12  ;;  %v3519_v37 = vadd.f32 0.00028619796, %v3518_v60  ;;  %v3530_v48 = vadd.f32 0.001143296, %v3529_v58  ;;  %vm1777_vm2 = vweird.f32 %v8777_v24 }
 0x432   :  { %v3462_v7 = vmul.f32 %v4470_v13, %v3461_v59  ;;  %4475 = vrcp.f32 %v8789_v16  ;;  %v3496_v49 = vadd.f32 0.4994258, %v3495_v17  ;;  %v3620_v43 = vmul.f32 %v3586_v44, %v2158_v31 }
 0x433   :  { %v1774_v28 = vmul.f32 %v8777_v24, %v1773_v20  ;;  %v3520_v47 = vmul.f32 %v3519_v37, %v8784_v39  ;;  %v3531_v18 = vmul.f32 %v3530_v48, %v8784_v39  ;;  %v1782_v2 = vand.u32 2147483648, %v8749_v23 }
 0x434   :  { %v3463_v41 = vadd.f32 %v4470_v13, %v3462_v7  ;;  %v3497_v45 = vmul.f32 %v3496_v49, %v8745_v29  ;;  %vm1776_vm0 = vweird.f32 %v8749_v23  ;;  %v1780_v22 = vand.u32 2147483647, %v8749_v23  ;;  %v1984_v49 = vpop.f32.mrf.mxu1 }
 0x435   :  { %v1775_v62 = vadd.f32 %v8777_v24, %v1774_v28  ;;  %v3532_v4 = vadd.f32 0.014752088, %v3531_v18  ;;  %v3483_v36 = vadd.f32 0.05243302, %v3482_v35  ;;  %vm8812_vm4 = vmor %vm1776_vm0, %vm1777_vm2  ;;  %v1795_v54 = vand.u32 2147483647, %v8789_v16 }
 0x436   :  { %v3467_v50 = vsel %vm3466_vm15, %v4470_v13, %v3463_v41  ;;  %v3498_v1 = vadd.f32 1.0, %v3497_v45  ;;  %v3521_v13 = vadd.f32 0.0036580483, %v3520_v47  ;;  %v1797_v5 = vand.u32 2147483648, %v8789_v16 }
 0x437   :  { %v3472_v38 = vsel %vm3469_vm1, %v3471_v52, %v3467_v50  ;;  %v3533_v27 = vmul.f32 %v3532_v4, %v8784_v39  ;;  %v1779_v14 = vsel %vm8812_vm4, %v8777_v24, %v1775_v62  ;;  %v1783_v59 = vor.u32 1.1754944e-38, %v1782_v2 }
 0x438   :  { %v3473_v53 = vmul.f32 %v3472_v38, %v3448_v40  ;;  %v4476_v30 = vpop.eup %4475  ;;  %4477 = vrcp.f32 %v3498_v1  ;;  %v3522_v8 = vmul.f32 %v3521_v13, %v8784_v39  ;;  %vm1781_vm6 = vcmp.eq.f32.partialorder %v1780_v22, 8.507059e+37 }
 0x439   :  { %v1787_v10 = vmul.f32 %v4476_v30, %v8789_v16  ;;  %vm1792_vm5 = vweird.f32 %v4476_v30  ;;  %v3534_v23 = vadd.f32 0.112945676, %v3533_v27  ;;  %vm1791_vm7 = vweird.f32 %v8789_v16 }
 0x43a   :  { %v4084_v42 = vclamps-f32 %v3473_v53, 1.0  ;;  %v1784_v3 = vsel %vm1781_vm6, %v1783_v59, %v1779_v14  ;;  %vm1793_vm8 = vmor %vm1791_vm7, %vm1792_vm5  ;;  %v1798_v11 = vor.u32 1.1754944e-38, %v1797_v5  ;;  %v3484_v24 = vmul.f32 %v3483_v36, %v8745_v29  ;;  %v8839_v5 = vld [vmem:[%s8940_s6] ss:$0 sm:$0xff] }
 0x43b   :  { %v1788_v26 = vsub.f32 1.0, %v1787_v10  ;;  %v3535_v32 = vmul.f32 %v3534_v23, %v8784_v39  ;;  %vm1796_vm9 = vcmp.eq.f32.partialorder %v1795_v54, 8.507059e+37  ;;  %v3523_v44 = vadd.f32 0.05243302, %v3522_v8  ;;  %v9312_v8 = vld [vmem:[#allocation24_spill] sm:$0xff] }
 0x43c   :  { %v3587_v56 = vadd.f32 1.0, %v4084_v42  ;;  %v1833_v20 = vmul.f32 %v1784_v3, %v8692_v61  ;;  %v3485_v51 = vadd.f32 0.18741608, %v3484_v24  ;;  %v3510_v38 = vand.u32 2147483648, %v3498_v1  ;;  %v1986_v13 = vpop.f32.mrf.mxu1  ;;  %v9313_v24 = vld [vmem:[#allocation25_spill] sm:$0xff] }
 0x43d   :  { %v1789_v12 = vmul.f32 %v4476_v30, %v1788_v26  ;;  %v3536_v7 = vadd.f32 0.4994258, %v3535_v32  ;;  %v3524_v48 = vmul.f32 %v3523_v44, %v8784_v39  ;;  %vm3504_vm11 = vweird.f32 %v3498_v1 }
 0x43e   :  { %v3621_v55 = vmul.f32 %v3587_v56, %v2159_v19  ;;  %v4478_v34 = vpop.eup %4477  ;;  %v3486_v17 = vmul.f32 %v3485_v51, %v8745_v29  ;;  %v3508_v28 = vand.u32 2147483647, %v3498_v1  ;;  %v3511_v18 = vor.u32 1.1754944e-38, %v3510_v38  ;;  %v8861_v51 = vld [vmem:[%s8941_s10] ss:$0 sm:$0xff] }
 0x43f   :  { %v1790_v63 = vadd.f32 %v4476_v30, %v1789_v12  ;;  %v3500_v41 = vmul.f32 %v4478_v34, %v3498_v1  ;;  %v3537_v52 = vmul.f32 %v3536_v7, %v8784_v39  ;;  %vm3505_vm10 = vweird.f32 %v4478_v34 }
 0x440   :  { %v3639_v57 = vpack.c.bf16 %v3621_v55, %v3620_v43  ;;  %v3525_v61 = vadd.f32 0.18741608, %v3524_v48  ;;  %vm3506_vm13 = vmor %vm3504_vm11, %vm3505_vm10  ;;  %vm3509_vm14 = vcmp.eq.f32.partialorder %v3508_v28, 8.507059e+37  ;;  %v2160_v55 = vmul.f32 0.5, %v8701_v15 }
 0x441   :  { %v1794_v60 = vsel %vm1793_vm8, %v4476_v30, %v1790_v63  ;;  %v3501_v25 = vsub.f32 1.0, %v3500_v41  ;;  %v3538_v40 = vadd.f32 1.0, %v3537_v52  ;;  %v2161_v0 = vmul.f32 0.5, %v8761_v21 }
 0x442   :  { %4102 = vmatmul.msk.bf16.gmra.mxu3 %vm3646_vm3, %v3639_v57  ;;  %v1799_v58 = vsel %vm1796_vm9, %v1798_v11, %v1794_v60  ;;  %v3526_v30 = vmul.f32 %v3525_v61, %v8784_v39  ;;  %v1985_v14 = vadd.f32 %v8839_v5, %v1984_v49  ;;  %v1987_v21 = vadd.f32 %v8839_v5, %v1986_v13 }
 0x443   :  { %v1834_v16 = vmul.f32 %v1799_v58, %v8718_v33  ;;  %v3502_v50 = vmul.f32 %v4478_v34, %v3501_v25  ;;  %4479 = vrcp.f32 %v3538_v40  ;;  %v3487_v33 = vadd.f32 1.1283791, %v3486_v17  ;;  %v9315_v17 = vld [vmem:[#allocation30_spill] sm:$0xff] }
 0x444   :  { %v3527_v42 = vadd.f32 1.1283791, %v3526_v30  ;;  %v3550_v45 = vand.u32 2147483648, %v3538_v40  ;;  %v3548_v2 = vand.u32 2147483647, %v3538_v40  ;;  %vm3544_vm1 = vweird.f32 %v3538_v40 }
 0x445   :  { %v1851_v37 = vpack.c.bf16 %v1834_v16, %v1833_v20  ;;  %v3503_v31 = vadd.f32 %v4478_v34, %v3502_v50  ;;  %v3488_v43 = vmul.f32 %v3487_v33, %v8713_v9  ;;  %v3818_v63 = vadd.f32 %v9312_v8, %v1985_v14  ;;  %v9314_v16 = vld [vmem:[#allocation26_spill] sm:$0xff]  ;;  %v9320_v8 = vld [vmem:[#allocation36_spill] sm:$0xff] }
 0x446   :  { %v3551_v56 = vor.u32 1.1754944e-38, %v3550_v45  ;;  %v3528_v26 = vmul.f32 %v3527_v42, %v8772_v46  ;;  %vm3549_vm0 = vcmp.eq.f32.partialorder %v3548_v2, 8.507059e+37  ;;  %v3819_v60 = vadd.f32 %v9313_v24, %v1987_v21  ;;  %v9317_v45 = vld [vmem:[#allocation31_spill] sm:$0xff] }
 0x447   :  { %2008 = vmatmul.bf16.gmra.mxu1 %v1851_v37  ;;  %v3507_v53 = vsel %vm3506_vm13, %v4478_v34, %v3503_v31 }
 0x448   :  { %v3512_v35 = vsel %vm3509_vm14, %v3511_v18, %v3507_v53 }
 0x449   :  { %v4480_v47 = vpop.eup %4479  ;;  %v3513_v10 = vmul.f32 %v3512_v35, %v3488_v43 }
 0x44a   :  { %v3540_v19 = vmul.f32 %v4480_v47, %v3538_v40  ;;  %vm3545_vm15 = vweird.f32 %v4480_v47  ;;  %v1989_v57 = vpop.f32.mrf.mxu1 }
 0x44b   :  { %vm3546_vm2 = vmor %vm3544_vm1, %vm3545_vm15  ;;  %v4085_v1 = vclamps-f32 %v3513_v10, 1.0  ;;  %v1990_v44 = vadd.f32 %v8839_v5, %v1989_v57 }
 0x44c   :  { %v3541_v29 = vsub.f32 1.0, %v3540_v19 }
 0x44d   :  { %v3588_v9 = vadd.f32 1.0, %v4085_v1  ;;  %v3820_v52 = vadd.f32 %v9314_v16, %v1990_v44 }
 0x44e   :  { %v3542_v62 = vmul.f32 %v4480_v47, %v3541_v29 }
 0x44f   :  { %v3622_v46 = vmul.f32 %v3588_v9, %v2160_v55 }
 0x450   :  { %v3543_v4 = vadd.f32 %v4480_v47, %v3542_v62 }
 0x452   :  { %v3547_v39 = vsel %vm3546_vm2, %v4480_v47, %v3543_v4  ;;  %v1991_v34 = vpop.f32.mrf.mxu1  ;;  %v9316_v47 = vld [vmem:[#allocation33_spill] sm:$0xff] }
 0x453   :  { %v3552_v22 = vsel %vm3549_vm0, %v3551_v56, %v3547_v39  ;;  %v1992_v48 = vadd.f32 %v8839_v5, %v1991_v34 }
 0x454   :  { %v3553_v36 = vmul.f32 %v3552_v22, %v3528_v26  ;;  %v9318_v26 = vld [vmem:[#allocation34_spill] sm:$0xff] }
 0x455   :  { %v3821_v31 = vadd.f32 %v9315_v17, %v1992_v48 }
 0x456   :  { %v4086_v27 = vclamps-f32 %v3553_v36, 1.0 }
 0x458   :  { %v3589_v54 = vadd.f32 1.0, %v4086_v27 }
 0x45a   :  { %v3623_v12 = vmul.f32 %v3589_v54, %v2161_v0  ;;  %v9319_v0 = vld [vmem:[#allocation35_spill] sm:$0xff] }
 0x45c   :  { %v3640_v23 = vpack.c.bf16 %v3623_v12, %v3622_v46 }
 0x45e   :  { %4103 = vmatmul.msk.bf16.gmra.mxu3 %vm3646_vm3, %v3640_v23 }
 0x465   :  { %v1994_v37 = vpop.f32.mrf.mxu1 }
 0x466   :  { %v1995_v28 = vadd.f32 %v8839_v5, %v1994_v37 }
 0x468   :  { %v3822_v18 = vadd.f32 %v9316_v47, %v1995_v28 }
 0x469   :  { %v3766_v59 = vpop.f32.mrf.mxu3 }
 0x46a   :  { %v3767_v32 = vadd.f32 %v8391_v6, %v3766_v59 }
 0x46c   :  { %v3852_v15 = vadd.f32 %v3818_v63, %v3767_v32 }
 0x46d   :  { %v1996_v53 = vpop.f32.mrf.mxu1 }
 0x46e   :  { %v3886_v3 = vpack.c.bf16 %v3852_v15, %v3852_v15  ;;  %v1997_v35 = vadd.f32 %v8839_v5, %v1996_v53 }
 0x470   :  { %3921 = vst.msk [vmem:[%s8942_s11 + $0x58] sm:$0xf] %vm3898_vm12, %v3886_v3  ;;  %v3823_v10 = vadd.f32 %v9317_v45, %v1997_v35 }
 0x471   :  { %v3768_v11 = vpop.f32.mrf.mxu3 }
 0x472   :  { %v3769_v7 = vadd.f32 %v8391_v6, %v3768_v11 }
 0x474   :  { %v3853_v58 = vadd.f32 %v3819_v60, %v3769_v7  ;;  %v9321_v60 = vld [vmem:[#allocation41_spill] sm:$0xff] }
 0x475   :  { %v1999_v29 = vpop.f32.mrf.mxu1 }
 0x476   :  { %v3887_v20 = vpack.c.bf16 %v3853_v58, %v3853_v58  ;;  %v2000_v4 = vadd.f32 %v8839_v5, %v1999_v29 }
 0x478   :  { %3922 = vst.msk [vmem:[%s8942_s11 + $0x5c] sm:$0xf] %vm3898_vm12, %v3887_v20  ;;  %v3824_v39 = vadd.f32 %v9318_v26, %v2000_v4 }
 0x479   :  { %v3771_v41 = vpop.f32.mrf.mxu3 }
 0x47a   :  { %v3772_v6 = vadd.f32 %v8861_v51, %v3771_v41 }
 0x47c   :  { %v3854_v25 = vadd.f32 %v3820_v52, %v3772_v6  ;;  %v9322_v52 = vld [vmem:[#allocation42_spill] sm:$0xff] }
 0x47d   :  { %v2001_v22 = vpop.f32.mrf.mxu1 }
 0x47e   :  { %v3888_v40 = vpack.c.bf16 %v3854_v25, %v3854_v25  ;;  %v2002_v9 = vadd.f32 %v8839_v5, %v2001_v22 }
 0x480   :  { %3923 = vst.msk [vmem:[%s8942_s11 + $0x60] sm:$0xf] %vm3898_vm12, %v3888_v40  ;;  %v3825_v54 = vadd.f32 %v9319_v0, %v2002_v9 }
 0x481   :  { %v3773_v50 = vpop.f32.mrf.mxu3 }
 0x482   :  { %v3774_v38 = vadd.f32 %v8861_v51, %v3773_v50 }
 0x484   :  { %v3855_v61 = vadd.f32 %v3821_v31, %v3774_v38  ;;  %v9323_v31 = vld [vmem:[#allocation28_spill] sm:$0xff] }
 0x486   :  { %v3889_v33 = vpack.c.bf16 %v3855_v61, %v3855_v61 }
 0x488   :  { %3924 = vst.msk [vmem:[%s8942_s11 + $0x64] sm:$0xf] %vm3898_vm12, %v3889_v33 }
 0x489   :  { %v3776_v49 = vpop.f32.mrf.mxu3 }
 0x48a   :  { %v3777_v30 = vadd.f32 %v8861_v51, %v3776_v49 }
 0x48c   :  { %v3856_v19 = vadd.f32 %v3822_v18, %v3777_v30 }
 0x48e   :  { %v3890_v43 = vpack.c.bf16 %v3856_v19, %v3856_v19 }
 0x490   :  { %3925 = vst.msk [vmem:[%s8942_s11 + $0x68] sm:$0xf] %vm3898_vm12, %v3890_v43 }
 0x491   :  { %v3778_v42 = vpop.f32.mrf.mxu3 }
 0x492   :  { %v3779_v62 = vadd.f32 %v8861_v51, %v3778_v42 }
 0x494   :  { %v3857_v2 = vadd.f32 %v3823_v10, %v3779_v62 }
 0x496   :  { %v3891_v56 = vpack.c.bf16 %v3857_v2, %v3857_v2 }
 0x498   :  { %3926 = vst.msk [vmem:[%s8942_s11 + $0x6c] sm:$0xf] %vm3898_vm12, %v3891_v56 }
 0x499   :  { %v3781_v1 = vpop.f32.mrf.mxu3 }
 0x49a   :  { %v3782_v13 = vadd.f32 %v8861_v51, %v3781_v1 }
 0x49c   :  { %v3858_v36 = vadd.f32 %v3824_v39, %v3782_v13 }
 0x49e   :  { %v3892_v27 = vpack.c.bf16 %v3858_v36, %v3858_v36 }
 0x4a0   :  { %3927 = vst.msk [vmem:[%s8942_s11 + $0x70] sm:$0xf] %vm3898_vm12, %v3892_v27 }
 0x4a1   :  { %v3783_v55 = vpop.f32.mrf.mxu3 }
 0x4a2   :  { %v3784_v14 = vadd.f32 %v8861_v51, %v3783_v55 }
 0x4a4   :  { %v3859_v46 = vadd.f32 %v3825_v54, %v3784_v14 }
 0x4a6   :  { %v3893_v12 = vpack.c.bf16 %v3859_v46, %v3859_v46 }
 0x4a8   :  { %3928 = vst.msk [vmem:[%s8942_s11 + $0x74] sm:$0xf] %vm3898_vm12, %v3893_v12 }
 0x4ae   :  { %v2004_v23 = vpop.f32.mrf.mxu1 }
 0x4af   :  { %v2005_v57 = vadd.f32 %v8839_v5, %v2004_v23 }
 0x4b1   :  { %v3826_v63 = vadd.f32 %v9320_v8, %v2005_v57 }
 0x4b6   :  { %v2006_v15 = vpop.f32.mrf.mxu1 }
 0x4b7   :  { %v2007_v3 = vadd.f32 %v8839_v5, %v2006_v15 }
 0x4b9   :  { %v3827_v7 = vadd.f32 %v9321_v60, %v2007_v3 }
 0x4c4   :  { %v2009_v20 = vpop.f32.mrf.mxu1 }
 0x4c5   :  { %v3786_v59 = vpop.f32.mrf.mxu3  ;;  %v2010_v41 = vadd.f32 %v8839_v5, %v2009_v20 }
 0x4c6   :  { %v3787_v32 = vadd.f32 %v8861_v51, %v3786_v59 }
 0x4c7   :  { %v3828_v6 = vadd.f32 %v9322_v52, %v2010_v41 }
 0x4c8   :  { %v3860_v21 = vadd.f32 %v3826_v63, %v3787_v32 }
 0x4ca   :  { %v3894_v11 = vpack.c.bf16 %v3860_v21, %v3860_v21 }
 0x4cc   :  { %3929 = vst.msk [vmem:[%s8942_s11 + $0x78] sm:$0xf] %vm3898_vm12, %v3894_v11  ;;  %v2011_v37 = vpop.f32.mrf.mxu1 }
 0x4cd   :  { %v3788_v24 = vpop.f32.mrf.mxu3  ;;  %v2012_v40 = vadd.f32 %v8839_v5, %v2011_v37 }
 0x4ce   :  { %v3789_v34 = vadd.f32 %v8861_v51, %v3788_v24 }
 0x4cf   :  { %v3829_v38 = vadd.f32 %v9323_v31, %v2012_v40 }
 0x4d0   :  { %v3861_v58 = vadd.f32 %v3827_v7, %v3789_v34 }
 0x4d2   :  { %v3895_v44 = vpack.c.bf16 %v3861_v58, %v3861_v58 }
 0x4d4   :  { %3930 = vst.msk [vmem:[%s8942_s11 + $0x7c] sm:$0xf] %vm3898_vm12, %v3895_v44 }
 0x4e1   :  { %v3791_v16 = vpop.f32.mrf.mxu3 }
 0x4e2   :  { %v3792_v25 = vadd.f32 %v8861_v51, %v3791_v16 }
 0x4e4   :  { %v3862_v48 = vadd.f32 %v3828_v6, %v3792_v25 }
 0x4e6   :  { %v3896_v50 = vpack.c.bf16 %v3862_v48, %v3862_v48 }
 0x4e8   :  { %3931 = vst.msk [vmem:[%s8942_s11 + $0x80] sm:$0xf] %vm3898_vm12, %v3896_v50 }
 0x4e9   :  { %v3793_v17 = vpop.f32.mrf.mxu3 }
 0x4ea   :  { %v3794_v61 = vadd.f32 %v8861_v51, %v3793_v17 }
 0x4ec   :  { %v3863_v28 = vadd.f32 %v3829_v38, %v3794_v61 }
 0x4ee   :  { %v3897_v33 = vpack.c.bf16 %v3863_v28, %v3863_v28 }
 0x4f0   :  { %3932 = vst.msk [vmem:[%s8942_s11 + $0x84] sm:$0xf] %vm3898_vm12, %v3897_v33 }

</bundles_post_ra>
